<compile_context>
chip_gen: v6e
topology: v6e:2x2x1
jax: 0.10.0
libtpu: 0.0.40
codegen_flags: <defaults>
</compile_context>

<pallas_src>
import jax
import jax.numpy as jnp
from jax import lax
from jax.experimental import pallas as pl
from jax.experimental.pallas import tpu as pltpu

EPS = 1e-5          # PyTorch BatchNorm2d default eps
LANE = 128


# ----------------------------- small helpers -----------------------------

def _round_up(x, m):
    return (x + m - 1) // m * m


def _vmem_limit_bytes():
    """Generation-aware scoped-VMEM limit: ~48 MiB on v7x (64 MiB VMEM), ~96 MiB on v5e/v6e."""
    cap = 64 * 1024 * 1024
    try:
        cap = int(getattr(pltpu.get_tpu_info(), "vmem_capacity_bytes", cap))
    except Exception:
        pass
    return max(32 * 1024 * 1024, min(cap * 3 // 4, 100 * 1024 * 1024))


def _pick_tile_rows(h, n, per_row_bytes, budget_bytes, min_programs=2):
    """Largest divisor of H whose working set fits the budget, keeping >=2 grid programs."""
    divs = [d for d in range(1, h + 1) if h % d == 0]
    fits = [d for d in divs if (d + 2) * per_row_bytes <= budget_bytes] or [1]
    pref = [d for d in fits if n * (h // d) >= min_programs] or fits
    return max(pref)


def _pad_last(a, cp):
    c = a.shape[-1]
    if c == cp:
        return a
    return jnp.pad(a, [(0, 0)] * (a.ndim - 1) + [(0, cp - c)])


def _pad_vec(v, cp):
    return jnp.pad(v.astype(jnp.float32), (0, cp - v.shape[0]))


def _pad_w3x3(w, cinp, coutp):
    """(3,3,Cin,Cout) HWIO -> (9, Cinp, Coutp) bf16, k = dy*3 + dx."""
    kh, kw, ci, co = w.shape
    w = jnp.pad(w, ((0, 0), (0, 0), (0, cinp - ci), (0, coutp - co)))
    return w.reshape(kh * kw, cinp, coutp).astype(jnp.bfloat16)


def _pad_mat(w, cinp, coutp):
    ci, co = w.shape
    return jnp.pad(w, ((0, cinp - ci), (0, coutp - co))).astype(jnp.bfloat16)


def _bn_affine(st, gamma_p, beta_p, count):
    """Reduce per-tile (sum, sum_sq) to a per-channel affine: y*scale + shift == BN(y)."""
    tot = jnp.sum(st.astype(jnp.float32), axis=(0, 1))        # (8, Cp); rows 0,1 used
    mean = tot[0] / count
    var = jnp.maximum(tot[1] / count - mean * mean, 0.0)      # biased var, clamp cancellation
    scale = gamma_p * lax.rsqrt(var + EPS)
    shift = beta_p - mean * scale
    return scale[None, :], shift[None, :]                     # (1, Cp) f32 each


# ------------------------------- kernel helpers ---------------------------

def _fill_halo(xpad_ref, top, mid, bot, r, nh):
    """Assemble the zero-padded (TH+2, W+2, Cin) halo tile in VMEM scratch and return it."""
    thp2, wp2, cin = xpad_ref.shape
    th, w = thp2 - 2, wp2 - 2
    zcol = jnp.zeros((thp2, 1, cin), xpad_ref.dtype)
    xpad_ref[:, 0:1, :] = zcol                  # left  zero-padding column
    xpad_ref[:, w + 1:w + 2, :] = zcol          # right zero-padding column
    xpad_ref[0:1, 1:w + 1, :] = top             # top halo row (clamped read; zeroed below if border)
    xpad_ref[1:th + 1, 1:w + 1, :] = mid        # tile interior
    xpad_ref[th + 1:th + 2, 1:w + 1, :] = bot   # bottom halo row

    zrow = jnp.zeros((1, wp2, cin), xpad_ref.dtype)

    @pl.when(r == 0)
    def _():
        xpad_ref[0:1, :, :] = zrow              # true image top border

    @pl.when(r == nh - 1)
    def _():
        xpad_ref[th + 1:th + 2, :, :] = zrow    # true image bottom border

    return xpad_ref[...]


def _conv3x3_acc(xt, w_ref):
    """3x3 SAME conv of one halo tile as 9 matmuls (bf16 x bf16 -> f32)."""
    thp2, wp2, cin = xt.shape
    th, w = thp2 - 2, wp2 - 2
    cout = w_ref.shape[-1]
    # Hoist the 3 column-shifted views once (3 relayouts instead of 9); the dy slices inside the
    # loop are cheap major-axis slices at offsets that are multiples of W.
    xs = [xt[:, dx:dx + w, :].reshape(thp2 * w, cin) for dx in range(3)]
    acc = jnp.zeros((th * w, cout), jnp.float32)
    for dy in range(3):
        lo = dy * w
        for dx in range(3):
            acc = acc + jnp.dot(xs[dx][lo:lo + th * w, :], w_ref[dy * 3 + dx],
                                preferred_element_type=jnp.float32)
    return acc


def _partial_stats(acc):
    """Per-channel (sum, sum_sq) of this tile's f32 accumulator, padded to 8 sublanes."""
    s = jnp.sum(acc, axis=0, keepdims=True)
    ss = jnp.sum(acc * acc, axis=0, keepdims=True)
    pad = jnp.zeros((6, acc.shape[-1]), jnp.float32)
    return jnp.concatenate([s, ss, pad], axis=0)              # (8, Cp)


# ------------------------------- kernels ---------------------------------

def _conv_kernel(top_ref, mid_ref, bot_ref, w_ref, y_ref, st_ref, xpad_ref):
    r, nh = pl.program_id(1), pl.num_programs(1)
    xt = _fill_halo(xpad_ref, top_ref[0], mid_ref[0], bot_ref[0], r, nh)
    acc = _conv3x3_acc(xt, w_ref)
    th, w = mid_ref.shape[1], mid_ref.shape[2]
    y_ref[0] = acc.reshape(th, w, -1).astype(y_ref.dtype)
    st_ref[0, 0] = _partial_stats(acc)


def _conv_ds_kernel(top_ref, mid_ref, bot_ref, w_ref, wd_ref,
                    y_ref, yd_ref, st_ref, std_ref, xpad_ref):
    r, nh = pl.program_id(1), pl.num_programs(1)
    mid = mid_ref[0]
    th, w, cin = mid.shape
    xt = _fill_halo(xpad_ref, top_ref[0], mid, bot_ref[0], r, nh)
    acc = _conv3x3_acc(xt, w_ref)
    accd = jnp.dot(mid.reshape(th * w, cin), wd_ref[...],     # 1x1 skip conv on the interior
                   preferred_element_type=jnp.float32)
    y_ref[0] = acc.reshape(th, w, -1).astype(y_ref.dtype)
    yd_ref[0] = accd.reshape(th, w, -1).astype(yd_ref.dtype)
    st_ref[0, 0] = _partial_stats(acc)
    std_ref[0, 0] = _partial_stats(accd)


def _conv_act_kernel(top_ref, mid_ref, bot_ref, w_ref, sc_ref, sh_ref, y_ref, st_ref, xpad_ref):
    # conv2: fused BN1-apply + ReLU prologue; padding rows/cols are written as true zeros
    # after the affine (see _fill_halo), preserving SAME-padding semantics.
    r, nh = pl.program_id(1), pl.num_programs(1)
    sc, sh = sc_ref[0], sh_ref[0]

    def act(v):
        return jnp.maximum(v.astype(jnp.float32) * sc + sh, 0.0).astype(v.dtype)

    xt = _fill_halo(xpad_ref, act(top_ref[0]), act(mid_ref[0]), act(bot_ref[0]), r, nh)
    acc = _conv3x3_acc(xt, w_ref)
    th, w = mid_ref.shape[1], mid_ref.shape[2]
    y_ref[0] = acc.reshape(th, w, -1).astype(y_ref.dtype)
    st_ref[0, 0] = _partial_stats(acc)


def _bn_add_relu_id_kernel(y2_ref, xres_ref, sc_ref, sh_ref, o_ref):
    o = (y2_ref[0].astype(jnp.float32) * sc_ref[0] + sh_ref[0]
         + xres_ref[0].astype(jnp.float32))
    o_ref[0] = jnp.maximum(o, 0.0).astype(o_ref.dtype)


def _bn_add_relu_ds_kernel(y2_ref, yd_ref, sc2_ref, sh2_ref, scd_ref, shd_ref, o_ref):
    o = (y2_ref[0].astype(jnp.float32) * sc2_ref[0] + sh2_ref[0]
         + yd_ref[0].astype(jnp.float32) * scd_ref[0] + shd_ref[0])
    o_ref[0] = jnp.maximum(o, 0.0).astype(o_ref.dtype)


# --------------------------- pallas_call wrappers -------------------------

def _compiler_params(vmem_limit):
    return pltpu.CompilerParams(dimension_semantics=("parallel", "parallel"),
                                vmem_limit_bytes=vmem_limit)


def _conv_stage(x_src, wk, th, vmem_limit, *, sc=None, sh=None, wdk=None):
    """One 3x3 conv stage (optionally with fused BN-ReLU prologue or fused 1x1 skip conv)."""
    n, h, w, cin = x_src.shape
    nh = h // th
    cout = wk.shape[-1]
    grid = (n, nh)

    top_spec = pl.BlockSpec((1, 1, w, cin),
                            lambda i, r: (i, jnp.maximum(r * th - 1, 0), 0, 0))
    mid_spec = pl.BlockSpec((1, th, w, cin), lambda i, r: (i, r, 0, 0))
    bot_spec = pl.BlockSpec((1, 1, w, cin),
                            lambda i, r: (i, jnp.minimum(r * th + th, h - 1), 0, 0))
    w_spec = pl.BlockSpec(wk.shape, lambda i, r: (0, 0, 0))
    vec_spec = pl.BlockSpec((1, cin), lambda i, r: (0, 0))
    y_spec = pl.BlockSpec((1, th, w, cout), lambda i, r: (i, r, 0, 0))
    st_spec = pl.BlockSpec((1, 1, 8, cout), lambda i, r: (i, r, 0, 0))

    y_shape = jax.ShapeDtypeStruct((n, h, w, cout), jnp.bfloat16)
    st_shape = jax.ShapeDtypeStruct((n, nh, 8, cout), jnp.float32)
    scratch = [pltpu.VMEM((th + 2, w + 2, cin), jnp.bfloat16)]
    cp = _compiler_params(vmem_limit)

    if wdk is not None:
        wd_spec = pl.BlockSpec(wdk.shape, lambda i, r: (0, 0))
        return pl.pallas_call(
            _conv_ds_kernel, grid=grid,
            in_specs=[top_spec, mid_spec, bot_spec, w_spec, wd_spec],
            out_specs=(y_spec, y_spec, st_spec, st_spec),
            out_shape=(y_shape, y_shape, st_shape, st_shape),
            scratch_shapes=scratch, compiler_params=cp,
        )(x_src, x_src, x_src, wk, wdk)

    if sc is not None:
        return pl.pallas_call(
            _conv_act_kernel, grid=grid,
            in_specs=[top_spec, mid_spec, bot_spec, w_spec, vec_spec, vec_spec],
            out_specs=(y_spec, st_spec),
            out_shape=(y_shape, st_shape),
            scratch_shapes=scratch, compiler_params=cp,
        )(x_src, x_src, x_src, wk, sc, sh)

    return pl.pallas_call(
        _conv_kernel, grid=grid,
        in_specs=[top_spec, mid_spec, bot_spec, w_spec],
        out_specs=(y_spec, st_spec),
        out_shape=(y_shape, st_shape),
        scratch_shapes=scratch, compiler_params=cp,
    )(x_src, x_src, x_src, wk)


def _epilogue(y2, res, affines, th, vmem_limit, downsample):
    """BN2 (+ BN_d) + residual add + ReLU, tiled over rows (pure mem-bound elementwise)."""
    n, h, w, cp = y2.shape
    nh = h // th
    grid = (n, nh)
    row_spec = pl.BlockSpec((1, th, w, cp), lambda i, r: (i, r, 0, 0))
    vec_spec = pl.BlockSpec((1, cp), lambda i, r: (0, 0))
    out_shape = jax.ShapeDtypeStruct((n, h, w, cp), jnp.float32)
    params = _compiler_params(vmem_limit)

    if downsample:
        sc2, sh2, scd, shd = affines
        return pl.pallas_call(
            _bn_add_relu_ds_kernel, grid=grid,
            in_specs=[row_spec, row_spec, vec_spec, vec_spec, vec_spec, vec_spec],
            out_specs=row_spec, out_shape=out_shape, compiler_params=params,
        )(y2, res, sc2, sh2, scd, shd)

    sc2, sh2 = affines
    return pl.pallas_call(
        _bn_add_relu_id_kernel, grid=grid,
        in_specs=[row_spec, row_spec, vec_spec, vec_spec],
        out_specs=row_spec, out_shape=out_shape, compiler_params=params,
    )(y2, res, sc2, sh2)


# ------------------------------- forward ----------------------------------

def resnet_cell_forward(x_nchw, params):
    n, cin, h, w = x_nchw.shape
    cout = params["w1"].shape[-1]
    cinp, coutp = _round_up(cin, LANE), _round_up(cout, LANE)
    cmax = max(cinp, coutp)
    downsample = cin != cout
    count = float(n * h * w)

    vmem_limit = _vmem_limit_bytes()
    # Conv row-tile: largest divisor of H fitting ~half the VMEM budget (weights subtracted),
    # while keeping >=2 grid programs for v7x megacore.
    conv_row_bytes = w * 30 * cmax
    conv_fixed = 40 * cmax * cmax
    th_c = _pick_tile_rows(h, n, conv_row_bytes, vmem_limit // 2 - conv_fixed)
    # Epilogue row-tile: as large as fits (pure HBM-bandwidth pass).
    th_e = _pick_tile_rows(h, n, w * coutp * 16, vmem_limit // 2)

    # Single fused producer: NCHW -> NHWC, channel pad, bf16 (one HBM copy of x).
    x_p = _pad_last(jnp.transpose(x_nchw, (0, 2, 3, 1)), cinp).astype(jnp.bfloat16)

    w1k = _pad_w3x3(params["w1"], cinp, coutp)                 # (9, Cinp, Coutp) bf16
    w2k = _pad_w3x3(params["w2"], coutp, coutp)
    g1, be1 = _pad_vec(params["g1"], coutp), _pad_vec(params["be1"], coutp)
    g2, be2 = _pad_vec(params["g2"], coutp), _pad_vec(params["be2"], coutp)

    # ---- stage 1: conv1 (+ optional fused 1x1 skip conv) + partial BN stats ----
    if downsample:
        wdk = _pad_mat(params["wd"], cinp, coutp)
        y1, yd, st1, std = _conv_stage(x_p, w1k, th_c, vmem_limit, wdk=wdk)
        scd, shd = _bn_affine(std, _pad_vec(params["gd"], coutp),
                              _pad_vec(params["bed"], coutp), count)
    else:
        y1, st1 = _conv_stage(x_p, w1k, th_c, vmem_limit)
    sc1, sh1 = _bn_affine(st1, g1, be1, count)

    # ---- stage 2: conv2 with fused BN1-apply + ReLU prologue + partial BN stats ----
    y2, st2 = _conv_stage(y1, w2k, th_c, vmem_limit, sc=sc1, sh=sh1)
    sc2, sh2 = _bn_affine(st2, g2, be2, count)

    # ---- fused epilogue: BN2 (+ BN_d) + residual add + ReLU ----
    if downsample:
        out = _epilogue(y2, yd, (sc2, sh2, scd, shd), th_e, vmem_limit, True)
    else:
        out = _epilogue(y2, x_p, (sc2, sh2), th_e, vmem_limit, False)   # Cinp == Coutp here

    return jnp.transpose(out[..., :cout], (0, 3, 1, 2))                 # back to NCHW f32


# --------------------- pure-JAX reference (sanity check) -------------------

def _bn_ref(y, gamma, beta):
    mean = jnp.mean(y, axis=(0, 1, 2), keepdims=True)
    var = jnp.mean((y - mean) ** 2, axis=(0, 1, 2), keepdims=True)
    return (y - mean) * lax.rsqrt(var + EPS) * gamma + beta


def resnet_cell_reference(x_nchw, params):
    cin = x_nchw.shape[1]
    cout = params["w1"].shape[-1]
    x = jnp.transpose(x_nchw, (0, 2, 3, 1)).astype(jnp.float32)
    dn = ("NHWC", "HWIO", "NHWC")

    y1 = lax.conv_general_dilated(x, params["w1"], (1, 1), "SAME", dimension_numbers=dn)
    h1 = jnp.maximum(_bn_ref(y1, params["g1"], params["be1"]), 0.0)
    y2 = lax.conv_general_dilated(h1, params["w2"], (1, 1), "SAME", dimension_numbers=dn)
    y2 = _bn_ref(y2, params["g2"], params["be2"])

    if cin != cout:
        yd = jnp.einsum("nhwc,co->nhwo", x, params["wd"])
        yd = _bn_ref(yd, params["gd"], params["bed"])
    else:
        yd = x

    out = jnp.maximum(y2 + yd, 0.0)
    return jnp.transpose(out, (0, 3, 1, 2))


def init_params(key, in_channels, out_channels):
    # Conv biases intentionally omitted: bias -> training-mode BN is a mathematical no-op.
    ks = jax.random.split(key, 8)
    p = {
        "w1": 0.1 * jax.random.normal(ks[0], (3, 3, in_channels, out_channels), jnp.float32),
        "g1": 1.0 + 0.1 * jax.random.normal(ks[1], (out_channels,), jnp.float32),
        "be1": 0.1 * jax.random.normal(ks[2], (out_channels,), jnp.float32),
        "w2": 0.1 * jax.random.normal(ks[3], (3, 3, out_channels, out_channels), jnp.float32),
        "g2": 1.0 + 0.1 * jax.random.normal(ks[4], (out_channels,), jnp.float32),
        "be2": 0.1 * jax.random.normal(ks[5], (out_channels,), jnp.float32),
    }
    if in_channels != out_channels:
        p["wd"] = 0.1 * jax.random.normal(ks[6], (in_channels, out_channels), jnp.float32)
        p["gd"] = 1.0 + 0.1 * jax.random.normal(ks[7], (out_channels,), jnp.float32)
        p["bed"] = jnp.zeros((out_channels,), jnp.float32)
    return p


if __name__ == "__main__":
    key = jax.random.PRNGKey(0)
    kx, kp, kp2 = jax.random.split(key, 3)

    # downsample path (in_channels != out_channels)
    N, Cin, Cout, H, W = 2, 4, 8, 16, 16
    x = jax.random.normal(kx, (N, Cin, H, W), jnp.float32)
    params = init_params(kp, Cin, Cout)
    out = jax.block_until_ready(jax.jit(resnet_cell_forward)(x, params))
    ref = resnet_cell_reference(x, params)
    assert out.shape == (N, Cout, H, W)
    # bf16 MXU operands vs f32 reference -> loose-ish tolerance
    assert jnp.allclose(out, ref, rtol=5e-2, atol=5e-2), "downsample path mismatch"

    # identity-skip path (in_channels == out_channels)
    x_id = jax.random.normal(kx, (N, Cout, H, W), jnp.float32)
    params_id = init_params(kp2, Cout, Cout)
    out_id = jax.block_until_ready(jax.jit(resnet_cell_forward)(x_id, params_id))
    ref_id = resnet_cell_reference(x_id, params_id)
    assert jnp.allclose(out_id, ref_id, rtol=5e-2, atol=5e-2), "identity path mismatch"

    print("KERNEL_OK")
</pallas_src>

<mosaic_0001>
module attributes {stable_mosaic.version = 11 : i64} {
  func.func @_conv_act_kernel(%arg0: i32, %arg1: i32, %arg2: memref<1x1x16x128xbf16, #tpu.memory_space<vmem>>, %arg3: memref<1x16x16x128xbf16, #tpu.memory_space<vmem>>, %arg4: memref<1x1x16x128xbf16, #tpu.memory_space<vmem>>, %arg5: memref<9x128x128xbf16, #tpu.memory_space<vmem>>, %arg6: memref<1x128xf32, #tpu.memory_space<vmem>>, %arg7: memref<1x128xf32, #tpu.memory_space<vmem>>, %arg8: memref<1x16x16x128xbf16, #tpu.memory_space<vmem>>, %arg9: memref<1x1x8x128xf32, #tpu.memory_space<vmem>>, %arg10: memref<18x18x128xbf16, #tpu.memory_space<vmem>>) attributes {dimension_semantics = [#tpu.dimension_semantics<parallel>, #tpu.dimension_semantics<parallel>], iteration_bounds = array<i64: 2, 1>, scalar_prefetch = 0 : i64, scratch_operands = 1 : i64, tpu.core_type = #tpu.core_type<tc>, window_params = [{transform_indices = @transform_0, window_bounds = array<i64: 1, 1, 16, 128>}, {transform_indices = @transform_1, window_bounds = array<i64: 1, 16, 16, 128>}, {transform_indices = @transform_2, window_bounds = array<i64: 1, 1, 16, 128>}, {pipeline_mode = #tpu.pipeline_mode<synchronous>, transform_indices = @transform_3, window_bounds = array<i64: 9, 128, 128>}, {pipeline_mode = #tpu.pipeline_mode<synchronous>, transform_indices = @transform_4, window_bounds = array<i64: 1, 128>}, {pipeline_mode = #tpu.pipeline_mode<synchronous>, transform_indices = @transform_5, window_bounds = array<i64: 1, 128>}, {transform_indices = @transform_6, window_bounds = array<i64: 1, 16, 16, 128>}, {transform_indices = @transform_7, window_bounds = array<i64: 1, 1, 8, 128>}]} {
    %c0 = arith.constant 0 : index
    %c0_0 = arith.constant 0 : index
    %0 = vector.load %arg6[%c0, %c0_0] : memref<1x128xf32, #tpu.memory_space<vmem>>, vector<1x128xf32>
    %1 = vector.shape_cast %0 : vector<1x128xf32> to vector<128xf32>
    %c0_1 = arith.constant 0 : index
    %c0_2 = arith.constant 0 : index
    %2 = vector.load %arg7[%c0_1, %c0_2] : memref<1x128xf32, #tpu.memory_space<vmem>>, vector<1x128xf32>
    %3 = vector.shape_cast %2 : vector<1x128xf32> to vector<128xf32>
    %c0_3 = arith.constant 0 : index
    %c0_4 = arith.constant 0 : index
    %c0_5 = arith.constant 0 : index
    %c0_6 = arith.constant 0 : index
    %4 = vector.load %arg2[%c0_3, %c0_4, %c0_5, %c0_6] : memref<1x1x16x128xbf16, #tpu.memory_space<vmem>>, vector<1x1x16x128xbf16>
    %5 = vector.shape_cast %4 : vector<1x1x16x128xbf16> to vector<1x16x128xbf16>
    %6 = arith.extf %5 : vector<1x16x128xbf16> to vector<1x16x128xf32>
    %7 = vector.shape_cast %1 : vector<128xf32> to vector<1x1x128xf32>
    %8 = vector.broadcast %7 : vector<1x1x128xf32> to vector<1x16x128xf32>
    %9 = arith.mulf %6, %8 : vector<1x16x128xf32>
    %10 = vector.shape_cast %3 : vector<128xf32> to vector<1x1x128xf32>
    %11 = vector.broadcast %10 : vector<1x1x128xf32> to vector<1x16x128xf32>
    %12 = arith.addf %9, %11 : vector<1x16x128xf32>
    %cst = arith.constant 0.000000e+00 : f32
    %13 = vector.broadcast %cst : f32 to vector<1x16x128xf32>
    %14 = arith.maximumf %12, %13 : vector<1x16x128xf32>
    %15 = arith.truncf %14 : vector<1x16x128xf32> to vector<1x16x128xbf16>
    %c0_7 = arith.constant 0 : index
    %c0_8 = arith.constant 0 : index
    %c0_9 = arith.constant 0 : index
    %c0_10 = arith.constant 0 : index
    %16 = vector.load %arg3[%c0_7, %c0_8, %c0_9, %c0_10] : memref<1x16x16x128xbf16, #tpu.memory_space<vmem>>, vector<1x16x16x128xbf16>
    %17 = vector.shape_cast %16 : vector<1x16x16x128xbf16> to vector<16x16x128xbf16>
    %18 = arith.extf %17 : vector<16x16x128xbf16> to vector<16x16x128xf32>
    %19 = vector.shape_cast %1 : vector<128xf32> to vector<1x1x128xf32>
    %20 = vector.broadcast %19 : vector<1x1x128xf32> to vector<16x16x128xf32>
    %21 = arith.mulf %18, %20 : vector<16x16x128xf32>
    %22 = vector.shape_cast %3 : vector<128xf32> to vector<1x1x128xf32>
    %23 = vector.broadcast %22 : vector<1x1x128xf32> to vector<16x16x128xf32>
    %24 = arith.addf %21, %23 : vector<16x16x128xf32>
    %cst_11 = arith.constant 0.000000e+00 : f32
    %25 = vector.broadcast %cst_11 : f32 to vector<16x16x128xf32>
    %26 = arith.maximumf %24, %25 : vector<16x16x128xf32>
    %27 = arith.truncf %26 : vector<16x16x128xf32> to vector<16x16x128xbf16>
    %c0_12 = arith.constant 0 : index
    %c0_13 = arith.constant 0 : index
    %c0_14 = arith.constant 0 : index
    %c0_15 = arith.constant 0 : index
    %28 = vector.load %arg4[%c0_12, %c0_13, %c0_14, %c0_15] : memref<1x1x16x128xbf16, #tpu.memory_space<vmem>>, vector<1x1x16x128xbf16>
    %29 = vector.shape_cast %28 : vector<1x1x16x128xbf16> to vector<1x16x128xbf16>
    %30 = arith.extf %29 : vector<1x16x128xbf16> to vector<1x16x128xf32>
    %31 = vector.shape_cast %1 : vector<128xf32> to vector<1x1x128xf32>
    %32 = vector.broadcast %31 : vector<1x1x128xf32> to vector<1x16x128xf32>
    %33 = arith.mulf %30, %32 : vector<1x16x128xf32>
    %34 = vector.shape_cast %3 : vector<128xf32> to vector<1x1x128xf32>
    %35 = vector.broadcast %34 : vector<1x1x128xf32> to vector<1x16x128xf32>
    %36 = arith.addf %33, %35 : vector<1x16x128xf32>
    %cst_16 = arith.constant 0.000000e+00 : f32
    %37 = vector.broadcast %cst_16 : f32 to vector<1x16x128xf32>
    %38 = arith.maximumf %36, %37 : vector<1x16x128xf32>
    %39 = arith.truncf %38 : vector<1x16x128xf32> to vector<1x16x128xbf16>
    %cst_17 = arith.constant 0.000000e+00 : bf16
    %40 = vector.broadcast %cst_17 : bf16 to vector<18x1x128xbf16>
    %c0_18 = arith.constant 0 : index
    %c0_19 = arith.constant 0 : index
    %c0_20 = arith.constant 0 : index
    %41 = vector.load %arg10[%c0_18, %c0_19, %c0_20] : memref<18x18x128xbf16, #tpu.memory_space<vmem>>, vector<18x1x128xbf16>
    tpu.vector_store %arg10[%c0_18, %c0_19, %c0_20], %40 {strides = array<i32>} : memref<18x18x128xbf16, #tpu.memory_space<vmem>>, vector<18x1x128xbf16>,
    %c0_21 = arith.constant 0 : index
    %c17 = arith.constant 17 : index
    %c0_22 = arith.constant 0 : index
    %42 = vector.load %arg10[%c0_21, %c17, %c0_22] : memref<18x18x128xbf16, #tpu.memory_space<vmem>>, vector<18x1x128xbf16>
    tpu.vector_store %arg10[%c0_21, %c17, %c0_22], %40 {strides = array<i32>} : memref<18x18x128xbf16, #tpu.memory_space<vmem>>, vector<18x1x128xbf16>,
    %c0_23 = arith.constant 0 : index
    %c1 = arith.constant 1 : index
    %c0_24 = arith.constant 0 : index
    %43 = vector.load %arg10[%c0_23, %c1, %c0_24] : memref<18x18x128xbf16, #tpu.memory_space<vmem>>, vector<1x16x128xbf16>
    tpu.vector_store %arg10[%c0_23, %c1, %c0_24], %15 {strides = array<i32>} : memref<18x18x128xbf16, #tpu.memory_space<vmem>>, vector<1x16x128xbf16>,
    %c1_25 = arith.constant 1 : index
    %c1_26 = arith.constant 1 : index
    %c0_27 = arith.constant 0 : index
    %44 = vector.load %arg10[%c1_25, %c1_26, %c0_27] : memref<18x18x128xbf16, #tpu.memory_space<vmem>>, vector<16x16x128xbf16>
    tpu.vector_store %arg10[%c1_25, %c1_26, %c0_27], %27 {strides = array<i32>} : memref<18x18x128xbf16, #tpu.memory_space<vmem>>, vector<16x16x128xbf16>,
    %c17_28 = arith.constant 17 : index
    %c1_29 = arith.constant 1 : index
    %c0_30 = arith.constant 0 : index
    %45 = vector.load %arg10[%c17_28, %c1_29, %c0_30] : memref<18x18x128xbf16, #tpu.memory_space<vmem>>, vector<1x16x128xbf16>
    tpu.vector_store %arg10[%c17_28, %c1_29, %c0_30], %39 {strides = array<i32>} : memref<18x18x128xbf16, #tpu.memory_space<vmem>>, vector<1x16x128xbf16>,
    %cst_31 = arith.constant 0.000000e+00 : bf16
    %46 = vector.broadcast %cst_31 : bf16 to vector<1x18x128xbf16>
    %c0_i32 = arith.constant 0 : i32
    %47 = arith.cmpi eq, %arg1, %c0_i32 : i32
    %48 = arith.extui %47 : i1 to i32
    %c0_i32_32 = arith.constant 0 : i32
    %49 = arith.cmpi ne, %48, %c0_i32_32 : i32
    scf.if %49 {
      %c0_79 = arith.constant 0 : index
      %c0_80 = arith.constant 0 : index
      %c0_81 = arith.constant 0 : index
      %121 = vector.load %arg10[%c0_79, %c0_80, %c0_81] : memref<18x18x128xbf16, #tpu.memory_space<vmem>>, vector<1x18x128xbf16>
      tpu.vector_store %arg10[%c0_79, %c0_80, %c0_81], %46 {strides = array<i32>} : memref<18x18x128xbf16, #tpu.memory_space<vmem>>, vector<1x18x128xbf16>,
    } else {
    }
    %c0_i32_33 = arith.constant 0 : i32
    %50 = arith.cmpi eq, %arg1, %c0_i32_33 : i32
    %51 = arith.extui %50 : i1 to i32
    %c0_i32_34 = arith.constant 0 : i32
    %52 = arith.cmpi ne, %51, %c0_i32_34 : i32
    scf.if %52 {
      %c17_79 = arith.constant 17 : index
      %c0_80 = arith.constant 0 : index
      %c0_81 = arith.constant 0 : index
      %121 = vector.load %arg10[%c17_79, %c0_80, %c0_81] : memref<18x18x128xbf16, #tpu.memory_space<vmem>>, vector<1x18x128xbf16>
      tpu.vector_store %arg10[%c17_79, %c0_80, %c0_81], %46 {strides = array<i32>} : memref<18x18x128xbf16, #tpu.memory_space<vmem>>, vector<1x18x128xbf16>,
    } else {
    }
    %c0_35 = arith.constant 0 : index
    %c0_36 = arith.constant 0 : index
    %c0_37 = arith.constant 0 : index
    %53 = vector.load %arg10[%c0_35, %c0_36, %c0_37] : memref<18x18x128xbf16, #tpu.memory_space<vmem>>, vector<18x18x128xbf16>
    %54 = vector.extract_strided_slice %53 {offsets = [0, 0, 0], sizes = [18, 16, 128], strides = [1, 1, 1]} : vector<18x18x128xbf16> to vector<18x16x128xbf16>
    %55 = vector.shape_cast %54 : vector<18x16x128xbf16> to vector<288x128xbf16>
    %56 = vector.extract_strided_slice %53 {offsets = [0, 1, 0], sizes = [18, 16, 128], strides = [1, 1, 1]} : vector<18x18x128xbf16> to vector<18x16x128xbf16>
    %57 = vector.shape_cast %56 : vector<18x16x128xbf16> to vector<288x128xbf16>
    %58 = vector.extract_strided_slice %53 {offsets = [0, 2, 0], sizes = [18, 16, 128], strides = [1, 1, 1]} : vector<18x18x128xbf16> to vector<18x16x128xbf16>
    %59 = vector.shape_cast %58 : vector<18x16x128xbf16> to vector<288x128xbf16>
    %cst_38 = arith.constant 0.000000e+00 : f32
    %60 = vector.broadcast %cst_38 : f32 to vector<256x128xf32>
    %61 = vector.extract_strided_slice %55 {offsets = [0, 0], sizes = [256, 128], strides = [1, 1]} : vector<288x128xbf16> to vector<256x128xbf16>
    %c0_39 = arith.constant 0 : index
    %c0_40 = arith.constant 0 : index
    %c0_41 = arith.constant 0 : index
    %62 = vector.load %arg5[%c0_39, %c0_40, %c0_41] : memref<9x128x128xbf16, #tpu.memory_space<vmem>>, vector<1x128x128xbf16>
    %63 = vector.shape_cast %62 : vector<1x128x128xbf16> to vector<128x128xbf16>
    %cst_42 = arith.constant dense<0.000000e+00> : vector<256x128xf32>
    %64 = tpu.matmul %61, %63, %cst_42 {dimension_numbers = #tpu.dot_dimension_numbers<[1], [0], [0], [1], [0, 0, 1, 1], [], []>} : vector<256x128xbf16>, vector<128x128xbf16>, vector<256x128xf32> -> vector<256x128xf32>
    %65 = arith.addf %60, %64 : vector<256x128xf32>
    %66 = vector.extract_strided_slice %57 {offsets = [0, 0], sizes = [256, 128], strides = [1, 1]} : vector<288x128xbf16> to vector<256x128xbf16>
    %c1_43 = arith.constant 1 : index
    %c0_44 = arith.constant 0 : index
    %c0_45 = arith.constant 0 : index
    %67 = vector.load %arg5[%c1_43, %c0_44, %c0_45] : memref<9x128x128xbf16, #tpu.memory_space<vmem>>, vector<1x128x128xbf16>
    %68 = vector.shape_cast %67 : vector<1x128x128xbf16> to vector<128x128xbf16>
    %cst_46 = arith.constant dense<0.000000e+00> : vector<256x128xf32>
    %69 = tpu.matmul %66, %68, %cst_46 {dimension_numbers = #tpu.dot_dimension_numbers<[1], [0], [0], [1], [0, 0, 1, 1], [], []>} : vector<256x128xbf16>, vector<128x128xbf16>, vector<256x128xf32> -> vector<256x128xf32>
    %70 = arith.addf %65, %69 : vector<256x128xf32>
    %71 = vector.extract_strided_slice %59 {offsets = [0, 0], sizes = [256, 128], strides = [1, 1]} : vector<288x128xbf16> to vector<256x128xbf16>
    %c2 = arith.constant 2 : index
    %c0_47 = arith.constant 0 : index
    %c0_48 = arith.constant 0 : index
    %72 = vector.load %arg5[%c2, %c0_47, %c0_48] : memref<9x128x128xbf16, #tpu.memory_space<vmem>>, vector<1x128x128xbf16>
    %73 = vector.shape_cast %72 : vector<1x128x128xbf16> to vector<128x128xbf16>
    %cst_49 = arith.constant dense<0.000000e+00> : vector<256x128xf32>
    %74 = tpu.matmul %71, %73, %cst_49 {dimension_numbers = #tpu.dot_dimension_numbers<[1], [0], [0], [1], [0, 0, 1, 1], [], []>} : vector<256x128xbf16>, vector<128x128xbf16>, vector<256x128xf32> -> vector<256x128xf32>
    %75 = arith.addf %70, %74 : vector<256x128xf32>
    %76 = vector.extract_strided_slice %55 {offsets = [16, 0], sizes = [256, 128], strides = [1, 1]} : vector<288x128xbf16> to vector<256x128xbf16>
    %c3 = arith.constant 3 : index
    %c0_50 = arith.constant 0 : index
    %c0_51 = arith.constant 0 : index
    %77 = vector.load %arg5[%c3, %c0_50, %c0_51] : memref<9x128x128xbf16, #tpu.memory_space<vmem>>, vector<1x128x128xbf16>
    %78 = vector.shape_cast %77 : vector<1x128x128xbf16> to vector<128x128xbf16>
    %cst_52 = arith.constant dense<0.000000e+00> : vector<256x128xf32>
    %79 = tpu.matmul %76, %78, %cst_52 {dimension_numbers = #tpu.dot_dimension_numbers<[1], [0], [0], [1], [0, 0, 1, 1], [], []>} : vector<256x128xbf16>, vector<128x128xbf16>, vector<256x128xf32> -> vector<256x128xf32>
    %80 = arith.addf %75, %79 : vector<256x128xf32>
    %81 = vector.extract_strided_slice %57 {offsets = [16, 0], sizes = [256, 128], strides = [1, 1]} : vector<288x128xbf16> to vector<256x128xbf16>
    %c4 = arith.constant 4 : index
    %c0_53 = arith.constant 0 : index
    %c0_54 = arith.constant 0 : index
    %82 = vector.load %arg5[%c4, %c0_53, %c0_54] : memref<9x128x128xbf16, #tpu.memory_space<vmem>>, vector<1x128x128xbf16>
    %83 = vector.shape_cast %82 : vector<1x128x128xbf16> to vector<128x128xbf16>
    %cst_55 = arith.constant dense<0.000000e+00> : vector<256x128xf32>
    %84 = tpu.matmul %81, %83, %cst_55 {dimension_numbers = #tpu.dot_dimension_numbers<[1], [0], [0], [1], [0, 0, 1, 1], [], []>} : vector<256x128xbf16>, vector<128x128xbf16>, vector<256x128xf32> -> vector<256x128xf32>
    %85 = arith.addf %80, %84 : vector<256x128xf32>
    %86 = vector.extract_strided_slice %59 {offsets = [16, 0], sizes = [256, 128], strides = [1, 1]} : vector<288x128xbf16> to vector<256x128xbf16>
    %c5 = arith.constant 5 : index
    %c0_56 = arith.constant 0 : index
    %c0_57 = arith.constant 0 : index
    %87 = vector.load %arg5[%c5, %c0_56, %c0_57] : memref<9x128x128xbf16, #tpu.memory_space<vmem>>, vector<1x128x128xbf16>
    %88 = vector.shape_cast %87 : vector<1x128x128xbf16> to vector<128x128xbf16>
    %cst_58 = arith.constant dense<0.000000e+00> : vector<256x128xf32>
    %89 = tpu.matmul %86, %88, %cst_58 {dimension_numbers = #tpu.dot_dimension_numbers<[1], [0], [0], [1], [0, 0, 1, 1], [], []>} : vector<256x128xbf16>, vector<128x128xbf16>, vector<256x128xf32> -> vector<256x128xf32>
    %90 = arith.addf %85, %89 : vector<256x128xf32>
    %91 = vector.extract_strided_slice %55 {offsets = [32, 0], sizes = [256, 128], strides = [1, 1]} : vector<288x128xbf16> to vector<256x128xbf16>
    %c6 = arith.constant 6 : index
    %c0_59 = arith.constant 0 : index
    %c0_60 = arith.constant 0 : index
    %92 = vector.load %arg5[%c6, %c0_59, %c0_60] : memref<9x128x128xbf16, #tpu.memory_space<vmem>>, vector<1x128x128xbf16>
    %93 = vector.shape_cast %92 : vector<1x128x128xbf16> to vector<128x128xbf16>
    %cst_61 = arith.constant dense<0.000000e+00> : vector<256x128xf32>
    %94 = tpu.matmul %91, %93, %cst_61 {dimension_numbers = #tpu.dot_dimension_numbers<[1], [0], [0], [1], [0, 0, 1, 1], [], []>} : vector<256x128xbf16>, vector<128x128xbf16>, vector<256x128xf32> -> vector<256x128xf32>
    %95 = arith.addf %90, %94 : vector<256x128xf32>
    %96 = vector.extract_strided_slice %57 {offsets = [32, 0], sizes = [256, 128], strides = [1, 1]} : vector<288x128xbf16> to vector<256x128xbf16>
    %c7 = arith.constant 7 : index
    %c0_62 = arith.constant 0 : index
    %c0_63 = arith.constant 0 : index
    %97 = vector.load %arg5[%c7, %c0_62, %c0_63] : memref<9x128x128xbf16, #tpu.memory_space<vmem>>, vector<1x128x128xbf16>
    %98 = vector.shape_cast %97 : vector<1x128x128xbf16> to vector<128x128xbf16>
    %cst_64 = arith.constant dense<0.000000e+00> : vector<256x128xf32>
    %99 = tpu.matmul %96, %98, %cst_64 {dimension_numbers = #tpu.dot_dimension_numbers<[1], [0], [0], [1], [0, 0, 1, 1], [], []>} : vector<256x128xbf16>, vector<128x128xbf16>, vector<256x128xf32> -> vector<256x128xf32>
    %100 = arith.addf %95, %99 : vector<256x128xf32>
    %101 = vector.extract_strided_slice %59 {offsets = [32, 0], sizes = [256, 128], strides = [1, 1]} : vector<288x128xbf16> to vector<256x128xbf16>
    %c8 = arith.constant 8 : index
    %c0_65 = arith.constant 0 : index
    %c0_66 = arith.constant 0 : index
    %102 = vector.load %arg5[%c8, %c0_65, %c0_66] : memref<9x128x128xbf16, #tpu.memory_space<vmem>>, vector<1x128x128xbf16>
    %103 = vector.shape_cast %102 : vector<1x128x128xbf16> to vector<128x128xbf16>
    %cst_67 = arith.constant dense<0.000000e+00> : vector<256x128xf32>
    %104 = tpu.matmul %101, %103, %cst_67 {dimension_numbers = #tpu.dot_dimension_numbers<[1], [0], [0], [1], [0, 0, 1, 1], [], []>} : vector<256x128xbf16>, vector<128x128xbf16>, vector<256x128xf32> -> vector<256x128xf32>
    %105 = arith.addf %100, %104 : vector<256x128xf32>
    %106 = vector.shape_cast %105 : vector<256x128xf32> to vector<16x16x128xf32>
    %107 = arith.truncf %106 : vector<16x16x128xf32> to vector<16x16x128xbf16>
    %c0_68 = arith.constant 0 : index
    %c0_69 = arith.constant 0 : index
    %c0_70 = arith.constant 0 : index
    %c0_71 = arith.constant 0 : index
    %108 = vector.load %arg8[%c0_68, %c0_69, %c0_70, %c0_71] : memref<1x16x16x128xbf16, #tpu.memory_space<vmem>>, vector<1x16x16x128xbf16>
    %109 = vector.shape_cast %108 : vector<1x16x16x128xbf16> to vector<16x16x128xbf16>
    %110 = vector.shape_cast %107 : vector<16x16x128xbf16> to vector<1x16x16x128xbf16>
    tpu.vector_store %arg8[%c0_68, %c0_69, %c0_70, %c0_71], %110 {strides = array<i32>} : memref<1x16x16x128xbf16, #tpu.memory_space<vmem>>, vector<1x16x16x128xbf16>,
    %cst_72 = arith.constant dense<0.000000e+00> : vector<128xf32>
    %111 = vector.multi_reduction <add>, %105, %cst_72 [0] : vector<256x128xf32> to vector<128xf32>
    %112 = vector.shape_cast %111 : vector<128xf32> to vector<1x128xf32>
    %113 = arith.mulf %105, %105 : vector<256x128xf32>
    %cst_73 = arith.constant dense<0.000000e+00> : vector<128xf32>
    %114 = vector.multi_reduction <add>, %113, %cst_73 [0] : vector<256x128xf32> to vector<128xf32>
    %115 = vector.shape_cast %114 : vector<128xf32> to vector<1x128xf32>
    %cst_74 = arith.constant 0.000000e+00 : f32
    %116 = vector.broadcast %cst_74 : f32 to vector<6x128xf32>
    %117 = tpu.concatenate %112, %115, %116 in 0 : vector<1x128xf32>, vector<1x128xf32>, vector<6x128xf32> -> vector<8x128xf32>
    %c0_75 = arith.constant 0 : index
    %c0_76 = arith.constant 0 : index
    %c0_77 = arith.constant 0 : index
    %c0_78 = arith.constant 0 : index
    %118 = vector.load %arg9[%c0_75, %c0_76, %c0_77, %c0_78] : memref<1x1x8x128xf32, #tpu.memory_space<vmem>>, vector<1x1x8x128xf32>
    %119 = vector.shape_cast %118 : vector<1x1x8x128xf32> to vector<8x128xf32>
    %120 = vector.shape_cast %117 : vector<8x128xf32> to vector<1x1x8x128xf32>
    tpu.vector_store %arg9[%c0_75, %c0_76, %c0_77, %c0_78], %120 {strides = array<i32>} : memref<1x1x8x128xf32, #tpu.memory_space<vmem>>, vector<1x1x8x128xf32>,
    return
  }
  func.func @transform_0(%arg0: i32, %arg1: i32) -> (i32, i32, i32, i32) {
    %c16_i32 = arith.constant 16 : i32
    %0 = arith.muli %arg1, %c16_i32 : i32
    %c1_i32 = arith.constant 1 : i32
    %1 = arith.subi %0, %c1_i32 : i32
    %c0_i32 = arith.constant 0 : i32
    %2 = arith.maxsi %1, %c0_i32 : i32
    %c0_i32_0 = arith.constant 0 : i32
    %c0_i32_1 = arith.constant 0 : i32
    %c0_i32_2 = arith.constant 0 : i32
    return %arg0, %2, %c0_i32_0, %c0_i32_1 : i32, i32, i32, i32
  }
  func.func @transform_1(%arg0: i32, %arg1: i32) -> (i32, i32, i32, i32) {
    %c0_i32 = arith.constant 0 : i32
    %c0_i32_0 = arith.constant 0 : i32
    %c0_i32_1 = arith.constant 0 : i32
    return %arg0, %arg1, %c0_i32, %c0_i32_0 : i32, i32, i32, i32
  }
  func.func @transform_2(%arg0: i32, %arg1: i32) -> (i32, i32, i32, i32) {
    %c16_i32 = arith.constant 16 : i32
    %0 = arith.muli %arg1, %c16_i32 : i32
    %c16_i32_0 = arith.constant 16 : i32
    %1 = arith.addi %0, %c16_i32_0 : i32
    %c15_i32 = arith.constant 15 : i32
    %2 = arith.minsi %1, %c15_i32 : i32
    %c0_i32 = arith.constant 0 : i32
    %c0_i32_1 = arith.constant 0 : i32
    %c0_i32_2 = arith.constant 0 : i32
    return %arg0, %2, %c0_i32, %c0_i32_1 : i32, i32, i32, i32
  }
  func.func @transform_3(%arg0: i32, %arg1: i32) -> (i32, i32, i32) {
    %c0_i32 = arith.constant 0 : i32
    %c0_i32_0 = arith.constant 0 : i32
    %c0_i32_1 = arith.constant 0 : i32
    %c0_i32_2 = arith.constant 0 : i32
    return %c0_i32, %c0_i32_0, %c0_i32_1 : i32, i32, i32
  }
  func.func @transform_4(%arg0: i32, %arg1: i32) -> (i32, i32) {
    %c0_i32 = arith.constant 0 : i32
    %c0_i32_0 = arith.constant 0 : i32
    %c0_i32_1 = arith.constant 0 : i32
    return %c0_i32, %c0_i32_0 : i32, i32
  }
  func.func @transform_5(%arg0: i32, %arg1: i32) -> (i32, i32) {
    %c0_i32 = arith.constant 0 : i32
    %c0_i32_0 = arith.constant 0 : i32
    %c0_i32_1 = arith.constant 0 : i32
    return %c0_i32, %c0_i32_0 : i32, i32
  }
  func.func @transform_6(%arg0: i32, %arg1: i32) -> (i32, i32, i32, i32) {
    %c0_i32 = arith.constant 0 : i32
    %c0_i32_0 = arith.constant 0 : i32
    %c0_i32_1 = arith.constant 0 : i32
    return %arg0, %arg1, %c0_i32, %c0_i32_0 : i32, i32, i32, i32
  }
  func.func @transform_7(%arg0: i32, %arg1: i32) -> (i32, i32, i32, i32) {
    %c0_i32 = arith.constant 0 : i32
    %c0_i32_0 = arith.constant 0 : i32
    %c0_i32_1 = arith.constant 0 : i32
    return %arg0, %arg1, %c0_i32, %c0_i32_0 : i32, i32, i32, i32
  }
}

module attributes {stable_mosaic.version = 11 : i64} {
  func.func @_conv_ds_kernel(%arg0: i32, %arg1: i32, %arg2: memref<1x1x16x128xbf16, #tpu.memory_space<vmem>>, %arg3: memref<1x16x16x128xbf16, #tpu.memory_space<vmem>>, %arg4: memref<1x1x16x128xbf16, #tpu.memory_space<vmem>>, %arg5: memref<9x128x128xbf16, #tpu.memory_space<vmem>>, %arg6: memref<128x128xbf16, #tpu.memory_space<vmem>>, %arg7: memref<1x16x16x128xbf16, #tpu.memory_space<vmem>>, %arg8: memref<1x16x16x128xbf16, #tpu.memory_space<vmem>>, %arg9: memref<1x1x8x128xf32, #tpu.memory_space<vmem>>, %arg10: memref<1x1x8x128xf32, #tpu.memory_space<vmem>>, %arg11: memref<18x18x128xbf16, #tpu.memory_space<vmem>>) attributes {dimension_semantics = [#tpu.dimension_semantics<parallel>, #tpu.dimension_semantics<parallel>], iteration_bounds = array<i64: 2, 1>, scalar_prefetch = 0 : i64, scratch_operands = 1 : i64, tpu.core_type = #tpu.core_type<tc>, window_params = [{transform_indices = @transform_0, window_bounds = array<i64: 1, 1, 16, 128>}, {transform_indices = @transform_1, window_bounds = array<i64: 1, 16, 16, 128>}, {transform_indices = @transform_2, window_bounds = array<i64: 1, 1, 16, 128>}, {pipeline_mode = #tpu.pipeline_mode<synchronous>, transform_indices = @transform_3, window_bounds = array<i64: 9, 128, 128>}, {pipeline_mode = #tpu.pipeline_mode<synchronous>, transform_indices = @transform_4, window_bounds = array<i64: 128, 128>}, {transform_indices = @transform_5, window_bounds = array<i64: 1, 16, 16, 128>}, {transform_indices = @transform_6, window_bounds = array<i64: 1, 16, 16, 128>}, {transform_indices = @transform_7, window_bounds = array<i64: 1, 1, 8, 128>}, {transform_indices = @transform_8, window_bounds = array<i64: 1, 1, 8, 128>}]} {
    %c0 = arith.constant 0 : index
    %c0_0 = arith.constant 0 : index
    %c0_1 = arith.constant 0 : index
    %c0_2 = arith.constant 0 : index
    %0 = vector.load %arg3[%c0, %c0_0, %c0_1, %c0_2] : memref<1x16x16x128xbf16, #tpu.memory_space<vmem>>, vector<1x16x16x128xbf16>
    %1 = vector.shape_cast %0 : vector<1x16x16x128xbf16> to vector<16x16x128xbf16>
    %c0_3 = arith.constant 0 : index
    %c0_4 = arith.constant 0 : index
    %c0_5 = arith.constant 0 : index
    %c0_6 = arith.constant 0 : index
    %2 = vector.load %arg2[%c0_3, %c0_4, %c0_5, %c0_6] : memref<1x1x16x128xbf16, #tpu.memory_space<vmem>>, vector<1x1x16x128xbf16>
    %3 = vector.shape_cast %2 : vector<1x1x16x128xbf16> to vector<1x16x128xbf16>
    %c0_7 = arith.constant 0 : index
    %c0_8 = arith.constant 0 : index
    %c0_9 = arith.constant 0 : index
    %c0_10 = arith.constant 0 : index
    %4 = vector.load %arg4[%c0_7, %c0_8, %c0_9, %c0_10] : memref<1x1x16x128xbf16, #tpu.memory_space<vmem>>, vector<1x1x16x128xbf16>
    %5 = vector.shape_cast %4 : vector<1x1x16x128xbf16> to vector<1x16x128xbf16>
    %cst = arith.constant 0.000000e+00 : bf16
    %6 = vector.broadcast %cst : bf16 to vector<18x1x128xbf16>
    %c0_11 = arith.constant 0 : index
    %c0_12 = arith.constant 0 : index
    %c0_13 = arith.constant 0 : index
    %7 = vector.load %arg11[%c0_11, %c0_12, %c0_13] : memref<18x18x128xbf16, #tpu.memory_space<vmem>>, vector<18x1x128xbf16>
    tpu.vector_store %arg11[%c0_11, %c0_12, %c0_13], %6 {strides = array<i32>} : memref<18x18x128xbf16, #tpu.memory_space<vmem>>, vector<18x1x128xbf16>,
    %c0_14 = arith.constant 0 : index
    %c17 = arith.constant 17 : index
    %c0_15 = arith.constant 0 : index
    %8 = vector.load %arg11[%c0_14, %c17, %c0_15] : memref<18x18x128xbf16, #tpu.memory_space<vmem>>, vector<18x1x128xbf16>
    tpu.vector_store %arg11[%c0_14, %c17, %c0_15], %6 {strides = array<i32>} : memref<18x18x128xbf16, #tpu.memory_space<vmem>>, vector<18x1x128xbf16>,
    %c0_16 = arith.constant 0 : index
    %c1 = arith.constant 1 : index
    %c0_17 = arith.constant 0 : index
    %9 = vector.load %arg11[%c0_16, %c1, %c0_17] : memref<18x18x128xbf16, #tpu.memory_space<vmem>>, vector<1x16x128xbf16>
    tpu.vector_store %arg11[%c0_16, %c1, %c0_17], %3 {strides = array<i32>} : memref<18x18x128xbf16, #tpu.memory_space<vmem>>, vector<1x16x128xbf16>,
    %c1_18 = arith.constant 1 : index
    %c1_19 = arith.constant 1 : index
    %c0_20 = arith.constant 0 : index
    %10 = vector.load %arg11[%c1_18, %c1_19, %c0_20] : memref<18x18x128xbf16, #tpu.memory_space<vmem>>, vector<16x16x128xbf16>
    tpu.vector_store %arg11[%c1_18, %c1_19, %c0_20], %1 {strides = array<i32>} : memref<18x18x128xbf16, #tpu.memory_space<vmem>>, vector<16x16x128xbf16>,
    %c17_21 = arith.constant 17 : index
    %c1_22 = arith.constant 1 : index
    %c0_23 = arith.constant 0 : index
    %11 = vector.load %arg11[%c17_21, %c1_22, %c0_23] : memref<18x18x128xbf16, #tpu.memory_space<vmem>>, vector<1x16x128xbf16>
    tpu.vector_store %arg11[%c17_21, %c1_22, %c0_23], %5 {strides = array<i32>} : memref<18x18x128xbf16, #tpu.memory_space<vmem>>, vector<1x16x128xbf16>,
    %cst_24 = arith.constant 0.000000e+00 : bf16
    %12 = vector.broadcast %cst_24 : bf16 to vector<1x18x128xbf16>
    %c0_i32 = arith.constant 0 : i32
    %13 = arith.cmpi eq, %arg1, %c0_i32 : i32
    %14 = arith.extui %13 : i1 to i32
    %c0_i32_25 = arith.constant 0 : i32
    %15 = arith.cmpi ne, %14, %c0_i32_25 : i32
    scf.if %15 {
      %c0_86 = arith.constant 0 : index
      %c0_87 = arith.constant 0 : index
      %c0_88 = arith.constant 0 : index
      %105 = vector.load %arg11[%c0_86, %c0_87, %c0_88] : memref<18x18x128xbf16, #tpu.memory_space<vmem>>, vector<1x18x128xbf16>
      tpu.vector_store %arg11[%c0_86, %c0_87, %c0_88], %12 {strides = array<i32>} : memref<18x18x128xbf16, #tpu.memory_space<vmem>>, vector<1x18x128xbf16>,
    } else {
    }
    %c0_i32_26 = arith.constant 0 : i32
    %16 = arith.cmpi eq, %arg1, %c0_i32_26 : i32
    %17 = arith.extui %16 : i1 to i32
    %c0_i32_27 = arith.constant 0 : i32
    %18 = arith.cmpi ne, %17, %c0_i32_27 : i32
    scf.if %18 {
      %c17_86 = arith.constant 17 : index
      %c0_87 = arith.constant 0 : index
      %c0_88 = arith.constant 0 : index
      %105 = vector.load %arg11[%c17_86, %c0_87, %c0_88] : memref<18x18x128xbf16, #tpu.memory_space<vmem>>, vector<1x18x128xbf16>
      tpu.vector_store %arg11[%c17_86, %c0_87, %c0_88], %12 {strides = array<i32>} : memref<18x18x128xbf16, #tpu.memory_space<vmem>>, vector<1x18x128xbf16>,
    } else {
    }
    %c0_28 = arith.constant 0 : index
    %c0_29 = arith.constant 0 : index
    %c0_30 = arith.constant 0 : index
    %19 = vector.load %arg11[%c0_28, %c0_29, %c0_30] : memref<18x18x128xbf16, #tpu.memory_space<vmem>>, vector<18x18x128xbf16>
    %20 = vector.extract_strided_slice %19 {offsets = [0, 0, 0], sizes = [18, 16, 128], strides = [1, 1, 1]} : vector<18x18x128xbf16> to vector<18x16x128xbf16>
    %21 = vector.shape_cast %20 : vector<18x16x128xbf16> to vector<288x128xbf16>
    %22 = vector.extract_strided_slice %19 {offsets = [0, 1, 0], sizes = [18, 16, 128], strides = [1, 1, 1]} : vector<18x18x128xbf16> to vector<18x16x128xbf16>
    %23 = vector.shape_cast %22 : vector<18x16x128xbf16> to vector<288x128xbf16>
    %24 = vector.extract_strided_slice %19 {offsets = [0, 2, 0], sizes = [18, 16, 128], strides = [1, 1, 1]} : vector<18x18x128xbf16> to vector<18x16x128xbf16>
    %25 = vector.shape_cast %24 : vector<18x16x128xbf16> to vector<288x128xbf16>
    %cst_31 = arith.constant 0.000000e+00 : f32
    %26 = vector.broadcast %cst_31 : f32 to vector<256x128xf32>
    %27 = vector.extract_strided_slice %21 {offsets = [0, 0], sizes = [256, 128], strides = [1, 1]} : vector<288x128xbf16> to vector<256x128xbf16>
    %c0_32 = arith.constant 0 : index
    %c0_33 = arith.constant 0 : index
    %c0_34 = arith.constant 0 : index
    %28 = vector.load %arg5[%c0_32, %c0_33, %c0_34] : memref<9x128x128xbf16, #tpu.memory_space<vmem>>, vector<1x128x128xbf16>
    %29 = vector.shape_cast %28 : vector<1x128x128xbf16> to vector<128x128xbf16>
    %cst_35 = arith.constant dense<0.000000e+00> : vector<256x128xf32>
    %30 = tpu.matmul %27, %29, %cst_35 {dimension_numbers = #tpu.dot_dimension_numbers<[1], [0], [0], [1], [0, 0, 1, 1], [], []>} : vector<256x128xbf16>, vector<128x128xbf16>, vector<256x128xf32> -> vector<256x128xf32>
    %31 = arith.addf %26, %30 : vector<256x128xf32>
    %32 = vector.extract_strided_slice %23 {offsets = [0, 0], sizes = [256, 128], strides = [1, 1]} : vector<288x128xbf16> to vector<256x128xbf16>
    %c1_36 = arith.constant 1 : index
    %c0_37 = arith.constant 0 : index
    %c0_38 = arith.constant 0 : index
    %33 = vector.load %arg5[%c1_36, %c0_37, %c0_38] : memref<9x128x128xbf16, #tpu.memory_space<vmem>>, vector<1x128x128xbf16>
    %34 = vector.shape_cast %33 : vector<1x128x128xbf16> to vector<128x128xbf16>
    %cst_39 = arith.constant dense<0.000000e+00> : vector<256x128xf32>
    %35 = tpu.matmul %32, %34, %cst_39 {dimension_numbers = #tpu.dot_dimension_numbers<[1], [0], [0], [1], [0, 0, 1, 1], [], []>} : vector<256x128xbf16>, vector<128x128xbf16>, vector<256x128xf32> -> vector<256x128xf32>
    %36 = arith.addf %31, %35 : vector<256x128xf32>
    %37 = vector.extract_strided_slice %25 {offsets = [0, 0], sizes = [256, 128], strides = [1, 1]} : vector<288x128xbf16> to vector<256x128xbf16>
    %c2 = arith.constant 2 : index
    %c0_40 = arith.constant 0 : index
    %c0_41 = arith.constant 0 : index
    %38 = vector.load %arg5[%c2, %c0_40, %c0_41] : memref<9x128x128xbf16, #tpu.memory_space<vmem>>, vector<1x128x128xbf16>
    %39 = vector.shape_cast %38 : vector<1x128x128xbf16> to vector<128x128xbf16>
    %cst_42 = arith.constant dense<0.000000e+00> : vector<256x128xf32>
    %40 = tpu.matmul %37, %39, %cst_42 {dimension_numbers = #tpu.dot_dimension_numbers<[1], [0], [0], [1], [0, 0, 1, 1], [], []>} : vector<256x128xbf16>, vector<128x128xbf16>, vector<256x128xf32> -> vector<256x128xf32>
    %41 = arith.addf %36, %40 : vector<256x128xf32>
    %42 = vector.extract_strided_slice %21 {offsets = [16, 0], sizes = [256, 128], strides = [1, 1]} : vector<288x128xbf16> to vector<256x128xbf16>
    %c3 = arith.constant 3 : index
    %c0_43 = arith.constant 0 : index
    %c0_44 = arith.constant 0 : index
    %43 = vector.load %arg5[%c3, %c0_43, %c0_44] : memref<9x128x128xbf16, #tpu.memory_space<vmem>>, vector<1x128x128xbf16>
    %44 = vector.shape_cast %43 : vector<1x128x128xbf16> to vector<128x128xbf16>
    %cst_45 = arith.constant dense<0.000000e+00> : vector<256x128xf32>
    %45 = tpu.matmul %42, %44, %cst_45 {dimension_numbers = #tpu.dot_dimension_numbers<[1], [0], [0], [1], [0, 0, 1, 1], [], []>} : vector<256x128xbf16>, vector<128x128xbf16>, vector<256x128xf32> -> vector<256x128xf32>
    %46 = arith.addf %41, %45 : vector<256x128xf32>
    %47 = vector.extract_strided_slice %23 {offsets = [16, 0], sizes = [256, 128], strides = [1, 1]} : vector<288x128xbf16> to vector<256x128xbf16>
    %c4 = arith.constant 4 : index
    %c0_46 = arith.constant 0 : index
    %c0_47 = arith.constant 0 : index
    %48 = vector.load %arg5[%c4, %c0_46, %c0_47] : memref<9x128x128xbf16, #tpu.memory_space<vmem>>, vector<1x128x128xbf16>
    %49 = vector.shape_cast %48 : vector<1x128x128xbf16> to vector<128x128xbf16>
    %cst_48 = arith.constant dense<0.000000e+00> : vector<256x128xf32>
    %50 = tpu.matmul %47, %49, %cst_48 {dimension_numbers = #tpu.dot_dimension_numbers<[1], [0], [0], [1], [0, 0, 1, 1], [], []>} : vector<256x128xbf16>, vector<128x128xbf16>, vector<256x128xf32> -> vector<256x128xf32>
    %51 = arith.addf %46, %50 : vector<256x128xf32>
    %52 = vector.extract_strided_slice %25 {offsets = [16, 0], sizes = [256, 128], strides = [1, 1]} : vector<288x128xbf16> to vector<256x128xbf16>
    %c5 = arith.constant 5 : index
    %c0_49 = arith.constant 0 : index
    %c0_50 = arith.constant 0 : index
    %53 = vector.load %arg5[%c5, %c0_49, %c0_50] : memref<9x128x128xbf16, #tpu.memory_space<vmem>>, vector<1x128x128xbf16>
    %54 = vector.shape_cast %53 : vector<1x128x128xbf16> to vector<128x128xbf16>
    %cst_51 = arith.constant dense<0.000000e+00> : vector<256x128xf32>
    %55 = tpu.matmul %52, %54, %cst_51 {dimension_numbers = #tpu.dot_dimension_numbers<[1], [0], [0], [1], [0, 0, 1, 1], [], []>} : vector<256x128xbf16>, vector<128x128xbf16>, vector<256x128xf32> -> vector<256x128xf32>
    %56 = arith.addf %51, %55 : vector<256x128xf32>
    %57 = vector.extract_strided_slice %21 {offsets = [32, 0], sizes = [256, 128], strides = [1, 1]} : vector<288x128xbf16> to vector<256x128xbf16>
    %c6 = arith.constant 6 : index
    %c0_52 = arith.constant 0 : index
    %c0_53 = arith.constant 0 : index
    %58 = vector.load %arg5[%c6, %c0_52, %c0_53] : memref<9x128x128xbf16, #tpu.memory_space<vmem>>, vector<1x128x128xbf16>
    %59 = vector.shape_cast %58 : vector<1x128x128xbf16> to vector<128x128xbf16>
    %cst_54 = arith.constant dense<0.000000e+00> : vector<256x128xf32>
    %60 = tpu.matmul %57, %59, %cst_54 {dimension_numbers = #tpu.dot_dimension_numbers<[1], [0], [0], [1], [0, 0, 1, 1], [], []>} : vector<256x128xbf16>, vector<128x128xbf16>, vector<256x128xf32> -> vector<256x128xf32>
    %61 = arith.addf %56, %60 : vector<256x128xf32>
    %62 = vector.extract_strided_slice %23 {offsets = [32, 0], sizes = [256, 128], strides = [1, 1]} : vector<288x128xbf16> to vector<256x128xbf16>
    %c7 = arith.constant 7 : index
    %c0_55 = arith.constant 0 : index
    %c0_56 = arith.constant 0 : index
    %63 = vector.load %arg5[%c7, %c0_55, %c0_56] : memref<9x128x128xbf16, #tpu.memory_space<vmem>>, vector<1x128x128xbf16>
    %64 = vector.shape_cast %63 : vector<1x128x128xbf16> to vector<128x128xbf16>
    %cst_57 = arith.constant dense<0.000000e+00> : vector<256x128xf32>
    %65 = tpu.matmul %62, %64, %cst_57 {dimension_numbers = #tpu.dot_dimension_numbers<[1], [0], [0], [1], [0, 0, 1, 1], [], []>} : vector<256x128xbf16>, vector<128x128xbf16>, vector<256x128xf32> -> vector<256x128xf32>
    %66 = arith.addf %61, %65 : vector<256x128xf32>
    %67 = vector.extract_strided_slice %25 {offsets = [32, 0], sizes = [256, 128], strides = [1, 1]} : vector<288x128xbf16> to vector<256x128xbf16>
    %c8 = arith.constant 8 : index
    %c0_58 = arith.constant 0 : index
    %c0_59 = arith.constant 0 : index
    %68 = vector.load %arg5[%c8, %c0_58, %c0_59] : memref<9x128x128xbf16, #tpu.memory_space<vmem>>, vector<1x128x128xbf16>
    %69 = vector.shape_cast %68 : vector<1x128x128xbf16> to vector<128x128xbf16>
    %cst_60 = arith.constant dense<0.000000e+00> : vector<256x128xf32>
    %70 = tpu.matmul %67, %69, %cst_60 {dimension_numbers = #tpu.dot_dimension_numbers<[1], [0], [0], [1], [0, 0, 1, 1], [], []>} : vector<256x128xbf16>, vector<128x128xbf16>, vector<256x128xf32> -> vector<256x128xf32>
    %71 = arith.addf %66, %70 : vector<256x128xf32>
    %72 = vector.shape_cast %1 : vector<16x16x128xbf16> to vector<256x128xbf16>
    %c0_61 = arith.constant 0 : index
    %c0_62 = arith.constant 0 : index
    %73 = vector.load %arg6[%c0_61, %c0_62] : memref<128x128xbf16, #tpu.memory_space<vmem>>, vector<128x128xbf16>
    %cst_63 = arith.constant dense<0.000000e+00> : vector<256x128xf32>
    %74 = tpu.matmul %72, %73, %cst_63 {dimension_numbers = #tpu.dot_dimension_numbers<[1], [0], [0], [1], [0, 0, 1, 1], [], []>} : vector<256x128xbf16>, vector<128x128xbf16>, vector<256x128xf32> -> vector<256x128xf32>
    %75 = vector.shape_cast %71 : vector<256x128xf32> to vector<16x16x128xf32>
    %76 = arith.truncf %75 : vector<16x16x128xf32> to vector<16x16x128xbf16>
    %c0_64 = arith.constant 0 : index
    %c0_65 = arith.constant 0 : index
    %c0_66 = arith.constant 0 : index
    %c0_67 = arith.constant 0 : index
    %77 = vector.load %arg7[%c0_64, %c0_65, %c0_66, %c0_67] : memref<1x16x16x128xbf16, #tpu.memory_space<vmem>>, vector<1x16x16x128xbf16>
    %78 = vector.shape_cast %77 : vector<1x16x16x128xbf16> to vector<16x16x128xbf16>
    %79 = vector.shape_cast %76 : vector<16x16x128xbf16> to vector<1x16x16x128xbf16>
    tpu.vector_store %arg7[%c0_64, %c0_65, %c0_66, %c0_67], %79 {strides = array<i32>} : memref<1x16x16x128xbf16, #tpu.memory_space<vmem>>, vector<1x16x16x128xbf16>,
    %80 = vector.shape_cast %74 : vector<256x128xf32> to vector<16x16x128xf32>
    %81 = arith.truncf %80 : vector<16x16x128xf32> to vector<16x16x128xbf16>
    %c0_68 = arith.constant 0 : index
    %c0_69 = arith.constant 0 : index
    %c0_70 = arith.constant 0 : index
    %c0_71 = arith.constant 0 : index
    %82 = vector.load %arg8[%c0_68, %c0_69, %c0_70, %c0_71] : memref<1x16x16x128xbf16, #tpu.memory_space<vmem>>, vector<1x16x16x128xbf16>
    %83 = vector.shape_cast %82 : vector<1x16x16x128xbf16> to vector<16x16x128xbf16>
    %84 = vector.shape_cast %81 : vector<16x16x128xbf16> to vector<1x16x16x128xbf16>
    tpu.vector_store %arg8[%c0_68, %c0_69, %c0_70, %c0_71], %84 {strides = array<i32>} : memref<1x16x16x128xbf16, #tpu.memory_space<vmem>>, vector<1x16x16x128xbf16>,
    %cst_72 = arith.constant dense<0.000000e+00> : vector<128xf32>
    %85 = vector.multi_reduction <add>, %71, %cst_72 [0] : vector<256x128xf32> to vector<128xf32>
    %86 = vector.shape_cast %85 : vector<128xf32> to vector<1x128xf32>
    %87 = arith.mulf %71, %71 : vector<256x128xf32>
    %cst_73 = arith.constant dense<0.000000e+00> : vector<128xf32>
    %88 = vector.multi_reduction <add>, %87, %cst_73 [0] : vector<256x128xf32> to vector<128xf32>
    %89 = vector.shape_cast %88 : vector<128xf32> to vector<1x128xf32>
    %cst_74 = arith.constant 0.000000e+00 : f32
    %90 = vector.broadcast %cst_74 : f32 to vector<6x128xf32>
    %91 = tpu.concatenate %86, %89, %90 in 0 : vector<1x128xf32>, vector<1x128xf32>, vector<6x128xf32> -> vector<8x128xf32>
    %c0_75 = arith.constant 0 : index
    %c0_76 = arith.constant 0 : index
    %c0_77 = arith.constant 0 : index
    %c0_78 = arith.constant 0 : index
    %92 = vector.load %arg9[%c0_75, %c0_76, %c0_77, %c0_78] : memref<1x1x8x128xf32, #tpu.memory_space<vmem>>, vector<1x1x8x128xf32>
    %93 = vector.shape_cast %92 : vector<1x1x8x128xf32> to vector<8x128xf32>
    %94 = vector.shape_cast %91 : vector<8x128xf32> to vector<1x1x8x128xf32>
    tpu.vector_store %arg9[%c0_75, %c0_76, %c0_77, %c0_78], %94 {strides = array<i32>} : memref<1x1x8x128xf32, #tpu.memory_space<vmem>>, vector<1x1x8x128xf32>,
    %cst_79 = arith.constant dense<0.000000e+00> : vector<128xf32>
    %95 = vector.multi_reduction <add>, %74, %cst_79 [0] : vector<256x128xf32> to vector<128xf32>
    %96 = vector.shape_cast %95 : vector<128xf32> to vector<1x128xf32>
    %97 = arith.mulf %74, %74 : vector<256x128xf32>
    %cst_80 = arith.constant dense<0.000000e+00> : vector<128xf32>
    %98 = vector.multi_reduction <add>, %97, %cst_80 [0] : vector<256x128xf32> to vector<128xf32>
    %99 = vector.shape_cast %98 : vector<128xf32> to vector<1x128xf32>
    %cst_81 = arith.constant 0.000000e+00 : f32
    %100 = vector.broadcast %cst_81 : f32 to vector<6x128xf32>
    %101 = tpu.concatenate %96, %99, %100 in 0 : vector<1x128xf32>, vector<1x128xf32>, vector<6x128xf32> -> vector<8x128xf32>
    %c0_82 = arith.constant 0 : index
    %c0_83 = arith.constant 0 : index
    %c0_84 = arith.constant 0 : index
    %c0_85 = arith.constant 0 : index
    %102 = vector.load %arg10[%c0_82, %c0_83, %c0_84, %c0_85] : memref<1x1x8x128xf32, #tpu.memory_space<vmem>>, vector<1x1x8x128xf32>
    %103 = vector.shape_cast %102 : vector<1x1x8x128xf32> to vector<8x128xf32>
    %104 = vector.shape_cast %101 : vector<8x128xf32> to vector<1x1x8x128xf32>
    tpu.vector_store %arg10[%c0_82, %c0_83, %c0_84, %c0_85], %104 {strides = array<i32>} : memref<1x1x8x128xf32, #tpu.memory_space<vmem>>, vector<1x1x8x128xf32>,
    return
  }
  func.func @transform_0(%arg0: i32, %arg1: i32) -> (i32, i32, i32, i32) {
    %c16_i32 = arith.constant 16 : i32
    %0 = arith.muli %arg1, %c16_i32 : i32
    %c1_i32 = arith.constant 1 : i32
    %1 = arith.subi %0, %c1_i32 : i32
    %c0_i32 = arith.constant 0 : i32
    %2 = arith.maxsi %1, %c0_i32 : i32
    %c0_i32_0 = arith.constant 0 : i32
    %c0_i32_1 = arith.constant 0 : i32
    %c0_i32_2 = arith.constant 0 : i32
    return %arg0, %2, %c0_i32_0, %c0_i32_1 : i32, i32, i32, i32
  }
  func.func @transform_1(%arg0: i32, %arg1: i32) -> (i32, i32, i32, i32) {
    %c0_i32 = arith.constant 0 : i32
    %c0_i32_0 = arith.constant 0 : i32
    %c0_i32_1 = arith.constant 0 : i32
    return %arg0, %arg1, %c0_i32, %c0_i32_0 : i32, i32, i32, i32
  }
  func.func @transform_2(%arg0: i32, %arg1: i32) -> (i32, i32, i32, i32) {
    %c16_i32 = arith.constant 16 : i32
    %0 = arith.muli %arg1, %c16_i32 : i32
    %c16_i32_0 = arith.constant 16 : i32
    %1 = arith.addi %0, %c16_i32_0 : i32
    %c15_i32 = arith.constant 15 : i32
    %2 = arith.minsi %1, %c15_i32 : i32
    %c0_i32 = arith.constant 0 : i32
    %c0_i32_1 = arith.constant 0 : i32
    %c0_i32_2 = arith.constant 0 : i32
    return %arg0, %2, %c0_i32, %c0_i32_1 : i32, i32, i32, i32
  }
  func.func @transform_3(%arg0: i32, %arg1: i32) -> (i32, i32, i32) {
    %c0_i32 = arith.constant 0 : i32
    %c0_i32_0 = arith.constant 0 : i32
    %c0_i32_1 = arith.constant 0 : i32
    %c0_i32_2 = arith.constant 0 : i32
    return %c0_i32, %c0_i32_0, %c0_i32_1 : i32, i32, i32
  }
  func.func @transform_4(%arg0: i32, %arg1: i32) -> (i32, i32) {
    %c0_i32 = arith.constant 0 : i32
    %c0_i32_0 = arith.constant 0 : i32
    %c0_i32_1 = arith.constant 0 : i32
    return %c0_i32, %c0_i32_0 : i32, i32
  }
  func.func @transform_5(%arg0: i32, %arg1: i32) -> (i32, i32, i32, i32) {
    %c0_i32 = arith.constant 0 : i32
    %c0_i32_0 = arith.constant 0 : i32
    %c0_i32_1 = arith.constant 0 : i32
    return %arg0, %arg1, %c0_i32, %c0_i32_0 : i32, i32, i32, i32
  }
  func.func @transform_6(%arg0: i32, %arg1: i32) -> (i32, i32, i32, i32) {
    %c0_i32 = arith.constant 0 : i32
    %c0_i32_0 = arith.constant 0 : i32
    %c0_i32_1 = arith.constant 0 : i32
    return %arg0, %arg1, %c0_i32, %c0_i32_0 : i32, i32, i32, i32
  }
  func.func @transform_7(%arg0: i32, %arg1: i32) -> (i32, i32, i32, i32) {
    %c0_i32 = arith.constant 0 : i32
    %c0_i32_0 = arith.constant 0 : i32
    %c0_i32_1 = arith.constant 0 : i32
    return %arg0, %arg1, %c0_i32, %c0_i32_0 : i32, i32, i32, i32
  }
  func.func @transform_8(%arg0: i32, %arg1: i32) -> (i32, i32, i32, i32) {
    %c0_i32 = arith.constant 0 : i32
    %c0_i32_0 = arith.constant 0 : i32
    %c0_i32_1 = arith.constant 0 : i32
    return %arg0, %arg1, %c0_i32, %c0_i32_0 : i32, i32, i32, i32
  }
}

module attributes {stable_mosaic.version = 11 : i64} {
  func.func @_bn_add_relu_ds_kernel(%arg0: i32, %arg1: i32, %arg2: memref<1x16x16x128xbf16, #tpu.memory_space<vmem>>, %arg3: memref<1x16x16x128xbf16, #tpu.memory_space<vmem>>, %arg4: memref<1x128xf32, #tpu.memory_space<vmem>>, %arg5: memref<1x128xf32, #tpu.memory_space<vmem>>, %arg6: memref<1x128xf32, #tpu.memory_space<vmem>>, %arg7: memref<1x128xf32, #tpu.memory_space<vmem>>, %arg8: memref<1x16x16x128xf32, #tpu.memory_space<vmem>>) attributes {dimension_semantics = [#tpu.dimension_semantics<parallel>, #tpu.dimension_semantics<parallel>], iteration_bounds = array<i64: 2, 1>, scalar_prefetch = 0 : i64, scratch_operands = 0 : i64, tpu.core_type = #tpu.core_type<tc>, window_params = [{transform_indices = @transform_0, window_bounds = array<i64: 1, 16, 16, 128>}, {transform_indices = @transform_1, window_bounds = array<i64: 1, 16, 16, 128>}, {pipeline_mode = #tpu.pipeline_mode<synchronous>, transform_indices = @transform_2, window_bounds = array<i64: 1, 128>}, {pipeline_mode = #tpu.pipeline_mode<synchronous>, transform_indices = @transform_3, window_bounds = array<i64: 1, 128>}, {pipeline_mode = #tpu.pipeline_mode<synchronous>, transform_indices = @transform_4, window_bounds = array<i64: 1, 128>}, {pipeline_mode = #tpu.pipeline_mode<synchronous>, transform_indices = @transform_5, window_bounds = array<i64: 1, 128>}, {transform_indices = @transform_6, window_bounds = array<i64: 1, 16, 16, 128>}]} {
    %c0 = arith.constant 0 : index
    %c0_0 = arith.constant 0 : index
    %c0_1 = arith.constant 0 : index
    %c0_2 = arith.constant 0 : index
    %0 = vector.load %arg2[%c0, %c0_0, %c0_1, %c0_2] : memref<1x16x16x128xbf16, #tpu.memory_space<vmem>>, vector<1x16x16x128xbf16>
    %1 = vector.shape_cast %0 : vector<1x16x16x128xbf16> to vector<16x16x128xbf16>
    %2 = arith.extf %1 : vector<16x16x128xbf16> to vector<16x16x128xf32>
    %c0_3 = arith.constant 0 : index
    %c0_4 = arith.constant 0 : index
    %3 = vector.load %arg4[%c0_3, %c0_4] : memref<1x128xf32, #tpu.memory_space<vmem>>, vector<1x128xf32>
    %4 = vector.shape_cast %3 : vector<1x128xf32> to vector<128xf32>
    %5 = vector.shape_cast %4 : vector<128xf32> to vector<1x1x128xf32>
    %6 = vector.broadcast %5 : vector<1x1x128xf32> to vector<16x16x128xf32>
    %7 = arith.mulf %2, %6 : vector<16x16x128xf32>
    %c0_5 = arith.constant 0 : index
    %c0_6 = arith.constant 0 : index
    %8 = vector.load %arg5[%c0_5, %c0_6] : memref<1x128xf32, #tpu.memory_space<vmem>>, vector<1x128xf32>
    %9 = vector.shape_cast %8 : vector<1x128xf32> to vector<128xf32>
    %10 = vector.shape_cast %9 : vector<128xf32> to vector<1x1x128xf32>
    %11 = vector.broadcast %10 : vector<1x1x128xf32> to vector<16x16x128xf32>
    %12 = arith.addf %7, %11 : vector<16x16x128xf32>
    %c0_7 = arith.constant 0 : index
    %c0_8 = arith.constant 0 : index
    %c0_9 = arith.constant 0 : index
    %c0_10 = arith.constant 0 : index
    %13 = vector.load %arg3[%c0_7, %c0_8, %c0_9, %c0_10] : memref<1x16x16x128xbf16, #tpu.memory_space<vmem>>, vector<1x16x16x128xbf16>
    %14 = vector.shape_cast %13 : vector<1x16x16x128xbf16> to vector<16x16x128xbf16>
    %15 = arith.extf %14 : vector<16x16x128xbf16> to vector<16x16x128xf32>
    %c0_11 = arith.constant 0 : index
    %c0_12 = arith.constant 0 : index
    %16 = vector.load %arg6[%c0_11, %c0_12] : memref<1x128xf32, #tpu.memory_space<vmem>>, vector<1x128xf32>
    %17 = vector.shape_cast %16 : vector<1x128xf32> to vector<128xf32>
    %18 = vector.shape_cast %17 : vector<128xf32> to vector<1x1x128xf32>
    %19 = vector.broadcast %18 : vector<1x1x128xf32> to vector<16x16x128xf32>
    %20 = arith.mulf %15, %19 : vector<16x16x128xf32>
    %21 = arith.addf %12, %20 : vector<16x16x128xf32>
    %c0_13 = arith.constant 0 : index
    %c0_14 = arith.constant 0 : index
    %22 = vector.load %arg7[%c0_13, %c0_14] : memref<1x128xf32, #tpu.memory_space<vmem>>, vector<1x128xf32>
    %23 = vector.shape_cast %22 : vector<1x128xf32> to vector<128xf32>
    %24 = vector.shape_cast %23 : vector<128xf32> to vector<1x1x128xf32>
    %25 = vector.broadcast %24 : vector<1x1x128xf32> to vector<16x16x128xf32>
    %26 = arith.addf %21, %25 : vector<16x16x128xf32>
    %cst = arith.constant 0.000000e+00 : f32
    %27 = vector.broadcast %cst : f32 to vector<16x16x128xf32>
    %28 = arith.maximumf %26, %27 : vector<16x16x128xf32>
    %c0_15 = arith.constant 0 : index
    %c0_16 = arith.constant 0 : index
    %c0_17 = arith.constant 0 : index
    %c0_18 = arith.constant 0 : index
    %29 = vector.load %arg8[%c0_15, %c0_16, %c0_17, %c0_18] : memref<1x16x16x128xf32, #tpu.memory_space<vmem>>, vector<1x16x16x128xf32>
    %30 = vector.shape_cast %29 : vector<1x16x16x128xf32> to vector<16x16x128xf32>
    %31 = vector.shape_cast %28 : vector<16x16x128xf32> to vector<1x16x16x128xf32>
    tpu.vector_store %arg8[%c0_15, %c0_16, %c0_17, %c0_18], %31 {strides = array<i32>} : memref<1x16x16x128xf32, #tpu.memory_space<vmem>>, vector<1x16x16x128xf32>,
    return
  }
  func.func @transform_0(%arg0: i32, %arg1: i32) -> (i32, i32, i32, i32) {
    %c0_i32 = arith.constant 0 : i32
    %c0_i32_0 = arith.constant 0 : i32
    %c0_i32_1 = arith.constant 0 : i32
    return %arg0, %arg1, %c0_i32, %c0_i32_0 : i32, i32, i32, i32
  }
  func.func @transform_1(%arg0: i32, %arg1: i32) -> (i32, i32, i32, i32) {
    %c0_i32 = arith.constant 0 : i32
    %c0_i32_0 = arith.constant 0 : i32
    %c0_i32_1 = arith.constant 0 : i32
    return %arg0, %arg1, %c0_i32, %c0_i32_0 : i32, i32, i32, i32
  }
  func.func @transform_2(%arg0: i32, %arg1: i32) -> (i32, i32) {
    %c0_i32 = arith.constant 0 : i32
    %c0_i32_0 = arith.constant 0 : i32
    %c0_i32_1 = arith.constant 0 : i32
    return %c0_i32, %c0_i32_0 : i32, i32
  }
  func.func @transform_3(%arg0: i32, %arg1: i32) -> (i32, i32) {
    %c0_i32 = arith.constant 0 : i32
    %c0_i32_0 = arith.constant 0 : i32
    %c0_i32_1 = arith.constant 0 : i32
    return %c0_i32, %c0_i32_0 : i32, i32
  }
  func.func @transform_4(%arg0: i32, %arg1: i32) -> (i32, i32) {
    %c0_i32 = arith.constant 0 : i32
    %c0_i32_0 = arith.constant 0 : i32
    %c0_i32_1 = arith.constant 0 : i32
    return %c0_i32, %c0_i32_0 : i32, i32
  }
  func.func @transform_5(%arg0: i32, %arg1: i32) -> (i32, i32) {
    %c0_i32 = arith.constant 0 : i32
    %c0_i32_0 = arith.constant 0 : i32
    %c0_i32_1 = arith.constant 0 : i32
    return %c0_i32, %c0_i32_0 : i32, i32
  }
  func.func @transform_6(%arg0: i32, %arg1: i32) -> (i32, i32, i32, i32) {
    %c0_i32 = arith.constant 0 : i32
    %c0_i32_0 = arith.constant 0 : i32
    %c0_i32_1 = arith.constant 0 : i32
    return %arg0, %arg1, %c0_i32, %c0_i32_0 : i32, i32, i32, i32
  }
}

</mosaic_0001>

<bundles_post_ra>
// kernel: resnet_cell_forward.5
= control target key start
LH: loop header
LB: loop body
LE: loop exit
PB: predicated region body
PF: predicated region fallthrough
CT: control target
= control target key end

     0   :  { %s1093_s21 = smov 0   ;;  %s1095_s22 = smov 0   ;;  %s1351_s0 = inlined_call_operand.vmem [shape: bf16[2,16,16,128], index: 0, kind: input, shape index: {}]   ;;  %s1352_s1 = inlined_call_operand.vmem [shape: bf16[2,16,16,128], index: 1, kind: input, shape index: {}]   ;;  %s1353_s2 = inlined_call_operand.vmem [shape: f32[1,128], index: 2, kind: input, shape index: {}]   ;;  %s1354_s3 = inlined_call_operand.vmem [shape: f32[1,128], index: 3, kind: input, shape index: {}]   ;;  %s1355_s4 = inlined_call_operand.vmem [shape: f32[1,128], index: 4, kind: input, shape index: {}]   ;;  %s1356_s5 = inlined_call_operand.vmem [shape: f32[1,128], index: 5, kind: input, shape index: {}]   ;;  %s1357_s6 = inlined_call_operand.vmem [shape: f32[2,16,16,128], index: 6, kind: output, shape index: {}]  }
   0x1   :  { %s1097_s23 = smov 0  }
   0x2 LB: > { %s28_s24 = sadd.s32 1, %s1052_s22  ;;  %p836_p0 = scmp.ge.s32.totalorder %s1056_s23, 1  ;;  %s1056_s23 = sphi %s1097_s23, %s16_s23   ;;  %s1052_s22 = sphi %s1095_s22, %s1359_s22   ;;  %s1048_s21 = sphi %s1093_s21, %s1358_s21  }
   0x3   : > { %p30_p1 = scmp.ge.s32.totalorder %s28_s24, 2  ;;  %p252_p2 = scmp.lt.s32.totalorder %s1056_s23, 3 }
   0x5   : > { %s1361_s24 = smov (%p30_p1, %s28_s24), 0  ;;  %p253_p3 = pnand %p836_p0, %p252_p2 }
   0x6   : > { %p303_p4 = scmp.lt.s32.totalorder (!%p253_p3), %s1048_s21, 1 }
   0x7   : > { %256 = sbr.rel (%p253_p3) target bundleno = 88 (0x58), region = 44 }
   0xc   : > { %s1363_s21 = smov (!%p303_p4, %s1048_s21), 1  ;;  %v1127_v0 = vld [vmem:[%s1353_s2] ss:$0 sm:$0xff] }
   0xd   : > { %s849_s25 = sshll.u32 %s1363_s21, 7  ;;  %v1132_v1 = vld [vmem:[%s1355_s4] ss:$0 sm:$0xff]  ;;  %s851_s16 = sshll.u32 %s1363_s21, 8 }
   0xe   : > { %s1117_s28 = scalar_lea.vmem %s1351_s0, %s849_s25  ;;  %s1122_s7 = scalar_lea.vmem %s1352_s1, %s849_s25  ;;  %v1141_v10 = vld [vmem:[%s1354_s3] ss:$0 sm:$0xff] }
   0xf   : > { %v853_v2 = vld [vmem:[%s1117_s28] sm:$0xff]   ;;  %v980_v4 = vld [vmem:[%s1117_s28 + $0x8] sm:$0xff]   ;;  %v981_v15 = vld [vmem:[%s1117_s28 + $0x10] sm:$0xff]   ;;  %s1175_s19 = scalar_lea.vmem %s1357_s6, %s851_s16 }
  0x10   : > { %v917_v3 = vld [vmem:[%s1122_s7] sm:$0xff]   ;;  %v854_v5 = vunpack.c.l.bf16 %v853_v2  ;;  %v855_v7 = vunpack.c.h.bf16 %v853_v2  ;;  %v995_v9 = vld [vmem:[%s1122_s7 + $0x8] sm:$0xff]   ;;  %v858_v11 = vunpack.c.l.bf16 %v980_v4  ;;  %v859_v13 = vunpack.c.h.bf16 %v980_v4  ;;  %v996_v16 = vld [vmem:[%s1122_s7 + $0x10] sm:$0xff]  }
  0x11   : > { %v918_v6 = vunpack.c.l.bf16 %v917_v3  ;;  %v919_v8 = vunpack.c.h.bf16 %v917_v3  ;;  %v922_v12 = vunpack.c.l.bf16 %v995_v9  ;;  %v923_v14 = vunpack.c.h.bf16 %v995_v9  ;;  %v1158_v29 = vld [vmem:[%s1356_s5] ss:$0 sm:$0xff]  ;;  %v982_v34 = vld [vmem:[%s1117_s28 + $0x18] sm:$0xff]  }
  0x12   : > { %v406_v17 = vmul.f32 %v854_v5, %v1127_v0  ;;  %v407_v19 = vmul.f32 %v855_v7, %v1127_v0  ;;  %v408_v21 = vmul.f32 %v858_v11, %v1127_v0  ;;  %v409_v23 = vmul.f32 %v859_v13, %v1127_v0  ;;  %v997_v39 = vld [vmem:[%s1122_s7 + $0x18] sm:$0xff]   ;;  %v983_v56 = vld [vmem:[%s1117_s28 + $0x20] sm:$0xff]  }
  0x13   : > { %v548_v18 = vmul.f32 %v918_v6, %v1132_v1  ;;  %v549_v20 = vmul.f32 %v919_v8, %v1132_v1  ;;  %v550_v22 = vmul.f32 %v922_v12, %v1132_v1  ;;  %v551_v24 = vmul.f32 %v923_v14, %v1132_v1  ;;  %v998_v57 = vld [vmem:[%s1122_s7 + $0x20] sm:$0xff]   ;;  %v984_v8 = vld [vmem:[%s1117_s28 + $0x28] sm:$0xff]  }
  0x14   : > { %v445_v25 = vadd.f32 %v1141_v10, %v406_v17  ;;  %v446_v26 = vadd.f32 %v1141_v10, %v407_v19  ;;  %v862_v27 = vunpack.c.l.bf16 %v981_v15  ;;  %v926_v28 = vunpack.c.l.bf16 %v996_v16  ;;  %v999_v14 = vld [vmem:[%s1122_s7 + $0x28] sm:$0xff]  }
  0x15   : > { %v447_v30 = vadd.f32 %v1141_v10, %v408_v21  ;;  %v448_v31 = vadd.f32 %v1141_v10, %v409_v23  ;;  %v863_v32 = vunpack.c.h.bf16 %v981_v15  ;;  %v927_v33 = vunpack.c.h.bf16 %v996_v16 }
  0x16   : > { %v580_v35 = vadd.f32 %v548_v18, %v445_v25  ;;  %v581_v36 = vadd.f32 %v549_v20, %v446_v26  ;;  %v410_v37 = vmul.f32 %v862_v27, %v1127_v0  ;;  %v552_v38 = vmul.f32 %v926_v28, %v1132_v1  ;;  %v985_v27 = vld [vmem:[%s1117_s28 + $0x30] sm:$0xff]  }
  0x17   : > { %v582_v40 = vadd.f32 %v550_v22, %v447_v30  ;;  %v583_v41 = vadd.f32 %v551_v24, %v448_v31  ;;  %v411_v42 = vmul.f32 %v863_v32, %v1127_v0  ;;  %v553_v43 = vmul.f32 %v927_v33, %v1132_v1  ;;  %v1000_v33 = vld [vmem:[%s1122_s7 + $0x30] sm:$0xff]  }
  0x18   : > { %v619_v44 = vadd.f32 %v1158_v29, %v580_v35  ;;  %v620_v45 = vadd.f32 %v1158_v29, %v581_v36  ;;  %v449_v46 = vadd.f32 %v1141_v10, %v410_v37  ;;  %v866_v47 = vunpack.c.l.bf16 %v982_v34 }
  0x19   : > { %v621_v48 = vadd.f32 %v1158_v29, %v582_v40  ;;  %v622_v49 = vadd.f32 %v1158_v29, %v583_v41  ;;  %v450_v50 = vadd.f32 %v1141_v10, %v411_v42  ;;  %v930_v51 = vunpack.c.l.bf16 %v997_v39 }
  0x1a   : > { %v651_v52 = vmax.f32 %v619_v44, 0.0  ;;  %v652_v53 = vmax.f32 %v620_v45, 0.0  ;;  %v584_v54 = vadd.f32 %v552_v38, %v449_v46  ;;  %v412_v55 = vmul.f32 %v866_v47, %v1127_v0 }
  0x1b   : > { %v653_v58 = vmax.f32 %v621_v48, 0.0  ;;  %v654_v59 = vmax.f32 %v622_v49, 0.0  ;;  %v585_v60 = vadd.f32 %v553_v43, %v450_v50  ;;  %v554_v61 = vmul.f32 %v930_v51, %v1132_v1  ;;  %v986_v50 = vld [vmem:[%s1117_s28 + $0x38] sm:$0xff]  }
  0x1c   : > { %683 = vst [vmem:[%s1175_s19] sm:$0xff] %v651_v52  ;;  %684 = vst [vmem:[%s1175_s19 + $0x8] sm:$0xff] %v652_v53  ;;  %v623_v62 = vadd.f32 %v1158_v29, %v584_v54  ;;  %v451_v63 = vadd.f32 %v1141_v10, %v412_v55  ;;  %v867_v2 = vunpack.c.h.bf16 %v982_v34  ;;  %v931_v3 = vunpack.c.h.bf16 %v997_v39  ;;  %v1001_v51 = vld [vmem:[%s1122_s7 + $0x38] sm:$0xff]  }
  0x1d   : > { %685 = vst [vmem:[%s1175_s19 + $0x10] sm:$0xff] %v653_v58  ;;  %686 = vst [vmem:[%s1175_s19 + $0x18] sm:$0xff] %v654_v59  ;;  %v624_v4 = vadd.f32 %v1158_v29, %v585_v60  ;;  %v870_v5 = vunpack.c.l.bf16 %v983_v56  ;;  %v934_v6 = vunpack.c.l.bf16 %v998_v57  ;;  %v871_v7 = vunpack.c.h.bf16 %v983_v56 }
  0x1e   : > { %v655_v9 = vmax.f32 %v623_v62, 0.0  ;;  %v586_v11 = vadd.f32 %v554_v61, %v451_v63  ;;  %v413_v12 = vmul.f32 %v867_v2, %v1127_v0  ;;  %v555_v13 = vmul.f32 %v931_v3, %v1132_v1  ;;  %v987_v2 = vld [vmem:[%s1117_s28 + $0x40] sm:$0xff]  }
  0x1f   : > { %v656_v15 = vmax.f32 %v624_v4, 0.0  ;;  %v414_v16 = vmul.f32 %v870_v5, %v1127_v0  ;;  %v556_v17 = vmul.f32 %v934_v6, %v1132_v1  ;;  %v415_v18 = vmul.f32 %v871_v7, %v1127_v0  ;;  %v1002_v7 = vld [vmem:[%s1122_s7 + $0x40] sm:$0xff]  }
  0x20   : > { %687 = vst [vmem:[%s1175_s19 + $0x20] sm:$0xff] %v655_v9  ;;  %v625_v19 = vadd.f32 %v1158_v29, %v586_v11  ;;  %v452_v20 = vadd.f32 %v1141_v10, %v413_v12  ;;  %v935_v21 = vunpack.c.h.bf16 %v998_v57  ;;  %v874_v22 = vunpack.c.l.bf16 %v984_v8 }
  0x21   : > { %688 = vst [vmem:[%s1175_s19 + $0x28] sm:$0xff] %v656_v15  ;;  %v453_v23 = vadd.f32 %v1141_v10, %v414_v16  ;;  %v454_v24 = vadd.f32 %v1141_v10, %v415_v18  ;;  %v938_v25 = vunpack.c.l.bf16 %v999_v14  ;;  %v875_v26 = vunpack.c.h.bf16 %v984_v8 }
  0x22   : > { %v657_v28 = vmax.f32 %v625_v19, 0.0  ;;  %v587_v30 = vadd.f32 %v555_v13, %v452_v20  ;;  %v557_v31 = vmul.f32 %v935_v21, %v1132_v1  ;;  %v416_v32 = vmul.f32 %v874_v22, %v1127_v0  ;;  %v988_v21 = vld [vmem:[%s1117_s28 + $0x48] sm:$0xff]  }
  0x23   : > { %v588_v34 = vadd.f32 %v556_v17, %v453_v23  ;;  %v558_v35 = vmul.f32 %v938_v25, %v1132_v1  ;;  %v417_v36 = vmul.f32 %v875_v26, %v1127_v0  ;;  %v939_v37 = vunpack.c.h.bf16 %v999_v14  ;;  %v1003_v26 = vld [vmem:[%s1122_s7 + $0x48] sm:$0xff]  }
  0x24   : > { %689 = vst [vmem:[%s1175_s19 + $0x30] sm:$0xff] %v657_v28  ;;  %v626_v38 = vadd.f32 %v1158_v29, %v587_v30  ;;  %v589_v39 = vadd.f32 %v557_v31, %v454_v24  ;;  %v455_v40 = vadd.f32 %v1141_v10, %v416_v32  ;;  %v878_v41 = vunpack.c.l.bf16 %v985_v27 }
  0x25   : > { %v627_v42 = vadd.f32 %v1158_v29, %v588_v34  ;;  %v456_v43 = vadd.f32 %v1141_v10, %v417_v36  ;;  %v559_v44 = vmul.f32 %v939_v37, %v1132_v1  ;;  %v942_v45 = vunpack.c.l.bf16 %v1000_v33 }
  0x26   : > { %v658_v46 = vmax.f32 %v626_v38, 0.0  ;;  %v628_v47 = vadd.f32 %v1158_v29, %v589_v39  ;;  %v590_v48 = vadd.f32 %v558_v35, %v455_v40  ;;  %v418_v49 = vmul.f32 %v878_v41, %v1127_v0 }
  0x27   : > { %v659_v52 = vmax.f32 %v627_v42, 0.0  ;;  %v591_v53 = vadd.f32 %v559_v44, %v456_v43  ;;  %v560_v54 = vmul.f32 %v942_v45, %v1132_v1  ;;  %v879_v55 = vunpack.c.h.bf16 %v985_v27  ;;  %v989_v44 = vld [vmem:[%s1117_s28 + $0x50] sm:$0xff]  }
  0x28   : > { %690 = vst [vmem:[%s1175_s19 + $0x38] sm:$0xff] %v658_v46  ;;  %v660_v56 = vmax.f32 %v628_v47, 0.0  ;;  %v629_v57 = vadd.f32 %v1158_v29, %v590_v48  ;;  %v457_v58 = vadd.f32 %v1141_v10, %v418_v49  ;;  %v943_v59 = vunpack.c.h.bf16 %v1000_v33  ;;  %v1004_v45 = vld [vmem:[%s1122_s7 + $0x50] sm:$0xff]  }
  0x29   : > { %691 = vst [vmem:[%s1175_s19 + $0x40] sm:$0xff] %v659_v52  ;;  %v630_v60 = vadd.f32 %v1158_v29, %v591_v53  ;;  %v419_v61 = vmul.f32 %v879_v55, %v1127_v0  ;;  %v882_v62 = vunpack.c.l.bf16 %v986_v50  ;;  %v946_v63 = vunpack.c.l.bf16 %v1001_v51 }
  0x2a   : > { %692 = vst [vmem:[%s1175_s19 + $0x48] sm:$0xff] %v660_v56  ;;  %v661_v3 = vmax.f32 %v629_v57, 0.0  ;;  %v592_v4 = vadd.f32 %v560_v54, %v457_v58  ;;  %v561_v5 = vmul.f32 %v943_v59, %v1132_v1  ;;  %v883_v6 = vunpack.c.h.bf16 %v986_v50  ;;  %v990_v58 = vld [vmem:[%s1117_s28 + $0x58] sm:$0xff]  }
  0x2b   : > { %v662_v8 = vmax.f32 %v630_v60, 0.0  ;;  %v458_v9 = vadd.f32 %v1141_v10, %v419_v61  ;;  %v420_v11 = vmul.f32 %v882_v62, %v1127_v0  ;;  %v562_v12 = vmul.f32 %v946_v63, %v1132_v1  ;;  %v1005_v63 = vld [vmem:[%s1122_s7 + $0x58] sm:$0xff]  }
  0x2c   : > { %693 = vst [vmem:[%s1175_s19 + $0x50] sm:$0xff] %v661_v3  ;;  %v631_v13 = vadd.f32 %v1158_v29, %v592_v4  ;;  %v421_v14 = vmul.f32 %v883_v6, %v1127_v0  ;;  %v947_v15 = vunpack.c.h.bf16 %v1001_v51  ;;  %v886_v16 = vunpack.c.l.bf16 %v987_v2 }
  0x2d   : > { %694 = vst [vmem:[%s1175_s19 + $0x58] sm:$0xff] %v662_v8  ;;  %v593_v17 = vadd.f32 %v561_v5, %v458_v9  ;;  %v459_v18 = vadd.f32 %v1141_v10, %v420_v11  ;;  %v950_v19 = vunpack.c.l.bf16 %v1002_v7  ;;  %v887_v20 = vunpack.c.h.bf16 %v987_v2 }
  0x2e   : > { %v663_v22 = vmax.f32 %v631_v13, 0.0  ;;  %v460_v23 = vadd.f32 %v1141_v10, %v421_v14  ;;  %v563_v24 = vmul.f32 %v947_v15, %v1132_v1  ;;  %v422_v25 = vmul.f32 %v886_v16, %v1127_v0  ;;  %v991_v15 = vld [vmem:[%s1117_s28 + $0x60] sm:$0xff]  }
  0x2f   : > { %v632_v27 = vadd.f32 %v1158_v29, %v593_v17  ;;  %v594_v28 = vadd.f32 %v562_v12, %v459_v18  ;;  %v564_v30 = vmul.f32 %v950_v19, %v1132_v1  ;;  %v423_v31 = vmul.f32 %v887_v20, %v1127_v0  ;;  %v1006_v20 = vld [vmem:[%s1122_s7 + $0x60] sm:$0xff]  }
  0x30   : > { %695 = vst [vmem:[%s1175_s19 + $0x60] sm:$0xff] %v663_v22  ;;  %v595_v32 = vadd.f32 %v563_v24, %v460_v23  ;;  %v461_v33 = vadd.f32 %v1141_v10, %v422_v25  ;;  %v951_v34 = vunpack.c.h.bf16 %v1002_v7  ;;  %v890_v35 = vunpack.c.l.bf16 %v988_v21 }
  0x31   : > { %v664_v36 = vmax.f32 %v632_v27, 0.0  ;;  %v633_v37 = vadd.f32 %v1158_v29, %v594_v28  ;;  %v462_v38 = vadd.f32 %v1141_v10, %v423_v31  ;;  %v954_v39 = vunpack.c.l.bf16 %v1003_v26 }
  0x32   : > { %v634_v40 = vadd.f32 %v1158_v29, %v595_v32  ;;  %v596_v41 = vadd.f32 %v564_v30, %v461_v33  ;;  %v565_v42 = vmul.f32 %v951_v34, %v1132_v1  ;;  %v424_v43 = vmul.f32 %v890_v35, %v1127_v0 }
  0x33   : > { %696 = vst [vmem:[%s1175_s19 + $0x68] sm:$0xff] %v664_v36  ;;  %v665_v46 = vmax.f32 %v633_v37, 0.0  ;;  %v566_v47 = vmul.f32 %v954_v39, %v1132_v1  ;;  %v891_v48 = vunpack.c.h.bf16 %v988_v21  ;;  %v955_v49 = vunpack.c.h.bf16 %v1003_v26  ;;  %v1007_v39 = vld [vmem:[%s1122_s7 + $0x68] sm:$0xff]  }
  0x34   : > { %v666_v50 = vmax.f32 %v634_v40, 0.0  ;;  %v635_v51 = vadd.f32 %v1158_v29, %v596_v41  ;;  %v597_v52 = vadd.f32 %v565_v42, %v462_v38  ;;  %v463_v53 = vadd.f32 %v1141_v10, %v424_v43  ;;  %v992_v38 = vld [vmem:[%s1117_s28 + $0x68] sm:$0xff]  }
  0x35   : > { %697 = vst [vmem:[%s1175_s19 + $0x70] sm:$0xff] %v665_v46  ;;  %v425_v54 = vmul.f32 %v891_v48, %v1127_v0  ;;  %v567_v55 = vmul.f32 %v955_v49, %v1132_v1  ;;  %v894_v56 = vunpack.c.l.bf16 %v989_v44  ;;  %v958_v57 = vunpack.c.l.bf16 %v1004_v45 }
  0x36   : > { %698 = vst [vmem:[%s1175_s19 + $0x78] sm:$0xff] %v666_v50  ;;  %v667_v59 = vmax.f32 %v635_v51, 0.0  ;;  %v636_v60 = vadd.f32 %v1158_v29, %v597_v52  ;;  %v598_v61 = vadd.f32 %v566_v47, %v463_v53  ;;  %v895_v62 = vunpack.c.h.bf16 %v989_v44  ;;  %v993_v52 = vld [vmem:[%s1117_s28 + $0x70] sm:$0xff]  }
  0x37   : > { %v464_v2 = vadd.f32 %v1141_v10, %v425_v54  ;;  %v426_v3 = vmul.f32 %v894_v56, %v1127_v0  ;;  %v568_v4 = vmul.f32 %v958_v57, %v1132_v1  ;;  %v959_v5 = vunpack.c.h.bf16 %v1004_v45  ;;  %v1008_v57 = vld [vmem:[%s1122_s7 + $0x70] sm:$0xff]  }
  0x38   : > { %699 = vst [vmem:[%s1175_s19 + $0x80] sm:$0xff] %v667_v59  ;;  %v668_v6 = vmax.f32 %v636_v60, 0.0  ;;  %v637_v7 = vadd.f32 %v1158_v29, %v598_v61  ;;  %v427_v8 = vmul.f32 %v895_v62, %v1127_v0  ;;  %v898_v9 = vunpack.c.l.bf16 %v990_v58 }
  0x39   : > { %v599_v11 = vadd.f32 %v567_v55, %v464_v2  ;;  %v465_v12 = vadd.f32 %v1141_v10, %v426_v3  ;;  %v569_v13 = vmul.f32 %v959_v5, %v1132_v1  ;;  %v962_v14 = vunpack.c.l.bf16 %v1005_v63 }
  0x3a   : > { %700 = vst [vmem:[%s1175_s19 + $0x88] sm:$0xff] %v668_v6  ;;  %v669_v16 = vmax.f32 %v637_v7, 0.0  ;;  %v466_v17 = vadd.f32 %v1141_v10, %v427_v8  ;;  %v428_v18 = vmul.f32 %v898_v9, %v1127_v0  ;;  %v899_v19 = vunpack.c.h.bf16 %v990_v58  ;;  %v994_v8 = vld [vmem:[%s1117_s28 + $0x78] sm:$0xff]  }
  0x3b   : > { %v638_v21 = vadd.f32 %v1158_v29, %v599_v11  ;;  %v600_v22 = vadd.f32 %v568_v4, %v465_v12  ;;  %v570_v23 = vmul.f32 %v962_v14, %v1132_v1  ;;  %v963_v24 = vunpack.c.h.bf16 %v1005_v63  ;;  %v1009_v14 = vld [vmem:[%s1122_s7 + $0x78] sm:$0xff]  }
  0x3c   : > { %701 = vst [vmem:[%s1175_s19 + $0x90] sm:$0xff] %v669_v16  ;;  %v601_v25 = vadd.f32 %v569_v13, %v466_v17  ;;  %v467_v26 = vadd.f32 %v1141_v10, %v428_v18  ;;  %v429_v27 = vmul.f32 %v899_v19, %v1127_v0  ;;  %v902_v28 = vunpack.c.l.bf16 %v991_v15 }
  0x3d   : > { %v670_v30 = vmax.f32 %v638_v21, 0.0  ;;  %v639_v31 = vadd.f32 %v1158_v29, %v600_v22  ;;  %v571_v32 = vmul.f32 %v963_v24, %v1132_v1  ;;  %v966_v33 = vunpack.c.l.bf16 %v1006_v20 }
  0x3e   : > { %v640_v34 = vadd.f32 %v1158_v29, %v601_v25  ;;  %v602_v35 = vadd.f32 %v570_v23, %v467_v26  ;;  %v468_v36 = vadd.f32 %v1141_v10, %v429_v27  ;;  %v430_v37 = vmul.f32 %v902_v28, %v1127_v0 }
  0x3f   : > { %702 = vst [vmem:[%s1175_s19 + $0x98] sm:$0xff] %v670_v30  ;;  %v671_v40 = vmax.f32 %v639_v31, 0.0  ;;  %v572_v41 = vmul.f32 %v966_v33, %v1132_v1  ;;  %v903_v42 = vunpack.c.h.bf16 %v991_v15  ;;  %v967_v43 = vunpack.c.h.bf16 %v1006_v20 }
  0x40   : > { %v672_v44 = vmax.f32 %v640_v34, 0.0  ;;  %v641_v45 = vadd.f32 %v1158_v29, %v602_v35  ;;  %v603_v46 = vadd.f32 %v571_v32, %v468_v36  ;;  %v469_v47 = vadd.f32 %v1141_v10, %v430_v37 }
  0x41   : > { %703 = vst [vmem:[%s1175_s19 + $0xa0] sm:$0xff] %v671_v40  ;;  %v431_v48 = vmul.f32 %v903_v42, %v1127_v0  ;;  %v573_v49 = vmul.f32 %v967_v43, %v1132_v1  ;;  %v906_v50 = vunpack.c.l.bf16 %v992_v38  ;;  %v970_v51 = vunpack.c.l.bf16 %v1007_v39 }
  0x42   : > { %704 = vst [vmem:[%s1175_s19 + $0xa8] sm:$0xff] %v672_v44  ;;  %v673_v53 = vmax.f32 %v641_v45, 0.0  ;;  %v642_v54 = vadd.f32 %v1158_v29, %v603_v46  ;;  %v604_v55 = vadd.f32 %v572_v41, %v469_v47  ;;  %v907_v56 = vunpack.c.h.bf16 %v992_v38 }
  0x43   : > { %v470_v58 = vadd.f32 %v1141_v10, %v431_v48  ;;  %v432_v59 = vmul.f32 %v906_v50, %v1127_v0  ;;  %v574_v60 = vmul.f32 %v970_v51, %v1132_v1  ;;  %v971_v61 = vunpack.c.h.bf16 %v1007_v39 }
  0x44   : > { %705 = vst [vmem:[%s1175_s19 + $0xb0] sm:$0xff] %v673_v53  ;;  %v674_v62 = vmax.f32 %v642_v54, 0.0  ;;  %v643_v63 = vadd.f32 %v1158_v29, %v604_v55  ;;  %v433_v2 = vmul.f32 %v907_v56, %v1127_v0  ;;  %v910_v3 = vunpack.c.l.bf16 %v993_v52 }
  0x45   : > { %v605_v4 = vadd.f32 %v573_v49, %v470_v58  ;;  %v471_v5 = vadd.f32 %v1141_v10, %v432_v59  ;;  %v575_v6 = vmul.f32 %v971_v61, %v1132_v1  ;;  %v974_v7 = vunpack.c.l.bf16 %v1008_v57 }
  0x46   : > { %706 = vst [vmem:[%s1175_s19 + $0xb8] sm:$0xff] %v674_v62  ;;  %v675_v9 = vmax.f32 %v643_v63, 0.0  ;;  %v472_v11 = vadd.f32 %v1141_v10, %v433_v2  ;;  %v434_v12 = vmul.f32 %v910_v3, %v1127_v0  ;;  %v911_v13 = vunpack.c.h.bf16 %v993_v52 }
  0x47   : > { %v644_v15 = vadd.f32 %v1158_v29, %v605_v4  ;;  %v606_v16 = vadd.f32 %v574_v60, %v471_v5  ;;  %v576_v17 = vmul.f32 %v974_v7, %v1132_v1  ;;  %v975_v18 = vunpack.c.h.bf16 %v1008_v57 }
  0x48   : > { %707 = vst [vmem:[%s1175_s19 + $0xc0] sm:$0xff] %v675_v9  ;;  %v607_v19 = vadd.f32 %v575_v6, %v472_v11  ;;  %v473_v20 = vadd.f32 %v1141_v10, %v434_v12  ;;  %v435_v21 = vmul.f32 %v911_v13, %v1127_v0  ;;  %v914_v22 = vunpack.c.l.bf16 %v994_v8 }
  0x49   : > { %v676_v23 = vmax.f32 %v644_v15, 0.0  ;;  %v645_v24 = vadd.f32 %v1158_v29, %v606_v16  ;;  %v577_v25 = vmul.f32 %v975_v18, %v1132_v1  ;;  %v978_v26 = vunpack.c.l.bf16 %v1009_v14 }
  0x4a   : > { %v646_v27 = vadd.f32 %v1158_v29, %v607_v19  ;;  %v608_v28 = vadd.f32 %v576_v17, %v473_v20  ;;  %v474_v30 = vadd.f32 %v1141_v10, %v435_v21  ;;  %v436_v31 = vmul.f32 %v914_v22, %v1127_v0 }
  0x4b   : > { %708 = vst [vmem:[%s1175_s19 + $0xc8] sm:$0xff] %v676_v23  ;;  %v677_v32 = vmax.f32 %v645_v24, 0.0  ;;  %v578_v33 = vmul.f32 %v978_v26, %v1132_v1  ;;  %v915_v34 = vunpack.c.h.bf16 %v994_v8  ;;  %v979_v35 = vunpack.c.h.bf16 %v1009_v14 }
  0x4c   : > { %v678_v36 = vmax.f32 %v646_v27, 0.0  ;;  %v647_v37 = vadd.f32 %v1158_v29, %v608_v28  ;;  %v609_v38 = vadd.f32 %v577_v25, %v474_v30  ;;  %v475_v39 = vadd.f32 %v1141_v10, %v436_v31 }
  0x4d   : > { %709 = vst [vmem:[%s1175_s19 + $0xd0] sm:$0xff] %v677_v32  ;;  %v437_v40 = vmul.f32 %v915_v34, %v1127_v0  ;;  %v579_v41 = vmul.f32 %v979_v35, %v1132_v1 }
  0x4e   : > { %710 = vst [vmem:[%s1175_s19 + $0xd8] sm:$0xff] %v678_v36  ;;  %v679_v42 = vmax.f32 %v647_v37, 0.0  ;;  %v648_v43 = vadd.f32 %v1158_v29, %v609_v38  ;;  %v610_v44 = vadd.f32 %v578_v33, %v475_v39 }
  0x4f   : > { %v476_v45 = vadd.f32 %v1141_v10, %v437_v40 }
  0x50   : > { %711 = vst [vmem:[%s1175_s19 + $0xe0] sm:$0xff] %v679_v42  ;;  %v680_v46 = vmax.f32 %v648_v43, 0.0  ;;  %v649_v47 = vadd.f32 %v1158_v29, %v610_v44 }
  0x51   : > { %v611_v48 = vadd.f32 %v579_v41, %v476_v45 }
  0x52   : > { %712 = vst [vmem:[%s1175_s19 + $0xe8] sm:$0xff] %v680_v46  ;;  %v681_v49 = vmax.f32 %v649_v47, 0.0 }
  0x53   : > { %v650_v50 = vadd.f32 %v1158_v29, %v611_v48 }
  0x54   : > { %713 = vst [vmem:[%s1175_s19 + $0xf0] sm:$0xff] %v681_v49 }
  0x55   : > { %v682_v0 = vmax.f32 %v650_v50, 0.0 }
  0x57   : > { %714 = vst [vmem:[%s1175_s19 + $0xf8] sm:$0xff] %v682_v0 }
  0x58 PF: > { %s16_s23 = sadd.s32 1, %s1056_s23   ;;  %s1358_s21 = smov %s1052_s22 }
  0x59   : > { %p13_p5 = scmp.ge.s32.totalorder %s16_s23, 4   ;;  %s1359_s22 = smov %s1361_s24 }
  0x5b   :  { %15 = sbr.rel (!%p13_p5) target bundleno = 2 (0x2), region = 77 }

// kernel: resnet_cell_forward.4
= control target key start
LH: loop header
LB: loop body
LE: loop exit
PB: predicated region body
PF: predicated region fallthrough
CT: control target
= control target key end

     0   :  { %s6473_s24 = smov 0   ;;  %s6475_s25 = smov 0   ;;  %s8111_s0 = inlined_call_operand.vmem [shape: bf16[2,16,16,128], index: 0, kind: input, shape index: {}, may-alias: {0,1,2}]   ;;  %s8112_s1 = inlined_call_operand.vmem [shape: bf16[2,16,16,128], index: 1, kind: input, shape index: {}, may-alias: {0,1,2}]   ;;  %s8113_s2 = inlined_call_operand.vmem [shape: bf16[2,16,16,128], index: 2, kind: input, shape index: {}, may-alias: {0,1,2}]   ;;  %s8114_s3 = inlined_call_operand.vmem [shape: bf16[9,128,128], index: 3, kind: input, shape index: {}]   ;;  %s8115_s4 = inlined_call_operand.vmem [shape: f32[1,128], index: 4, kind: input, shape index: {}]   ;;  %s8116_s5 = inlined_call_operand.vmem [shape: f32[1,128], index: 5, kind: input, shape index: {}]   ;;  %s8117_s6 = inlined_call_operand.vmem [shape: bf16[2,16,16,128], index: 6, kind: output, shape index: {0}]   ;;  %s8118_s7 = inlined_call_operand.vmem [shape: f32[2,1,8,128], index: 7, kind: output, shape index: {1}]  }
   0x1   :  { %s6477_s26 = smov 0  }
   0x2 LB: > { %s30_s27 = sadd.s32 1, %s6426_s25  ;;  %p4983_p0 = scmp.ge.s32.totalorder %s6430_s26, 1  ;;  %s6430_s26 = sphi %s6477_s26, %s18_s26   ;;  %s6426_s25 = sphi %s6475_s25, %s8262_s25   ;;  %s6422_s24 = sphi %s6473_s24, %s8261_s24  }
   0x3   : > { %p32_p1 = scmp.ge.s32.totalorder %s30_s27, 2  ;;  %p328_p2 = scmp.lt.s32.totalorder %s6430_s26, 3 }
   0x5   : > { %s8264_s27 = smov (%p32_p1, %s30_s27), 0  ;;  %p329_p3 = pnand %p4983_p0, %p328_p2 }
   0x7   : > { %332 = sbr.rel (%p329_p3) target bundleno = 683 (0x2ab), region = 44 }
   0xc   : > { %v6282_v0 = vld [vmem:[%s8114_s3 + $0x78] sm:$0xff]   ;;  %p407_p4 = scmp.lt.s32.totalorder %s6422_s24, 1  ;;  %v6283_v1 = vld [vmem:[%s8114_s3 + $0x70] sm:$0xff]   ;;  %v6284_v2 = vld [vmem:[%s8114_s3 + $0x68] sm:$0xff]   ;;  %vm679_vm0 = vcmask 1040384   ;;  %vm819_vm5 = vcmask 1043456  }
   0xd   : > { %6241 = vmatprep.subr.bf16.mxu1 %v6282_v0  ;;  %5809 = vmatprep.subr.bf16.mxu0 %v6282_v0  ;;  %v6285_v3 = vld [vmem:[%s8114_s3 + $0x60] sm:$0xff]   ;;  %vm680_vm1 = vsmask.f32 256  ;;  %vm736_vm2 = vsmask.f32 7938  ;;  %v6286_v12 = vld [vmem:[%s8114_s3 + $0x58] sm:$0xff]  }
   0xe   : > { %s8266_s24 = smov (!%p407_p4, %s6422_s24), 1  ;;  %6249 = vmatpush3.bf16.msra.mxu1 %v6282_v0  ;;  %5810 = vmatpush3.bf16.msra.mxu0 %v6282_v0  ;;  %v6517_v4 = vld [vmem:[%s8115_s4] ss:$0 sm:$0xff]  ;;  %vm6531_vm3 = vmand %vm679_vm0, %vm680_vm1  ;;  %v762_v11 = vld [vmem:[#allocation2 + $0x68] sm:$0x1]  ;;  %vm1927_vm12 = vcmask 1042432  }
   0xf   : > { %6242 = vmatprep.subr.bf16.mxu1 %v6283_v1  ;;  %5811 = vmatprep.subr.bf16.mxu0 %v6283_v1  ;;  %s6503_s11 = sshll.u32 %s8266_s24, 7  ;;  %v706_v8 = vld [vmem:[#allocation2 + $0x60] sm:$0x1]  ;;  %vm6544_vm4 = vmand %vm679_vm0, %vm736_vm2  ;;  %vm797_vm6 = vsmask.f32 4368  ;;  %v6287_v35 = vld [vmem:[%s8114_s3 + $0x50] sm:$0xff]  }
  0x10   : > { %s6509_s14 = scalar_lea.vmem %s8112_s1, %s6503_s11  ;;  %s415_s21 = scalar_lea.vmem %s8111_s0, %s6503_s11  ;;  %v6527_v9 = vld [vmem:[%s8116_s5] ss:$0 sm:$0xff]  ;;  %v707_v15 = vsel %vm6531_vm3, 0, %v706_v8  ;;  %v763_v17 = vsel %vm6544_vm4, 0, %v762_v11  ;;  %v738_v24 = vld [vmem:[#allocation2 + $0x8] sm:$0x1]  ;;  %vm6578_vm7 = vmor %vm680_vm1, %vm797_vm6 }
  0x11   : > { %v5569_v5 = vld [vmem:[%s6509_s14 + $0x38] sm:$0xff]   ;;  %708 = vst [vmem:[#allocation2 + $0x60] sm:$0x1] %v707_v15  ;;  %v5411_v18 = vld [vmem:[%s415_s21] sm:$0xff]   ;;  %764 = vst [vmem:[#allocation2 + $0x68] sm:$0x1] %v763_v17  ;;  %s8017_s20 = scalar_lea.vmem %s8117_s6, %s6503_s11 }
  0x12   : > { %6250 = vmatpush3.bf16.msra.mxu1 %v6283_v1  ;;  %5812 = vmatpush3.bf16.msra.mxu0 %v6283_v1  ;;  %v5444_v6 = vunpack.c.l.bf16 %v5569_v5  ;;  %v5445_v7 = vunpack.c.h.bf16 %v5569_v5  ;;  %v5412_v21 = vunpack.c.l.bf16 %v5411_v18  ;;  %v5413_v22 = vunpack.c.h.bf16 %v5411_v18  ;;  %v682_v23 = vld [vmem:[#allocation2] sm:$0x1]  ;;  %v709_v28 = vld [vmem:[#allocation2 + $0x6c] sm:$0x1]  ;;  %v765_v33 = vld [vmem:[#allocation2 + $0x74] sm:$0x1] }
  0x13   : > { %6243 = vmatprep.subr.bf16.mxu1 %v6284_v2  ;;  %5813 = vmatprep.subr.bf16.mxu0 %v6284_v2  ;;  %v683_v25 = vsel %vm6531_vm3, 0, %v682_v23  ;;  %v739_v26 = vsel %vm6544_vm4, 0, %v738_v24  ;;  %v5570_v27 = vld [vmem:[%s6509_s14 + $0x40] sm:$0xff]   ;;  %v710_v38 = vsel %vm6531_vm3, 0, %v709_v28  ;;  %v766_v39 = vsel %vm6544_vm4, 0, %v765_v33  ;;  %v6288_v52 = vld [vmem:[%s8114_s3 + $0x48] sm:$0xff]   ;;  %vm6586_vm8 = vmand %vm819_vm5, %vm736_vm2 }
  0x14   : > { %v570_v13 = vmul.f32 %v5444_v6, %v6517_v4  ;;  %v571_v14 = vmul.f32 %v5445_v7, %v6517_v4  ;;  %v479_v31 = vmul.f32 %v5412_v21, %v6517_v4  ;;  %v480_v32 = vmul.f32 %v5413_v22, %v6517_v4  ;;  %684 = vst [vmem:[#allocation2] sm:$0x1] %v683_v25  ;;  %v5415_v34 = vld [vmem:[%s6509_s14] sm:$0xff]   ;;  %v685_v18 = vld [vmem:[#allocation2 + $0xc] sm:$0x1]  ;;  %v6606_v33 = vld [vmem:[%s8114_s3 + $0x38] sm:$0xff]  }
  0x15   : > { %740 = vst [vmem:[#allocation2 + $0x8] sm:$0x1] %v739_v26  ;;  %v5448_v36 = vunpack.c.l.bf16 %v5570_v27  ;;  %v5449_v37 = vunpack.c.h.bf16 %v5570_v27  ;;  %711 = vst [vmem:[#allocation2 + $0x6c] sm:$0x1] %v710_v38  ;;  %v5416_v46 = vunpack.c.l.bf16 %v5415_v34  ;;  %v5417_v47 = vunpack.c.h.bf16 %v5415_v34  ;;  %v6289_v6 = vld [vmem:[%s8114_s3 + $0x40] sm:$0xff]   ;;  %v6340_v62 = vld [vmem:[%s8114_s3 + $0x170] sm:$0xff]  }
  0x16   : > { %6251 = vmatpush3.bf16.msra.mxu1 %v6284_v2  ;;  %5814 = vmatpush3.bf16.msra.mxu0 %v6284_v2  ;;  %v602_v19 = vadd.f32 %v6527_v9, %v570_v13  ;;  %v603_v20 = vadd.f32 %v6527_v9, %v571_v14  ;;  %v487_v42 = vadd.f32 %v6527_v9, %v479_v31  ;;  %vm1438_vm9 = vsmask.f32 3328  ;;  %v741_v38 = vld [vmem:[#allocation2 + $0x14] sm:$0x1]  ;;  %v6342_v57 = vld [vmem:[%s8114_s3 + $0x168] sm:$0xff]  }
  0x17   : > { %6244 = vmatprep.subr.bf16.mxu1 %v6285_v3  ;;  %5815 = vmatprep.subr.bf16.mxu0 %v6285_v3  ;;  %v488_v43 = vadd.f32 %v6527_v9, %v480_v32  ;;  %767 = vst [vmem:[#allocation2 + $0x74] sm:$0x1] %v766_v39  ;;  %v572_v44 = vmul.f32 %v5448_v36, %v6517_v4  ;;  %vm1439_vm10 = vsmask.f32 7440  ;;  %v686_v32 = vsel %vm6531_vm3, 0, %v685_v18  ;;  %v6611_v39 = vld [vmem:[%s8114_s3 + $0xb8] sm:$0xff]  }
  0x18   : > { %v634_v29 = vmax.f32 %v602_v19, 0.0  ;;  %v635_v30 = vmax.f32 %v603_v20, 0.0  ;;  %v573_v45 = vmul.f32 %v5449_v37, %v6517_v4  ;;  %v489_v53 = vmax.f32 %v487_v42, 0.0  ;;  %v1278_v63 = vld [vmem:[#allocation2 + $0x60] sm:$0xf]  ;;  %vm6647_vm11 = vmor %vm1438_vm9, %vm1439_vm10 }
  0x19   : > { %v490_v54 = vmax.f32 %v488_v43, 0.0  ;;  %v604_v55 = vadd.f32 %v6527_v9, %v572_v44  ;;  %v556_v60 = vmul.f32 %v5416_v46, %v6517_v4  ;;  %v557_v61 = vmul.f32 %v5417_v47, %v6517_v4  ;;  %v1282_v0 = vld [vmem:[#allocation2 + $0x68] sm:$0x1]  ;;  %687 = vst [vmem:[#allocation2 + $0xc] sm:$0x1] %v686_v32 }
  0x1a   : > { %6252 = vmatpush3.bf16.msra.mxu1 %v6285_v3  ;;  %5816 = vmatpush3.bf16.msra.mxu0 %v6285_v3  ;;  %v5358_v40 = vpack.c.bf16 %v634_v29, %v634_v29  ;;  %v5359_v41 = vpack.c.bf16 %v635_v30, %v635_v30  ;;  %v605_v56 = vadd.f32 %v6527_v9, %v573_v45  ;;  %v6614_v44 = vld [vmem:[%s6509_s14 + $0x48] sm:$0xff]   ;;  %vm1928_vm13 = vcmask 1046532  }
  0x1b   : > { %6245 = vmatprep.subr.bf16.mxu1 %v6286_v12  ;;  %5817 = vmatprep.subr.bf16.mxu0 %v6286_v12  ;;  %v5342_v1 = vpack.c.bf16 %v489_v53, %v489_v53  ;;  %v5343_v2 = vpack.c.bf16 %v490_v54, %v490_v54  ;;  %v636_v3 = vmax.f32 %v604_v55, 0.0  ;;  %v821_v25 = vld [vmem:[#allocation2] sm:$0xf]  ;;  %v588_v27 = vadd.f32 %v6527_v9, %v556_v60  ;;  %vm7087_vm14 = vmor %vm1927_vm12, %vm1928_vm13 }
  0x1c   : > { %v1028_v48 = vshrl.u32 %v5358_v40, 16  ;;  %v1031_v49 = vshll.u32 %v5358_v40, 16  ;;  %v1036_v50 = vshrl.u32 %v5359_v41, 16  ;;  %v1039_v51 = vshll.u32 %v5359_v41, 16  ;;  %v825_v28 = vld [vmem:[#allocation2 + $0x8] sm:$0x1] }
  0x1d   : > { %v637_v5 = vmax.f32 %v605_v56, 0.0  ;;  %v800_v13 = vshrl.u32 %v5342_v1, 16  ;;  %v803_v14 = vshll.u32 %v5342_v1, 16  ;;  %v808_v15 = vshrl.u32 %v5343_v2, 16 }
  0x1e   : > { %6253 = vmatpush3.bf16.msra.mxu1 %v6286_v12  ;;  %5818 = vmatpush3.bf16.msra.mxu0 %v6286_v12  ;;  %v1030_v58 = vrot.slane %v1028_v48, 7  ;;  %v1038_v59 = vrot.slane %v1036_v50, 7  ;;  %v811_v17 = vshll.u32 %v5343_v2, 16  ;;  %v5360_v22 = vpack.c.bf16 %v636_v3, %v636_v3  ;;  %v1285_v48 = vld [vmem:[#allocation2 + $0x6c] sm:$0xf] }
  0x1f   : > { %6246 = vmatprep.subr.bf16.mxu1 %v6287_v35  ;;  %5819 = vmatprep.subr.bf16.mxu0 %v6287_v35  ;;  %v802_v23 = vrot.slane %v800_v13, 7  ;;  %v810_v24 = vrot.slane %v808_v15, 7  ;;  %v5361_v26 = vpack.c.bf16 %v637_v5, %v637_v5  ;;  %v589_v31 = vadd.f32 %v6527_v9, %v557_v61  ;;  %v6623_v50 = vld [vmem:[%s6509_s14 + $0x8] sm:$0xff]   ;;  %v1289_v56 = vld [vmem:[#allocation2 + $0x74] sm:$0x1] }
  0x20   : > { %v1033_v7 = vor.u32 %v1031_v49, %v1030_v58  ;;  %v1034_v8 = vrot.slane %v1030_v58, 4  ;;  %v1041_v11 = vor.u32 %v1039_v51, %v1038_v59  ;;  %v1043_v12 = vrot.slane %v1038_v59, 4 }
  0x21   : > { %v1045_v29 = vshrl.u32 %v5360_v22, 16  ;;  %v1048_v30 = vshll.u32 %v5360_v22, 16  ;;  %v805_v34 = vor.u32 %v803_v14, %v802_v23  ;;  %v813_v36 = vor.u32 %v811_v17, %v810_v24 }
  0x22   : > { %6254 = vmatpush3.bf16.msra.mxu1 %v6287_v35  ;;  %5820 = vmatpush3.bf16.msra.mxu0 %v6287_v35  ;;  %v1042_v19 = vsel %vm6578_vm7, %v1034_v8, %v1041_v11  ;;  %v1279_v20 = vsel %vm6586_vm8, %v1033_v7, %v1278_v63  ;;  %v1283_v21 = vsel %vm6531_vm3, %v1043_v12, %v1282_v0  ;;  %v806_v35 = vrot.slane %v802_v23, 4 }
  0x23   : > { %6247 = vmatprep.subr.bf16.mxu1 %v6288_v52  ;;  %5821 = vmatprep.subr.bf16.mxu0 %v6288_v52  ;;  %1280 = vst [vmem:[#allocation2 + $0x60] sm:$0xf] %v1279_v20  ;;  %1281 = vst [vmem:[#allocation2 + $0x64] sm:$0xf] %v1042_v19  ;;  %v815_v37 = vrot.slane %v810_v24, 4  ;;  %v1047_v40 = vrot.slane %v1045_v29, 7  ;;  %v822_v46 = vsel %vm6586_vm8, %v805_v34, %v821_v25  ;;  %v5452_v60 = vunpack.c.l.bf16 %v6614_v44 }
  0x24   : > { %1284 = vst [vmem:[#allocation2 + $0x68] sm:$0x1] %v1283_v21  ;;  %v1053_v41 = vshrl.u32 %v5361_v26, 16  ;;  %v1056_v42 = vshll.u32 %v5361_v26, 16  ;;  %v620_v43 = vmax.f32 %v588_v27, 0.0  ;;  %v814_v45 = vsel %vm6578_vm7, %v806_v35, %v813_v36 }
  0x25   : > { %v826_v47 = vsel %vm6531_vm3, %v815_v37, %v825_v28  ;;  %v621_v49 = vmax.f32 %v589_v31, 0.0  ;;  %823 = vst [vmem:[#allocation2] sm:$0xf] %v822_v46  ;;  %824 = vst [vmem:[#allocation2 + $0x4] sm:$0xf] %v814_v45  ;;  %v1050_v51 = vor.u32 %v1048_v30, %v1047_v40  ;;  %v742_v54 = vsel %vm6544_vm4, 0, %v741_v38 }
  0x26   : > { %6255 = vmatpush3.bf16.msra.mxu1 %v6288_v52  ;;  %5822 = vmatpush3.bf16.msra.mxu0 %v6288_v52  ;;  %827 = vst [vmem:[#allocation2 + $0x8] sm:$0x1] %v826_v47  ;;  %v1051_v52 = vrot.slane %v1047_v40, 4  ;;  %v1055_v53 = vrot.slane %v1053_v41, 7  ;;  %v8119_v55 = vmov 0   ;;  %v5344_v58 = vpack.c.bf16 %v620_v43, %v620_v43 }
  0x27   : > { %6248 = vmatprep.subr.bf16.mxu1 %v6289_v6  ;;  %5823 = vmatprep.subr.bf16.mxu0 %v6289_v6  ;;  %1378 = vst [vmem:[#allocation2] sm:$0xf] %v8119_v55  ;;  %1379 = vst [vmem:[#allocation2 + $0x4] sm:$0xf] %v8119_v55  ;;  %v6631_v59 = vpack.c.bf16 %v621_v49, %v621_v49  ;;  %v1286_v2 = vsel %vm6586_vm8, %v1050_v51, %v1285_v48  ;;  %v5453_v3 = vunpack.c.h.bf16 %v6614_v44  ;;  %v8151_v25 = vmov 0 }
  0x28   : > { %1380 = vst [vmem:[#allocation2 + $0x8] sm:$0x1] %v8119_v55  ;;  %743 = vst [vmem:[#allocation2 + $0x14] sm:$0x1] %v742_v54  ;;  %v1058_v1 = vor.u32 %v1056_v42, %v1055_v53  ;;  %v5420_v5 = vunpack.c.l.bf16 %v6623_v50  ;;  %v1060_v14 = vrot.slane %v1055_v53, 4  ;;  %v909_v15 = vshrl.u32 %v5344_v58, 16 }
  0x29   : > { %1287 = vst [vmem:[#allocation2 + $0x6c] sm:$0xf] %v1286_v2  ;;  %v912_v24 = vshll.u32 %v5344_v58, 16  ;;  %v8152_v25 = vsel %vm6647_vm11, 4294967295, %v8151_v25  ;;  %v917_v28 = vshrl.u32 %v6631_v59, 16  ;;  %v920_v29 = vshll.u32 %v6631_v59, 16 }
  0x2a   : > { %6256 = vmatpush3.bf16.msra.mxu1 %v6289_v6  ;;  %5824 = vmatpush3.bf16.msra.mxu0 %v6289_v6  ;;  %v1408_v61 = vld [vmem:[#allocation2 + $0x60] sm:$0xf]  ;;  %v1409_v63 = vld [vmem:[#allocation2 + $0x64] sm:$0xf]  ;;  %v1059_v13 = vsel %vm6578_vm7, %v1051_v52, %v1058_v1  ;;  %v1290_v22 = vsel %vm6531_vm3, %v1060_v14, %v1289_v56  ;;  %v6643_v23 = vrot.slane %v909_v15, 7  ;;  %8153 = vst [vmem:[#allocation3_spill] sm:$0xff] %v8152_v25  ;;  %v5421_v37 = vunpack.c.h.bf16 %v6623_v50 }
  0x2b   : > { %5857 = vmatprep.subr.bf16.mxu1 %v6606_v33  ;;  %5905 = vmatprep.subr.bf16.mxu0 %v6611_v39  ;;  %v1410_v0 = vld [vmem:[#allocation2 + $0x68] sm:$0x1]  ;;  %v1634_v6 = vshrl.u32 %v1408_v61, 16  ;;  %v1637_v7 = vshll.u32 %v1408_v61, 16  ;;  %v1643_v8 = vshll.u32 %v1409_v63, 16  ;;  %v1647_v11 = vshrl.u32 %v1409_v63, 16 }
  0x2c   : > { %v1653_v12 = vshll.u32 %v1410_v0, 16  ;;  %1288 = vst [vmem:[#allocation2 + $0x70] sm:$0xf] %v1059_v13  ;;  %1291 = vst [vmem:[#allocation2 + $0x74] sm:$0x1] %v1290_v22  ;;  %v914_v34 = vor.u32 %v912_v24, %v6643_v23  ;;  %v574_v35 = vmul.f32 %v5452_v60, %v6517_v4  ;;  %v575_v36 = vmul.f32 %v5453_v3, %v6517_v4  ;;  %v6292_v50 = vld [vmem:[%s8114_s3 + $0x30] sm:$0xff]  }
  0x2d   : > { %v1636_v17 = vrot.slane %v1634_v6, 4  ;;  %v1639_v18 = vrot.slane %v1637_v7, 5  ;;  %v1645_v19 = vrot.slane %v1643_v8, 5  ;;  %v1649_v20 = vrot.slane %v1647_v11, 4  ;;  %v1229_v1 = vld [vmem:[#allocation2 + $0xc] sm:$0xf] }
  0x2e   : > { %v1655_v21 = vrot.slane %v1653_v12, 5  ;;  %v1384_v30 = vld [vmem:[#allocation2] sm:$0xf]  ;;  %v1385_v31 = vld [vmem:[#allocation2 + $0x4] sm:$0xf]  ;;  %v558_v47 = vmul.f32 %v5420_v5, %v6517_v4  ;;  %v915_v6 = vrot.slane %v6643_v23, 4  ;;  %v1230_v23 = vsel %vm6586_vm8, %v914_v34, %v1229_v1 }
  0x2f   : > { %v1640_v26 = vor.u32 %v1639_v18, %v1636_v17  ;;  %v1650_v27 = vor.u32 %v1649_v20, %v1645_v19  ;;  %v1386_v32 = vld [vmem:[#allocation2 + $0x8] sm:$0x1]  ;;  %v1442_v41 = vshrl.u32 %v1384_v30, 16  ;;  %v1445_v42 = vshll.u32 %v1384_v30, 16  ;;  %v712_v14 = vld [vmem:[#allocation2 + $0x78] sm:$0x1] }
  0x30   : > { %v1451_v43 = vshll.u32 %v1385_v31, 16  ;;  %v1455_v44 = vshrl.u32 %v1385_v31, 16  ;;  %v1461_v45 = vshll.u32 %v1386_v32, 16  ;;  %v1411_v46 = vld [vmem:[#allocation2 + $0x6c] sm:$0xf]  ;;  %v919_v7 = vrot.slane %v917_v28, 7 }
  0x31   : > { %v1641_v38 = vrot.slane %v1640_v26, 4  ;;  %v1651_v40 = vrot.slane %v1650_v27, 4  ;;  %v1444_v51 = vrot.slane %v1442_v41, 4  ;;  %v1447_v52 = vrot.slane %v1445_v42, 5  ;;  %v768_v15 = vld [vmem:[#allocation2 + $0x80] sm:$0x1] }
  0x32   : > { %v1453_v54 = vrot.slane %v1451_v43, 5  ;;  %v1457_v56 = vrot.slane %v1455_v44, 4  ;;  %v1463_v58 = vrot.slane %v1461_v45, 5  ;;  %v1658_v61 = vshrl.u32 %v1411_v46, 16  ;;  %v688_v27 = vld [vmem:[#allocation2 + $0x18] sm:$0x1] }
  0x33   : > { %v1646_v48 = vsel %vm6647_vm11, %v1641_v38, %v1645_v19  ;;  %v1656_v49 = vsel %vm6647_vm11, %v1651_v40, %v1655_v21  ;;  %v1412_v59 = vld [vmem:[#allocation2 + $0x70] sm:$0xf]  ;;  %v1448_v60 = vor.u32 %v1447_v52, %v1444_v51  ;;  %v1661_v63 = vshll.u32 %v1411_v46, 16  ;;  %v1413_v3 = vld [vmem:[#allocation2 + $0x74] sm:$0x1] }
  0x34   : > { %v6662_v53 = vcombine.low %v1646_v48, %v1656_v49  ;;  %v1667_v0 = vshll.u32 %v1412_v59, 16  ;;  %v1458_v2 = vor.u32 %v1457_v56, %v1453_v54  ;;  %v1671_v5 = vshrl.u32 %v1412_v59, 16  ;;  %v1233_v21 = vld [vmem:[#allocation2 + $0x14] sm:$0x1]  ;;  %v744_v28 = vld [vmem:[#allocation2 + $0x20] sm:$0x1] }
  0x35   : > { %v1449_v8 = vrot.slane %v1448_v60, 4  ;;  %v1660_v11 = vrot.slane %v1658_v61, 4  ;;  %v1663_v12 = vrot.slane %v1661_v63, 5  ;;  %v1677_v19 = vshll.u32 %v1413_v3, 16  ;;  %1231 = vst [vmem:[#allocation2 + $0xc] sm:$0xf] %v1230_v23 }
  0x36   : > { %5841 = vmatprep.mubr.bf16.mxu1 %v6662_v53  ;;  %v1669_v13 = vrot.slane %v1667_v0, 5  ;;  %v1459_v17 = vrot.slane %v1458_v2, 4  ;;  %v1673_v18 = vrot.slane %v1671_v5, 4  ;;  %v922_v20 = vor.u32 %v920_v29, %v919_v7  ;;  %v715_v51 = vld [vmem:[#allocation2 + $0x84] sm:$0x1] }
  0x37   : > { %v1454_v22 = vsel %vm6647_vm11, %v1449_v8, %v1453_v54  ;;  %v1664_v24 = vor.u32 %v1663_v12, %v1660_v11  ;;  %v924_v26 = vrot.slane %v919_v7, 4  ;;  %v1679_v32 = vrot.slane %v1677_v19, 5  ;;  %v6294_v19 = vld [vmem:[%s8114_s3 + $0x28] sm:$0xff]  }
  0x38   : > { %v1464_v30 = vsel %vm6647_vm11, %v1459_v17, %v1463_v58  ;;  %v1674_v31 = vor.u32 %v1673_v18, %v1669_v13  ;;  %v923_v38 = vsel %vm6578_vm7, %v915_v6, %v922_v20  ;;  %v606_v34 = vadd.f32 %v6527_v9, %v574_v35 }
  0x39   : > { %v5065_v29 = vcombine.low %v1454_v22, %v1464_v30  ;;  %v1665_v40 = vrot.slane %v1664_v24, 4  ;;  %1232 = vst [vmem:[#allocation2 + $0x10] sm:$0xf] %v923_v38  ;;  %v1234_v41 = vsel %vm6531_vm3, %v924_v26, %v1233_v21  ;;  %v607_v43 = vadd.f32 %v6527_v9, %v575_v36  ;;  %v6689_v36 = vld [vmem:[%s6509_s14 + $0x50] sm:$0xff]  }
  0x3a   : > { %v1675_v42 = vrot.slane %v1674_v31, 4  ;;  %1235 = vst [vmem:[#allocation2 + $0x14] sm:$0x1] %v1234_v41  ;;  %v713_v44 = vsel %vm6531_vm3, 0, %v712_v14  ;;  %v769_v45 = vsel %vm6544_vm4, 0, %v768_v15  ;;  %v638_v48 = vmax.f32 %v606_v34, 0.0 }
  0x3b   : > { %5825 = vmatprep.mubr.bf16.mxu0 %v5065_v29  ;;  %v1670_v46 = vsel %vm6647_vm11, %v1665_v40, %v1669_v13  ;;  %714 = vst [vmem:[#allocation2 + $0x78] sm:$0x1] %v713_v44  ;;  %770 = vst [vmem:[#allocation2 + $0x80] sm:$0x1] %v769_v45  ;;  %v559_v35 = vmul.f32 %v5421_v37, %v6517_v4  ;;  %v590_v49 = vadd.f32 %v6527_v9, %v558_v47  ;;  %v6296_v44 = vld [vmem:[%s8114_s3 + $0x20] sm:$0xff]   ;;  %vm4797_vm15 = vcmask 1041408  }
  0x3c   : > { %v1680_v52 = vsel %vm6647_vm11, %v1675_v42, %v1679_v32  ;;  %v639_v54 = vmax.f32 %v607_v43, 0.0  ;;  %v689_v56 = vsel %vm6531_vm3, 0, %v688_v27  ;;  %v745_v58 = vsel %vm6544_vm4, 0, %v744_v28  ;;  %v1387_v1 = vld [vmem:[#allocation2 + $0xc] sm:$0xf] }
  0x3d   : > { %v6697_v59 = vcombine.low %v1670_v46, %v1680_v52  ;;  %v5362_v37 = vpack.c.bf16 %v638_v48, %v638_v48  ;;  %v591_v47 = vadd.f32 %v6527_v9, %v559_v35  ;;  %v622_v60 = vmax.f32 %v590_v49, 0.0  ;;  %690 = vst [vmem:[#allocation2 + $0x18] sm:$0x1] %v689_v56  ;;  %746 = vst [vmem:[#allocation2 + $0x20] sm:$0x1] %v745_v58 }
  0x3e   : > { %v5363_v61 = vpack.c.bf16 %v639_v54, %v639_v54  ;;  %v5456_v63 = vunpack.c.l.bf16 %v6689_v36  ;;  %v716_v0 = vsel %vm6531_vm3, 0, %v715_v51  ;;  %v5457_v6 = vunpack.c.h.bf16 %v6689_v36  ;;  %v771_v49 = vld [vmem:[#allocation2 + $0x8c] sm:$0x1] }
  0x3f   : > { %5842 = vmatmul.mubr.bf16.vlgmr.msra.gmra.mxu1 %v6697_v59  ;;  %v1062_v2 = vshrl.u32 %v5362_v37, 16  ;;  %v1065_v3 = vshll.u32 %v5362_v37, 16  ;;  %v623_v5 = vmax.f32 %v591_v47, 0.0  ;;  %717 = vst [vmem:[#allocation2 + $0x84] sm:$0x1] %v716_v0  ;;  %v1466_v8 = vshrl.u32 %v1387_v1, 16 }
  0x40   : > { %5858 = vmatpush3.bf16.msra.mxu1 %v6606_v33  ;;  %v1388_v7 = vld [vmem:[#allocation2 + $0x10] sm:$0xf]  ;;  %v1469_v11 = vshll.u32 %v1387_v1, 16  ;;  %v1070_v12 = vshrl.u32 %v5363_v61, 16  ;;  %v5346_v13 = vpack.c.bf16 %v622_v60, %v622_v60  ;;  %v1073_v26 = vshll.u32 %v5363_v61, 16 }
  0x41   : > { %v1389_v14 = vld [vmem:[#allocation2 + $0x14] sm:$0x1]  ;;  %v1475_v15 = vshll.u32 %v1388_v7, 16  ;;  %v1479_v17 = vshrl.u32 %v1388_v7, 16  ;;  %5859 = vmatprep.subr.bf16.mxu1 %v6292_v50  ;;  %v1064_v18 = vrot.slane %v1062_v2, 7  ;;  %v5347_v20 = vpack.c.bf16 %v623_v5, %v623_v5 }
  0x42   : > { %v1468_v21 = vrot.slane %v1466_v8, 4  ;;  %v1471_v22 = vrot.slane %v1469_v11, 5  ;;  %v1485_v24 = vshll.u32 %v1389_v14, 16  ;;  %v1292_v33 = vld [vmem:[#allocation2 + $0x78] sm:$0xf]  ;;  %v1072_v38 = vrot.slane %v1070_v12, 7 }
  0x43   : > { %v1477_v23 = vrot.slane %v1475_v15, 5  ;;  %v1481_v27 = vrot.slane %v1479_v17, 4  ;;  %v1067_v28 = vor.u32 %v1065_v3, %v1064_v18  ;;  %v1068_v30 = vrot.slane %v1064_v18, 4  ;;  %v1296_v34 = vld [vmem:[#allocation2 + $0x80] sm:$0x1]  ;;  %v6298_v11 = vld [vmem:[%s8114_s3 + $0x18] sm:$0xff]  }
  0x44   : > { %v1472_v31 = vor.u32 %v1471_v22, %v1468_v21  ;;  %v1487_v32 = vrot.slane %v1485_v24, 5  ;;  %5860 = vmatpush3.bf16.msra.mxu1 %v6292_v50  ;;  %v926_v29 = vshrl.u32 %v5346_v13, 16  ;;  %v929_v42 = vshll.u32 %v5346_v13, 16  ;;  %v1236_v56 = vld [vmem:[#allocation2 + $0x18] sm:$0xf]  ;;  %v5564_v50 = vld [vmem:[%s6509_s14 + $0x10] sm:$0xff]  }
  0x45   : > { %v1482_v40 = vor.u32 %v1481_v27, %v1477_v23  ;;  %v1293_v41 = vsel %vm6586_vm8, %v1067_v28, %v1292_v33  ;;  %5861 = vmatprep.subr.bf16.mxu1 %v6294_v19  ;;  %v934_v43 = vshrl.u32 %v5347_v20, 16  ;;  %v1075_v46 = vor.u32 %v1073_v26, %v1072_v38  ;;  %v691_v37 = vld [vmem:[#allocation2 + $0x24] sm:$0x1]  ;;  %v1240_v1 = vld [vmem:[#allocation2 + $0x20] sm:$0x1]  ;;  %v5573_v17 = vld [vmem:[%s6509_s14 + $0x58] sm:$0xff]  }
  0x46   : > { %v1473_v45 = vrot.slane %v1472_v31, 4  ;;  %v1077_v48 = vrot.slane %v1072_v38, 4  ;;  %1294 = vst [vmem:[#allocation2 + $0x78] sm:$0xf] %v1293_v41  ;;  %v928_v35 = vrot.slane %v926_v29, 7  ;;  %v937_v54 = vshll.u32 %v5347_v20, 16 }
  0x47   : > { %v1483_v51 = vrot.slane %v1482_v40, 4  ;;  %v936_v52 = vrot.slane %v934_v43, 7  ;;  %v576_v58 = vmul.f32 %v5456_v63, %v6517_v4  ;;  %v1076_v60 = vsel %vm6578_vm7, %v1068_v30, %v1075_v46  ;;  %v747_v2 = vld [vmem:[#allocation2 + $0x2c] sm:$0x1]  ;;  %v6293_v63 = vld [vmem:[%s8114_s3 + $0xb0] sm:$0xff]   ;;  %v6749_v22 = vld [vmem:[%s6509_s14 + $0x18] sm:$0xff]  }
  0x48   : > { %v1478_v47 = vsel %vm6647_vm11, %v1473_v45, %v1477_v23  ;;  %v1297_v61 = vsel %vm6531_vm3, %v1077_v48, %v1296_v34  ;;  %v931_v0 = vor.u32 %v929_v42, %v928_v35  ;;  %5862 = vmatpush3.bf16.msra.mxu1 %v6294_v19  ;;  %1295 = vst [vmem:[#allocation2 + $0x7c] sm:$0xf] %v1076_v60  ;;  %v932_v5 = vrot.slane %v928_v35, 4  ;;  %v6300_v31 = vld [vmem:[%s8114_s3 + $0x10] sm:$0xff]  }
  0x49   : > { %v1488_v3 = vsel %vm6647_vm11, %v1483_v51, %v1487_v32  ;;  %1298 = vst [vmem:[#allocation2 + $0x80] sm:$0x1] %v1297_v61  ;;  %v939_v7 = vor.u32 %v937_v54, %v936_v52  ;;  %v941_v8 = vrot.slane %v936_v52, 4  ;;  %5863 = vmatprep.subr.bf16.mxu1 %v6296_v44  ;;  %v577_v14 = vmul.f32 %v5457_v6, %v6517_v4  ;;  %v6297_v61 = vld [vmem:[%s8114_s3 + $0xa0] sm:$0xff]  }
  0x4a   : > { %v6733_v12 = vcombine.low %v1478_v47, %v1488_v3  ;;  %v1237_v13 = vsel %vm6586_vm8, %v931_v0, %v1236_v56  ;;  %v608_v15 = vadd.f32 %v6527_v9, %v576_v58  ;;  %v772_v20 = vsel %vm6544_vm4, 0, %v771_v49 }
  0x4b   : > { %v940_v18 = vsel %vm6578_vm7, %v932_v5, %v939_v7  ;;  %1238 = vst [vmem:[#allocation2 + $0x18] sm:$0xf] %v1237_v13  ;;  %v1241_v19 = vsel %vm6531_vm3, %v941_v8, %v1240_v1  ;;  %v5424_v21 = vunpack.c.l.bf16 %v5564_v50  ;;  %v609_v36 = vadd.f32 %v6527_v9, %v577_v14  ;;  %773 = vst [vmem:[#allocation2 + $0x8c] sm:$0x1] %v772_v20 }
  0x4c   : > { %5826 = vmatmul.mubr.bf16.vlgmr.msra.gmra.mxu0 %v6733_v12  ;;  %1239 = vst [vmem:[#allocation2 + $0x1c] sm:$0xf] %v940_v18  ;;  %1242 = vst [vmem:[#allocation2 + $0x20] sm:$0x1] %v1241_v19  ;;  %v640_v6 = vmax.f32 %v608_v15, 0.0  ;;  %v5425_v24 = vunpack.c.h.bf16 %v5564_v50  ;;  %v692_v26 = vsel %vm6531_vm3, 0, %v691_v37  ;;  %5864 = vmatpush3.bf16.msra.mxu1 %v6296_v44  ;;  %v5460_v28 = vunpack.c.l.bf16 %v5573_v17 }
  0x4d   : > { %5906 = vmatpush3.bf16.msra.mxu0 %v6611_v39  ;;  %v1414_v33 = vld [vmem:[#allocation2 + $0x78] sm:$0xf]  ;;  %v560_v23 = vmul.f32 %v5424_v21, %v6517_v4  ;;  %693 = vst [vmem:[#allocation2 + $0x24] sm:$0x1] %v692_v26  ;;  %v748_v27 = vsel %vm6544_vm4, 0, %v747_v2  ;;  %v5461_v30 = vunpack.c.h.bf16 %v5573_v17  ;;  %5865 = vmatprep.subr.bf16.mxu1 %v6298_v11  ;;  %v641_v29 = vmax.f32 %v609_v36, 0.0 }
  0x4e   : > { %5907 = vmatprep.subr.bf16.mxu0 %v6293_v63  ;;  %v1682_v32 = vshrl.u32 %v1414_v33, 16  ;;  %v1685_v38 = vshll.u32 %v1414_v33, 16  ;;  %v5364_v40 = vpack.c.bf16 %v640_v6, %v640_v6  ;;  %749 = vst [vmem:[#allocation2 + $0x2c] sm:$0x1] %v748_v27  ;;  %v6295_v39 = vld [vmem:[%s8114_s3 + $0xa8] sm:$0xff]   ;;  %v561_v41 = vmul.f32 %v5425_v24, %v6517_v4  ;;  %v6304_v19 = vld [vmem:[%s8114_s3] sm:$0xff]  }
  0x4f   : > { %v6767_v34 = vadd.f32 %v6527_v9, %v560_v23  ;;  %v578_v42 = vmul.f32 %v5460_v28, %v6517_v4  ;;  %v6771_v43 = vmul.f32 %v5461_v30, %v6517_v4  ;;  %v6302_v44 = vld [vmem:[%s8114_s3 + $0x8] sm:$0xff]   ;;  %v1415_v45 = vld [vmem:[#allocation2 + $0x7c] sm:$0xf]  ;;  %v6776_v49 = vpack.c.bf16 %v641_v29, %v641_v29  ;;  %v1299_v24 = vld [vmem:[#allocation2 + $0x84] sm:$0xf] }
  0x50   : > { %v1416_v46 = vld [vmem:[#allocation2 + $0x80] sm:$0x1]  ;;  %v1684_v48 = vrot.slane %v1682_v32, 4  ;;  %v1687_v35 = vrot.slane %v1685_v38, 5  ;;  %v5428_v51 = vunpack.c.l.bf16 %v6749_v22  ;;  %5866 = vmatpush3.bf16.msra.mxu1 %v6298_v11  ;;  %v1691_v52 = vshll.u32 %v1415_v45, 16  ;;  %v6299_v26 = vld [vmem:[%s8114_s3 + $0x98] sm:$0xff]  }
  0x51   : > { %5908 = vmatpush3.bf16.msra.mxu0 %v6293_v63  ;;  %v1695_v54 = vshrl.u32 %v1415_v45, 16  ;;  %v1701_v56 = vshll.u32 %v1416_v46, 16  ;;  %v1079_v58 = vshrl.u32 %v5364_v40, 16  ;;  %5867 = vmatprep.subr.bf16.mxu1 %v6300_v31  ;;  %v1082_v37 = vshll.u32 %v5364_v40, 16  ;;  %v6301_v29 = vld [vmem:[%s8114_s3 + $0x90] sm:$0xff]  }
  0x52   : > { %v1688_v4 = vor.u32 %v1687_v35, %v1684_v48  ;;  %v1390_v50 = vld [vmem:[#allocation2 + $0x18] sm:$0xf]  ;;  %v1087_v47 = vshrl.u32 %v6776_v49, 16  ;;  %v1090_v60 = vshll.u32 %v6776_v49, 16  ;;  %5909 = vmatprep.subr.bf16.mxu0 %v6295_v39  ;;  %v1693_v0 = vrot.slane %v1691_v52, 5 }
  0x53   : > { %v1697_v1 = vrot.slane %v1695_v54, 4  ;;  %v1703_v2 = vrot.slane %v1701_v56, 5  ;;  %v1391_v3 = vld [vmem:[#allocation2 + $0x1c] sm:$0xf]  ;;  %v1490_v63 = vshrl.u32 %v1390_v50, 16  ;;  %v1493_v8 = vshll.u32 %v1390_v50, 16 }
  0x54   : > { %v1689_v5 = vrot.slane %v1688_v4, 4  ;;  %v1392_v7 = vld [vmem:[#allocation2 + $0x20] sm:$0x1]  ;;  %v1499_v11 = vshll.u32 %v1391_v3, 16  ;;  %v1503_v13 = vshrl.u32 %v1391_v3, 16  ;;  %5868 = vmatpush3.bf16.msra.mxu1 %v6300_v31  ;;  %v1081_v18 = vrot.slane %v1079_v58, 7 }
  0x55   : > { %v1698_v14 = vor.u32 %v1697_v1, %v1693_v0  ;;  %v1492_v15 = vrot.slane %v1490_v63, 4  ;;  %v1509_v17 = vshll.u32 %v1392_v7, 16  ;;  %5910 = vmatpush3.bf16.msra.mxu0 %v6295_v39  ;;  %5869 = vmatprep.subr.bf16.mxu1 %v6302_v44  ;;  %v1495_v21 = vrot.slane %v1493_v8, 5  ;;  %v718_v48 = vld [vmem:[#allocation2 + $0x90] sm:$0x1] }
  0x56   : > { %v1694_v20 = vsel %vm6647_vm11, %v1689_v5, %v1693_v0  ;;  %v1501_v36 = vrot.slane %v1499_v11, 5  ;;  %v1505_v6 = vrot.slane %v1503_v13, 4  ;;  %5911 = vmatprep.subr.bf16.mxu0 %v6297_v61  ;;  %v1084_v27 = vor.u32 %v1082_v37, %v1081_v18  ;;  %v774_v35 = vld [vmem:[#allocation2 + $0x98] sm:$0x1]  ;;  %v1303_v56 = vld [vmem:[#allocation2 + $0x8c] sm:$0x1] }
  0x57   : > { %v1699_v33 = vrot.slane %v1698_v14, 4  ;;  %v1511_v23 = vrot.slane %v1509_v17, 5  ;;  %v1085_v28 = vrot.slane %v1081_v18, 4  ;;  %v1496_v30 = vor.u32 %v1495_v21, %v1492_v15  ;;  %v694_v50 = vld [vmem:[#allocation2 + $0x30] sm:$0x1] }
  0x58   : > { %v1506_v31 = vor.u32 %v1505_v6, %v1501_v36  ;;  %v1089_v32 = vrot.slane %v1087_v47, 7  ;;  %v593_v38 = vadd.f32 %v6527_v9, %v561_v41  ;;  %5870 = vmatpush3.bf16.msra.mxu1 %v6302_v44  ;;  %v1300_v39 = vsel %vm6586_vm8, %v1084_v27, %v1299_v24  ;;  %v6307_v41 = vld [vmem:[%s8114_s3 + $0xf8] sm:$0xff]   ;;  %v1243_v63 = vld [vmem:[#allocation2 + $0x24] sm:$0xf]  ;;  %v6398_v25 = vld [vmem:[#allocation2 + $0x80] sm:$0x1] }
  0x59   : > { %v1704_v40 = vsel %vm6647_vm11, %v1699_v33, %v1703_v2  ;;  %v624_v45 = vmax.f32 %v6767_v34, 0.0  ;;  %5912 = vmatpush3.bf16.msra.mxu0 %v6297_v61  ;;  %v610_v46 = vadd.f32 %v6527_v9, %v578_v42  ;;  %5871 = vmatprep.subr.bf16.mxu1 %v6304_v19  ;;  %v1497_v44 = vrot.slane %v1496_v30, 4  ;;  %1301 = vst [vmem:[#allocation2 + $0x84] sm:$0xf] %v1300_v39  ;;  %v6303_v2 = vld [vmem:[%s8114_s3 + $0x88] sm:$0xff]  }
  0x5a   : > { %v6805_v49 = vcombine.low %v1694_v20, %v1704_v40  ;;  %v1507_v52 = vrot.slane %v1506_v31, 4  ;;  %v1092_v54 = vor.u32 %v1090_v60, %v1089_v32  ;;  %5913 = vmatprep.subr.bf16.mxu0 %v6299_v26  ;;  %v1094_v58 = vrot.slane %v1089_v32, 4  ;;  %v1247_v30 = vld [vmem:[#allocation2 + $0x2c] sm:$0x1] }
  0x5b   : > { %v625_v34 = vmax.f32 %v593_v38, 0.0  ;;  %v5348_v4 = vpack.c.bf16 %v624_v45, %v624_v45  ;;  %v611_v42 = vadd.f32 %v6527_v9, %v6771_v43  ;;  %v1502_v37 = vsel %vm6647_vm11, %v1497_v44, %v1501_v36 }
  0x5c   : > { %5845 = vmatprep.mubr.bf16.mxu1 %v6805_v49  ;;  %v1512_v47 = vsel %vm6647_vm11, %v1507_v52, %v1511_v23  ;;  %v1093_v60 = vsel %vm6578_vm7, %v1085_v28, %v1092_v54  ;;  %v642_v61 = vmax.f32 %v610_v46, 0.0  ;;  %5872 = vmatpush3.bf16.msra.mxu1 %v6304_v19  ;;  %v1304_v9 = vsel %vm6531_vm3, %v1094_v58, %v1303_v56  ;;  %v6832_v19 = vld [vmem:[%s8115_s4] ss:$0 sm:$0xff]  ;;  %v750_v58 = vld [vmem:[#allocation2 + $0x38] sm:$0x1] }
  0x5d   : > { %v6816_v0 = vcombine.low %v1502_v37, %v1512_v47  ;;  %1302 = vst [vmem:[#allocation2 + $0x88] sm:$0xf] %v1093_v60  ;;  %v5349_v43 = vpack.c.bf16 %v625_v34, %v625_v34  ;;  %v943_v1 = vshrl.u32 %v5348_v4, 16  ;;  %5914 = vmatpush3.bf16.msra.mxu0 %v6299_v26  ;;  %5953 = vmatprep.subr.bf16.mxu1 %v6307_v41  ;;  %1305 = vst [vmem:[#allocation2 + $0x8c] sm:$0x1] %v1304_v9  ;;  %v6305_v23 = vld [vmem:[%s8114_s3 + $0x80] sm:$0xff]  }
  0x5e   : > { %v946_v3 = vshll.u32 %v5348_v4, 16  ;;  %v643_v5 = vmax.f32 %v611_v42, 0.0  ;;  %v719_v7 = vsel %vm6531_vm3, 0, %v718_v48  ;;  %v775_v8 = vsel %vm6544_vm4, 0, %v774_v35  ;;  %5915 = vmatprep.subr.bf16.mxu0 %v6301_v29  ;;  %v6309_v35 = vld [vmem:[%s8114_s3 + $0x138] sm:$0xff]  }
  0x5f   : > { %5829 = vmatprep.mubr.bf16.mxu0 %v6816_v0  ;;  %v945_v11 = vrot.slane %v943_v1, 7  ;;  %v951_v13 = vshrl.u32 %v5349_v43, 16  ;;  %v954_v14 = vshll.u32 %v5349_v43, 16  ;;  %720 = vst [vmem:[#allocation2 + $0x90] sm:$0x1] %v719_v7  ;;  %v5366_v15 = vpack.c.bf16 %v642_v61, %v642_v61  ;;  %v5574_v1 = vld [vmem:[%s6509_s14 + $0x60] sm:$0xff]  }
  0x60   : > { %776 = vst [vmem:[#allocation2 + $0x98] sm:$0x1] %v775_v8  ;;  %v5367_v17 = vpack.c.bf16 %v643_v5, %v643_v5  ;;  %v5429_v18 = vunpack.c.h.bf16 %v6749_v22  ;;  %v562_v20 = vmul.f32 %v6832_v19, %v5428_v51  ;;  %v695_v21 = vsel %vm6531_vm3, 0, %v694_v50  ;;  %v1417_v36 = vld [vmem:[#allocation2 + $0x84] sm:$0xf] }
  0x61   : > { %v948_v6 = vor.u32 %v946_v3, %v945_v11  ;;  %v949_v24 = vrot.slane %v945_v11, 4  ;;  %v953_v26 = vrot.slane %v951_v13, 7  ;;  %v1096_v33 = vshrl.u32 %v5366_v15, 16  ;;  %696 = vst [vmem:[#allocation2 + $0x30] sm:$0x1] %v695_v21  ;;  %5916 = vmatpush3.bf16.msra.mxu0 %v6301_v29 }
  0x62   : > { %v1706_v27 = vshrl.u32 %v1417_v36, 16  ;;  %v1709_v28 = vshll.u32 %v1417_v36, 16  ;;  %v1099_v22 = vshll.u32 %v5366_v15, 16  ;;  %v1104_v31 = vshrl.u32 %v5367_v17, 16  ;;  %5917 = vmatprep.subr.bf16.mxu0 %v6303_v2  ;;  %v721_v7 = vld [vmem:[#allocation2 + $0x9c] sm:$0x1] }
  0x63   : > { %v956_v51 = vor.u32 %v954_v14, %v953_v26  ;;  %v958_v32 = vrot.slane %v953_v26, 4  ;;  %v1244_v38 = vsel %vm6586_vm8, %v948_v6, %v1243_v63  ;;  %v1098_v40 = vrot.slane %v1096_v33, 7  ;;  %v6862_v14 = vld [vmem:[%s8116_s5] ss:$0 sm:$0xff]  ;;  %v777_v6 = vld [vmem:[#allocation2 + $0xa4] sm:$0x1] }
  0x64   : > { %v1418_v39 = vld [vmem:[#allocation2 + $0x88] sm:$0xf]  ;;  %v1708_v45 = vrot.slane %v1706_v27, 4  ;;  %v1711_v46 = vrot.slane %v1709_v28, 5  ;;  %1245 = vst [vmem:[#allocation2 + $0x24] sm:$0xf] %v1244_v38  ;;  %v594_v15 = vadd.f32 %v6862_v14, %v562_v20  ;;  %v5464_v36 = vunpack.c.l.bf16 %v5574_v1 }
  0x65   : > { %v1106_v29 = vrot.slane %v1104_v31, 7  ;;  %v1107_v48 = vshll.u32 %v5367_v17, 16  ;;  %v1419_v41 = vld [vmem:[#allocation2 + $0x8c] sm:$0x1]  ;;  %v1715_v44 = vshll.u32 %v1418_v39, 16  ;;  %v1719_v52 = vshrl.u32 %v1418_v39, 16  ;;  %5918 = vmatpush3.bf16.msra.mxu0 %v6303_v2 }
  0x66   : > { %v957_v54 = vsel %vm6578_vm7, %v949_v24, %v956_v51  ;;  %v1248_v56 = vsel %vm6531_vm3, %v958_v32, %v1247_v30  ;;  %v1712_v34 = vor.u32 %v1711_v46, %v1708_v45  ;;  %v1725_v4 = vshll.u32 %v1419_v41, 16  ;;  %v1306_v37 = vld [vmem:[#allocation2 + $0x90] sm:$0xf]  ;;  %5919 = vmatprep.subr.bf16.mxu0 %v6305_v23 }
  0x67   : > { %1246 = vst [vmem:[#allocation2 + $0x28] sm:$0xf] %v957_v54  ;;  %1249 = vst [vmem:[#allocation2 + $0x2c] sm:$0x1] %v1248_v56  ;;  %v1101_v42 = vor.u32 %v1099_v22, %v1098_v40  ;;  %v1102_v50 = vrot.slane %v1098_v40, 4  ;;  %v1717_v60 = vrot.slane %v1715_v44, 5  ;;  %v1109_v9 = vor.u32 %v1107_v48, %v1106_v29 }
  0x68   : > { %v1310_v47 = vld [vmem:[#allocation2 + $0x98] sm:$0x1]  ;;  %v1721_v61 = vrot.slane %v1719_v52, 4  ;;  %v1111_v43 = vrot.slane %v1106_v29, 4  ;;  %v1713_v3 = vrot.slane %v1712_v34, 4  ;;  %v1727_v63 = vrot.slane %v1725_v4, 5 }
  0x69   : > { %v1307_v5 = vsel %vm6586_vm8, %v1101_v42, %v1306_v37  ;;  %v563_v2 = vmul.f32 %v6832_v19, %v5429_v18  ;;  %v1110_v11 = vsel %vm6578_vm7, %v1102_v50, %v1109_v9  ;;  %5920 = vmatpush3.bf16.msra.mxu0 %v6305_v23  ;;  %v751_v21 = vsel %vm6544_vm4, 0, %v750_v58 }
  0x6a   : > { %v1722_v8 = vor.u32 %v1721_v61, %v1717_v60  ;;  %1308 = vst [vmem:[#allocation2 + $0x90] sm:$0xf] %v1307_v5  ;;  %v1311_v13 = vsel %vm6531_vm3, %v1111_v43, %v1310_v47  ;;  %v1718_v17 = vsel %vm6647_vm11, %v1713_v3, %v1717_v60  ;;  %1309 = vst [vmem:[#allocation2 + $0x94] sm:$0xf] %v1110_v11  ;;  %6001 = vmatprep.subr.bf16.mxu0 %v6309_v35  ;;  %v6881_v35 = vld [vmem:[%s6509_s14 + $0x20] sm:$0xff]  }
  0x6b   : > { %1312 = vst [vmem:[#allocation2 + $0x98] sm:$0x1] %v1311_v13  ;;  %v595_v18 = vadd.f32 %v6862_v14, %v563_v2  ;;  %v1393_v26 = vld [vmem:[#allocation2 + $0x24] sm:$0xf]  ;;  %v626_v33 = vmax.f32 %v594_v15, 0.0  ;;  %v5465_v27 = vunpack.c.h.bf16 %v5574_v1  ;;  %v722_v20 = vsel %vm6531_vm3, 0, %v721_v7 }
  0x6c   : > { %v1723_v24 = vrot.slane %v1722_v8, 4  ;;  %752 = vst [vmem:[#allocation2 + $0x38] sm:$0x1] %v751_v21  ;;  %v1514_v23 = vshrl.u32 %v1393_v26, 16  ;;  %v1517_v28 = vshll.u32 %v1393_v26, 16  ;;  %v580_v22 = vmul.f32 %v6832_v19, %v5464_v36 }
  0x6d   : > { %v627_v30 = vmax.f32 %v595_v18, 0.0  ;;  %723 = vst [vmem:[#allocation2 + $0x9c] sm:$0x1] %v722_v20  ;;  %v5350_v38 = vpack.c.bf16 %v626_v33, %v626_v33  ;;  %v581_v40 = vmul.f32 %v6832_v19, %v5465_v27  ;;  %v778_v39 = vsel %vm6544_vm4, 0, %v777_v6  ;;  %v1250_v11 = vld [vmem:[#allocation2 + $0x30] sm:$0xf] }
  0x6e   : > { %v1728_v31 = vsel %vm6647_vm11, %v1723_v24, %v1727_v63  ;;  %v1394_v51 = vld [vmem:[#allocation2 + $0x28] sm:$0xf]  ;;  %v1395_v32 = vld [vmem:[#allocation2 + $0x2c] sm:$0x1]  ;;  %v1516_v46 = vrot.slane %v1514_v23, 4  ;;  %v1519_v29 = vrot.slane %v1517_v28, 5  ;;  %v612_v42 = vadd.f32 %v6862_v14, %v580_v22 }
  0x6f   : > { %v6878_v45 = vcombine.low %v1718_v17, %v1728_v31  ;;  %v1523_v48 = vshll.u32 %v1394_v51, 16  ;;  %779 = vst [vmem:[#allocation2 + $0xa4] sm:$0x1] %v778_v39  ;;  %v1527_v41 = vshrl.u32 %v1394_v51, 16  ;;  %v1533_v44 = vshll.u32 %v1395_v32, 16 }
  0x70   : > { %v5351_v52 = vpack.c.bf16 %v627_v30, %v627_v30  ;;  %v960_v54 = vshrl.u32 %v5350_v38, 16  ;;  %v1520_v56 = vor.u32 %v1519_v29, %v1516_v46  ;;  %v963_v4 = vshll.u32 %v5350_v38, 16 }
  0x71   : > { %5846 = vmatmul.mubr.bf16.gmra.mxu1 %v6878_v45  ;;  %v1525_v58 = vrot.slane %v1523_v48, 5  ;;  %v1420_v34 = vld [vmem:[#allocation2 + $0x90] sm:$0xf]  ;;  %v1529_v50 = vrot.slane %v1527_v41, 4  ;;  %v1535_v37 = vrot.slane %v1533_v44, 5  ;;  %v613_v61 = vadd.f32 %v6862_v14, %v581_v40 }
  0x72   : > { %v1421_v47 = vld [vmem:[#allocation2 + $0x94] sm:$0xf]  ;;  %v1422_v60 = vld [vmem:[#allocation2 + $0x98] sm:$0x1]  ;;  %v5432_v9 = vunpack.c.l.bf16 %v6881_v35  ;;  %v1521_v43 = vrot.slane %v1520_v56, 4  ;;  %v1730_v1 = vshrl.u32 %v1420_v34, 16  ;;  %v5433_v29 = vunpack.c.h.bf16 %v6881_v35 }
  0x73   : > { %v1733_v3 = vshll.u32 %v1420_v34, 16  ;;  %v1739_v63 = vshll.u32 %v1421_v47, 16  ;;  %v1530_v5 = vor.u32 %v1529_v50, %v1525_v58  ;;  %v1743_v2 = vshrl.u32 %v1421_v47, 16  ;;  %v1254_v22 = vld [vmem:[#allocation2 + $0x38] sm:$0x1]  ;;  %v5575_v34 = vld [vmem:[%s6509_s14 + $0x68] sm:$0xff]  }
  0x74   : > { %v1749_v7 = vshll.u32 %v1422_v60, 16  ;;  %v962_v8 = vrot.slane %v960_v54, 7  ;;  %v1526_v13 = vsel %vm6647_vm11, %v1521_v43, %v1525_v58  ;;  %v1732_v15 = vrot.slane %v1730_v1, 4  ;;  %v697_v41 = vld [vmem:[#allocation2 + $0x3c] sm:$0x1] }
  0x75   : > { %v1735_v17 = vrot.slane %v1733_v3, 5  ;;  %v1741_v18 = vrot.slane %v1739_v63, 5  ;;  %v1531_v21 = vrot.slane %v1530_v5, 4  ;;  %v1745_v36 = vrot.slane %v1743_v2, 4  ;;  %v753_v58 = vld [vmem:[#allocation2 + $0x44] sm:$0x1] }
  0x76   : > { %v1751_v6 = vrot.slane %v1749_v7, 5  ;;  %v965_v24 = vor.u32 %v963_v4, %v962_v8  ;;  %v966_v33 = vrot.slane %v962_v8, 4  ;;  %v968_v27 = vshrl.u32 %v5351_v52, 16  ;;  %v1317_v3 = vld [vmem:[#allocation2 + $0xa4] sm:$0x1] }
  0x77   : > { %v1736_v26 = vor.u32 %v1735_v17, %v1732_v15  ;;  %v971_v20 = vshll.u32 %v5351_v52, 16  ;;  %v1536_v23 = vsel %vm6647_vm11, %v1531_v21, %v1535_v37  ;;  %v1746_v28 = vor.u32 %v1745_v36, %v1741_v18  ;;  %v724_v36 = vld [vmem:[#allocation2 + $0xa8] sm:$0x1] }
  0x78   : > { %v1251_v30 = vsel %vm6586_vm8, %v965_v24, %v1250_v11  ;;  %v644_v31 = vmax.f32 %v612_v42, 0.0  ;;  %v6893_v51 = vcombine.low %v1526_v13, %v1536_v23  ;;  %v970_v38 = vrot.slane %v968_v27, 7 }
  0x79   : > { %v1737_v32 = vrot.slane %v1736_v26, 4  ;;  %1252 = vst [vmem:[#allocation2 + $0x30] sm:$0xf] %v1251_v30  ;;  %v645_v40 = vmax.f32 %v613_v61, 0.0  ;;  %v1747_v39 = vrot.slane %v1746_v28, 4  ;;  %v564_v48 = vmul.f32 %v6832_v19, %v5432_v9 }
  0x7a   : > { %v5368_v46 = vpack.c.bf16 %v644_v31, %v644_v31  ;;  %5830 = vmatmul.mubr.bf16.gmra.mxu0 %v6893_v51  ;;  %v973_v52 = vor.u32 %v971_v20, %v970_v38  ;;  %v975_v54 = vrot.slane %v970_v38, 4  ;;  %v565_v35 = vmul.f32 %v6832_v19, %v5433_v29  ;;  %v1313_v9 = vld [vmem:[#allocation2 + $0x9c] sm:$0xf] }
  0x7b   : > { %v1742_v44 = vsel %vm6647_vm11, %v1737_v32, %v1741_v18  ;;  %v5369_v56 = vpack.c.bf16 %v645_v40, %v645_v40  ;;  %v1752_v4 = vsel %vm6647_vm11, %v1747_v39, %v1751_v6  ;;  %v596_v63 = vadd.f32 %v6862_v14, %v564_v48 }
  0x7c   : > { %v1113_v42 = vshrl.u32 %v5368_v46, 16  ;;  %v1116_v50 = vshll.u32 %v5368_v46, 16  ;;  %v6904_v37 = vcombine.low %v1742_v44, %v1752_v4  ;;  %v974_v47 = vsel %vm6578_vm7, %v966_v33, %v973_v52 }
  0x7d   : > { %v1255_v60 = vsel %vm6531_vm3, %v975_v54, %v1254_v22  ;;  %v1121_v61 = vshrl.u32 %v5369_v56, 16  ;;  %1253 = vst [vmem:[#allocation2 + $0x34] sm:$0xf] %v974_v47  ;;  %v1124_v1 = vshll.u32 %v5369_v56, 16  ;;  %v597_v5 = vadd.f32 %v6862_v14, %v565_v35 }
  0x7e   : > { %1256 = vst [vmem:[#allocation2 + $0x38] sm:$0x1] %v1255_v60  ;;  %v1115_v43 = vrot.slane %v1113_v42, 7  ;;  %5849 = vmatprep.mubr.bf16.mxu1 %v6904_v37  ;;  %v698_v7 = vsel %vm6531_vm3, 0, %v697_v41  ;;  %v754_v8 = vsel %vm6544_vm4, 0, %v753_v58  ;;  %v5468_v11 = vunpack.c.l.bf16 %v5575_v34 }
  0x7f   : > { %v1123_v2 = vrot.slane %v1121_v61, 7  ;;  %v628_v18 = vmax.f32 %v596_v63, 0.0  ;;  %v629_v21 = vmax.f32 %v597_v5, 0.0  ;;  %699 = vst [vmem:[#allocation2 + $0x3c] sm:$0x1] %v698_v7  ;;  %v5469_v28 = vunpack.c.h.bf16 %v5575_v34 }
  0x80   : > { %v6917_v13 = vld [vmem:[#allocation2 + $0x30] sm:$0xf]  ;;  %v1118_v15 = vor.u32 %v1116_v50, %v1115_v43  ;;  %v1119_v17 = vrot.slane %v1115_v43, 4  ;;  %755 = vst [vmem:[#allocation2 + $0x44] sm:$0x1] %v754_v8  ;;  %v582_v44 = vmul.f32 %v6832_v19, %v5468_v11  ;;  %v725_v54 = vsel %vm6531_vm3, 0, %v724_v36 }
  0x81   : > { %v1538_v6 = vshrl.u32 %v6917_v13, 16  ;;  %v1541_v24 = vshll.u32 %v6917_v13, 16  ;;  %v1126_v26 = vor.u32 %v1124_v1, %v1123_v2  ;;  %v1128_v33 = vrot.slane %v1123_v2, 4  ;;  %726 = vst [vmem:[#allocation2 + $0xa8] sm:$0x1] %v725_v54 }
  0x82   : > { %v1314_v27 = vsel %vm6586_vm8, %v1118_v15, %v1313_v9  ;;  %v5352_v20 = vpack.c.bf16 %v628_v18, %v628_v18  ;;  %v5353_v23 = vpack.c.bf16 %v629_v21, %v629_v21  ;;  %v583_v52 = vmul.f32 %v6832_v19, %v5469_v28  ;;  %v780_v63 = vld [vmem:[#allocation2 + $0xb0] sm:$0x1] }
  0x83   : > { %v1540_v30 = vrot.slane %v1538_v6, 4  ;;  %v1543_v22 = vrot.slane %v1541_v24, 5  ;;  %v1127_v31 = vsel %vm6578_vm7, %v1119_v17, %v1126_v26  ;;  %1315 = vst [vmem:[#allocation2 + $0x9c] sm:$0xf] %v1314_v27  ;;  %v1318_v32 = vsel %vm6531_vm3, %v1128_v33, %v1317_v3 }
  0x84   : > { %1316 = vst [vmem:[#allocation2 + $0xa0] sm:$0xf] %v1127_v31  ;;  %1319 = vst [vmem:[#allocation2 + $0xa4] sm:$0x1] %v1318_v32  ;;  %v977_v38 = vshrl.u32 %v5352_v20, 16  ;;  %v980_v40 = vshll.u32 %v5352_v20, 16  ;;  %v614_v60 = vadd.f32 %v6862_v14, %v582_v44  ;;  %v615_v61 = vadd.f32 %v6862_v14, %v583_v52 }
  0x85   : > { %v985_v39 = vshrl.u32 %v5353_v23, 16  ;;  %v988_v46 = vshll.u32 %v5353_v23, 16  ;;  %v6927_v29 = vld [vmem:[#allocation2 + $0x34] sm:$0xf]  ;;  %v6929_v48 = vld [vmem:[#allocation2 + $0x38] sm:$0x1]  ;;  %v1544_v41 = vor.u32 %v1543_v22, %v1540_v30 }
  0x86   : > { %v1547_v56 = vshll.u32 %v6927_v29, 16  ;;  %v1551_v58 = vshrl.u32 %v6927_v29, 16  ;;  %v1557_v34 = vshll.u32 %v6929_v48, 16  ;;  %v979_v4 = vrot.slane %v977_v38, 7  ;;  %v1257_v35 = vld [vmem:[#allocation2 + $0x3c] sm:$0xf] }
  0x87   : > { %v1545_v42 = vrot.slane %v1544_v41, 4  ;;  %v987_v50 = vrot.slane %v985_v39, 7  ;;  %v1261_v47 = vld [vmem:[#allocation2 + $0x44] sm:$0x1]  ;;  %v646_v8 = vmax.f32 %v614_v60, 0.0  ;;  %v647_v21 = vmax.f32 %v615_v61, 0.0 }
  0x88   : > { %v1549_v9 = vrot.slane %v1547_v56, 5  ;;  %v1553_v43 = vrot.slane %v1551_v58, 4  ;;  %v1559_v1 = vrot.slane %v1557_v34, 5  ;;  %v982_v3 = vor.u32 %v980_v40, %v979_v4  ;;  %v5567_v40 = vld [vmem:[%s6509_s14 + $0x28] sm:$0xff]  }
  0x89   : > { %v983_v5 = vrot.slane %v979_v4, 4  ;;  %v990_v2 = vor.u32 %v988_v46, %v987_v50  ;;  %v992_v7 = vrot.slane %v987_v50, 4  ;;  %v781_v32 = vsel %vm6544_vm4, 0, %v780_v63  ;;  %v700_v39 = vld [vmem:[#allocation2 + $0x48] sm:$0x1] }
  0x8a   : > { %v1550_v11 = vsel %vm6647_vm11, %v1545_v42, %v1549_v9  ;;  %v1554_v15 = vor.u32 %v1553_v43, %v1549_v9  ;;  %v1423_v17 = vld [vmem:[#allocation2 + $0x9c] sm:$0xf]  ;;  %v1258_v18 = vsel %vm6586_vm8, %v982_v3, %v1257_v35  ;;  %v5370_v38 = vpack.c.bf16 %v646_v8, %v646_v8  ;;  %782 = vst [vmem:[#allocation2 + $0xb0] sm:$0x1] %v781_v32 }
  0x8b   : > { %v1424_v36 = vld [vmem:[#allocation2 + $0xa0] sm:$0xf]  ;;  %v1425_v6 = vld [vmem:[#allocation2 + $0xa4] sm:$0x1]  ;;  %v1754_v24 = vshrl.u32 %v1423_v17, 16  ;;  %v1757_v26 = vshll.u32 %v1423_v17, 16  ;;  %v991_v33 = vsel %vm6578_vm7, %v983_v5, %v990_v2  ;;  %v1262_v27 = vsel %vm6531_vm3, %v992_v7, %v1261_v47 }
  0x8c   : > { %1259 = vst [vmem:[#allocation2 + $0x3c] sm:$0xf] %v1258_v18  ;;  %v1555_v20 = vrot.slane %v1554_v15, 4  ;;  %v1763_v23 = vshll.u32 %v1424_v36, 16  ;;  %v1767_v28 = vshrl.u32 %v1424_v36, 16  ;;  %v1773_v30 = vshll.u32 %v1425_v6, 16 }
  0x8d   : > { %1260 = vst [vmem:[#allocation2 + $0x40] sm:$0xf] %v991_v33  ;;  %1263 = vst [vmem:[#allocation2 + $0x44] sm:$0x1] %v1262_v27  ;;  %v1756_v22 = vrot.slane %v1754_v24, 4  ;;  %v1759_v31 = vrot.slane %v1757_v26, 5  ;;  %v5371_v58 = vpack.c.bf16 %v647_v21, %v647_v21  ;;  %v5436_v50 = vunpack.c.l.bf16 %v5567_v40 }
  0x8e   : > { %v1560_v46 = vsel %vm6647_vm11, %v1555_v20, %v1559_v1  ;;  %v1765_v41 = vrot.slane %v1763_v23, 5  ;;  %v1769_v44 = vrot.slane %v1767_v28, 4  ;;  %v1775_v52 = vrot.slane %v1773_v30, 5  ;;  %v756_v18 = vld [vmem:[#allocation2 + $0x50] sm:$0x1] }
  0x8f   : > { %v6953_v54 = vcombine.low %v1550_v11, %v1560_v46  ;;  %v1760_v56 = vor.u32 %v1759_v31, %v1756_v22  ;;  %v1130_v34 = vshrl.u32 %v5370_v38, 16  ;;  %v1133_v42 = vshll.u32 %v5370_v38, 16  ;;  %v1320_v26 = vld [vmem:[#allocation2 + $0xa8] sm:$0xf]  ;;  %v5576_v30 = vld [vmem:[%s6509_s14 + $0x70] sm:$0xff]  }
  0x90   : > { %v1770_v4 = vor.u32 %v1769_v44, %v1765_v41  ;;  %v5437_v35 = vunpack.c.h.bf16 %v5567_v40  ;;  %v1138_v61 = vshrl.u32 %v5371_v58, 16  ;;  %v1141_v9 = vshll.u32 %v5371_v58, 16  ;;  %v727_v44 = vld [vmem:[#allocation2 + $0xb4] sm:$0x1] }
  0x91   : > { %5833 = vmatprep.mubr.bf16.mxu0 %v6953_v54  ;;  %v1761_v47 = vrot.slane %v1760_v56, 4  ;;  %v1132_v60 = vrot.slane %v1130_v34, 7  ;;  %v566_v3 = vmul.f32 %v6832_v19, %v5436_v50  ;;  %v701_v5 = vsel %vm6531_vm3, 0, %v700_v39  ;;  %v1324_v28 = vld [vmem:[#allocation2 + $0xb0] sm:$0x1] }
  0x92   : > { %v1771_v43 = vrot.slane %v1770_v4, 4  ;;  %v567_v63 = vmul.f32 %v6832_v19, %v5437_v35  ;;  %702 = vst [vmem:[#allocation2 + $0x48] sm:$0x1] %v701_v5  ;;  %v1140_v38 = vrot.slane %v1138_v61, 7  ;;  %v757_v4 = vsel %vm6544_vm4, 0, %v756_v18 }
  0x93   : > { %v6956_v1 = vld [vmem:[#allocation2 + $0x3c] sm:$0xf]  ;;  %v1766_v2 = vsel %vm6647_vm11, %v1761_v47, %v1765_v41  ;;  %v1135_v17 = vor.u32 %v1133_v42, %v1132_v60  ;;  %v1136_v23 = vrot.slane %v1132_v60, 4  ;;  %v598_v46 = vadd.f32 %v6862_v14, %v566_v3  ;;  %758 = vst [vmem:[#allocation2 + $0x50] sm:$0x1] %v757_v4 }
  0x94   : > { %v6964_v7 = vld [vmem:[#allocation2 + $0x40] sm:$0xf]  ;;  %v6966_v8 = vld [vmem:[#allocation2 + $0x44] sm:$0x1]  ;;  %v1562_v11 = vshrl.u32 %v6956_v1, 16  ;;  %v1565_v15 = vshll.u32 %v6956_v1, 16  ;;  %v1776_v21 = vsel %vm6647_vm11, %v1771_v43, %v1775_v52  ;;  %v599_v41 = vadd.f32 %v6862_v14, %v567_v63 }
  0x95   : > { %v1571_v36 = vshll.u32 %v6964_v7, 16  ;;  %v1575_v6 = vshrl.u32 %v6964_v7, 16  ;;  %v1581_v24 = vshll.u32 %v6966_v8, 16  ;;  %v6975_v33 = vcombine.low %v1766_v2, %v1776_v21  ;;  %v783_v52 = vld [vmem:[#allocation2 + $0xbc] sm:$0x1] }
  0x96   : > { %v1564_v27 = vrot.slane %v1562_v11, 4  ;;  %v1567_v20 = vrot.slane %v1565_v15, 5  ;;  %v1321_v39 = vsel %vm6586_vm8, %v1135_v17, %v1320_v26  ;;  %v1143_v58 = vor.u32 %v1141_v9, %v1140_v38  ;;  %v6993_v11 = vld [vmem:[%s6509_s14 + $0x30] sm:$0xff]  }
  0x97   : > { %v1573_v22 = vrot.slane %v1571_v36, 5  ;;  %v1577_v31 = vrot.slane %v1575_v6, 4  ;;  %v1583_v32 = vrot.slane %v1581_v24, 5  ;;  %5850 = vmatmul.mubr.bf16.gmra.mxu1 %v6975_v33  ;;  %v1145_v34 = vrot.slane %v1140_v38, 4  ;;  %1322 = vst [vmem:[#allocation2 + $0xa8] sm:$0xf] %v1321_v39 }
  0x98   : > { %v1568_v40 = vor.u32 %v1567_v20, %v1564_v27  ;;  %v630_v50 = vmax.f32 %v598_v46, 0.0  ;;  %v631_v35 = vmax.f32 %v599_v41, 0.0  ;;  %v5472_v47 = vunpack.c.l.bf16 %v5576_v30  ;;  %v703_v15 = vld [vmem:[#allocation2 + $0x54] sm:$0x1] }
  0x99   : > { %v1578_v56 = vor.u32 %v1577_v31, %v1573_v22  ;;  %v1144_v61 = vsel %vm6578_vm7, %v1136_v23, %v1143_v58  ;;  %v1325_v43 = vsel %vm6531_vm3, %v1145_v34, %v1324_v28  ;;  %v5473_v3 = vunpack.c.h.bf16 %v5576_v30  ;;  %v1264_v38 = vld [vmem:[#allocation2 + $0x48] sm:$0xf] }
  0x9a   : > { %v1569_v42 = vrot.slane %v1568_v40, 4  ;;  %1323 = vst [vmem:[#allocation2 + $0xac] sm:$0xf] %v1144_v61  ;;  %1326 = vst [vmem:[#allocation2 + $0xb0] sm:$0x1] %v1325_v43  ;;  %v5354_v63 = vpack.c.bf16 %v630_v50, %v630_v50  ;;  %v5355_v5 = vpack.c.bf16 %v631_v35, %v631_v35  ;;  %v584_v2 = vmul.f32 %v6832_v19, %v5472_v47 }
  0x9b   : > { %v1579_v60 = vrot.slane %v1578_v56, 4  ;;  %v585_v18 = vmul.f32 %v6832_v19, %v5473_v3  ;;  %v728_v21 = vsel %vm6531_vm3, 0, %v727_v44  ;;  %v784_v36 = vsel %vm6544_vm4, 0, %v783_v52  ;;  %v1268_v44 = vld [vmem:[#allocation2 + $0x50] sm:$0x1] }
  0x9c   : > { %v1574_v9 = vsel %vm6647_vm11, %v1569_v42, %v1573_v22  ;;  %v994_v24 = vshrl.u32 %v5354_v63, 16  ;;  %v997_v26 = vshll.u32 %v5354_v63, 16  ;;  %v1002_v27 = vshrl.u32 %v5355_v5, 16  ;;  %729 = vst [vmem:[#allocation2 + $0xb4] sm:$0x1] %v728_v21 }
  0x9d   : > { %v1584_v17 = vsel %vm6647_vm11, %v1579_v60, %v1583_v32  ;;  %785 = vst [vmem:[#allocation2 + $0xbc] sm:$0x1] %v784_v36  ;;  %v1005_v20 = vshll.u32 %v5355_v5, 16  ;;  %v616_v23 = vadd.f32 %v6862_v14, %v584_v2  ;;  %v617_v28 = vadd.f32 %v6862_v14, %v585_v18  ;;  %v759_v18 = vld [vmem:[#allocation2 + $0x5c] sm:$0x1] }
  0x9e   : > { %v7002_v6 = vcombine.low %v1574_v9, %v1584_v17  ;;  %v5440_v30 = vunpack.c.l.bf16 %v6993_v11  ;;  %v7008_v22 = vld [vmem:[#allocation2 + $0xa8] sm:$0xf]  ;;  %v996_v31 = vrot.slane %v994_v24, 7  ;;  %v1004_v32 = vrot.slane %v1002_v27, 7 }
  0x9f   : > { %v5441_v40 = vunpack.c.h.bf16 %v6993_v11  ;;  %v704_v39 = vsel %vm6531_vm3, 0, %v703_v15  ;;  %v1778_v46 = vshrl.u32 %v7008_v22, 16  ;;  %v1781_v41 = vshll.u32 %v7008_v22, 16 }
  0xa0   : > { %5834 = vmatmul.mubr.bf16.gmra.mxu0 %v7002_v6  ;;  %v648_v52 = vmax.f32 %v616_v23, 0.0  ;;  %v649_v56 = vmax.f32 %v617_v28, 0.0  ;;  %705 = vst [vmem:[#allocation2 + $0x54] sm:$0x1] %v704_v39  ;;  %v999_v58 = vor.u32 %v997_v26, %v996_v31  ;;  %v1000_v34 = vrot.slane %v996_v31, 4 }
  0xa1   : > { %v1007_v4 = vor.u32 %v1005_v20, %v1004_v32  ;;  %v1009_v42 = vrot.slane %v1004_v32, 4  ;;  %v7015_v50 = vld [vmem:[#allocation2 + $0xac] sm:$0xf]  ;;  %v7017_v35 = vld [vmem:[#allocation2 + $0xb0] sm:$0x1]  ;;  %v1780_v47 = vrot.slane %v1778_v46, 4  ;;  %v569_v39 = vmul.f32 %v6832_v19, %v5441_v40 }
  0xa2   : > { %v1783_v60 = vrot.slane %v1781_v41, 5  ;;  %v5372_v61 = vpack.c.bf16 %v648_v52, %v648_v52  ;;  %v5373_v43 = vpack.c.bf16 %v649_v56, %v649_v56  ;;  %v1787_v3 = vshll.u32 %v7015_v50, 16 }
  0xa3   : > { %v1791_v9 = vshrl.u32 %v7015_v50, 16  ;;  %v1797_v63 = vshll.u32 %v7017_v35, 16  ;;  %v1008_v5 = vsel %vm6578_vm7, %v1000_v34, %v1007_v4  ;;  %v1265_v11 = vsel %vm6586_vm8, %v999_v58, %v1264_v38  ;;  %v1327_v32 = vld [vmem:[#allocation2 + $0xb4] sm:$0xf] }
  0xa4   : > { %v1784_v2 = vor.u32 %v1783_v60, %v1780_v47  ;;  %1267 = vst [vmem:[#allocation2 + $0x4c] sm:$0xf] %v1008_v5  ;;  %v1269_v15 = vsel %vm6531_vm3, %v1009_v42, %v1268_v44  ;;  %v1147_v17 = vshrl.u32 %v5372_v61, 16  ;;  %v1789_v21 = vrot.slane %v1787_v3, 5  ;;  %1266 = vst [vmem:[#allocation2 + $0x48] sm:$0xf] %v1265_v11 }
  0xa5   : > { %v1793_v36 = vrot.slane %v1791_v9, 4  ;;  %v1799_v24 = vrot.slane %v1797_v63, 5  ;;  %1270 = vst [vmem:[#allocation2 + $0x50] sm:$0x1] %v1269_v15  ;;  %v1150_v26 = vshll.u32 %v5372_v61, 16  ;;  %v1155_v23 = vshrl.u32 %v5373_v43, 16 }
  0xa6   : > { %v1785_v27 = vrot.slane %v1784_v2, 4  ;;  %v1149_v20 = vrot.slane %v1147_v17, 7  ;;  %v1158_v28 = vshll.u32 %v5373_v43, 16  ;;  %v568_v38 = vmul.f32 %v6832_v19, %v5440_v30  ;;  %v1331_v56 = vld [vmem:[#allocation2 + $0xbc] sm:$0x1] }
  0xa7   : > { %v1794_v31 = vor.u32 %v1793_v36, %v1789_v21  ;;  %v760_v46 = vsel %vm6544_vm4, 0, %v759_v18  ;;  %v1157_v52 = vrot.slane %v1155_v23, 7  ;;  %v601_v42 = vadd.f32 %v6862_v14, %v569_v39 }
  0xa8   : > { %v1152_v41 = vor.u32 %v1150_v26, %v1149_v20  ;;  %v1153_v44 = vrot.slane %v1149_v20, 4  ;;  %761 = vst [vmem:[#allocation2 + $0x5c] sm:$0x1] %v760_v46  ;;  %v1790_v58 = vsel %vm6647_vm11, %v1785_v27, %v1789_v21  ;;  %v600_v4 = vadd.f32 %v6862_v14, %v568_v38 }
  0xa9   : > { %v1795_v34 = vrot.slane %v1794_v31, 4  ;;  %v1160_v47 = vor.u32 %v1158_v28, %v1157_v52  ;;  %v1162_v30 = vrot.slane %v1157_v52, 4  ;;  %v633_v43 = vmax.f32 %v601_v42, 0.0  ;;  %v1271_v42 = vld [vmem:[#allocation2 + $0x54] sm:$0xf] }
  0xaa   : > { %v1328_v19 = vsel %vm6586_vm8, %v1152_v41, %v1327_v32  ;;  %v632_v61 = vmax.f32 %v600_v4, 0.0 }
  0xab   : > { %v1800_v40 = vsel %vm6647_vm11, %v1795_v34, %v1799_v24  ;;  %v7040_v60 = vld [vmem:[#allocation2 + $0x4c] sm:$0xf]  ;;  %1329 = vst [vmem:[#allocation2 + $0xb4] sm:$0xf] %v1328_v19  ;;  %v7044_v9 = vld [vmem:[#allocation2 + $0x48] sm:$0xf]  ;;  %v1161_v2 = vsel %vm6578_vm7, %v1153_v44, %v1160_v47  ;;  %v1332_v18 = vsel %vm6531_vm3, %v1162_v30, %v1331_v56  ;;  %v5357_v26 = vpack.c.bf16 %v633_v43, %v633_v43 }
  0xac   : > { %v7042_v3 = vcombine.low %v1790_v58, %v1800_v40  ;;  %v7046_v63 = vld [vmem:[#allocation2 + $0x50] sm:$0x1]  ;;  %v1595_v14 = vshll.u32 %v7040_v60, 16  ;;  %v1599_v5 = vshrl.u32 %v7040_v60, 16  ;;  %v1586_v11 = vshrl.u32 %v7044_v9, 16 }
  0xad   : > { %v1589_v15 = vshll.u32 %v7044_v9, 16  ;;  %v1605_v17 = vshll.u32 %v7046_v63, 16  ;;  %1330 = vst [vmem:[#allocation2 + $0xb8] sm:$0xf] %v1161_v2  ;;  %1333 = vst [vmem:[#allocation2 + $0xbc] sm:$0x1] %v1332_v18  ;;  %v5356_v24 = vpack.c.bf16 %v632_v61, %v632_v61 }
  0xae   : > { %8154 = vst [vmem:[#allocation4_spill] sm:$0xff] %v7042_v3  ;;  %5853 = vmatprep.mubr.bf16.mxu1 %v7042_v3  ;;  %v1597_v21 = vrot.slane %v1595_v14, 5  ;;  %v1601_v36 = vrot.slane %v1599_v5, 4  ;;  %v1588_v27 = vrot.slane %v1586_v11, 4  ;;  %v1019_v38 = vshrl.u32 %v5357_v26, 16 }
  0xaf   : > { %v1591_v20 = vrot.slane %v1589_v15, 5  ;;  %v1607_v23 = vrot.slane %v1605_v17, 5  ;;  %v1011_v31 = vshrl.u32 %v5356_v24, 16  ;;  %v1014_v32 = vshll.u32 %v5356_v24, 16  ;;  %v1275_v24 = vld [vmem:[#allocation2 + $0x5c] sm:$0x1] }
  0xb0   : > { %v1602_v28 = vor.u32 %v1601_v36, %v1597_v21  ;;  %v1022_v46 = vshll.u32 %v5357_v26, 16  ;;  %v1021_v56 = vrot.slane %v1019_v38, 7 }
  0xb1   : > { %v1592_v39 = vor.u32 %v1591_v20, %v1588_v27  ;;  %v1013_v52 = vrot.slane %v1011_v31, 7 }
  0xb2   : > { %v1603_v41 = vrot.slane %v1602_v28, 4  ;;  %v7058_v44 = vld [vmem:[#allocation2 + $0xb4] sm:$0xf]  ;;  %v1024_v61 = vor.u32 %v1022_v46, %v1021_v56  ;;  %v1026_v20 = vrot.slane %v1021_v56, 4  ;;  %v6375_v56 = vld [vmem:[#allocation2] sm:$0xf] }
  0xb3   : > { %v1593_v58 = vrot.slane %v1592_v39, 4  ;;  %v1802_v34 = vshrl.u32 %v7058_v44, 16  ;;  %v1805_v4 = vshll.u32 %v7058_v44, 16  ;;  %v1016_v19 = vor.u32 %v1014_v32, %v1013_v52  ;;  %v6374_v39 = vld [vmem:[#allocation2 + $0x4] sm:$0xf] }
  0xb4   : > { %v1608_v47 = vsel %vm6647_vm11, %v1603_v41, %v1607_v23  ;;  %v7064_v30 = vld [vmem:[#allocation2 + $0xb8] sm:$0xf]  ;;  %v1017_v40 = vrot.slane %v1013_v52, 4  ;;  %v7068_v14 = vld [vmem:[#allocation2 + $0xbc] sm:$0x1]  ;;  %v1276_v31 = vsel %vm6531_vm3, %v1026_v20, %v1275_v24  ;;  %v1932_v46 = vrot.slane %v6374_v39, 5 }
  0xb5   : > { %v1598_v43 = vsel %vm6647_vm11, %v1593_v58, %v1597_v21  ;;  %v1804_v5 = vrot.slane %v1802_v34, 4  ;;  %v1807_v2 = vrot.slane %v1805_v4, 5  ;;  %v1811_v11 = vshll.u32 %v7064_v30, 16  ;;  %1277 = vst [vmem:[#allocation2 + $0x5c] sm:$0x1] %v1276_v31 }
  0xb6   : > { %v7071_v15 = vcombine.low %v1598_v43, %v1608_v47  ;;  %v1815_v17 = vshrl.u32 %v7064_v30, 16  ;;  %v1821_v18 = vshll.u32 %v7068_v14, 16  ;;  %v1025_v36 = vsel %vm6578_vm7, %v1017_v40, %v1024_v61  ;;  %v6376_v34 = vld [vmem:[#allocation2 + $0x8] sm:$0x1]  ;;  %v6378_v20 = vld [vmem:[#allocation2 + $0xc] sm:$0xf] }
  0xb7   : > { %v1808_v26 = vor.u32 %v1807_v2, %v1804_v5  ;;  %v1813_v27 = vrot.slane %v1811_v11, 5  ;;  %v1272_v21 = vsel %vm6586_vm8, %v1016_v19, %v1271_v42  ;;  %1274 = vst [vmem:[#allocation2 + $0x58] sm:$0xf] %v1025_v36  ;;  %v5031_v58 = vrot.slane %v6375_v56, 9  ;;  %v7084_v42 = vld [vmem:[#allocation2 + $0x14] sm:$0x1] }
  0xb8   : > { %5837 = vmatprep.mubr.bf16.mxu0 %v7071_v15  ;;  %v1817_v23 = vrot.slane %v1815_v17, 4  ;;  %1273 = vst [vmem:[#allocation2 + $0x54] sm:$0xf] %v1272_v21  ;;  %v1823_v38 = vrot.slane %v1821_v18, 5  ;;  %v1935_v4 = vrot.slane %v6376_v34, 5  ;;  %v8155_v19 = vmov 0 }
  0xb9   : > { %v1809_v28 = vrot.slane %v1808_v26, 4  ;;  %v8156_v19 = vsel %vm7087_vm14, 4294967295, %v8155_v19  ;;  %v5089_v43 = vcombine.low %v6375_v56, %v6374_v39  ;;  %v7097_v5 = vcombine.low %v6917_v13, %v6927_v29  ;;  %v6379_v21 = vld [vmem:[#allocation2 + $0x10] sm:$0xf] }
  0xba   : > { %v1818_v32 = vor.u32 %v1817_v23, %v1813_v27  ;;  %8157 = vst [vmem:[#allocation5_spill] sm:$0xff] %v8156_v19  ;;  %v7101_v2 = vcombine.low %v6956_v1, %v6964_v7  ;;  %v1934_v24 = vrot.slane %v1932_v46, 4  ;;  %v7111_v23 = vcombine.low %v6378_v20, %v6379_v21 }
  0xbb   : > { %v1814_v41 = vsel %vm6647_vm11, %v1809_v28, %v1813_v27  ;;  %v1933_v28 = vsel %vm7087_vm14, %v5031_v58, %v1932_v46  ;;  %v1939_v39 = vrot.slane %v6379_v21, 5  ;;  %v1963_v58 = vrot.slane %v6929_v48, 5  ;;  %v6380_v21 = vld [vmem:[#allocation2 + $0x1c] sm:$0xf] }
  0xbc   : > { %v1819_v52 = vrot.slane %v1818_v32, 4  ;;  %v7116_v31 = vld [vmem:[#allocation2 + $0x5c] sm:$0x1]  ;;  %v1936_v46 = vsel %vm7087_vm14, %v1934_v24, %v1935_v4  ;;  %v5036_v47 = vrot.slane %v6956_v1, 9  ;;  %v5032_v3 = vrot.slane %v6378_v20, 9 }
  0xbd   : > { %v1629_v34 = vshll.u32 %v7116_v31, 16  ;;  %v1941_v4 = vrot.slane %v1939_v39, 4  ;;  %v6381_v24 = vld [vmem:[#allocation2 + $0x18] sm:$0xf] }
  0xbe   : > { %v1824_v40 = vsel %vm6647_vm11, %v1819_v52, %v1823_v38  ;;  %v7093_v61 = vld [vmem:[#allocation2 + $0x58] sm:$0xf]  ;;  %v7129_v48 = vcombine.low %v6381_v24, %v6380_v21 }
  0xbf   : > { %v7103_v11 = vcombine.low %v1814_v41, %v1824_v40  ;;  %v7105_v17 = vld [vmem:[#allocation2 + $0x54] sm:$0xf]  ;;  %v1619_v18 = vshll.u32 %v7093_v61, 16  ;;  %v1623_v36 = vshrl.u32 %v7093_v61, 16  ;;  %v5035_v41 = vrot.slane %v6917_v13, 9 }
  0xc0   : > { %v1610_v26 = vshrl.u32 %v7105_v17, 16  ;;  %v1613_v27 = vshll.u32 %v7105_v17, 16  ;;  %v1960_v40 = vrot.slane %v6927_v29, 5  ;;  %v1970_v29 = vrot.slane %v6966_v8, 5 }
  0xc1   : > { %8158 = vst [vmem:[#allocation6_spill] sm:$0xff] %v7103_v11  ;;  %5854 = vmatmul.mubr.bf16.gmra.mxu1 %v7103_v11  ;;  %v1621_v32 = vrot.slane %v1619_v18, 5  ;;  %v1625_v38 = vrot.slane %v1623_v36, 4  ;;  %v1631_v36 = vrot.slane %v1629_v34, 5  ;;  %v1946_v11 = vrot.slane %v6380_v21, 5 }
  0xc2   : > { %v1612_v52 = vrot.slane %v1610_v26, 4  ;;  %v1615_v56 = vrot.slane %v1613_v27, 5  ;;  %5873 = vmatprep.mubr.bf16.mxu1 %v5089_v43  ;;  %v1961_v13 = vsel %vm7087_vm14, %v5035_v41, %v1960_v40  ;;  %v1962_v27 = vrot.slane %v1960_v40, 4 }
  0xc3   : > { %v1626_v55 = vor.u32 %v1625_v38, %v1621_v32  ;;  %v1967_v43 = vrot.slane %v6964_v7, 5  ;;  %v5129_v41 = vcombine.low %v1933_v28, %v1936_v46  ;;  %v1940_v46 = vsel %vm7087_vm14, %v5032_v3, %v1939_v39  ;;  %v6319_v3 = vld [vmem:[%s8114_s3 + $0xe0] sm:$0xff]  }
  0xc4   : > { %v1616_v18 = vor.u32 %v1615_v56, %v1612_v52  ;;  %v6311_v52 = vld [vmem:[%s8114_s3 + $0xf0] sm:$0xff]   ;;  %v5033_v56 = vrot.slane %v6381_v24, 9 }
  0xc5   : > { %v1627_v26 = vrot.slane %v1626_v55, 4  ;;  %v1964_v55 = vsel %vm7087_vm14, %v1962_v27, %v1963_v58  ;;  %v1968_v7 = vsel %vm7087_vm14, %v5036_v47, %v1967_v43  ;;  %v1969_v8 = vrot.slane %v1967_v43, 4  ;;  %v6383_v47 = vld [vmem:[%s8114_s3 + $0xf8] sm:$0xff]   ;;  %v6384_v27 = vld [vmem:[#allocation2 + $0x28] sm:$0xf] }
  0xc6   : > { %v1617_v38 = vrot.slane %v1616_v18, 4  ;;  %v7142_v34 = vcombine.low %v1961_v13, %v1964_v55  ;;  %v1948_v18 = vrot.slane %v1946_v11, 4  ;;  %v8161_v13 = vrot.slane %v7084_v42, 5 }
  0xc7   : > { %v1632_v1 = vsel %vm6647_vm11, %v1627_v26, %v1631_v36  ;;  %v6382_v36 = vld [vmem:[#allocation2 + $0x20] sm:$0x1]  ;;  %v1971_v58 = vsel %vm7087_vm14, %v1969_v8, %v1970_v29  ;;  %v1953_v43 = vrot.slane %v6384_v27, 5  ;;  %v6385_v29 = vld [vmem:[#allocation2 + $0x24] sm:$0xf]  ;;  %v1947_v24 = vsel %vm7087_vm14, %v5033_v56, %v1946_v11  ;;  %v6313_v11 = vld [vmem:[%s8114_s3 + $0x130] sm:$0xff]  }
  0xc8   : > { %v1622_v20 = vsel %vm6647_vm11, %v1617_v38, %v1621_v32  ;;  %8159 = vst [vmem:[#allocation7_spill] sm:$0xff] %v7142_v34  ;;  %v1949_v21 = vrot.slane %v6382_v36, 5  ;;  %v7153_v28 = vcombine.low %v1968_v7, %v1971_v58  ;;  %v6315_v32 = vld [vmem:[%s8114_s3 + $0xe8] sm:$0xff]   ;;  %v1943_v26 = vsel %vm7087_vm14, %v1941_v4, %v8161_v13  ;;  %v6327_v13 = vld [vmem:[%s8114_s3 + $0xd0] sm:$0xff]  }
  0xc9   : > { %v7144_v40 = vcombine.low %v1622_v20, %v1632_v1  ;;  %5874 = vmatmul.mubr.bf16.vlgmr.msra.gmra.mxu1 %v7111_v23  ;;  %v7165_v38 = vcombine.low %v6385_v29, %v6384_v27  ;;  %v7171_v55 = vcombine.low %v1940_v46, %v1943_v26  ;;  %v5034_v39 = vrot.slane %v6385_v29, 9  ;;  %v6386_v7 = vld [vmem:[#allocation2 + $0x2c] sm:$0x1]  ;;  %v6323_v20 = vld [vmem:[%s8114_s3 + $0xd8] sm:$0xff]  }
  0xca   : > { %5954 = vmatpush3.bf16.msra.mxu1 %v6383_v47  ;;  %5877 = vmatprep.mubr.bf16.mxu1 %v7129_v48  ;;  %8160 = vst [vmem:[#allocation8_spill] sm:$0xff] %v7153_v28  ;;  %v1950_v1 = vsel %vm7087_vm14, %v1948_v18, %v1949_v21  ;;  %v1955_v4 = vrot.slane %v1953_v43, 4  ;;  %v1956_v8 = vrot.slane %v6386_v7, 5  ;;  %v6317_v36 = vld [vmem:[%s8114_s3 + $0x128] sm:$0xff]   ;;  %v5037_v21 = vrot.slane %v7044_v9, 9  ;;  %v5577_v29 = vld [vmem:[%s6509_s14 + $0x78] sm:$0xff]  }
  0xcb   : > { %5838 = vmatmul.mubr.bf16.gmra.mxu0 %v7144_v40  ;;  %5955 = vmatprep.subr.bf16.mxu1 %v6311_v52  ;;  %v7176_v42 = vcombine.low %v1947_v24, %v1950_v1  ;;  %v1954_v56 = vsel %vm7087_vm14, %v5034_v39, %v1953_v43  ;;  %v7202_v58 = vcombine.low %v7044_v9, %v7040_v60  ;;  %v5045_v9 = vrot.slane %v7008_v22, 9  ;;  %v730_v24 = vld [vmem:[#allocation2 + $0xc0] sm:$0x1]  ;;  %s5340_s14 = sadd.s32 120, %s6503_s11  ;;  %s4992_s11 = sshll.u32 %s8266_s24, 3 }
  0xcc   : > { %5921 = vmatprep.mubr.bf16.mxu0 %v5129_v41  ;;  %v6387_v41 = vld [vmem:[%s8114_s3 + $0x138] sm:$0xff]   ;;  %v1957_v18 = vsel %vm7087_vm14, %v1955_v4, %v1956_v8  ;;  %v7212_v26 = vcombine.low %v7008_v22, %v7015_v50  ;;  %v7216_v27 = vcombine.low %v7058_v44, %v7064_v30  ;;  %v2033_v43 = vrot.slane %v7017_v35, 5  ;;  %v6321_v39 = vld [vmem:[%s8114_s3 + $0x120] sm:$0xff]   ;;  %v786_v4 = vld [vmem:[#allocation2 + $0xc8] sm:$0x1]  ;;  %s443_s9 = scalar_lea.vmem %s8113_s2, %s5340_s14  ;;  %s465_s23 = scalar_lea.vmem %s8118_s7, %s4992_s11 }
  0xcd   : > { %8162 = vst [vmem:[#allocation9_spill] sm:$0xff] %v7176_v42  ;;  %v7205_v46 = vcombine.low %v1954_v56, %v1957_v18  ;;  %v5046_v22 = vrot.slane %v7058_v44, 9  ;;  %v6331_v44 = vld [vmem:[%s8114_s3 + $0xc8] sm:$0xff]   ;;  %v731_v18 = vsel %vm6531_vm3, 0, %v730_v24  ;;  %v6390_v24 = vld [vmem:[#allocation2 + $0x60] sm:$0xf] }
  0xce   : > { %5956 = vmatpush3.bf16.msra.mxu1 %v6311_v52  ;;  %v1974_v52 = vrot.slane %v7040_v60, 5  ;;  %v7220_v60 = vcombine.low %v7105_v17, %v7093_v61  ;;  %732 = vst [vmem:[#allocation2 + $0xc0] sm:$0x1] %v731_v18 }
  0xcf   : > { %5957 = vmatprep.subr.bf16.mxu1 %v6315_v32  ;;  %8163 = vst [vmem:[#allocation10_spill] sm:$0xff] %v7205_v46 }
  0xd0   : > { %v1976_v47 = vrot.slane %v1974_v52, 4  ;;  %v1975_v1 = vsel %vm7087_vm14, %v5037_v21, %v1974_v52  ;;  %v5476_v52 = vunpack.c.l.bf16 %v5577_v29  ;;  %v787_v21 = vsel %vm6544_vm4, 0, %v786_v4 }
  0xd1   : > { %5878 = vmatmul.mubr.bf16.gmra.mxu1 %v7165_v38  ;;  %788 = vst [vmem:[#allocation2 + $0xc8] sm:$0x1] %v787_v21 }
  0xd2   : > { %5881 = vmatprep.mubr.bf16.mxu1 %v7097_v5  ;;  %5958 = vmatpush3.bf16.msra.mxu1 %v6315_v32  ;;  %v1977_v32 = vrot.slane %v7046_v63, 5  ;;  %v2030_v63 = vrot.slane %v7015_v50, 5  ;;  %v2037_v50 = vrot.slane %v7064_v30, 5 }
  0xd3   : > { %5922 = vmatmul.mubr.bf16.vlgmr.msra.gmra.mxu0 %v7171_v55  ;;  %5959 = vmatprep.subr.bf16.mxu1 %v6319_v3 }
  0xd4   : > { %6002 = vmatpush3.bf16.msra.mxu0 %v6387_v41  ;;  %5925 = vmatprep.mubr.bf16.mxu0 %v7176_v42  ;;  %v1978_v35 = vsel %vm7087_vm14, %v1976_v47, %v1977_v32  ;;  %v2031_v7 = vsel %vm7087_vm14, %v5045_v9, %v2030_v63  ;;  %v2032_v8 = vrot.slane %v2030_v63, 4  ;;  %v2038_v30 = vsel %vm7087_vm14, %v5046_v22, %v2037_v50  ;;  %v6325_v47 = vld [vmem:[%s8114_s3 + $0x118] sm:$0xff]   ;;  %v7264_v9 = vld [vmem:[%s8115_s4] ss:$0 sm:$0xff] }
  0xd5   : > { %6003 = vmatprep.subr.bf16.mxu0 %v6313_v11  ;;  %v5477_v41 = vunpack.c.h.bf16 %v5577_v29  ;;  %v586_v63 = vmul.f32 %v7264_v9, %v5476_v52  ;;  %v5038_v29 = vrot.slane %v7105_v17, 9 }
  0xd6   : > { %5960 = vmatpush3.bf16.msra.mxu1 %v6319_v3  ;;  %v1981_v3 = vrot.slane %v7093_v61, 5  ;;  %v2040_v61 = vrot.slane %v7068_v14, 5  ;;  %v2034_v14 = vsel %vm7087_vm14, %v2032_v8, %v2033_v43  ;;  %v6335_v8 = vld [vmem:[%s8114_s3 + $0xc0] sm:$0xff]  }
  0xd7   : > { %5961 = vmatprep.subr.bf16.mxu1 %v6323_v20  ;;  %v7257_v32 = vcombine.low %v2031_v7, %v2034_v14  ;;  %v587_v43 = vmul.f32 %v7264_v9, %v5477_v41  ;;  %v1984_v7 = vrot.slane %v7116_v31, 5  ;;  %v6392_v31 = vld [vmem:[#allocation2 + $0x68] sm:$0x1] }
  0xd8   : > { %6004 = vmatpush3.bf16.msra.mxu0 %v6313_v11  ;;  %v2039_v11 = vrot.slane %v2037_v50, 4  ;;  %v1983_v4 = vrot.slane %v1981_v3, 4  ;;  %v1991_v41 = vrot.slane %v6392_v31, 5  ;;  %v1982_v21 = vsel %vm7087_vm14, %v5038_v29, %v1981_v3  ;;  %v6394_v3 = vld [vmem:[#allocation2 + $0x6c] sm:$0xf] }
  0xd9   : > { %5882 = vmatmul.mubr.bf16.gmra.mxu1 %v7101_v2  ;;  %6005 = vmatprep.subr.bf16.mxu0 %v6317_v36 }
  0xda   : > { %5885 = vmatprep.mubr.bf16.mxu1 %v7202_v58  ;;  %5962 = vmatpush3.bf16.msra.mxu1 %v6323_v20  ;;  %v6388_v20 = vld [vmem:[#allocation2 + $0x64] sm:$0xf] }
  0xdb   : > { %5926 = vmatmul.mubr.bf16.gmra.mxu0 %v7205_v46  ;;  %5963 = vmatprep.subr.bf16.mxu1 %v6327_v13  ;;  %v1988_v56 = vrot.slane %v6388_v20, 5  ;;  %v7269_v22 = vcombine.low %v6390_v24, %v6388_v20  ;;  %v6329_v20 = vld [vmem:[%s8114_s3 + $0x110] sm:$0xff]  }
  0xdc   : > { %5929 = vmatprep.mubr.bf16.mxu0 %v7142_v34  ;;  %6006 = vmatpush3.bf16.msra.mxu0 %v6317_v36  ;;  %v2041_v36 = vsel %vm7087_vm14, %v2039_v11, %v2040_v61  ;;  %v7280_v61 = vld [vmem:[%s8116_s5] ss:$0 sm:$0xff] }
  0xdd   : > { %6007 = vmatprep.subr.bf16.mxu0 %v6321_v39  ;;  %v7271_v50 = vcombine.low %v2038_v30, %v2041_v36  ;;  %v618_v17 = vadd.f32 %v7280_v61, %v586_v63  ;;  %v619_v11 = vadd.f32 %v7280_v61, %v587_v43  ;;  %v5039_v30 = vrot.slane %v6390_v24, 9  ;;  %v7299_v36 = vld [vmem:[%s8114_s3 + $0x178] sm:$0xff]  }
  0xde   : > { %5964 = vmatpush3.bf16.msra.mxu1 %v6327_v13  ;;  %v7284_v13 = vcombine.low %v1975_v1, %v1978_v35  ;;  %v1990_v52 = vrot.slane %v1988_v56, 4  ;;  %v1985_v1 = vsel %vm7087_vm14, %v1983_v4, %v1984_v7  ;;  %v6395_v4 = vld [vmem:[#allocation2 + $0x7c] sm:$0xf] }
  0xdf   : > { %8164 = vst [vmem:[#allocation11_spill] sm:$0xff] %v7271_v50  ;;  %5965 = vmatprep.subr.bf16.mxu1 %v6331_v44  ;;  %v650_v14 = vmax.f32 %v618_v17, 0.0  ;;  %v651_v18 = vmax.f32 %v619_v11, 0.0  ;;  %v2002_v7 = vrot.slane %v6395_v4, 5  ;;  %v6333_v17 = vld [vmem:[%s8114_s3 + $0x108] sm:$0xff]  }
  0xe0   : > { %8165 = vst [vmem:[#allocation12_spill] sm:$0xff] %v7284_v13  ;;  %6008 = vmatpush3.bf16.msra.mxu0 %v6321_v39  ;;  %v6393_v39 = vld [vmem:[#allocation2 + $0x70] sm:$0xf]  ;;  %v1992_v24 = vsel %vm7087_vm14, %v1990_v52, %v1991_v41 }
  0xe1   : > { %5886 = vmatmul.mubr.bf16.gmra.mxu1 %v7220_v60  ;;  %6009 = vmatprep.subr.bf16.mxu0 %v6325_v47  ;;  %v1995_v35 = vrot.slane %v6393_v39, 5  ;;  %v5374_v63 = vpack.c.bf16 %v650_v14, %v650_v14  ;;  %v5375_v43 = vpack.c.bf16 %v651_v18, %v651_v18  ;;  %v7302_v29 = vcombine.low %v6394_v3, %v6393_v39 }
  0xe2   : > { %5889 = vmatprep.mubr.bf16.mxu1 %v7269_v22  ;;  %5966 = vmatpush3.bf16.msra.mxu1 %v6331_v44  ;;  %v1989_v44 = vsel %vm7087_vm14, %v5039_v30, %v1988_v56  ;;  %v7311_v39 = vcombine.low %v1982_v21, %v1985_v1  ;;  %v6397_v30 = vld [vmem:[#allocation2 + $0x78] sm:$0xf]  ;;  %v1334_v21 = vld [vmem:[#allocation2 + $0xc0] sm:$0xf]  ;;  %v1338_v1 = vld [vmem:[#allocation2 + $0xc8] sm:$0x1] }
  0xe3   : > { %5930 = vmatmul.mubr.bf16.gmra.mxu0 %v7153_v28  ;;  %5967 = vmatprep.subr.bf16.mxu1 %v6335_v8  ;;  %v1164_v11 = vshrl.u32 %v5374_v63, 16  ;;  %v1167_v31 = vshll.u32 %v5374_v63, 16  ;;  %v1172_v14 = vshrl.u32 %v5375_v43, 16  ;;  %v1175_v18 = vshll.u32 %v5375_v43, 16  ;;  %v6396_v28 = vld [vmem:[#allocation2 + $0x74] sm:$0x1] }
  0xe4   : > { %5933 = vmatprep.mubr.bf16.mxu0 %v7284_v13  ;;  %6010 = vmatpush3.bf16.msra.mxu0 %v6325_v47  ;;  %v5040_v13 = vrot.slane %v6394_v3, 9  ;;  %v1998_v56 = vrot.slane %v6396_v28, 5  ;;  %v7313_v34 = vcombine.low %v6397_v30, %v6395_v4  ;;  %v1997_v47 = vrot.slane %v1995_v35, 4  ;;  %v6337_v28 = vld [vmem:[%s8114_s3 + $0x100] sm:$0xff]  }
  0xe5   : > { %6011 = vmatprep.subr.bf16.mxu0 %v6329_v20  ;;  %v5041_v52 = vrot.slane %v6397_v30, 9  ;;  %v1166_v41 = vrot.slane %v1164_v11, 7  ;;  %v1174_v46 = vrot.slane %v1172_v14, 7  ;;  %v7316_v42 = vcombine.low %v1989_v44, %v1992_v24 }
  0xe6   : > { %5968 = vmatpush3.bf16.msra.mxu1 %v6335_v8  ;;  %v2004_v63 = vrot.slane %v2002_v7, 4  ;;  %v2005_v43 = vrot.slane %v6398_v25, 5  ;;  %v1996_v24 = vsel %vm7087_vm14, %v5040_v13, %v1995_v35  ;;  %v6401_v13 = vld [vmem:[#allocation2 + $0x94] sm:$0xf] }
  0xe7   : > { %6049 = vmatprep.subr.bf16.mxu1 %v7299_v36  ;;  %v1169_v8 = vor.u32 %v1167_v31, %v1166_v41  ;;  %v1170_v3 = vrot.slane %v1166_v41, 4  ;;  %v1177_v4 = vor.u32 %v1175_v18, %v1174_v46  ;;  %v1179_v11 = vrot.slane %v1174_v46, 4  ;;  %v6399_v31 = vld [vmem:[#allocation2 + $0x88] sm:$0xf]  ;;  %v6400_v18 = vld [vmem:[#allocation2 + $0x84] sm:$0xf] }
  0xe8   : > { %6012 = vmatpush3.bf16.msra.mxu0 %v6329_v20  ;;  %v1999_v46 = vsel %vm7087_vm14, %v1997_v47, %v1998_v56  ;;  %v2009_v14 = vrot.slane %v6399_v31, 5  ;;  %v7336_v30 = vcombine.low %v6400_v18, %v6399_v31  ;;  %v2003_v41 = vsel %vm7087_vm14, %v5041_v52, %v2002_v7  ;;  %v6402_v56 = vld [vmem:[#allocation2 + $0x90] sm:$0xf] }
  0xe9   : > { %5890 = vmatmul.mubr.bf16.gmra.mxu1 %v7302_v29  ;;  %6013 = vmatprep.subr.bf16.mxu0 %v6333_v17  ;;  %v1178_v25 = vsel %vm6578_vm7, %v1170_v3, %v1177_v4  ;;  %v1335_v20 = vsel %vm6586_vm8, %v1169_v8, %v1334_v21  ;;  %v1339_v44 = vsel %vm6531_vm3, %v1179_v11, %v1338_v1  ;;  %v2016_v35 = vrot.slane %v6401_v13, 5  ;;  %v5479_v1 = vld [vmem:[%s443_s9] sm:$0xff]   ;;  %v6403_v4 = vld [vmem:[#allocation2 + $0x8c] sm:$0x1] }
  0xea   : > { %5893 = vmatprep.mubr.bf16.mxu1 %v7313_v34  ;;  %1336 = vst [vmem:[#allocation2 + $0xc0] sm:$0xf] %v1335_v20  ;;  %1337 = vst [vmem:[#allocation2 + $0xc4] sm:$0xf] %v1178_v25  ;;  %v2006_v21 = vsel %vm7087_vm14, %v2004_v63, %v2005_v43  ;;  %v7350_v47 = vcombine.low %v6402_v56, %v6401_v13  ;;  %v7352_v7 = vcombine.low %v1996_v24, %v1999_v46  ;;  %v6405_v13 = vld [vmem:[#allocation2 + $0x9c] sm:$0xf] }
  0xeb   : > { %5934 = vmatmul.mubr.bf16.gmra.mxu0 %v7311_v39  ;;  %1340 = vst [vmem:[#allocation2 + $0xc8] sm:$0x1] %v1339_v44  ;;  %v5042_v52 = vrot.slane %v6400_v18, 9  ;;  %v5480_v63 = vunpack.c.l.bf16 %v5479_v1  ;;  %v5481_v43 = vunpack.c.h.bf16 %v5479_v1  ;;  %v7354_v8 = vcombine.low %v2003_v41, %v2006_v21  ;;  %v6404_v44 = vld [vmem:[#allocation2 + $0x98] sm:$0x1] }
  0xec   : > { %5937 = vmatprep.mubr.bf16.mxu0 %v7316_v42  ;;  %6014 = vmatpush3.bf16.msra.mxu0 %v6333_v17  ;;  %v7345_v17 = vld [vmem:[%s8114_s3 + $0x1b8] sm:$0xff]   ;;  %v2011_v3 = vrot.slane %v2009_v14, 4  ;;  %v2012_v11 = vrot.slane %v6403_v4, 5  ;;  %v5043_v25 = vrot.slane %v6402_v56, 9  ;;  %v2018_v20 = vrot.slane %v2016_v35, 4 }
  0xed   : > { %6015 = vmatprep.subr.bf16.mxu0 %v6337_v28  ;;  %8166 = vst [vmem:[#allocation13_spill] sm:$0xff] %v7354_v8  ;;  %v2019_v31 = vrot.slane %v6404_v44, 5  ;;  %v672_v24 = vmul.f32 %v7264_v9, %v5480_v63  ;;  %v673_v46 = vmul.f32 %v7264_v9, %v5481_v43  ;;  %v6406_v56 = vld [vmem:[#allocation2 + $0xa0] sm:$0xf]  ;;  %v733_v44 = vld [vmem:[#allocation2 + $0xcc] sm:$0x1] }
  0xee   : > { %v2013_v21 = vsel %vm7087_vm14, %v2011_v3, %v2012_v11  ;;  %v7369_v1 = vcombine.low %v6405_v13, %v6406_v56  ;;  %v2023_v9 = vrot.slane %v6406_v56, 5  ;;  %v2017_v63 = vsel %vm7087_vm14, %v5043_v25, %v2016_v35 }
  0xef   : > { %v674_v18 = vadd.f32 %v7280_v61, %v672_v24  ;;  %v675_v41 = vadd.f32 %v7280_v61, %v673_v46  ;;  %v2020_v43 = vsel %vm7087_vm14, %v2018_v20, %v2019_v31  ;;  %v5044_v46 = vrot.slane %v6405_v13, 9 }
  0xf0   : > { %6016 = vmatpush3.bf16.msra.mxu0 %v6337_v28  ;;  %v2010_v28 = vsel %vm7087_vm14, %v5042_v52, %v2009_v14  ;;  %v734_v14 = vsel %vm6531_vm3, 0, %v733_v44  ;;  %v7379_v24 = vcombine.low %v2017_v63, %v2020_v43  ;;  %v2025_v56 = vrot.slane %v2023_v9, 4 }
  0xf1   : > { %5894 = vmatmul.mubr.bf16.gmra.mxu1 %v7336_v30  ;;  %6097 = vmatprep.subr.bf16.mxu0 %v7345_v17  ;;  %v676_v61 = vmax.f32 %v674_v18, 0.0  ;;  %v677_v4 = vmax.f32 %v675_v41, 0.0  ;;  %v7377_v52 = vcombine.low %v2010_v28, %v2013_v21  ;;  %735 = vst [vmem:[#allocation2 + $0xcc] sm:$0x1] %v734_v14  ;;  %v2024_v28 = vsel %vm7087_vm14, %v5044_v46, %v2023_v9  ;;  %v6350_v46 = vld [vmem:[%s8114_s3 + $0x148] sm:$0xff]  }
  0xf2   : > { %5897 = vmatprep.mubr.bf16.mxu1 %v7350_v47  ;;  %v8167_v9 = vmov 0  }
  0xf3   : > { %5938 = vmatmul.mubr.bf16.gmra.mxu0 %v7352_v7  ;;  %v5376_v3 = vpack.c.bf16 %v676_v61, %v676_v61  ;;  %v5377_v11 = vpack.c.bf16 %v677_v4, %v677_v4 }
  0xf4   : > { %5941 = vmatprep.mubr.bf16.mxu0 %v7354_v8  ;;  %v6407_v8 = vld [vmem:[#allocation2 + $0xa4] sm:$0x1] }
  0xf5   : > { %v2026_v35 = vrot.slane %v6407_v8, 5  ;;  %v1347_v25 = vshrl.u32 %v5376_v3, 16  ;;  %v1355_v20 = vshrl.u32 %v5377_v11, 16  ;;  %v1350_v18 = vshll.u32 %v5376_v3, 16  ;;  %v6343_v3 = vld [vmem:[%s8114_s3 + $0x1a8] sm:$0xff]  }
  0xf6   : > { %v1358_v21 = vshll.u32 %v5377_v11, 16  ;;  %v6348_v11 = vld [vmem:[%s8114_s3 + $0x150] sm:$0xff]  }
  0xf7   : > { %v1349_v31 = vrot.slane %v1347_v25, 7  ;;  %v7384_v41 = vrot.slane %v1355_v20, 7  ;;  %v2027_v8 = vsel %vm7087_vm14, %v2025_v56, %v2026_v35  ;;  %v6347_v56 = vld [vmem:[%s8114_s3 + $0x198] sm:$0xff]   ;;  %v6352_v35 = vld [vmem:[%s8114_s3 + $0x140] sm:$0xff]   ;;  %v6349_v25 = vld [vmem:[%s8114_s3 + $0x190] sm:$0xff]  }
  0xf8   : > { %v1367_v61 = vld [vmem:[#allocation2 + $0xcc] sm:$0xf]  ;;  %v7392_v4 = vcombine.low %v2024_v28, %v2027_v8  ;;  %v6355_v20 = vld [vmem:[%s8114_s3 + $0x1f8] sm:$0xff]   ;;  %v789_v8 = vld [vmem:[#allocation2 + $0xd4] sm:$0x1] }
  0xf9   : > { %5898 = vmatmul.mubr.bf16.gmra.mxu1 %v7369_v1  ;;  %v1352_v13 = vor.u32 %v1350_v18, %v1349_v31  ;;  %v1353_v63 = vrot.slane %v1349_v31, 4  ;;  %v1360_v43 = vor.u32 %v1358_v21, %v7384_v41  ;;  %v6351_v31 = vld [vmem:[%s8114_s3 + $0x188] sm:$0xff]   ;;  %v6354_v18 = vld [vmem:[%s8114_s3 + $0x180] sm:$0xff]   ;;  %v6356_v28 = vld [vmem:[%s8114_s3 + $0x238] sm:$0xff]   ;;  %v790_v21 = vsel %vm6544_vm4, 0, %v789_v8 }
  0xfa   : > { %5901 = vmatprep.mubr.bf16.mxu1 %v7212_v26  ;;  %791 = vst [vmem:[#allocation2 + $0xd4] sm:$0x1] %v790_v21 }
  0xfb   : > { %5942 = vmatmul.mubr.bf16.gmra.mxu0 %v7377_v52  ;;  %v1368_v44 = vsel %vm6586_vm8, %v1352_v13, %v1367_v61  ;;  %v1361_v14 = vsel %vm6578_vm7, %v1353_v63, %v1360_v43  ;;  %v7477_v13 = vld [vmem:[#allocation2 + $0xc0] sm:$0xf]  ;;  %v7479_v63 = vld [vmem:[#allocation2 + $0xc4] sm:$0xf] }
  0xfc   : > { %5945 = vmatprep.mubr.bf16.mxu0 %v7379_v24  ;;  %1369 = vst [vmem:[#allocation2 + $0xcc] sm:$0xf] %v1368_v44  ;;  %1370 = vst [vmem:[#allocation2 + $0xd0] sm:$0xf] %v1361_v14  ;;  %v1826_v43 = vshrl.u32 %v7477_v13, 16  ;;  %v1829_v61 = vshll.u32 %v7477_v13, 16 }
  0xfd   : > { %1381 = vst [vmem:[#allocation2 + $0xcc] sm:$0xf] %v8167_v9  ;;  %1382 = vst [vmem:[#allocation2 + $0xd0] sm:$0xf] %v8167_v9  ;;  %v1839_v16 = vshrl.u32 %v7479_v63, 16  ;;  %v1835_v44 = vshll.u32 %v7479_v63, 16 }
  0xfe   : > { %v1362_v14 = vrot.slane %v7384_v41, 4 }
 0x101   : > { %5902 = vmatmul.mubr.bf16.gmra.mxu1 %v7216_v27 }
 0x102   : > { %5969 = vmatprep.mubr.bf16.mxu1 %v7111_v23  ;;  %v6344_v23 = vld [vmem:[%s8114_s3 + $0x160] sm:$0xff]  }
 0x103   : > { %5946 = vmatmul.mubr.bf16.gmra.mxu0 %v7392_v4 }
 0x104   : > { %5949 = vmatprep.mubr.bf16.mxu0 %v7257_v32 }
 0x109   : > { %5970 = vmatmul.mubr.bf16.vlgmr.msra.gmra.mxu1 %v7129_v48 }
 0x10a   : > { %6050 = vmatpush3.bf16.msra.mxu1 %v7299_v36  ;;  %5973 = vmatprep.mubr.bf16.mxu1 %v7165_v38  ;;  %v6341_v36 = vld [vmem:[%s8114_s3 + $0x1b0] sm:$0xff]  }
 0x10b   : > { %5950 = vmatmul.mubr.bf16.gmra.mxu0 %v7271_v50  ;;  %6051 = vmatprep.subr.bf16.mxu1 %v6340_v62 }
 0x10c   : > { %6017 = vmatprep.mubr.bf16.mxu0 %v6733_v12  ;;  %v6346_v12 = vld [vmem:[%s8114_s3 + $0x158] sm:$0xff]  }
 0x10e   : > { %6052 = vmatpush3.bf16.msra.mxu1 %v6340_v62  ;;  %v1828_v62 = vrot.slane %v1826_v43, 4 }
 0x10f   : > { %6053 = vmatprep.subr.bf16.mxu1 %v6342_v57 }
 0x111   : > { %5974 = vmatmul.mubr.bf16.gmra.mxu1 %v7097_v5 }
 0x112   : > { %5977 = vmatprep.mubr.bf16.mxu1 %v7101_v2  ;;  %6054 = vmatpush3.bf16.msra.mxu1 %v6342_v57  ;;  %v1831_v57 = vrot.slane %v1829_v61, 5  ;;  %v6357_v61 = vld [vmem:[%s8114_s3 + $0x1f0] sm:$0xff]  }
 0x113   : > { %6018 = vmatmul.mubr.bf16.vlgmr.msra.gmra.mxu0 %v6816_v0  ;;  %6055 = vmatprep.subr.bf16.mxu1 %v6344_v23 }
 0x114   : > { %6098 = vmatpush3.bf16.msra.mxu0 %v7345_v17  ;;  %6021 = vmatprep.mubr.bf16.mxu0 %v6893_v51  ;;  %v6345_v17 = vld [vmem:[%s8114_s3 + $0x1a0] sm:$0xff]   ;;  %v1832_v41 = vor.u32 %v1831_v57, %v1828_v62  ;;  %v8173_v62 = vld [vmem:[#allocation7_spill] sm:$0xff]  ;;  %v7530_v57 = vpop.f32.mrf.mxu1 }
 0x115   : > { %6099 = vmatprep.subr.bf16.mxu0 %v6341_v36 }
 0x116   : > { %6056 = vmatpush3.bf16.msra.mxu1 %v6344_v23  ;;  %v1837_v23 = vrot.slane %v1835_v44, 5  ;;  %v6359_v44 = vld [vmem:[%s8114_s3 + $0x1e8] sm:$0xff]  }
 0x117   : > { %6057 = vmatprep.subr.bf16.mxu1 %v6346_v12 }
 0x118   : > { %6100 = vmatpush3.bf16.msra.mxu0 %v6341_v36  ;;  %v1841_v36 = vrot.slane %v1839_v16, 4  ;;  %v8171_v16 = vld [vmem:[#allocation9_spill] sm:$0xff] }
 0x119   : > { %5978 = vmatmul.mubr.bf16.gmra.mxu1 %v7202_v58  ;;  %6101 = vmatprep.subr.bf16.mxu0 %v6343_v3 }
 0x11a   : > { %5981 = vmatprep.mubr.bf16.mxu1 %v7220_v60  ;;  %6058 = vmatpush3.bf16.msra.mxu1 %v6346_v12  ;;  %v1371_v12 = vld [vmem:[#allocation2 + $0xd4] sm:$0x1] }
 0x11b   : > { %6022 = vmatmul.mubr.bf16.gmra.mxu0 %v6953_v54  ;;  %6059 = vmatprep.subr.bf16.mxu1 %v6348_v11 }
 0x11c   : > { %6025 = vmatprep.mubr.bf16.mxu0 %v7002_v6  ;;  %6102 = vmatpush3.bf16.msra.mxu0 %v6343_v3  ;;  %v7490_v3 = vld [vmem:[#allocation2 + $0xc8] sm:$0x1] }
 0x11d   : > { %6103 = vmatprep.subr.bf16.mxu0 %v6345_v17 }
 0x11e   : > { %6060 = vmatpush3.bf16.msra.mxu1 %v6348_v11  ;;  %v1372_v11 = vsel %vm6531_vm3, %v1362_v14, %v1371_v12  ;;  %v6361_v14 = vld [vmem:[%s8114_s3 + $0x1e0] sm:$0xff]   ;;  %v7541_v12 = vpop.f32.mrf.mxu1 }
 0x11f   : > { %6061 = vmatprep.subr.bf16.mxu1 %v6350_v46  ;;  %1373 = vst [vmem:[#allocation2 + $0xd4] sm:$0x1] %v1372_v11  ;;  %v8175_v11 = vld [vmem:[#allocation12_spill] sm:$0xff] }
 0x120   : > { %6104 = vmatpush3.bf16.msra.mxu0 %v6345_v17  ;;  %1383 = vst [vmem:[#allocation2 + $0xd4] sm:$0x1] %v8167_v9  ;;  %v1842_v17 = vor.u32 %v1841_v36, %v1837_v23  ;;  %v8169_v9 = vld [vmem:[#allocation6_spill] sm:$0xff]  ;;  %v6360_v36 = vld [vmem:[%s8114_s3 + $0x228] sm:$0xff]  }
 0x121   : > { %5982 = vmatmul.mubr.bf16.gmra.mxu1 %v7269_v22  ;;  %6105 = vmatprep.subr.bf16.mxu0 %v6347_v56 }
 0x122   : > { %5985 = vmatprep.mubr.bf16.mxu1 %v7302_v29  ;;  %6062 = vmatpush3.bf16.msra.mxu1 %v6350_v46  ;;  %v1845_v46 = vshll.u32 %v7490_v3, 16  ;;  %v1843_v10 = vrot.slane %v1842_v17, 4  ;;  %v6367_v17 = vld [vmem:[%s8114_s3 + $0x1c8] sm:$0xff]  }
 0x123   : > { %6026 = vmatmul.mubr.bf16.gmra.mxu0 %v7071_v15  ;;  %6063 = vmatprep.subr.bf16.mxu1 %v6352_v35 }
 0x124   : > { %6029 = vmatprep.mubr.bf16.mxu0 %v7144_v40  ;;  %6106 = vmatpush3.bf16.msra.mxu0 %v6347_v56  ;;  %v7501_v56 = vcombine.low %v7477_v13, %v7479_v63 }
 0x125   : > { %6107 = vmatprep.subr.bf16.mxu0 %v6349_v25 }
 0x126   : > { %6064 = vmatpush3.bf16.msra.mxu1 %v6352_v35  ;;  %v1833_v35 = vrot.slane %v1832_v41, 4  ;;  %v7554_v41 = vpop.f32.mrf.mxu0 }
 0x127   : > { %6145 = vmatprep.subr.bf16.mxu1 %v6355_v20 }
 0x128   : > { %6108 = vmatpush3.bf16.msra.mxu0 %v6349_v25  ;;  %v1847_v25 = vrot.slane %v1845_v46, 5  ;;  %v1838_v8 = vsel %vm6647_vm11, %v1833_v35, %v1837_v23  ;;  %v8174_v23 = vld [vmem:[#allocation8_spill] sm:$0xff]  ;;  %v6364_v46 = vld [vmem:[%s8114_s3 + $0x218] sm:$0xff]  }
 0x129   : > { %5986 = vmatmul.mubr.bf16.gmra.mxu1 %v7313_v34  ;;  %6109 = vmatprep.subr.bf16.mxu0 %v6351_v31 }
 0x12a   : > { %5989 = vmatprep.mubr.bf16.mxu1 %v7336_v30  ;;  %v1848_v21 = vsel %vm6647_vm11, %v1843_v10, %v1847_v25  ;;  %v7565_v10 = vpop.f32.mrf.mxu0  ;;  %v6366_v25 = vld [vmem:[%s8114_s3 + $0x210] sm:$0xff]  }
 0x12b   : > { %6030 = vmatmul.mubr.bf16.gmra.mxu0 %v6662_v53  ;;  %v7511_v43 = vcombine.low %v1838_v8, %v1848_v21 }
 0x12c   : > { %6033 = vmatprep.mubr.bf16.mxu0 %v6697_v59  ;;  %6110 = vmatpush3.bf16.msra.mxu0 %v6351_v31  ;;  %v8168_v31 = vld [vmem:[#allocation4_spill] sm:$0xff]  ;;  %v7578_v8 = vpop.f32.mrf.mxu0 }
 0x12d   : > { %6111 = vmatprep.subr.bf16.mxu0 %v6354_v18 }
 0x130   : > { %6112 = vmatpush3.bf16.msra.mxu0 %v6354_v18 }
 0x131   : > { %5990 = vmatmul.mubr.bf16.gmra.mxu1 %v7350_v47  ;;  %6193 = vmatprep.subr.bf16.mxu0 %v6356_v28 }
 0x132   : > { %5993 = vmatprep.mubr.bf16.mxu1 %v7369_v1 }
 0x133   : > { %6034 = vmatmul.mubr.bf16.gmra.mxu0 %v6805_v49 }
 0x134   : > { %6037 = vmatprep.mubr.bf16.mxu0 %v6878_v45 }
 0x139   : > { %5994 = vmatmul.mubr.bf16.gmra.mxu1 %v7212_v26 }
 0x13a   : > { %5997 = vmatprep.mubr.bf16.mxu1 %v7216_v27 }
 0x13b   : > { %6038 = vmatmul.mubr.bf16.gmra.mxu0 %v6904_v37 }
 0x13c   : > { %6041 = vmatprep.mubr.bf16.mxu0 %v6975_v33 }
 0x141   : > { %5998 = vmatmul.mubr.bf16.gmra.mxu1 %v7501_v56 }
 0x142   : > { %6065 = vmatprep.mubr.bf16.mxu1 %v7171_v55  ;;  %v8172_v55 = vld [vmem:[#allocation10_spill] sm:$0xff] }
 0x143   : > { %6042 = vmatmul.mubr.bf16.gmra.mxu0 %v8168_v31 }
 0x144   : > { %6045 = vmatprep.mubr.bf16.mxu0 %v8169_v9 }
 0x149   : > { %6066 = vmatmul.mubr.bf16.vlgmr.msra.gmra.mxu1 %v8171_v16 }
 0x14a   : > { %6146 = vmatpush3.bf16.msra.mxu1 %v6355_v20  ;;  %6069 = vmatprep.mubr.bf16.mxu1 %v8172_v55  ;;  %v6358_v20 = vld [vmem:[%s8114_s3 + $0x230] sm:$0xff]  }
 0x14b   : > { %6046 = vmatmul.mubr.bf16.gmra.mxu0 %v7511_v43  ;;  %6147 = vmatprep.subr.bf16.mxu1 %v6357_v61 }
 0x14c   : > { %6113 = vmatprep.mubr.bf16.mxu0 %v7129_v48  ;;  %v6363_v48 = vld [vmem:[%s8114_s3 + $0x1d8] sm:$0xff]  }
 0x14e   : > { %6148 = vmatpush3.bf16.msra.mxu1 %v6357_v61  ;;  %v6368_v61 = vld [vmem:[%s8114_s3 + $0x208] sm:$0xff]  }
 0x14f   : > { %6149 = vmatprep.subr.bf16.mxu1 %v6359_v44 }
 0x151   : > { %6070 = vmatmul.mubr.bf16.gmra.mxu1 %v8173_v62 }
 0x152   : > { %6073 = vmatprep.mubr.bf16.mxu1 %v8174_v23  ;;  %6150 = vmatpush3.bf16.msra.mxu1 %v6359_v44  ;;  %v7586_v44 = vpop.f32.mrf.mxu0 }
 0x153   : > { %6114 = vmatmul.mubr.bf16.vlgmr.msra.gmra.mxu0 %v7165_v38  ;;  %6151 = vmatprep.subr.bf16.mxu1 %v6361_v14  ;;  %v6365_v38 = vld [vmem:[%s8114_s3 + $0x1d0] sm:$0xff]  }
 0x154   : > { %6194 = vmatpush3.bf16.msra.mxu0 %v6356_v28  ;;  %6117 = vmatprep.mubr.bf16.mxu0 %v7097_v5  ;;  %v6362_v5 = vld [vmem:[%s8114_s3 + $0x220] sm:$0xff]   ;;  %v7550_v28 = vpop.f32.mrf.mxu1 }
 0x155   : > { %6195 = vmatprep.subr.bf16.mxu0 %v6358_v20 }
 0x156   : > { %6152 = vmatpush3.bf16.msra.mxu1 %v6361_v14  ;;  %v7563_v35 = vpop.f32.mrf.mxu1  ;;  %v8176_v14 = vld [vmem:[#allocation13_spill] sm:$0xff] }
 0x157   : > { %6153 = vmatprep.subr.bf16.mxu1 %v6363_v48 }
 0x158   : > { %6196 = vmatpush3.bf16.msra.mxu0 %v6358_v20  ;;  %v7596_v20 = vpop.f32.mrf.mxu0 }
 0x159   : > { %6074 = vmatmul.mubr.bf16.gmra.mxu1 %v8175_v11  ;;  %6197 = vmatprep.subr.bf16.mxu0 %v6360_v36 }
 0x15a   : > { %6077 = vmatprep.mubr.bf16.mxu1 %v7311_v39  ;;  %6154 = vmatpush3.bf16.msra.mxu1 %v6363_v48 }
 0x15b   : > { %6118 = vmatmul.mubr.bf16.gmra.mxu0 %v7101_v2  ;;  %6155 = vmatprep.subr.bf16.mxu1 %v6365_v38  ;;  %v6369_v2 = vld [vmem:[%s8114_s3 + $0x1c0] sm:$0xff]  }
 0x15c   : > { %6121 = vmatprep.mubr.bf16.mxu0 %v7202_v58  ;;  %6198 = vmatpush3.bf16.msra.mxu0 %v6360_v36  ;;  %v7571_v58 = vpop.f32.mrf.mxu1  ;;  %v7601_v36 = vpop.f32.mrf.mxu0 }
 0x15d   : > { %6199 = vmatprep.subr.bf16.mxu0 %v6362_v5 }
 0x15e   : > { %6156 = vmatpush3.bf16.msra.mxu1 %v6365_v38  ;;  %v7581_v21 = vpop.f32.mrf.mxu1 }
 0x15f   : > { %6157 = vmatprep.subr.bf16.mxu1 %v6367_v17 }
 0x160   : > { %6200 = vmatpush3.bf16.msra.mxu0 %v6362_v5  ;;  %v2044_v5 = vrot.slane %v7479_v63, 5 }
 0x161   : > { %6078 = vmatmul.mubr.bf16.gmra.mxu1 %v7316_v42  ;;  %6201 = vmatprep.subr.bf16.mxu0 %v6364_v46 }
 0x162   : > { %6081 = vmatprep.mubr.bf16.mxu1 %v7352_v7  ;;  %6158 = vmatpush3.bf16.msra.mxu1 %v6367_v17  ;;  %v5047_v17 = vrot.slane %v7477_v13, 9 }
 0x163   : > { %6122 = vmatmul.mubr.bf16.gmra.mxu0 %v7220_v60  ;;  %6159 = vmatprep.subr.bf16.mxu1 %v6369_v2  ;;  %v7589_v60 = vpop.f32.mrf.mxu1 }
 0x164   : > { %6125 = vmatprep.mubr.bf16.mxu0 %v7269_v22  ;;  %6202 = vmatpush3.bf16.msra.mxu0 %v6364_v46  ;;  %v6371_v22 = vld [vmem:[%s8114_s3 + $0x200] sm:$0xff]   ;;  %v2046_v46 = vrot.slane %v2044_v5, 4 }
 0x165   : > { %6203 = vmatprep.subr.bf16.mxu0 %v6366_v25  ;;  %v7599_v48 = vpop.f32.mrf.mxu1 }
 0x166   : > { %6160 = vmatpush3.bf16.msra.mxu1 %v6369_v2  ;;  %8177 = vst [vmem:[#allocation4_spill] sm:$0xff] %v7599_v48  ;;  %v2047_v2 = vrot.slane %v7490_v3, 5 }
 0x167   : > { %v7604_v38 = vpop.f32.mrf.mxu1 }
 0x168   : > { %6204 = vmatpush3.bf16.msra.mxu0 %v6366_v25  ;;  %8178 = vst [vmem:[#allocation6_spill] sm:$0xff] %v7604_v38 }
 0x169   : > { %6082 = vmatmul.mubr.bf16.gmra.mxu1 %v8176_v14  ;;  %6205 = vmatprep.subr.bf16.mxu0 %v6368_v61 }
 0x16a   : > { %6085 = vmatprep.mubr.bf16.mxu1 %v7377_v52 }
 0x16b   : > { %6126 = vmatmul.mubr.bf16.gmra.mxu0 %v7302_v29  ;;  %v7609_v29 = vpop.f32.mrf.mxu0 }
 0x16c   : > { %6129 = vmatprep.mubr.bf16.mxu0 %v7313_v34  ;;  %6206 = vmatpush3.bf16.msra.mxu0 %v6368_v61  ;;  %v7612_v34 = vpop.f32.mrf.mxu1 }
 0x16d   : > { %6207 = vmatprep.subr.bf16.mxu0 %v6371_v22  ;;  %8179 = vst [vmem:[#allocation3_spill] sm:$0xff] %v7612_v34  ;;  %v2254_v25 = vpop.f32.mrf.mxu0 }
 0x16e   : > { %v7617_v61 = vpop.f32.mrf.mxu1 }
 0x16f   : > { %8180 = vst [vmem:[#allocation9_spill] sm:$0xff] %v7617_v61  ;;  %v5835_v63 = vpop.f32.mrf.mxu0 }
 0x170   : > { %6208 = vmatpush3.bf16.msra.mxu0 %v6371_v22  ;;  %v7626_v13 = vpop.f32.mrf.mxu1 }
 0x171   : > { %6086 = vmatmul.mubr.bf16.gmra.mxu1 %v7379_v24  ;;  %8181 = vst [vmem:[#allocation10_spill] sm:$0xff] %v7626_v13  ;;  %v2267_v22 = vpop.f32.mrf.mxu0 }
 0x172   : > { %6089 = vmatprep.mubr.bf16.mxu1 %v7392_v4 }
 0x173   : > { %6130 = vmatmul.mubr.bf16.gmra.mxu0 %v7336_v30  ;;  %v2045_v30 = vsel %vm7087_vm14, %v5047_v17, %v2044_v5  ;;  %v5836_v5 = vpop.f32.mrf.mxu0 }
 0x174   : > { %6133 = vmatprep.mubr.bf16.mxu0 %v7350_v47  ;;  %v2048_v47 = vsel %vm7087_vm14, %v2046_v46, %v2047_v2 }
 0x175   : > { %v7628_v3 = vcombine.low %v2045_v30, %v2048_v47  ;;  %v2270_v2 = vpop.f32.mrf.mxu0 }
 0x177   : > { %8182 = vst [vmem:[#allocation7_spill] sm:$0xff] %v7628_v3 }
 0x179   : > { %6090 = vmatmul.mubr.bf16.gmra.mxu1 %v7257_v32 }
 0x17a   : > { %6093 = vmatprep.mubr.bf16.mxu1 %v7271_v50 }
 0x17b   : > { %6134 = vmatmul.mubr.bf16.gmra.mxu0 %v7369_v1  ;;  %v7638_v1 = vld [vmem:[#allocation2 + $0xcc] sm:$0xf] }
 0x17c   : > { %6137 = vmatprep.mubr.bf16.mxu0 %v7212_v26  ;;  %v7640_v26 = vld [vmem:[#allocation2 + $0xd0] sm:$0xf] }
 0x17d   : > { %v5244_v30 = vcombine.low %v7638_v1, %v7640_v26 }
 0x181   : > { %v7630_v34 = vpop.f32.mrf.mxu1  ;;  %6094 = vmatmul.mubr.bf16.gmra.mxu1 %v7628_v3 }
 0x182   : > { %8183 = vst [vmem:[#allocation8_spill] sm:$0xff] %v7630_v34  ;;  %6161 = vmatprep.mubr.bf16.mxu1 %v6816_v0 }
 0x183   : > { %6138 = vmatmul.mubr.bf16.gmra.mxu0 %v7216_v27  ;;  %v7635_v17 = vpop.f32.mrf.mxu1 }
 0x184   : > { %8184 = vst [vmem:[#allocation12_spill] sm:$0xff] %v7635_v17  ;;  %6141 = vmatprep.mubr.bf16.mxu0 %v7501_v56 }
 0x185   : > { %v7642_v46 = vpop.f32.mrf.mxu1 }
 0x186   : > { %8185 = vst [vmem:[#allocation13_spill] sm:$0xff] %v7642_v46 }
 0x187   : > { %v7646_v47 = vpop.f32.mrf.mxu1 }
 0x188   : > { %8186 = vst [vmem:[#allocation14_spill] sm:$0xff] %v7646_v47 }
 0x189   : > { %v5875_v0 = vpop.f32.mrf.mxu1  ;;  %6162 = vmatmul.mubr.bf16.vlgmr.msra.gmra.mxu1 %v6893_v51 }
 0x18a   : > { %6165 = vmatprep.mubr.bf16.mxu1 %v6953_v54  ;;  %v2517_v19 = vadd.f32 %v5875_v0, %v7554_v41 }
 0x18b   : > { %v5839_v27 = vpop.f32.mrf.mxu0  ;;  %6142 = vmatmul.mubr.bf16.gmra.mxu0 %v5244_v30  ;;  %v2508_v56 = vpop.f32.mrf.mxu1 }
 0x18c   : > { %6209 = vmatprep.mubr.bf16.mxu0 %v8171_v16  ;;  %v2509_v47 = vadd.f32 %v2508_v56, %v7565_v10 }
 0x18d   : > { %v2283_v17 = vpop.f32.mrf.mxu0  ;;  %v5876_v3 = vpop.f32.mrf.mxu1 }
 0x18e   : > { %v2520_v16 = vadd.f32 %v5876_v3, %v7578_v8 }
 0x18f   : > { %v5840_v61 = vpop.f32.mrf.mxu0  ;;  %v2511_v46 = vpop.f32.mrf.mxu1 }
 0x191   : > { %v2286_v50 = vpop.f32.mrf.mxu0  ;;  %v5879_v34 = vpop.f32.mrf.mxu1  ;;  %6166 = vmatmul.mubr.bf16.gmra.mxu1 %v7002_v6  ;;  %v2512_v6 = vadd.f32 %v2511_v46, %v7586_v44 }
 0x192   : > { %6169 = vmatprep.mubr.bf16.mxu1 %v7071_v15  ;;  %v2533_v15 = vadd.f32 %v5879_v34, %v7596_v20 }
 0x193   : > { %v5923_v51 = vpop.f32.mrf.mxu0  ;;  %6210 = vmatmul.mubr.bf16.vlgmr.msra.gmra.mxu0 %v8172_v55  ;;  %v2524_v54 = vpop.f32.mrf.mxu1 }
 0x194   : > { %v7656_v30 = vadd.f32 %v5923_v51, %v2517_v19  ;;  %6213 = vmatprep.mubr.bf16.mxu0 %v8173_v62  ;;  %v2525_v62 = vadd.f32 %v2524_v54, %v7601_v36 }
 0x195   : > { %v2798_v13 = vpop.f32.mrf.mxu0  ;;  %v5880_v41 = vpop.f32.mrf.mxu1 }
 0x196   : > { %v7660_v0 = vadd.f32 %v2798_v13, %v2509_v47  ;;  %v2536_v20 = vadd.f32 %v5880_v41, %v7609_v29 }
 0x197   : > { %v5924_v38 = vpop.f32.mrf.mxu0  ;;  %v2527_v10 = vpop.f32.mrf.mxu1 }
 0x198   : > { %v7663_v56 = vadd.f32 %v5924_v38, %v2520_v16  ;;  %v2528_v55 = vadd.f32 %v2527_v10, %v2254_v25 }
 0x199   : > { %v2801_v48 = vpop.f32.mrf.mxu0  ;;  %v5883_v19 = vpop.f32.mrf.mxu1  ;;  %6170 = vmatmul.mubr.bf16.gmra.mxu1 %v7144_v40 }
 0x19a   : > { %v7667_v8 = vadd.f32 %v2801_v48, %v2512_v6  ;;  %v2549_v3 = vadd.f32 %v5883_v19, %v5835_v63  ;;  %6173 = vmatprep.mubr.bf16.mxu1 %v6662_v53 }
 0x19b   : > { %v5927_v13 = vpop.f32.mrf.mxu0  ;;  %6214 = vmatmul.mubr.bf16.gmra.mxu0 %v8174_v23  ;;  %v2540_v44 = vpop.f32.mrf.mxu1 }
 0x19c   : > { %v7672_v38 = vadd.f32 %v5927_v13, %v2533_v15  ;;  %6217 = vmatprep.mubr.bf16.mxu0 %v8175_v11  ;;  %v2541_v34 = vadd.f32 %v2540_v44, %v2267_v22 }
 0x19d   : > { %v2814_v25 = vpop.f32.mrf.mxu0  ;;  %v5884_v40 = vpop.f32.mrf.mxu1 }
 0x19e   : > { %v7676_v48 = vadd.f32 %v2814_v25, %v2525_v62  ;;  %v2552_v46 = vadd.f32 %v5884_v40, %v5836_v5 }
 0x19f   : > { %v5928_v36 = vpop.f32.mrf.mxu0  ;;  %v2543_v63 = vpop.f32.mrf.mxu1 }
 0x1a0   : > { %v7678_v47 = vadd.f32 %v5928_v36, %v2536_v20  ;;  %v2544_v53 = vadd.f32 %v2543_v63, %v2270_v2 }
 0x1a1   : > { %v2817_v51 = vpop.f32.mrf.mxu0  ;;  %v5887_v23 = vpop.f32.mrf.mxu1  ;;  %6174 = vmatmul.mubr.bf16.gmra.mxu1 %v6697_v59 }
 0x1a2   : > { %v7681_v54 = vadd.f32 %v2817_v51, %v2528_v55  ;;  %v2565_v29 = vadd.f32 %v5887_v23, %v5839_v27  ;;  %6177 = vmatprep.mubr.bf16.mxu1 %v6805_v49  ;;  %v1850_v49 = vshrl.u32 %v7638_v1, 16 }
 0x1a3   : > { %v5931_v11 = vpop.f32.mrf.mxu0  ;;  %6218 = vmatmul.mubr.bf16.gmra.mxu0 %v7311_v39  ;;  %v2556_v22 = vpop.f32.mrf.mxu1  ;;  %v1853_v39 = vshll.u32 %v7638_v1, 16 }
 0x1a4   : > { %v7685_v16 = vadd.f32 %v5931_v11, %v2549_v3  ;;  %6221 = vmatprep.mubr.bf16.mxu0 %v7316_v42  ;;  %v2557_v5 = vadd.f32 %v2556_v22, %v2283_v17  ;;  %v1859_v42 = vshll.u32 %v7640_v26, 16  ;;  %v1863_v17 = vshrl.u32 %v7640_v26, 16 }
 0x1a5   : > { %v2830_v41 = vpop.f32.mrf.mxu0  ;;  %v5888_v2 = vpop.f32.mrf.mxu1  ;;  %v1852_v44 = vrot.slane %v1850_v49, 4  ;;  %v1855_v20 = vrot.slane %v1853_v39, 5 }
 0x1a6   : > { %v7688_v6 = vadd.f32 %v2830_v41, %v2541_v34  ;;  %v2568_v10 = vadd.f32 %v5888_v2, %v5840_v61  ;;  %v1861_v25 = vrot.slane %v1859_v42, 5  ;;  %v1865_v40 = vrot.slane %v1863_v17, 4 }
 0x1a7   : > { %v5932_v59 = vpop.f32.mrf.mxu0  ;;  %v2559_v15 = vpop.f32.mrf.mxu1 }
 0x1a8   : > { %v7690_v55 = vadd.f32 %v5932_v59, %v2552_v46  ;;  %v2560_v27 = vadd.f32 %v2559_v15, %v2286_v50  ;;  %v1866_v22 = vor.u32 %v1865_v40, %v1861_v25  ;;  %v5048_v40 = vrot.slane %v7638_v1, 9 }
 0x1a9   : > { %v2833_v19 = vpop.f32.mrf.mxu0  ;;  %v5891_v62 = vpop.f32.mrf.mxu1  ;;  %6178 = vmatmul.mubr.bf16.gmra.mxu1 %v6878_v45 }
 0x1aa   : > { %v7697_v3 = vadd.f32 %v2833_v19, %v2544_v53  ;;  %6181 = vmatprep.mubr.bf16.mxu1 %v6904_v37  ;;  %v7706_v53 = vld [vmem:[#allocation2 + $0xd4] sm:$0x1] }
 0x1ab   : > { %v5935_v61 = vpop.f32.mrf.mxu0  ;;  %6222 = vmatmul.mubr.bf16.gmra.mxu0 %v7352_v7  ;;  %v2572_v50 = vpop.f32.mrf.mxu1  ;;  %v2581_v7 = vadd.f32 %v5891_v62, %v7530_v57 }
 0x1ac   : > { %v7701_v13 = vadd.f32 %v5935_v61, %v2565_v29  ;;  %6225 = vmatprep.mubr.bf16.mxu0 %v8176_v14  ;;  %v1856_v14 = vor.u32 %v1855_v20, %v1852_v44  ;;  %v2573_v11 = vadd.f32 %v2572_v50, %v7541_v12  ;;  %v1867_v12 = vrot.slane %v1866_v22, 4 }
 0x1ad   : > { %v2846_v34 = vpop.f32.mrf.mxu0  ;;  %v5892_v45 = vpop.f32.mrf.mxu1  ;;  %v2051_v50 = vrot.slane %v7640_v26, 5 }
 0x1ae   : > { %v7704_v46 = vadd.f32 %v2846_v34, %v2557_v5  ;;  %v1869_v5 = vshll.u32 %v7706_v53, 16  ;;  %v2584_v57 = vadd.f32 %v5892_v45, %v7550_v28  ;;  %v1857_v15 = vrot.slane %v1856_v14, 4 }
 0x1af   : > { %v5936_v36 = vpop.f32.mrf.mxu0  ;;  %v2575_v63 = vpop.f32.mrf.mxu1 }
 0x1b0   : > { %v7708_v37 = vadd.f32 %v5936_v36, %v2568_v10  ;;  %v1871_v49 = vrot.slane %v1869_v5, 5  ;;  %v8190_v5 = vld [vmem:[#allocation3_spill] sm:$0xff] }
 0x1b1   : > { %v2849_v51 = vpop.f32.mrf.mxu0  ;;  %v5895_v23 = vpop.f32.mrf.mxu1  ;;  %6182 = vmatmul.mubr.bf16.gmra.mxu1 %v6975_v33 }
 0x1b2   : > { %v7712_v29 = vadd.f32 %v2849_v51, %v2560_v27  ;;  %6185 = vmatprep.mubr.bf16.mxu1 %v8168_v31  ;;  %v2576_v31 = vadd.f32 %v2575_v63, %v7563_v35  ;;  %v1862_v35 = vsel %vm6647_vm11, %v1857_v15, %v1861_v25  ;;  %v1872_v61 = vsel %vm6647_vm11, %v1867_v12, %v1871_v49  ;;  %v8187_v25 = vld [vmem:[#allocation4_spill] sm:$0xff]  ;;  %v8194_v49 = vld [vmem:[#allocation9_spill] sm:$0xff] }
 0x1b3   : > { %v5939_v41 = vpop.f32.mrf.mxu0  ;;  %6226 = vmatmul.mubr.bf16.gmra.mxu0 %v7377_v52  ;;  %v2588_v2 = vpop.f32.mrf.mxu1  ;;  %v2597_v52 = vadd.f32 %v5895_v23, %v7571_v58  ;;  %v5269_v34 = vcombine.low %v1862_v35, %v1872_v61  ;;  %v2053_v63 = vrot.slane %v2051_v50, 4  ;;  %v8189_v23 = vld [vmem:[#allocation10_spill] sm:$0xff]  ;;  %v2052_v15 = vsel %vm7087_vm14, %v5048_v40, %v2051_v50  ;;  %v8197_v61 = vld [vmem:[#allocation13_spill] sm:$0xff] }
 0x1b4   : > { %v7718_v10 = vadd.f32 %v5939_v41, %v2581_v7  ;;  %6229 = vmatprep.mubr.bf16.mxu0 %v7379_v24  ;;  %v2589_v28 = vadd.f32 %v2588_v2, %v7581_v21  ;;  %v8188_v7 = vld [vmem:[#allocation6_spill] sm:$0xff]  ;;  %v8191_v2 = vld [vmem:[#allocation8_spill] sm:$0xff] }
 0x1b5   : > { %v2862_v33 = vpop.f32.mrf.mxu0  ;;  %v5896_v59 = vpop.f32.mrf.mxu1 }
 0x1b6   : > { %v7722_v27 = vadd.f32 %v2862_v33, %v2573_v11  ;;  %v8192_v33 = vld [vmem:[#allocation11_spill] sm:$0xff] }
 0x1b7   : > { %v5940_v39 = vpop.f32.mrf.mxu0  ;;  %v2591_v19 = vpop.f32.mrf.mxu1 }
 0x1b8   : > { %v7725_v62 = vadd.f32 %v5940_v39, %v2584_v57  ;;  %v2592_v18 = vadd.f32 %v2591_v19, %v8187_v25  ;;  %v8195_v39 = vld [vmem:[#allocation7_spill] sm:$0xff] }
 0x1b9   : > { %v2865_v42 = vpop.f32.mrf.mxu0  ;;  %v5899_v17 = vpop.f32.mrf.mxu1  ;;  %6186 = vmatmul.mubr.bf16.gmra.mxu1 %v8169_v9  ;;  %v2600_v9 = vadd.f32 %v5896_v59, %v7589_v60 }
 0x1ba   : > { %v7729_v24 = vadd.f32 %v2865_v42, %v2576_v31  ;;  %6189 = vmatprep.mubr.bf16.mxu1 %v7511_v43  ;;  %v2613_v51 = vadd.f32 %v5899_v17, %v8188_v7 }
 0x1bb   : > { %v5943_v44 = vpop.f32.mrf.mxu0  ;;  %6230 = vmatmul.mubr.bf16.gmra.mxu0 %v7392_v4  ;;  %v2604_v58 = vpop.f32.mrf.mxu1 }
 0x1bc   : > { %v7739_v20 = vadd.f32 %v5943_v44, %v2597_v52  ;;  %6233 = vmatprep.mubr.bf16.mxu0 %v7257_v32  ;;  %v2054_v32 = vrot.slane %v7706_v53, 5  ;;  %v2605_v41 = vadd.f32 %v2604_v58, %v8190_v5  ;;  %v8196_v52 = vld [vmem:[#allocation12_spill] sm:$0xff] }
 0x1bd   : > { %v2878_v21 = vpop.f32.mrf.mxu0  ;;  %v5900_v43 = vpop.f32.mrf.mxu1 }
 0x1be   : > { %v7743_v45 = vadd.f32 %v2878_v21, %v2589_v28  ;;  %v2616_v53 = vadd.f32 %v5900_v43, %v8194_v49  ;;  %v2055_v19 = vsel %vm7087_vm14, %v2053_v63, %v2054_v32 }
 0x1bf   : > { %v5944_v26 = vpop.f32.mrf.mxu0  ;;  %v2607_v36 = vpop.f32.mrf.mxu1  ;;  %v5294_v50 = vcombine.low %v2052_v15, %v2055_v19 }
 0x1c0   : > { %v7747_v4 = vadd.f32 %v5944_v26, %v2600_v9  ;;  %v2608_v60 = vadd.f32 %v2607_v36, %v8189_v23 }
 0x1c1   : > { %v2881_v14 = vpop.f32.mrf.mxu0  ;;  %v5903_v11 = vpop.f32.mrf.mxu1  ;;  %6190 = vmatmul.mubr.bf16.gmra.mxu1 %v5269_v34  ;;  %v8198_v34 = vld [vmem:[#allocation14_spill] sm:$0xff] }
 0x1c2   : > { %v7752_v22 = vadd.f32 %v2881_v14, %v2592_v18  ;;  %v2629_v1 = vadd.f32 %v5903_v11, %v8191_v2 }
 0x1c3   : > { %v5947_v57 = vpop.f32.mrf.mxu0  ;;  %6234 = vmatmul.mubr.bf16.gmra.mxu0 %v8192_v33  ;;  %v2620_v31 = vpop.f32.mrf.mxu1 }
 0x1c4   : > { %v7759_v12 = vadd.f32 %v5947_v57, %v2613_v51  ;;  %6237 = vmatprep.mubr.bf16.mxu0 %v8195_v39  ;;  %v2621_v42 = vadd.f32 %v2620_v31, %v8196_v52 }
 0x1c5   : > { %v2894_v17 = vpop.f32.mrf.mxu0  ;;  %v5904_v28 = vpop.f32.mrf.mxu1 }
 0x1c6   : > { %v7766_v35 = vadd.f32 %v2894_v17, %v2605_v41  ;;  %v2632_v44 = vadd.f32 %v5904_v28, %v8197_v61 }
 0x1c7   : > { %v5948_v58 = vpop.f32.mrf.mxu0  ;;  %v2623_v9 = vpop.f32.mrf.mxu1 }
 0x1c8   : > { %v7769_v21 = vadd.f32 %v5948_v58, %v2616_v53  ;;  %v2624_v43 = vadd.f32 %v2623_v9, %v8198_v34 }
 0x1c9   : > { %v2897_v25 = vpop.f32.mrf.mxu0  ;;  %v5971_v18 = vpop.f32.mrf.mxu1 }
 0x1ca   : > { %v7772_v40 = vadd.f32 %v2897_v25, %v2608_v60  ;;  %v3189_v26 = vadd.f32 %v5971_v18, %v7656_v30 }
 0x1cb   : > { %v5951_v36 = vpop.f32.mrf.mxu0  ;;  %6238 = vmatmul.mubr.bf16.gmra.mxu0 %v5294_v50  ;;  %v3060_v63 = vpop.f32.mrf.mxu1 }
 0x1cc   : > { %v7775_v7 = vadd.f32 %v5951_v36, %v2629_v1  ;;  %v3187_v51 = vadd.f32 %v3060_v63, %v7660_v0 }
 0x1cd   : > { %v2910_v23 = vpop.f32.mrf.mxu0  ;;  %v5972_v32 = vpop.f32.mrf.mxu1 }
 0x1ce   : > { %v7778_v14 = vadd.f32 %v2910_v23, %v2621_v42  ;;  %v3190_v11 = vadd.f32 %v5972_v32, %v7663_v56 }
 0x1cf   : > { %v5952_v5 = vpop.f32.mrf.mxu0  ;;  %v3063_v41 = vpop.f32.mrf.mxu1 }
 0x1d0   : > { %v7781_v2 = vadd.f32 %v5952_v5, %v2632_v44  ;;  %v3188_v60 = vadd.f32 %v3063_v41, %v7667_v8 }
 0x1d1   : > { %v2913_v30 = vpop.f32.mrf.mxu0  ;;  %v5975_v57 = vpop.f32.mrf.mxu1 }
 0x1d2   : > { %v7784_v33 = vadd.f32 %v2913_v30, %v2624_v43  ;;  %v3193_v1 = vadd.f32 %v5975_v57, %v7672_v38 }
 0x1d3   : > { %v6019_v59 = vpop.f32.mrf.mxu0  ;;  %v3076_v0 = vpop.f32.mrf.mxu1 }
 0x1d4   : > { %v7787_v15 = vadd.f32 %v6019_v59, %v3189_v26  ;;  %v3191_v31 = vadd.f32 %v3076_v0, %v7676_v48 }
 0x1d5   : > { %v3322_v49 = vpop.f32.mrf.mxu0  ;;  %v5976_v56 = vpop.f32.mrf.mxu1 }
 0x1d6   : > { %v7790_v53 = vadd.f32 %v3322_v49, %v3187_v51  ;;  %v3194_v39 = vadd.f32 %v5976_v56, %v7678_v47 }
 0x1d7   : > { %v6020_v19 = vpop.f32.mrf.mxu0  ;;  %v3079_v8 = vpop.f32.mrf.mxu1 }
 0x1d8   : > { %v7793_v52 = vadd.f32 %v6020_v19, %v3190_v11  ;;  %v3192_v42 = vadd.f32 %v3079_v8, %v7681_v54 }
 0x1d9   : > { %v3325_v17 = vpop.f32.mrf.mxu0  ;;  %v5979_v38 = vpop.f32.mrf.mxu1 }
 0x1da   : > { %v7796_v28 = vadd.f32 %v3325_v17, %v3188_v60  ;;  %v3197_v61 = vadd.f32 %v5979_v38, %v7685_v16 }
 0x1db   : > { %v6023_v44 = vpop.f32.mrf.mxu0  ;;  %v3092_v48 = vpop.f32.mrf.mxu1 }
 0x1dc   : > { %v7799_v58 = vadd.f32 %v6023_v44, %v3193_v1  ;;  %v3195_v50 = vadd.f32 %v3092_v48, %v7688_v6 }
 0x1dd   : > { %v3338_v9 = vpop.f32.mrf.mxu0  ;;  %v5980_v47 = vpop.f32.mrf.mxu1 }
 0x1de   : > { %v7802_v34 = vadd.f32 %v3338_v9, %v3191_v31  ;;  %v3198_v43 = vadd.f32 %v5980_v47, %v7690_v55 }
 0x1df   : > { %v6024_v25 = vpop.f32.mrf.mxu0  ;;  %v3095_v54 = vpop.f32.mrf.mxu1 }
 0x1e0   : > { %v7805_v18 = vadd.f32 %v6024_v25, %v3194_v39  ;;  %v3196_v26 = vadd.f32 %v3095_v54, %v7697_v3 }
 0x1e1   : > { %v3341_v36 = vpop.f32.mrf.mxu0  ;;  %v5983_v16 = vpop.f32.mrf.mxu1 }
 0x1e2   : > { %v7808_v63 = vadd.f32 %v3341_v36, %v3192_v42  ;;  %v3201_v51 = vadd.f32 %v5983_v16, %v7701_v13 }
 0x1e3   : > { %v6027_v23 = vpop.f32.mrf.mxu0  ;;  %v3108_v6 = vpop.f32.mrf.mxu1 }
 0x1e4   : > { %v7811_v32 = vadd.f32 %v6027_v23, %v3197_v61  ;;  %v3199_v11 = vadd.f32 %v3108_v6, %v7704_v46 }
 0x1e5   : > { %v3354_v5 = vpop.f32.mrf.mxu0  ;;  %v5984_v55 = vpop.f32.mrf.mxu1 }
 0x1e6   : > { %v7814_v41 = vadd.f32 %v3354_v5, %v3195_v50  ;;  %v3202_v60 = vadd.f32 %v5984_v55, %v7708_v37 }
 0x1e7   : > { %v6028_v30 = vpop.f32.mrf.mxu0  ;;  %v3111_v3 = vpop.f32.mrf.mxu1 }
 0x1e8   : > { %v7817_v57 = vadd.f32 %v6028_v30, %v3198_v43  ;;  %v3200_v1 = vadd.f32 %v3111_v3, %v7712_v29 }
 0x1e9   : > { %v3357_v59 = vpop.f32.mrf.mxu0  ;;  %v5987_v13 = vpop.f32.mrf.mxu1 }
 0x1ea   : > { %v7820_v0 = vadd.f32 %v3357_v59, %v3196_v26  ;;  %v3205_v31 = vadd.f32 %v5987_v13, %v7718_v10 }
 0x1eb   : > { %v6031_v49 = vpop.f32.mrf.mxu0  ;;  %v3124_v46 = vpop.f32.mrf.mxu1 }
 0x1ec   : > { %v7823_v56 = vadd.f32 %v6031_v49, %v3201_v51  ;;  %v3203_v39 = vadd.f32 %v3124_v46, %v7722_v27 }
 0x1ed   : > { %v3370_v19 = vpop.f32.mrf.mxu0  ;;  %v5988_v37 = vpop.f32.mrf.mxu1 }
 0x1ee   : > { %v7826_v8 = vadd.f32 %v3370_v19, %v3199_v11  ;;  %v3206_v42 = vadd.f32 %v5988_v37, %v7725_v62 }
 0x1ef   : > { %v6032_v17 = vpop.f32.mrf.mxu0  ;;  %v3127_v29 = vpop.f32.mrf.mxu1 }
 0x1f0   : > { %v7829_v38 = vadd.f32 %v6032_v17, %v3202_v60  ;;  %v3204_v61 = vadd.f32 %v3127_v29, %v7729_v24 }
 0x1f1   : > { %v3373_v44 = vpop.f32.mrf.mxu0  ;;  %v5991_v10 = vpop.f32.mrf.mxu1 }
 0x1f2   : > { %v7832_v48 = vadd.f32 %v3373_v44, %v3200_v1  ;;  %v3209_v50 = vadd.f32 %v5991_v10, %v7739_v20 }
 0x1f3   : > { %v6035_v9 = vpop.f32.mrf.mxu0  ;;  %v3140_v27 = vpop.f32.mrf.mxu1 }
 0x1f4   : > { %v7835_v47 = vadd.f32 %v6035_v9, %v3205_v31  ;;  %v3207_v43 = vadd.f32 %v3140_v27, %v7743_v45 }
 0x1f5   : > { %v3386_v25 = vpop.f32.mrf.mxu0  ;;  %v5992_v62 = vpop.f32.mrf.mxu1 }
 0x1f6   : > { %v7838_v54 = vadd.f32 %v3386_v25, %v3203_v39  ;;  %v3210_v26 = vadd.f32 %v5992_v62, %v7747_v4 }
 0x1f7   : > { %v6036_v36 = vpop.f32.mrf.mxu0  ;;  %v3143_v24 = vpop.f32.mrf.mxu1 }
 0x1f8   : > { %v7841_v16 = vadd.f32 %v6036_v36, %v3206_v42  ;;  %v3208_v51 = vadd.f32 %v3143_v24, %v7752_v22 }
 0x1f9   : > { %v3389_v23 = vpop.f32.mrf.mxu0  ;;  %v5995_v20 = vpop.f32.mrf.mxu1 }
 0x1fa   : > { %v7844_v6 = vadd.f32 %v3389_v23, %v3204_v61  ;;  %v3213_v11 = vadd.f32 %v5995_v20, %v7759_v12 }
 0x1fb   : > { %v6039_v5 = vpop.f32.mrf.mxu0  ;;  %v3156_v45 = vpop.f32.mrf.mxu1 }
 0x1fc   : > { %v7847_v55 = vadd.f32 %v6039_v5, %v3209_v50  ;;  %v3211_v60 = vadd.f32 %v3156_v45, %v7766_v35 }
 0x1fd   : > { %v3402_v30 = vpop.f32.mrf.mxu0  ;;  %v5996_v4 = vpop.f32.mrf.mxu1 }
 0x1fe   : > { %v7850_v3 = vadd.f32 %v3402_v30, %v3207_v43  ;;  %v3214_v1 = vadd.f32 %v5996_v4, %v7769_v21 }
 0x1ff   : > { %v6040_v59 = vpop.f32.mrf.mxu0  ;;  %v3159_v22 = vpop.f32.mrf.mxu1 }
 0x200   : > { %8199 = vst [vmem:[#allocation4_spill] sm:$0xff] %v7850_v3  ;;  %v7853_v13 = vadd.f32 %v6040_v59, %v3210_v26  ;;  %v3212_v31 = vadd.f32 %v3159_v22, %v7772_v40 }
 0x201   : > { %v3405_v49 = vpop.f32.mrf.mxu0  ;;  %v5999_v12 = vpop.f32.mrf.mxu1 }
 0x202   : > { %8200 = vst [vmem:[#allocation6_spill] sm:$0xff] %v7853_v13  ;;  %v7856_v46 = vadd.f32 %v3405_v49, %v3208_v51  ;;  %v3217_v39 = vadd.f32 %v5999_v12, %v7775_v7 }
 0x203   : > { %v6043_v19 = vpop.f32.mrf.mxu0  ;;  %v3172_v35 = vpop.f32.mrf.mxu1 }
 0x204   : > { %8201 = vst [vmem:[#allocation10_spill] sm:$0xff] %v7856_v46  ;;  %v7859_v37 = vadd.f32 %v6043_v19, %v3213_v11  ;;  %v3215_v42 = vadd.f32 %v3172_v35, %v7778_v14 }
 0x205   : > { %v3418_v17 = vpop.f32.mrf.mxu0  ;;  %v6000_v21 = vpop.f32.mrf.mxu1 }
 0x206   : > { %v7862_v29 = vadd.f32 %v3418_v17, %v3211_v60  ;;  %v3218_v61 = vadd.f32 %v6000_v21, %v7781_v2 }
 0x207   : > { %v6044_v44 = vpop.f32.mrf.mxu0  ;;  %v3175_v40 = vpop.f32.mrf.mxu1 }
 0x208   : > { %8202 = vst [vmem:[#allocation3_spill] sm:$0xff] %v7862_v29  ;;  %v7865_v10 = vadd.f32 %v6044_v44, %v3214_v1  ;;  %v3216_v50 = vadd.f32 %v3175_v40, %v7784_v33 }
 0x209   : > { %v3421_v9 = vpop.f32.mrf.mxu0  ;;  %v6067_v7 = vpop.f32.mrf.mxu1 }
 0x20a   : > { %8203 = vst [vmem:[#allocation8_spill] sm:$0xff] %v7865_v10  ;;  %v7868_v27 = vadd.f32 %v3421_v9, %v3212_v31  ;;  %v3713_v43 = vadd.f32 %v6067_v7, %v7787_v15 }
 0x20b   : > { %v6047_v25 = vpop.f32.mrf.mxu0  ;;  %v3584_v14 = vpop.f32.mrf.mxu1 }
 0x20c   : > { %8204 = vst [vmem:[#allocation11_spill] sm:$0xff] %v7868_v27  ;;  %v7871_v62 = vadd.f32 %v6047_v25, %v3217_v39  ;;  %v3711_v26 = vadd.f32 %v3584_v14, %v7790_v53 }
 0x20d   : > { %v3434_v36 = vpop.f32.mrf.mxu0  ;;  %v7874_v2 = vpop.f32.mrf.mxu1 }
 0x20e   : > { %v7876_v24 = vadd.f32 %v3434_v36, %v3215_v42 }
 0x20f   : > { %v6048_v51 = vpop.f32.mrf.mxu0  ;;  %v7878_v23 = vpop.f32.mrf.mxu1 }
 0x210   : > { %8205 = vst [vmem:[#allocation5_spill] sm:$0xff] %v7876_v24  ;;  %v7880_v33 = vadd.f32 %v6048_v51, %v3218_v61 }
 0x211   : > { %v3437_v20 = vpop.f32.mrf.mxu0  ;;  %v6071_v11 = vpop.f32.mrf.mxu1 }
 0x212   : > { %8206 = vst [vmem:[#allocation9_spill] sm:$0xff] %v7880_v33  ;;  %v7882_v5 = vadd.f32 %v3437_v20, %v3216_v50  ;;  %v3717_v15 = vadd.f32 %v6071_v11, %v7799_v58 }
 0x213   : > { %v6115_v45 = vpop.f32.mrf.mxu0  ;;  %v7885_v60 = vpop.f32.mrf.mxu1 }
 0x214   : > { %8207 = vst [vmem:[#allocation7_spill] sm:$0xff] %v7882_v5  ;;  %v7887_v53 = vadd.f32 %v6115_v45, %v3713_v43 }
 0x215   : > { %v3846_v30 = vpop.f32.mrf.mxu0  ;;  %v7889_v4 = vpop.f32.mrf.mxu1 }
 0x216   : > { %v7891_v1 = vadd.f32 %v3846_v30, %v3711_v26 }
 0x217   : > { %v7893_v59 = vpop.f32.mrf.mxu0  ;;  %v7895_v22 = vpop.f32.mrf.mxu1 }
 0x219   : > { %v7897_v31 = vpop.f32.mrf.mxu0  ;;  %v6075_v49 = vpop.f32.mrf.mxu1 }
 0x21a   : > { %v3721_v12 = vadd.f32 %v6075_v49, %v7811_v32 }
 0x21b   : > { %v6119_v58 = vpop.f32.mrf.mxu0  ;;  %v7900_v39 = vpop.f32.mrf.mxu1 }
 0x21c   : > { %v7902_v19 = vadd.f32 %v6119_v58, %v3717_v15 }
 0x21d   : > { %v7904_v35 = vpop.f32.mrf.mxu0  ;;  %v7906_v42 = vpop.f32.mrf.mxu1 }
 0x21f   : > { %v7908_v17 = vpop.f32.mrf.mxu0  ;;  %v7910_v21 = vpop.f32.mrf.mxu1 }
 0x221   : > { %v7912_v61 = vpop.f32.mrf.mxu0  ;;  %v6079_v44 = vpop.f32.mrf.mxu1 }
 0x222   : > { %v3725_v40 = vadd.f32 %v6079_v44, %v7823_v56 }
 0x223   : > { %v6123_v50 = vpop.f32.mrf.mxu0  ;;  %v7915_v32 = vpop.f32.mrf.mxu1 }
 0x224   : > { %v7917_v9 = vadd.f32 %v6123_v50, %v3721_v12 }
 0x225   : > { %v7919_v7 = vpop.f32.mrf.mxu0  ;;  %v7921_v43 = vpop.f32.mrf.mxu1 }
 0x227   : > { %v7923_v25 = vpop.f32.mrf.mxu0  ;;  %v7925_v14 = vpop.f32.mrf.mxu1 }
 0x229   : > { %v7927_v26 = vpop.f32.mrf.mxu0  ;;  %v6083_v36 = vpop.f32.mrf.mxu1 }
 0x22a   : > { %v3729_v51 = vadd.f32 %v6083_v36, %v7835_v47 }
 0x22b   : > { %v6127_v20 = vpop.f32.mrf.mxu0  ;;  %v7930_v56 = vpop.f32.mrf.mxu1 }
 0x22c   : > { %v7932_v11 = vadd.f32 %v6127_v20, %v3725_v40 }
 0x22d   : > { %v7934_v15 = vpop.f32.mrf.mxu0  ;;  %v7936_v45 = vpop.f32.mrf.mxu1 }
 0x22f   : > { %v7938_v30 = vpop.f32.mrf.mxu0  ;;  %v7940_v49 = vpop.f32.mrf.mxu1 }
 0x231   : > { %v7942_v12 = vpop.f32.mrf.mxu0  ;;  %v6087_v58 = vpop.f32.mrf.mxu1 }
 0x232   : > { %v3733_v44 = vadd.f32 %v6087_v58, %v7847_v55 }
 0x233   : > { %v6131_v50 = vpop.f32.mrf.mxu0  ;;  %v7945_v47 = vpop.f32.mrf.mxu1 }
 0x234   : > { %8208 = vst [vmem:[#allocation12_spill] sm:$0xff] %v7945_v47  ;;  %v7947_v36 = vadd.f32 %v6131_v50, %v3729_v51 }
 0x235   : > { %v7949_v40 = vpop.f32.mrf.mxu0  ;;  %v7951_v20 = vpop.f32.mrf.mxu1 }
 0x236   : > { %8209 = vst [vmem:[#allocation13_spill] sm:$0xff] %v7947_v36  ;;  %8210 = vst [vmem:[#allocation14_spill] sm:$0xff] %v7951_v20 }
 0x237   : > { %v7953_v5 = vpop.f32.mrf.mxu0  ;;  %v7955_v33 = vpop.f32.mrf.mxu1 }
 0x238   : > { %8211 = vst [vmem:[#allocation15_spill] sm:$0xff] %v7955_v33 }
 0x239   : > { %v7957_v24 = vpop.f32.mrf.mxu0  ;;  %v6091_v27 = vpop.f32.mrf.mxu1 }
 0x23a   : > { %v3737_v10 = vadd.f32 %v6091_v27, %v7859_v37 }
 0x23b   : > { %v6135_v29 = vpop.f32.mrf.mxu0  ;;  %v7960_v55 = vpop.f32.mrf.mxu1 }
 0x23c   : > { %8212 = vst [vmem:[#allocation16_spill] sm:$0xff] %v7960_v55  ;;  %v7962_v58 = vadd.f32 %v6135_v29, %v3733_v44 }
 0x23d   : > { %v7964_v51 = vpop.f32.mrf.mxu0  ;;  %v7966_v50 = vpop.f32.mrf.mxu1 }
 0x23e   : > { %8213 = vst [vmem:[#allocation17_spill] sm:$0xff] %v7962_v58  ;;  %8214 = vst [vmem:[#allocation18_spill] sm:$0xff] %v7964_v51 }
 0x23f   : > { %8215 = vst [vmem:[#allocation19_spill] sm:$0xff] %v7966_v50  ;;  %v7968_v46 = vpop.f32.mrf.mxu0  ;;  %v7970_v20 = vpop.f32.mrf.mxu1 }
 0x240   : > { %8216 = vst [vmem:[#allocation20_spill] sm:$0xff] %v7968_v46  ;;  %8217 = vst [vmem:[#allocation21_spill] sm:$0xff] %v7970_v20 }
 0x241   : > { %v7972_v13 = vpop.f32.mrf.mxu0  ;;  %v6095_v33 = vpop.f32.mrf.mxu1 }
 0x242   : > { %8218 = vst [vmem:[#allocation22_spill] sm:$0xff] %v7972_v13  ;;  %v3741_v47 = vadd.f32 %v6095_v33, %v7871_v62 }
 0x243   : > { %v6139_v3 = vpop.f32.mrf.mxu0  ;;  %v7975_v37 = vpop.f32.mrf.mxu1 }
 0x244   : > { %8219 = vst [vmem:[#allocation23_spill] sm:$0xff] %v7975_v37  ;;  %v7977_v27 = vadd.f32 %v6139_v3, %v3737_v10  ;;  %v3714_v3 = vadd.f32 %v7874_v2, %v7793_v52  ;;  %v3712_v37 = vadd.f32 %v7878_v23, %v7796_v28  ;;  %v3718_v28 = vadd.f32 %v7889_v4, %v7805_v18 }
 0x245   : > { %v7979_v29 = vpop.f32.mrf.mxu0  ;;  %v7981_v44 = vpop.f32.mrf.mxu1 }
 0x246   : > { %8220 = vst [vmem:[#allocation24_spill] sm:$0xff] %v7977_v27  ;;  %8221 = vst [vmem:[#allocation25_spill] sm:$0xff] %v7979_v29 }
 0x247   : > { %8222 = vst [vmem:[#allocation26_spill] sm:$0xff] %v7981_v44  ;;  %v7983_v55 = vpop.f32.mrf.mxu0  ;;  %v7985_v50 = vpop.f32.mrf.mxu1 }
 0x248   : > { %8223 = vst [vmem:[#allocation27_spill] sm:$0xff] %v7983_v55  ;;  %8224 = vst [vmem:[#allocation28_spill] sm:$0xff] %v7985_v50 }
 0x249   : > { %v7987_v58 = vpop.f32.mrf.mxu0  ;;  %v6163_v20 = vpop.f32.mrf.mxu1 }
 0x24a   : > { %8225 = vst [vmem:[#allocation29_spill] sm:$0xff] %v7987_v58  ;;  %v3976_v58 = vadd.f32 %v7893_v59, %v3714_v3  ;;  %v4237_v52 = vadd.f32 %v6163_v20, %v7887_v53  ;;  %v3716_v53 = vadd.f32 %v7895_v22, %v7808_v63 }
 0x24b   : > { %v6143_v13 = vpop.f32.mrf.mxu0  ;;  %v4108_v46 = vpop.f32.mrf.mxu1 }
 0x24c   : > { %v7989_v51 = vadd.f32 %v6143_v13, %v3741_v47  ;;  %v3715_v13 = vadd.f32 %v7885_v60, %v7802_v34  ;;  %v4235_v2 = vadd.f32 %v4108_v46, %v7891_v1 }
 0x24d   : > { %v7991_v62 = vpop.f32.mrf.mxu0  ;;  %v6164_v33 = vpop.f32.mrf.mxu1 }
 0x24e   : > { %8226 = vst [vmem:[#allocation30_spill] sm:$0xff] %v7989_v51  ;;  %8227 = vst [vmem:[#allocation31_spill] sm:$0xff] %v7991_v62  ;;  %v3974_v62 = vadd.f32 %v7897_v31, %v3712_v37  ;;  %v3977_v34 = vadd.f32 %v7904_v35, %v3715_v13  ;;  %v3980_v31 = vadd.f32 %v7908_v17, %v3718_v28 }
 0x24f   : > { %v7995_v10 = vpop.f32.mrf.mxu0  ;;  %v4111_v44 = vpop.f32.mrf.mxu1 }
 0x250   : > { %8228 = vst [vmem:[#allocation32_spill] sm:$0xff] %v7995_v10  ;;  %v4238_v10 = vadd.f32 %v6164_v33, %v3976_v58  ;;  %v4236_v55 = vadd.f32 %v4111_v44, %v3974_v62  ;;  %v3978_v33 = vadd.f32 %v7912_v61, %v3716_v53 }
 0x251   : > { %v7999_v50 = vpop.f32.mrf.mxu0  ;;  %v6167_v27 = vpop.f32.mrf.mxu1 }
 0x252   : > { %8229 = vst [vmem:[#allocation33_spill] sm:$0xff] %v7999_v50  ;;  %v4241_v35 = vadd.f32 %v6167_v27, %v7902_v19 }
 0x253   : > { %v6211_v47 = vpop.f32.mrf.mxu0  ;;  %v4124_v51 = vpop.f32.mrf.mxu1 }
 0x254   : > { %v4499_v60 = vadd.f32 %v6211_v47, %v4237_v52  ;;  %v4239_v20 = vadd.f32 %v4124_v51, %v3977_v34  ;;  %v3720_v52 = vadd.f32 %v7910_v21, %v7820_v0 }
 0x255   : > { %v4370_v23 = vpop.f32.mrf.mxu0  ;;  %v6168_v50 = vpop.f32.mrf.mxu1 }
 0x256   : > { %v4497_v29 = vadd.f32 %v4370_v23, %v4235_v2  ;;  %v4242_v37 = vadd.f32 %v6168_v50, %v3980_v31  ;;  %v4728_v47 = vmul.f32 %v4499_v60, %v4499_v60 }
 0x257   : > { %v6212_v59 = vpop.f32.mrf.mxu0  ;;  %v4127_v3 = vpop.f32.mrf.mxu1 }
 0x258   : > { %v4500_v36 = vadd.f32 %v6212_v59, %v4238_v10  ;;  %v4726_v44 = vmul.f32 %v4497_v29, %v4497_v29  ;;  %v3719_v10 = vadd.f32 %v7900_v39, %v7814_v41  ;;  %v4240_v28 = vadd.f32 %v4127_v3, %v3978_v33 }
 0x259   : > { %v4373_v18 = vpop.f32.mrf.mxu0  ;;  %v6171_v46 = vpop.f32.mrf.mxu1 }
 0x25a   : > { %v5490_v4 = vpack.c.bf16 %v4500_v36, %v4499_v60  ;;  %v4498_v1 = vadd.f32 %v4373_v18, %v4236_v55  ;;  %v3722_v55 = vadd.f32 %v7906_v42, %v7817_v57  ;;  %v3981_v57 = vadd.f32 %v7919_v7, %v3719_v10 }
 0x25b   : > { %v6215_v58 = vpop.f32.mrf.mxu0  ;;  %v4140_v17 = vpop.f32.mrf.mxu1 }
 0x25c   : > { %5578 = vst [vmem:[%s8017_s20 + $0x8] sm:$0xff] %v5490_v4   ;;  %v5485_v63 = vpack.c.bf16 %v4498_v1, %v4497_v29  ;;  %v4689_v22 = vadd.f32 %v4498_v1, %v4497_v29  ;;  %v4727_v62 = vmul.f32 %v4498_v1, %v4498_v1  ;;  %v4729_v29 = vmul.f32 %v4500_v36, %v4500_v36 }
 0x25d   : > { %v4386_v51 = vpop.f32.mrf.mxu0  ;;  %v6172_v13 = vpop.f32.mrf.mxu1  ;;  %v4503_v59 = vadd.f32 %v6215_v58, %v4241_v35  ;;  %v3984_v42 = vadd.f32 %v7923_v25, %v3722_v55  ;;  %v4243_v1 = vadd.f32 %v4140_v17, %v3981_v57  ;;  %v4245_v35 = vadd.f32 %v6171_v46, %v7917_v9 }
 0x25e   : > { %5486 = vst [vmem:[%s8017_s20] sm:$0xff] %v5485_v63   ;;  %v4690_v19 = vadd.f32 %v4689_v22, %v4499_v60  ;;  %v4758_v50 = vadd.f32 %v4727_v62, %v4726_v44  ;;  %v4501_v27 = vadd.f32 %v4386_v51, %v4239_v20  ;;  %v3982_v20 = vadd.f32 %v7927_v26, %v3720_v52 }
 0x25f   : > { %v6216_v2 = vpop.f32.mrf.mxu0  ;;  %v4143_v61 = vpop.f32.mrf.mxu1  ;;  %v4246_v7 = vadd.f32 %v6172_v13, %v3984_v42  ;;  %v3723_v25 = vadd.f32 %v7915_v32, %v7826_v8  ;;  %v3726_v17 = vadd.f32 %v7921_v43, %v7829_v38  ;;  %v3724_v62 = vadd.f32 %v7925_v14, %v7832_v48 }
 0x260   : > { %v4759_v23 = vadd.f32 %v4758_v50, %v4728_v47  ;;  %v4691_v41 = vadd.f32 %v4690_v19, %v4500_v36  ;;  %v4504_v39 = vadd.f32 %v6216_v2, %v4242_v37  ;;  %v4730_v53 = vmul.f32 %v4501_v27, %v4501_v27 }
 0x261   : > { %v4389_v34 = vpop.f32.mrf.mxu0  ;;  %v6175_v60 = vpop.f32.mrf.mxu1  ;;  %v4244_v26 = vadd.f32 %v4143_v61, %v3982_v20  ;;  %v4732_v33 = vmul.f32 %v4503_v59, %v4503_v59  ;;  %v3985_v13 = vadd.f32 %v7934_v15, %v3723_v25  ;;  %v3988_v48 = vadd.f32 %v7938_v30, %v3726_v17 }
 0x262   : > { %v4692_v31 = vadd.f32 %v4691_v41, %v4501_v27  ;;  %v4760_v18 = vadd.f32 %v4759_v23, %v4729_v29  ;;  %v5500_v4 = vpack.c.bf16 %v4504_v39, %v4503_v59  ;;  %v4502_v0 = vadd.f32 %v4389_v34, %v4240_v28 }
 0x263   : > { %v6219_v21 = vpop.f32.mrf.mxu0  ;;  %v4156_v3 = vpop.f32.mrf.mxu1  ;;  %v4733_v47 = vmul.f32 %v4504_v39, %v4504_v39  ;;  %v3986_v14 = vadd.f32 %v7942_v12, %v3724_v62  ;;  %v3727_v30 = vadd.f32 %v7930_v56, %v7838_v54 }
 0x264   : > { %v4761_v36 = vadd.f32 %v4760_v18, %v4730_v53  ;;  %5580 = vst [vmem:[%s8017_s20 + $0x18] sm:$0xff] %v5500_v4   ;;  %v5495_v58 = vpack.c.bf16 %v4502_v0, %v4501_v27  ;;  %v4693_v37 = vadd.f32 %v4692_v31, %v4502_v0  ;;  %v4731_v44 = vmul.f32 %v4502_v0, %v4502_v0 }
 0x265   : > { %v4402_v63 = vpop.f32.mrf.mxu0  ;;  %v6176_v22 = vpop.f32.mrf.mxu1  ;;  %v4507_v8 = vadd.f32 %v6219_v21, %v4245_v35  ;;  %v4247_v23 = vadd.f32 %v4156_v3, %v3985_v13  ;;  %v3730_v53 = vadd.f32 %v7936_v45, %v7841_v16  ;;  %v3728_v18 = vadd.f32 %v7940_v49, %v7844_v6  ;;  %v8233_v13 = vld [vmem:[#allocation6_spill] sm:$0xff] }
 0x266   : > { %5579 = vst [vmem:[%s8017_s20 + $0x10] sm:$0xff] %v5495_v58   ;;  %v4694_v10 = vadd.f32 %v4693_v37, %v4503_v59  ;;  %v4762_v9 = vadd.f32 %v4761_v36, %v4731_v44  ;;  %v4505_v46 = vadd.f32 %v4402_v63, %v4243_v1  ;;  %v4250_v57 = vadd.f32 %v6176_v22, %v3988_v48 }
 0x267   : > { %v6220_v55 = vpop.f32.mrf.mxu0  ;;  %v4159_v51 = vpop.f32.mrf.mxu1  ;;  %v4736_v0 = vmul.f32 %v4507_v8, %v4507_v8  ;;  %v3989_v56 = vadd.f32 %v7949_v40, %v3727_v30  ;;  %v3992_v6 = vadd.f32 %v7953_v5, %v3730_v53  ;;  %v3990_v49 = vadd.f32 %v7957_v24, %v3728_v18 }
 0x268   : > { %v4508_v32 = vadd.f32 %v6220_v55, %v4246_v7  ;;  %v4763_v19 = vadd.f32 %v4762_v9, %v4732_v33  ;;  %v4695_v50 = vadd.f32 %v4694_v10, %v4504_v39  ;;  %v4734_v2 = vmul.f32 %v4505_v46, %v4505_v46  ;;  %v8230_v33 = vld [vmem:[#allocation13_spill] sm:$0xff]  ;;  %v8232_v55 = vld [vmem:[#allocation12_spill] sm:$0xff] }
 0x269   : > { %v4405_v38 = vpop.f32.mrf.mxu0  ;;  %v6179_v43 = vpop.f32.mrf.mxu1  ;;  %v4249_v39 = vadd.f32 %v6175_v60, %v7932_v11  ;;  %v4248_v4 = vadd.f32 %v4159_v51, %v3986_v14 }
 0x26a   : > { %v5510_v27 = vpack.c.bf16 %v4508_v32, %v4507_v8  ;;  %v4506_v52 = vadd.f32 %v4405_v38, %v4244_v26  ;;  %v4696_v29 = vadd.f32 %v4695_v50, %v4505_v46  ;;  %v4764_v28 = vadd.f32 %v4763_v19, %v4733_v47  ;;  %v8234_v47 = vld [vmem:[#allocation14_spill] sm:$0xff]  ;;  %v8236_v38 = vld [vmem:[#allocation15_spill] sm:$0xff] }
 0x26b   : > { %v6223_v61 = vpop.f32.mrf.mxu0  ;;  %v4172_v59 = vpop.f32.mrf.mxu1  ;;  %v4737_v36 = vmul.f32 %v4508_v32, %v4508_v32  ;;  %v4253_v10 = vadd.f32 %v6179_v43, %v8230_v33  ;;  %v3734_v19 = vadd.f32 %v8234_v47, %v8233_v13  ;;  %v8235_v50 = vld [vmem:[#allocation10_spill] sm:$0xff] }
 0x26c   : > { %5582 = vst [vmem:[%s8017_s20 + $0x28] sm:$0xff] %v5510_v27   ;;  %v5505_v15 = vpack.c.bf16 %v4506_v52, %v4505_v46  ;;  %v4735_v41 = vmul.f32 %v4506_v52, %v4506_v52  ;;  %v4765_v42 = vadd.f32 %v4764_v28, %v4734_v2  ;;  %v4697_v12 = vadd.f32 %v4696_v29, %v4506_v52  ;;  %v8231_v46 = vld [vmem:[#allocation4_spill] sm:$0xff] }
 0x26d   : > { %v4418_v34 = vpop.f32.mrf.mxu0  ;;  %v6180_v31 = vpop.f32.mrf.mxu1  ;;  %v4511_v20 = vadd.f32 %v6223_v61, %v4249_v39  ;;  %v4251_v17 = vadd.f32 %v4172_v59, %v3989_v56  ;;  %v3731_v5 = vadd.f32 %v8232_v55, %v8231_v46  ;;  %v3732_v48 = vadd.f32 %v8236_v38, %v8235_v50  ;;  %v8237_v59 = vld [vmem:[#allocation18_spill] sm:$0xff]  ;;  %v8248_v38 = vld [vmem:[#allocation27_spill] sm:$0xff] }
 0x26e   : > { %5581 = vst [vmem:[%s8017_s20 + $0x20] sm:$0xff] %v5505_v15   ;;  %v4698_v21 = vadd.f32 %v4697_v12, %v4507_v8  ;;  %v4766_v1 = vadd.f32 %v4765_v42, %v4735_v41  ;;  %v4509_v11 = vadd.f32 %v4418_v34, %v4247_v23  ;;  %v4254_v9 = vadd.f32 %v6180_v31, %v3992_v6  ;;  %v8238_v12 = vld [vmem:[#allocation20_spill] sm:$0xff]  ;;  %v8239_v31 = vld [vmem:[#allocation22_spill] sm:$0xff] }
 0x26f   : > { %v6224_v60 = vpop.f32.mrf.mxu0  ;;  %v4175_v3 = vpop.f32.mrf.mxu1  ;;  %v4740_v27 = vmul.f32 %v4511_v20, %v4511_v20  ;;  %v3993_v15 = vadd.f32 %v8237_v59, %v3731_v5  ;;  %v3996_v34 = vadd.f32 %v8238_v12, %v3734_v19  ;;  %v3994_v53 = vadd.f32 %v8239_v31, %v3732_v48  ;;  %v8251_v12 = vld [vmem:[#allocation5_spill] sm:$0xff] }
 0x270   : > { %v4512_v54 = vadd.f32 %v6224_v60, %v4250_v57  ;;  %v4767_v35 = vadd.f32 %v4766_v1, %v4736_v0  ;;  %v4699_v7 = vadd.f32 %v4698_v21, %v4508_v32  ;;  %v4738_v44 = vmul.f32 %v4509_v11, %v4509_v11 }
 0x271   : > { %v4421_v16 = vpop.f32.mrf.mxu0  ;;  %v6183_v45 = vpop.f32.mrf.mxu1  ;;  %v4252_v14 = vadd.f32 %v4175_v3, %v3990_v49 }
 0x272   : > { %v5520_v25 = vpack.c.bf16 %v4512_v54, %v4511_v20  ;;  %v4510_v58 = vadd.f32 %v4421_v16, %v4248_v4  ;;  %v4700_v37 = vadd.f32 %v4699_v7, %v4509_v11  ;;  %v4768_v63 = vadd.f32 %v4767_v35, %v4737_v36  ;;  %v8240_v36 = vld [vmem:[#allocation17_spill] sm:$0xff]  ;;  %v8241_v7 = vld [vmem:[#allocation3_spill] sm:$0xff]  ;;  %v8242_v16 = vld [vmem:[#allocation16_spill] sm:$0xff] }
 0x273   : > { %v6227_v22 = vpop.f32.mrf.mxu0  ;;  %v4188_v62 = vpop.f32.mrf.mxu1  ;;  %v4741_v41 = vmul.f32 %v4512_v54, %v4512_v54  ;;  %v3735_v6 = vadd.f32 %v8242_v16, %v8241_v7 }
 0x274   : > { %5584 = vst [vmem:[%s8017_s20 + $0x38] sm:$0xff] %v5520_v25   ;;  %v5515_v40 = vpack.c.bf16 %v4510_v58, %v4509_v11  ;;  %v4739_v26 = vmul.f32 %v4510_v58, %v4510_v58  ;;  %v4769_v51 = vadd.f32 %v4768_v63, %v4738_v44  ;;  %v4701_v24 = vadd.f32 %v4700_v37, %v4510_v58  ;;  %v8243_v44 = vld [vmem:[#allocation8_spill] sm:$0xff]  ;;  %v8244_v63 = vld [vmem:[#allocation19_spill] sm:$0xff] }
 0x275   : > { %v4434_v8 = vpop.f32.mrf.mxu0  ;;  %v6184_v32 = vpop.f32.mrf.mxu1  ;;  %v4515_v61 = vadd.f32 %v6227_v22, %v4253_v10  ;;  %v4255_v60 = vadd.f32 %v4188_v62, %v3993_v15  ;;  %v3738_v22 = vadd.f32 %v8244_v63, %v8243_v44 }
 0x276   : > { %5583 = vst [vmem:[%s8017_s20 + $0x30] sm:$0xff] %v5515_v40   ;;  %v4702_v52 = vadd.f32 %v4701_v24, %v4511_v20  ;;  %v4770_v29 = vadd.f32 %v4769_v51, %v4739_v26  ;;  %v4513_v43 = vadd.f32 %v4434_v8, %v4251_v17  ;;  %v4258_v35 = vadd.f32 %v6184_v32, %v3996_v34  ;;  %v8245_v17 = vld [vmem:[#allocation11_spill] sm:$0xff]  ;;  %v8246_v40 = vld [vmem:[#allocation21_spill] sm:$0xff] }
 0x277   : > { %v6228_v2 = vpop.f32.mrf.mxu0  ;;  %v4191_v28 = vpop.f32.mrf.mxu1  ;;  %v3736_v62 = vadd.f32 %v8246_v40, %v8245_v17  ;;  %v4744_v33 = vmul.f32 %v4515_v61, %v4515_v61  ;;  %v8247_v24 = vld [vmem:[#allocation25_spill] sm:$0xff]  ;;  %v4000_v48 = vadd.f32 %v8248_v38, %v3738_v22  ;;  %v8252_v34 = vld [vmem:[#allocation23_spill] sm:$0xff]  ;;  %v8258_v22 = vld [vmem:[#allocation32_spill] sm:$0xff] }
 0x278   : > { %v4516_v23 = vadd.f32 %v6228_v2, %v4254_v9  ;;  %v4771_v39 = vadd.f32 %v4770_v29, %v4740_v27  ;;  %v4703_v57 = vadd.f32 %v4702_v52, %v4512_v54  ;;  %v4742_v21 = vmul.f32 %v4513_v43, %v4513_v43  ;;  %v8259_v40 = vld [vmem:[#allocation33_spill] sm:$0xff] }
 0x279   : > { %v4437_v30 = vpop.f32.mrf.mxu0  ;;  %v6187_v42 = vpop.f32.mrf.mxu1  ;;  %v4257_v54 = vadd.f32 %v6183_v45, %v8240_v36  ;;  %v4256_v26 = vadd.f32 %v4191_v28, %v3994_v53  ;;  %v3997_v8 = vadd.f32 %v8247_v24, %v3735_v6  ;;  %v3739_v31 = vadd.f32 %v8252_v34, %v8251_v12 }
 0x27a   : > { %v5530_v18 = vpack.c.bf16 %v4516_v23, %v4515_v61  ;;  %v4514_v4 = vadd.f32 %v4437_v30, %v4252_v14  ;;  %v4704_v0 = vadd.f32 %v4703_v57, %v4513_v43  ;;  %v4772_v1 = vadd.f32 %v4771_v39, %v4741_v41  ;;  %v8249_v14 = vld [vmem:[#allocation29_spill] sm:$0xff]  ;;  %v8250_v57 = vld [vmem:[#allocation24_spill] sm:$0xff] }
 0x27b   : > { %v6231_v11 = vpop.f32.mrf.mxu0  ;;  %v4204_v3 = vpop.f32.mrf.mxu1  ;;  %v4745_v32 = vmul.f32 %v4516_v23, %v4516_v23  ;;  %v3998_v27 = vadd.f32 %v8249_v14, %v3736_v62 }
 0x27c   : > { %5586 = vst [vmem:[%s8017_s20 + $0x48] sm:$0xff] %v5530_v18   ;;  %v5525_v20 = vpack.c.bf16 %v4514_v4, %v4513_v43  ;;  %v4743_v56 = vmul.f32 %v4514_v4, %v4514_v4  ;;  %v4773_v49 = vadd.f32 %v4772_v1, %v4742_v21  ;;  %v4705_v25 = vadd.f32 %v4704_v0, %v4514_v4  ;;  %v8253_v0 = vld [vmem:[#allocation9_spill] sm:$0xff]  ;;  %v8254_v21 = vld [vmem:[#allocation26_spill] sm:$0xff] }
 0x27d   : > { %v4450_v58 = vpop.f32.mrf.mxu0  ;;  %v6188_v37 = vpop.f32.mrf.mxu1  ;;  %v4519_v5 = vadd.f32 %v6231_v11, %v4257_v54  ;;  %v4259_v59 = vadd.f32 %v4204_v3, %v3997_v8  ;;  %v3742_v1 = vadd.f32 %v8254_v21, %v8253_v0  ;;  %v8255_v11 = vld [vmem:[#allocation7_spill] sm:$0xff] }
 0x27e   : > { %5585 = vst [vmem:[%s8017_s20 + $0x40] sm:$0xff] %v5525_v20   ;;  %v4706_v10 = vadd.f32 %v4705_v25, %v4515_v61  ;;  %v4774_v9 = vadd.f32 %v4773_v49, %v4743_v56  ;;  %v4517_v45 = vadd.f32 %v4450_v58, %v4255_v60  ;;  %v4262_v30 = vadd.f32 %v6188_v37, %v4000_v48  ;;  %v8256_v60 = vld [vmem:[#allocation28_spill] sm:$0xff]  ;;  %v8257_v49 = vld [vmem:[#allocation31_spill] sm:$0xff] }
 0x27f   : > { %v6232_v46 = vpop.f32.mrf.mxu0  ;;  %v4207_v55 = vpop.f32.mrf.mxu1  ;;  %v3740_v20 = vadd.f32 %v8256_v60, %v8255_v11  ;;  %v4748_v56 = vmul.f32 %v4519_v5, %v4519_v5  ;;  %v4001_v25 = vadd.f32 %v8257_v49, %v3739_v31  ;;  %v4004_v17 = vadd.f32 %v8258_v22, %v3742_v1 }
 0x280   : > { %v4520_v51 = vadd.f32 %v6232_v46, %v4258_v35  ;;  %v4775_v13 = vadd.f32 %v4774_v9, %v4744_v33  ;;  %v4707_v47 = vadd.f32 %v4706_v10, %v4516_v23  ;;  %v4746_v2 = vmul.f32 %v4517_v45, %v4517_v45 }
 0x281   : > { %v4453_v19 = vpop.f32.mrf.mxu0  ;;  %v6191_v50 = vpop.f32.mrf.mxu1  ;;  %v4261_v23 = vadd.f32 %v6187_v42, %v8250_v57  ;;  %v4260_v3 = vadd.f32 %v4207_v55, %v3998_v27  ;;  %v4002_v62 = vadd.f32 %v8259_v40, %v3740_v20 }
 0x282   : > { %v5540_v52 = vpack.c.bf16 %v4520_v51, %v4519_v5  ;;  %v4518_v29 = vadd.f32 %v4453_v19, %v4256_v26  ;;  %v4708_v43 = vadd.f32 %v4707_v47, %v4517_v45  ;;  %v4776_v28 = vadd.f32 %v4775_v13, %v4745_v32  ;;  %v8260_v32 = vld [vmem:[#allocation30_spill] sm:$0xff] }
 0x283   : > { %v6235_v61 = vpop.f32.mrf.mxu0  ;;  %v4220_v15 = vpop.f32.mrf.mxu1  ;;  %v4749_v58 = vmul.f32 %v4520_v51, %v4520_v51  ;;  %v4265_v13 = vadd.f32 %v6191_v50, %v8260_v32 }
 0x284   : > { %5588 = vst [vmem:[%s8017_s20 + $0x58] sm:$0xff] %v5540_v52   ;;  %v5535_v41 = vpack.c.bf16 %v4518_v29, %v4517_v45  ;;  %v4747_v39 = vmul.f32 %v4518_v29, %v4518_v29  ;;  %v4777_v53 = vadd.f32 %v4776_v28, %v4746_v2  ;;  %v4709_v18 = vadd.f32 %v4708_v43, %v4518_v29 }
 0x285   : > { %v4466_v4 = vpop.f32.mrf.mxu0  ;;  %v6192_v7 = vpop.f32.mrf.mxu1  ;;  %v4523_v16 = vadd.f32 %v6235_v61, %v4261_v23  ;;  %v4263_v55 = vadd.f32 %v4220_v15, %v4001_v25 }
 0x286   : > { %5587 = vst [vmem:[%s8017_s20 + $0x50] sm:$0xff] %v5535_v41   ;;  %v4710_v36 = vadd.f32 %v4709_v18, %v4519_v5  ;;  %v4778_v54 = vadd.f32 %v4777_v53, %v4747_v39  ;;  %v4521_v35 = vadd.f32 %v4466_v4, %v4259_v59 }
 0x287   : > { %v6236_v42 = vpop.f32.mrf.mxu0  ;;  %v4223_v5 = vpop.f32.mrf.mxu1  ;;  %v4752_v14 = vmul.f32 %v4523_v16, %v4523_v16 }
 0x288   : > { %v4524_v6 = vadd.f32 %v6236_v42, %v4262_v30  ;;  %v4779_v37 = vadd.f32 %v4778_v54, %v4748_v56  ;;  %v4711_v44 = vadd.f32 %v4710_v36, %v4520_v51  ;;  %v4750_v9 = vmul.f32 %v4521_v35, %v4521_v35 }
 0x289   : > { %v4469_v63 = vpop.f32.mrf.mxu0  ;;  %v4266_v51 = vadd.f32 %v6192_v7, %v4004_v17  ;;  %v4264_v48 = vadd.f32 %v4223_v5, %v4002_v62 }
 0x28a   : > { %v5550_v26 = vpack.c.bf16 %v4524_v6, %v4523_v16  ;;  %v4522_v33 = vadd.f32 %v4469_v63, %v4260_v3  ;;  %v4712_v10 = vadd.f32 %v4711_v44, %v4521_v35  ;;  %v4780_v45 = vadd.f32 %v4779_v37, %v4749_v58 }
 0x28b   : > { %v6239_v46 = vpop.f32.mrf.mxu0  ;;  %v4753_v61 = vmul.f32 %v4524_v6, %v4524_v6 }
 0x28c   : > { %5590 = vst [vmem:[%s8017_s20 + $0x68] sm:$0xff] %v5550_v26   ;;  %v5545_v24 = vpack.c.bf16 %v4522_v33, %v4521_v35  ;;  %v4751_v8 = vmul.f32 %v4522_v33, %v4522_v33  ;;  %v4781_v47 = vadd.f32 %v4780_v45, %v4750_v9  ;;  %v4713_v19 = vadd.f32 %v4712_v10, %v4522_v33 }
 0x28d   : > { %v4482_v38 = vpop.f32.mrf.mxu0  ;;  %v4527_v2 = vadd.f32 %v6239_v46, %v4265_v13 }
 0x28e   : > { %5589 = vst [vmem:[%s8017_s20 + $0x60] sm:$0xff] %v5545_v24   ;;  %v4714_v27 = vadd.f32 %v4713_v19, %v4523_v16  ;;  %v4782_v52 = vadd.f32 %v4781_v47, %v4751_v8  ;;  %v4525_v29 = vadd.f32 %v4482_v38, %v4263_v55 }
 0x28f   : > { %v6240_v43 = vpop.f32.mrf.mxu0  ;;  %v4756_v18 = vmul.f32 %v4527_v2, %v4527_v2 }
 0x290   : > { %v4528_v28 = vadd.f32 %v6240_v43, %v4266_v51  ;;  %v4783_v59 = vadd.f32 %v4782_v52, %v4752_v14  ;;  %v4715_v15 = vadd.f32 %v4714_v27, %v4524_v6  ;;  %v4754_v23 = vmul.f32 %v4525_v29, %v4525_v29 }
 0x291   : > { %v4485_v41 = vpop.f32.mrf.mxu0 }
 0x292   : > { %v5560_v50 = vpack.c.bf16 %v4528_v28, %v4527_v2  ;;  %v4526_v39 = vadd.f32 %v4485_v41, %v4264_v48  ;;  %v4716_v57 = vadd.f32 %v4715_v15, %v4525_v29  ;;  %v4784_v30 = vadd.f32 %v4783_v59, %v4753_v61 }
 0x293   : > { %v4757_v21 = vmul.f32 %v4528_v28, %v4528_v28 }
 0x294   : > { %5592 = vst [vmem:[%s8017_s20 + $0x78] sm:$0xff] %v5560_v50   ;;  %v5555_v12 = vpack.c.bf16 %v4526_v39, %v4525_v29  ;;  %v4755_v34 = vmul.f32 %v4526_v39, %v4526_v39  ;;  %v4785_v31 = vadd.f32 %v4784_v30, %v4754_v23  ;;  %v4717_v53 = vadd.f32 %v4716_v57, %v4526_v39 }
 0x296   : > { %5591 = vst [vmem:[%s8017_s20 + $0x70] sm:$0xff] %v5555_v12   ;;  %v4718_v4 = vadd.f32 %v4717_v53, %v4527_v2  ;;  %v4786_v0 = vadd.f32 %v4785_v31, %v4755_v34 }
 0x298   : > { %v4719_v1 = vadd.f32 %v4718_v4, %v4528_v28  ;;  %v4787_v11 = vadd.f32 %v4786_v0, %v4756_v18 }
 0x29a   : > { %v4720_v60 = vrot.slane %v4719_v1, 4  ;;  %v4788_v20 = vadd.f32 %v4787_v11, %v4757_v21 }
 0x29c   : > { %v4721_v3 = vadd.f32 %v4720_v60, %v4719_v1  ;;  %v4789_v56 = vrot.slane %v4788_v20, 4 }
 0x29e   : > { %v4722_v36 = vrot.slane %v4721_v3, 2  ;;  %v4790_v54 = vadd.f32 %v4789_v56, %v4788_v20 }
 0x2a0   : > { %v4723_v35 = vadd.f32 %v4722_v36, %v4721_v3  ;;  %v4791_v42 = vrot.slane %v4790_v54, 2 }
 0x2a2   : > { %v4724_v7 = vrot.slane %v4723_v35, 1  ;;  %v4792_v16 = vadd.f32 %v4791_v42, %v4790_v54 }
 0x2a4   : > { %v4793_v6 = vrot.slane %v4792_v16, 1  ;;  %v4725_v49 = vadd.f32 %v4724_v7, %v4723_v35 }
 0x2a6   : > { %v4794_v25 = vadd.f32 %v4793_v6, %v4792_v16 }
 0x2a8   : > { %v4796_v58 = vsel %vm679_vm0, %v4725_v49, %v4794_v25 }
 0x2a9   : > { %v4798_v37 = vsel %vm4797_vm15, %v4796_v58, 0.0 }
 0x2aa   : > { %4799 = vst [vmem:[%s465_s23] sm:$0xff] %v4798_v37 }
 0x2ab PF: > { %s18_s26 = sadd.s32 1, %s6430_s26   ;;  %s8261_s24 = smov %s6426_s25 }
 0x2ac   : > { %p15_p5 = scmp.ge.s32.totalorder %s18_s26, 4   ;;  %s8262_s25 = smov %s8264_s27 }
 0x2ae   :  { %17 = sbr.rel (!%p15_p5) target bundleno = 2 (0x2), region = 106 }

// kernel: resnet_cell_forward.3
= control target key start
LH: loop header
LB: loop body
LE: loop exit
PB: predicated region body
PF: predicated region fallthrough
CT: control target
= control target key end

     0   :  { %s7097_s27 = smov 0   ;;  %s7099_s28 = smov 0   ;;  %s8849_s0 = inlined_call_operand.vmem [shape: bf16[2,16,16,128], index: 0, kind: input, shape index: {}, may-alias: {0,1,2}]   ;;  %s8850_s1 = inlined_call_operand.vmem [shape: bf16[2,16,16,128], index: 1, kind: input, shape index: {}, may-alias: {0,1,2}]   ;;  %s8851_s2 = inlined_call_operand.vmem [shape: bf16[2,16,16,128], index: 2, kind: input, shape index: {}, may-alias: {0,1,2}]   ;;  %s8852_s3 = inlined_call_operand.vmem [shape: bf16[9,128,128], index: 3, kind: input, shape index: {}]   ;;  %s8853_s4 = inlined_call_operand.vmem [shape: bf16[128,128], index: 4, kind: input, shape index: {}]   ;;  %s8854_s5 = inlined_call_operand.vmem [shape: bf16[2,16,16,128], index: 5, kind: output, shape index: {0}]   ;;  %s8855_s6 = inlined_call_operand.vmem [shape: bf16[2,16,16,128], index: 6, kind: output, shape index: {1}]   ;;  %s8856_s7 = inlined_call_operand.vmem [shape: f32[2,1,8,128], index: 7, kind: output, shape index: {2}]   ;;  %s8857_s8 = inlined_call_operand.vmem [shape: f32[2,1,8,128], index: 8, kind: output, shape index: {3}]  }
   0x1   :  { %s7101_s29 = smov 0  }
   0x2 LB: > { %s31_s30 = sadd.s32 1, %s7045_s28  ;;  %p5474_p0 = scmp.ge.s32.totalorder %s7049_s29, 1  ;;  %s7049_s29 = sphi %s7101_s29, %s19_s29   ;;  %s7045_s28 = sphi %s7099_s28, %s9008_s28   ;;  %s7041_s27 = sphi %s7097_s27, %s9007_s27  }
   0x3   : > { %p33_p1 = scmp.ge.s32.totalorder %s31_s30, 2  ;;  %p361_p2 = scmp.lt.s32.totalorder %s7049_s29, 3 }
   0x5   : > { %s9010_s30 = smov (%p33_p1, %s31_s30), 0  ;;  %p362_p3 = pnand %p5474_p0, %p361_p2 }
   0x7   : > { %365 = sbr.rel (%p362_p3) target bundleno = 660 (0x294), region = 40 }
   0xc   : > { %v6855_v0 = vld [vmem:[%s8852_s3 + $0x78] sm:$0xff]   ;;  %v6857_v2 = vld [vmem:[%s8852_s3 + $0x70] sm:$0xff]   ;;  %p459_p4 = scmp.lt.s32.totalorder %s7041_s27, 1  ;;  %v6859_v4 = vld [vmem:[%s8852_s3 + $0x68] sm:$0xff]   ;;  %vm573_vm0 = vcmask 1040384   ;;  %vm708_vm5 = vcmask 1043456  }
   0xd   : > { %v6856_v1 = vld [vmem:[%s8852_s3 + $0x38] sm:$0xff]   ;;  %6350 = vmatprep.subr.bf16.mxu0 %v6855_v0  ;;  %v6858_v3 = vld [vmem:[%s8852_s3 + $0x30] sm:$0xff]   ;;  %v6860_v5 = vld [vmem:[%s8852_s3 + $0x28] sm:$0xff]   ;;  %vm574_vm1 = vsmask.f32 256  ;;  %v8922_v32 = vmov 0 }
   0xe   : > { %6398 = vmatprep.subr.bf16.mxu1 %v6856_v1  ;;  %6351 = vmatpush3.bf16.msra.mxu0 %v6855_v0  ;;  %s9012_s27 = smov (!%p459_p4, %s7041_s27), 1  ;;  %v6861_v6 = vld [vmem:[%s8852_s3 + $0x60] sm:$0xff]   ;;  %v6863_v8 = vld [vmem:[%s8852_s3 + $0x58] sm:$0xff]   ;;  %v6865_v10 = vld [vmem:[%s8852_s3 + $0x50] sm:$0xff]   ;;  %vm630_vm3 = vsmask.f32 7938 }
   0xf   : > { %6399 = vmatpush3.bf16.msra.mxu1 %v6856_v1  ;;  %6352 = vmatprep.subr.bf16.mxu0 %v6857_v2  ;;  %v6862_v7 = vld [vmem:[%s8852_s3 + $0x20] sm:$0xff]   ;;  %s7142_s25 = sshll.u32 %s9012_s27, 7  ;;  %v6864_v9 = vld [vmem:[%s8852_s3 + $0x18] sm:$0xff]   ;;  %v6866_v11 = vld [vmem:[%s8852_s3 + $0x10] sm:$0xff]   ;;  %vm686_vm6 = vsmask.f32 4368 }
  0x10   : > { %6400 = vmatprep.subr.bf16.mxu1 %v6858_v3  ;;  %s467_s14 = scalar_lea.vmem %s8849_s0, %s7142_s25  ;;  %s7164_s21 = scalar_lea.vmem %s8850_s1, %s7142_s25  ;;  %vm7168_vm2 = vmand %vm573_vm0, %vm574_vm1  ;;  %v576_v15 = vld [vmem:[#allocation2] sm:$0x1]  ;;  %v632_v16 = vld [vmem:[#allocation2 + $0x8] sm:$0x1]  ;;  %v8925_v43 = vmov 0  ;;  %v8858_v57 = vmov 0  }
  0x11   : > { %v569_v12 = vld [vmem:[%s467_s14] sm:$0xf]  ;;  %v570_v13 = vld [vmem:[%s467_s14 + $0x4] sm:$0xf]  ;;  %v577_v17 = vsel %vm7168_vm2, 0, %v576_v15  ;;  %vm7176_vm4 = vmand %vm573_vm0, %vm630_vm3  ;;  %vm1731_vm12 = vcmask 1042432   ;;  %s8746_s23 = scalar_lea.vmem %s8855_s6, %s7142_s25  ;;  %s8768_s9 = scalar_lea.vmem %s8854_s5, %s7142_s25 }
  0x12   : > { %6353 = vmatpush3.bf16.msra.mxu0 %v6857_v2  ;;  %v689_v19 = vshrl.u32 %v569_v12, 16  ;;  %v692_v20 = vshll.u32 %v569_v12, 16  ;;  %578 = vst [vmem:[#allocation2] sm:$0x1] %v577_v17  ;;  %v633_v21 = vsel %vm7176_vm4, 0, %v632_v16  ;;  %v697_v22 = vshrl.u32 %v570_v13, 16  ;;  %vm7192_vm7 = vmor %vm574_vm1, %vm686_vm6 }
  0x13   : > { %6401 = vmatpush3.bf16.msra.mxu1 %v6858_v3  ;;  %6354 = vmatprep.subr.bf16.mxu0 %v6859_v4  ;;  %v700_v23 = vshll.u32 %v570_v13, 16  ;;  %v6867_v24 = vld [vmem:[%s8852_s3 + $0x48] sm:$0xff]   ;;  %634 = vst [vmem:[#allocation2 + $0x8] sm:$0x1] %v633_v21  ;;  %v537_v27 = vld [vmem:[%s7164_s21] sm:$0xf]  ;;  %vm7205_vm8 = vmand %vm708_vm5, %vm630_vm3 }
  0x14   : > { %6402 = vmatprep.subr.bf16.mxu1 %v6860_v5  ;;  %v6868_v25 = vld [vmem:[%s8852_s3 + $0x8] sm:$0xff]   ;;  %v691_v26 = vrot.slane %v689_v19, 7  ;;  %v699_v28 = vrot.slane %v697_v22, 7  ;;  %v538_v29 = vld [vmem:[%s7164_s21 + $0x4] sm:$0xf]  ;;  %v718_v31 = vshrl.u32 %v537_v27, 16 }
  0x15   : > { %v579_v30 = vld [vmem:[#allocation2 + $0xc] sm:$0x1]  ;;  %v8923_v32 = vsel %vm7192_vm7, 4294967295, %v8922_v32  ;;  %v635_v36 = vld [vmem:[#allocation2 + $0x14] sm:$0x1]  ;;  %v721_v37 = vshll.u32 %v537_v27, 16 }
  0x16   : > { %6355 = vmatpush3.bf16.msra.mxu0 %v6859_v4  ;;  %8924 = vst [vmem:[#allocation3_spill] sm:$0xff] %v8923_v32  ;;  %v694_v33 = vor.u32 %v692_v20, %v691_v26  ;;  %v695_v34 = vrot.slane %v691_v26, 4  ;;  %v580_v35 = vsel %vm7168_vm2, 0, %v579_v30  ;;  %v6869_v38 = vld [vmem:[%s8852_s3 + $0x40] sm:$0xff]   ;;  %v702_v39 = vor.u32 %v700_v23, %v699_v28  ;;  %v7215_v49 = vld [vmem:[%s7164_s21 + $0x8] sm:$0xf] }
  0x17   : > { %6403 = vmatpush3.bf16.msra.mxu1 %v6860_v5  ;;  %6356 = vmatprep.subr.bf16.mxu0 %v6861_v6  ;;  %v704_v40 = vrot.slane %v699_v28, 4  ;;  %581 = vst [vmem:[#allocation2 + $0xc] sm:$0x1] %v580_v35  ;;  %v636_v41 = vsel %vm7176_vm4, 0, %v635_v36  ;;  %v720_v42 = vrot.slane %v718_v31, 7  ;;  %v8926_v43 = vsel %vm7205_vm8, 4294967295, %v8925_v43 }
  0x18   : > { %6404 = vmatprep.subr.bf16.mxu1 %v6862_v7  ;;  %8927 = vst [vmem:[#allocation4_spill] sm:$0xff] %v8926_v43  ;;  %637 = vst [vmem:[#allocation2 + $0x14] sm:$0x1] %v636_v41  ;;  %v726_v44 = vshrl.u32 %v538_v29, 16  ;;  %v729_v45 = vshll.u32 %v538_v29, 16  ;;  %v6870_v46 = vld [vmem:[%s8852_s3] sm:$0xff]   ;;  %v703_v47 = vsel %vm7192_vm7, %v695_v34, %v702_v39 }
  0x19   : > { %v724_v48 = vrot.slane %v720_v42, 4  ;;  %v710_v50 = vld [vmem:[#allocation2] sm:$0xf]  ;;  %713 = vst [vmem:[#allocation2 + $0x4] sm:$0xf] %v703_v47  ;;  %v7220_v52 = vld [vmem:[%s8852_s3 + $0xb8] sm:$0xff]   ;;  %v723_v58 = vor.u32 %v721_v37, %v720_v42 }
  0x1a   : > { %6357 = vmatpush3.bf16.msra.mxu0 %v6861_v6  ;;  %v728_v51 = vrot.slane %v726_v44, 7  ;;  %v540_v53 = vld [vmem:[%s7164_s21 + $0xc] sm:$0xf]  ;;  %v735_v54 = vshrl.u32 %v7215_v49, 16  ;;  %v711_v55 = vsel %vm7205_vm8, %v694_v33, %v710_v50  ;;  %v714_v56 = vld [vmem:[#allocation2 + $0x8] sm:$0x1] }
  0x1b   : > { %6405 = vmatpush3.bf16.msra.mxu1 %v6862_v7  ;;  %6358 = vmatprep.subr.bf16.mxu0 %v6863_v8  ;;  %1183 = vst [vmem:[#allocation2 + $0x4] sm:$0xf] %v8858_v57  ;;  %v7230_v59 = vld [vmem:[%s8852_s3 + $0xf8] sm:$0xff]   ;;  %v638_v61 = vld [vmem:[#allocation2 + $0x20] sm:$0x1]  ;;  %v715_v62 = vsel %vm7168_vm2, %v704_v40, %v714_v56  ;;  %v738_v6 = vshll.u32 %v7215_v49, 16 }
  0x1c   : > { %6406 = vmatprep.subr.bf16.mxu1 %v6864_v9  ;;  %v582_v60 = vld [vmem:[#allocation2 + $0x18] sm:$0x1]  ;;  %712 = vst [vmem:[#allocation2] sm:$0xf] %v711_v55  ;;  %v731_v63 = vor.u32 %v729_v45, %v728_v51  ;;  %v733_v0 = vrot.slane %v728_v51, 4  ;;  %v639_v4 = vsel %vm7176_vm4, 0, %v638_v61 }
  0x1d   : > { %v583_v1 = vsel %vm7168_vm2, 0, %v582_v60  ;;  %v541_v2 = vld [vmem:[%s7164_s21 + $0x10] sm:$0xf]  ;;  %v7238_v3 = vld [vmem:[%s7164_s21 + $0x14] sm:$0xf]  ;;  %v737_v5 = vrot.slane %v735_v54, 7 }
  0x1e   : > { %6359 = vmatpush3.bf16.msra.mxu0 %v6863_v8  ;;  %716 = vst [vmem:[#allocation2 + $0x8] sm:$0x1] %v715_v62  ;;  %1182 = vst [vmem:[#allocation2] sm:$0xf] %v8858_v57  ;;  %vm1242_vm9 = vsmask.f32 3328 }
  0x1f   : > { %6407 = vmatpush3.bf16.msra.mxu1 %v6864_v9  ;;  %6360 = vmatprep.subr.bf16.mxu0 %v6865_v10  ;;  %584 = vst [vmem:[#allocation2 + $0x18] sm:$0x1] %v583_v1  ;;  %v743_v7 = vshrl.u32 %v540_v53, 16  ;;  %v585_v8 = vld [vmem:[#allocation2 + $0x24] sm:$0x1]  ;;  %v732_v9 = vsel %vm7192_vm7, %v724_v48, %v731_v63  ;;  %v741_v17 = vrot.slane %v737_v5, 4  ;;  %v740_v27 = vor.u32 %v738_v6, %v737_v5 }
  0x20   : > { %6408 = vmatprep.subr.bf16.mxu1 %v6866_v11  ;;  %1184 = vst [vmem:[#allocation2 + $0x8] sm:$0x1] %v8858_v57  ;;  %640 = vst [vmem:[#allocation2 + $0x20] sm:$0x1] %v639_v4  ;;  %v586_v12 = vsel %vm7168_vm2, 0, %v585_v8  ;;  %v752_v22 = vshrl.u32 %v541_v2, 16 }
  0x21   : > { %v641_v13 = vld [vmem:[#allocation2 + $0x2c] sm:$0x1]  ;;  %1041 = vst [vmem:[#allocation2 + $0x10] sm:$0xf] %v732_v9  ;;  %v1042_v16 = vld [vmem:[#allocation2 + $0x14] sm:$0x1] }
  0x22   : > { %6361 = vmatpush3.bf16.msra.mxu0 %v6865_v10  ;;  %v1038_v10 = vld [vmem:[#allocation2 + $0xc] sm:$0xf]  ;;  %v7251_v19 = vrot.slane %v743_v7, 7  ;;  %587 = vst [vmem:[#allocation2 + $0x24] sm:$0x1] %v586_v12  ;;  %v1043_v20 = vsel %vm7168_vm2, %v733_v0, %v1042_v16  ;;  %v642_v21 = vsel %vm7176_vm4, 0, %v641_v13 }
  0x23   : > { %6409 = vmatpush3.bf16.msra.mxu1 %v6866_v11  ;;  %6362 = vmatprep.subr.bf16.mxu0 %v6867_v24  ;;  %v746_v11 = vshll.u32 %v540_v53, 16  ;;  %v1039_v15 = vsel %vm7205_vm8, %v723_v58, %v1038_v10  ;;  %v755_v23 = vshll.u32 %v541_v2, 16  ;;  %vm1243_vm10 = vsmask.f32 7440  ;;  %1044 = vst [vmem:[#allocation2 + $0x14] sm:$0x1] %v1043_v20 }
  0x24   : > { %6410 = vmatprep.subr.bf16.mxu1 %v6868_v25  ;;  %1040 = vst [vmem:[#allocation2 + $0xc] sm:$0xf] %v1039_v15  ;;  %643 = vst [vmem:[#allocation2 + $0x2c] sm:$0x1] %v642_v21  ;;  %v1189_v26 = vld [vmem:[#allocation2 + $0x4] sm:$0xf] }
  0x25   : > { %v7261_v28 = vrot.slane %v752_v22, 7  ;;  %v1255_v29 = vshll.u32 %v1189_v26, 16  ;;  %v1259_v30 = vshrl.u32 %v1189_v26, 16  ;;  %v750_v33 = vrot.slane %v7251_v19, 4  ;;  %v1188_v34 = vld [vmem:[#allocation2] sm:$0xf]  ;;  %vm7280_vm11 = vmor %vm1242_vm9, %vm1243_vm10 }
  0x26   : > { %6363 = vmatpush3.bf16.msra.mxu0 %v6867_v24  ;;  %v748_v24 = vor.u32 %v746_v11, %v7251_v19  ;;  %v1045_v35 = vld [vmem:[#allocation2 + $0x18] sm:$0xf]  ;;  %v1246_v40 = vshrl.u32 %v1188_v34, 16  ;;  %v1249_v41 = vshll.u32 %v1188_v34, 16  ;;  %v6878_v16 = vld [vmem:[%s8852_s3 + $0xf0] sm:$0xff]   ;;  %vm1732_vm13 = vcmask 1046532  }
  0x27   : > { %6411 = vmatpush3.bf16.msra.mxu1 %v6868_v25  ;;  %6364 = vmatprep.subr.bf16.mxu0 %v6869_v38  ;;  %v760_v25 = vshrl.u32 %v7238_v3, 16  ;;  %v7267_v36 = vor.u32 %v755_v23, %v7261_v28  ;;  %v1190_v39 = vld [vmem:[#allocation2 + $0x8] sm:$0x1]  ;;  %v1257_v42 = vrot.slane %v1255_v29, 5  ;;  %v1261_v44 = vrot.slane %v1259_v30, 4  ;;  %vm7825_vm14 = vmor %vm1731_vm12, %vm1732_vm13  ;;  %s5852_s19 = sadd.s32 120, %s7142_s25 }
  0x28   : > { %6412 = vmatprep.subr.bf16.mxu1 %v6870_v46  ;;  %v749_v31 = vsel %vm7192_vm7, %v741_v17, %v748_v24  ;;  %v1265_v45 = vshll.u32 %v1190_v39, 16  ;;  %v1192_v47 = vld [vmem:[#allocation2 + $0x10] sm:$0xf]  ;;  %v1046_v48 = vsel %vm7205_vm8, %v740_v27, %v1045_v35  ;;  %v758_v49 = vrot.slane %v7261_v28, 4  ;;  %v7276_v50 = vld [vmem:[%s7164_s21 + $0x18] sm:$0xf]  ;;  %s495_s26 = scalar_lea.vmem %s8851_s2, %s5852_s19 }
  0x29   : > { %1048 = vst [vmem:[#allocation2 + $0x1c] sm:$0xf] %v749_v31  ;;  %v7269_v37 = vrot.slane %v760_v25, 7  ;;  %v1248_v51 = vrot.slane %v1246_v40, 4  ;;  %v1251_v53 = vrot.slane %v1249_v41, 5  ;;  %v1262_v54 = vor.u32 %v1261_v44, %v1257_v42  ;;  %v6923_v14 = vld [vmem:[%s8852_s3 + $0x1f0] sm:$0xff]  }
  0x2a   : > { %6365 = vmatpush3.bf16.msra.mxu0 %v6869_v38  ;;  %v763_v38 = vshll.u32 %v7238_v3, 16  ;;  %v1279_v56 = vshll.u32 %v1192_v47, 16  ;;  %1047 = vst [vmem:[#allocation2 + $0x18] sm:$0xf] %v1046_v48  ;;  %v1267_v60 = vrot.slane %v1265_v45, 5  ;;  %v1283_v0 = vshrl.u32 %v1192_v47, 16 }
  0x2b   : > { %6413 = vmatpush3.bf16.msra.mxu1 %v6870_v46  ;;  %6446 = vmatprep.subr.bf16.mxu0 %v7220_v52  ;;  %v5545_v46 = vcombine.low %v1188_v34, %v1189_v26  ;;  %v1191_v55 = vld [vmem:[#allocation2 + $0xc] sm:$0xf]  ;;  %v1193_v61 = vld [vmem:[#allocation2 + $0x14] sm:$0x1]  ;;  %v1252_v1 = vor.u32 %v1251_v53, %v1248_v51  ;;  %v1263_v2 = vrot.slane %v1262_v54, 4  ;;  %v769_v9 = vshrl.u32 %v7276_v50, 16 }
  0x2c   : > { %6494 = vmatprep.subr.bf16.mxu1 %v7230_v59  ;;  %v1270_v62 = vshrl.u32 %v1191_v55, 16  ;;  %v1273_v63 = vshll.u32 %v1191_v55, 16  ;;  %v1281_v3 = vrot.slane %v1279_v56, 5  ;;  %v1289_v4 = vshll.u32 %v1193_v61, 16  ;;  %v1049_v5 = vld [vmem:[#allocation2 + $0x20] sm:$0x1] }
  0x2d   : > { %6414 = vmatprep.mubr.bf16.mxu1 %v5545_v46  ;;  %v1285_v8 = vrot.slane %v1283_v0, 4  ;;  %v1253_v10 = vrot.slane %v1252_v1, 4  ;;  %v1268_v11 = vsel %vm7280_vm11, %v1263_v2, %v1267_v60  ;;  %v7287_v13 = vcombine.low %v1191_v55, %v1192_v47  ;;  %v1052_v22 = vld [vmem:[#allocation2 + $0x24] sm:$0xf]  ;;  %v1056_v27 = vld [vmem:[#allocation2 + $0x2c] sm:$0x1] }
  0x2e   : > { %v1272_v6 = vrot.slane %v1270_v62, 4  ;;  %v1275_v7 = vrot.slane %v1273_v63, 5  ;;  %v1291_v12 = vrot.slane %v1289_v4, 5  ;;  %v1050_v20 = vsel %vm7168_vm2, %v750_v33, %v1049_v5  ;;  %v588_v29 = vld [vmem:[#allocation2 + $0x30] sm:$0x1]  ;;  %v6882_v46 = vld [vmem:[%s8852_s3 + $0xe8] sm:$0xff]  }
  0x2f   : > { %v1286_v19 = vor.u32 %v1285_v8, %v1281_v3  ;;  %v1258_v23 = vsel %vm7280_vm11, %v1253_v10, %v1257_v42  ;;  %6415 = vmatmul.mubr.bf16.vlgmr.msra.gmra.mxu1 %v7287_v13  ;;  %1051 = vst [vmem:[#allocation2 + $0x20] sm:$0x1] %v1050_v20  ;;  %v765_v25 = vor.u32 %v763_v38, %v7269_v37  ;;  %v767_v26 = vrot.slane %v7269_v37, 4  ;;  %v644_v30 = vld [vmem:[#allocation2 + $0x38] sm:$0x1]  ;;  %v6877_v37 = vld [vmem:[%s8852_s3 + $0xb0] sm:$0xff]  }
  0x30   : > { %v1195_v15 = vld [vmem:[#allocation2 + $0x1c] sm:$0xf]  ;;  %v1276_v17 = vor.u32 %v1275_v7, %v1272_v6  ;;  %v5521_v31 = vcombine.low %v1258_v23, %v1268_v11  ;;  %6495 = vmatpush3.bf16.msra.mxu1 %v7230_v59  ;;  %v1053_v51 = vsel %vm7205_vm8, %v7267_v36, %v1052_v22  ;;  %v647_v53 = vld [vmem:[#allocation2 + $0x44] sm:$0x1]  ;;  %v589_v36 = vsel %vm7168_vm2, 0, %v588_v29  ;;  %s5485_s25 = sshll.u32 %s9012_s27, 3 }
  0x31   : > { %v1303_v21 = vshll.u32 %v1195_v15, 16  ;;  %v1307_v24 = vshrl.u32 %v1195_v15, 16  ;;  %v1287_v33 = vrot.slane %v1286_v19, 4  ;;  %v1194_v35 = vld [vmem:[#allocation2 + $0x18] sm:$0xf]  ;;  %6496 = vmatprep.subr.bf16.mxu1 %v6878_v16  ;;  %v766_v48 = vsel %vm7192_vm7, %v758_v49, %v765_v25  ;;  %v6886_v62 = vld [vmem:[%s8852_s3 + $0xe0] sm:$0xff]   ;;  %s535_s12 = scalar_lea.vmem %s8857_s8, %s5485_s25  ;;  %s528_s14 = scalar_lea.vmem %s8856_s7, %s5485_s25 }
  0x32   : > { %v1277_v34 = vrot.slane %v1276_v17, 4  ;;  %v544_v40 = vld [vmem:[%s7164_s21 + $0x1c] sm:$0xf]  ;;  %v1294_v41 = vshrl.u32 %v1194_v35, 16  ;;  %v1297_v42 = vshll.u32 %v1194_v35, 16  ;;  %v7303_v45 = vcombine.low %v1194_v35, %v1195_v15  ;;  %6366 = vmatprep.mubr.bf16.mxu0 %v5521_v31 }
  0x33   : > { %v7300_v39 = vrot.slane %v1303_v21, 5  ;;  %v1309_v44 = vrot.slane %v1307_v24, 4  ;;  %v591_v38 = vld [vmem:[#allocation2 + $0x3c] sm:$0x1]  ;;  %v1292_v47 = vsel %vm7280_vm11, %v1287_v33, %v1291_v12  ;;  %1054 = vst [vmem:[#allocation2 + $0x24] sm:$0xf] %v1053_v51  ;;  %v1057_v28 = vsel %vm7168_vm2, %v767_v26, %v1056_v27 }
  0x34   : > { %v1282_v59 = vsel %vm7280_vm11, %v1277_v34, %v1281_v3  ;;  %v1296_v55 = vrot.slane %v1294_v41, 4  ;;  %v1299_v56 = vrot.slane %v1297_v42, 5  ;;  %6418 = vmatprep.mubr.bf16.mxu1 %v7303_v45  ;;  %1055 = vst [vmem:[#allocation2 + $0x28] sm:$0xf] %v766_v48  ;;  %6497 = vmatpush3.bf16.msra.mxu1 %v6878_v16  ;;  %v645_v49 = vsel %vm7176_vm4, 0, %v644_v30  ;;  %v6890_v23 = vld [vmem:[%s8852_s3 + $0xd8] sm:$0xff]  }
  0x35   : > { %v7322_v54 = vcombine.low %v1282_v59, %v1292_v47  ;;  %v1310_v60 = vor.u32 %v1309_v44, %v7300_v39  ;;  %v771_v61 = vrot.slane %v769_v9, 7  ;;  %1058 = vst [vmem:[#allocation2 + $0x2c] sm:$0x1] %v1057_v28  ;;  %590 = vst [vmem:[#allocation2 + $0x30] sm:$0x1] %v589_v36  ;;  %v777_v1 = vshrl.u32 %v544_v40, 16  ;;  %6498 = vmatprep.subr.bf16.mxu1 %v6882_v46 }
  0x36   : > { %v1300_v63 = vor.u32 %v1299_v56, %v1296_v55  ;;  %646 = vst [vmem:[#allocation2 + $0x38] sm:$0x1] %v645_v49  ;;  %v7337_v2 = vld [vmem:[%s7164_s21 + $0x20] sm:$0xf]  ;;  %v7340_v3 = vld [vmem:[%s7164_s21 + $0x24] sm:$0xf] }
  0x37   : > { %8930 = vst [vmem:[#allocation5_spill] sm:$0xff] %v7322_v54  ;;  %6367 = vmatmul.mubr.bf16.vlgmr.msra.gmra.mxu0 %v7322_v54  ;;  %v1311_v0 = vrot.slane %v1310_v60, 4  ;;  %v1196_v4 = vld [vmem:[#allocation2 + $0x20] sm:$0x1]  ;;  %v772_v5 = vshll.u32 %v7276_v50, 16  ;;  %v780_v6 = vshll.u32 %v544_v40, 16 }
  0x38   : > { %6447 = vmatpush3.bf16.msra.mxu0 %v7220_v52  ;;  %v592_v7 = vsel %vm7168_vm2, 0, %v591_v38  ;;  %v648_v8 = vsel %vm7176_vm4, 0, %v647_v53  ;;  %v1301_v9 = vrot.slane %v1300_v63, 4  ;;  %v1313_v10 = vshll.u32 %v1196_v4, 16  ;;  %v6881_v52 = vld [vmem:[%s8852_s3 + $0xa8] sm:$0xff]   ;;  %6499 = vmatpush3.bf16.msra.mxu1 %v6882_v46  ;;  %v6894_v47 = vld [vmem:[%s8852_s3 + $0xd0] sm:$0xff]  }
  0x39   : > { %6448 = vmatprep.subr.bf16.mxu0 %v6877_v37  ;;  %v775_v11 = vrot.slane %v771_v61, 4  ;;  %v779_v12 = vrot.slane %v777_v1, 7  ;;  %593 = vst [vmem:[#allocation2 + $0x3c] sm:$0x1] %v592_v7  ;;  %649 = vst [vmem:[#allocation2 + $0x44] sm:$0x1] %v648_v8  ;;  %6500 = vmatprep.subr.bf16.mxu1 %v6886_v62  ;;  %v774_v26 = vor.u32 %v772_v5, %v771_v61 }
  0x3a   : > { %v786_v50 = vshrl.u32 %v7337_v2, 16  ;;  %v789_v15 = vshll.u32 %v7337_v2, 16  ;;  %v794_v16 = vshrl.u32 %v7340_v3, 16  ;;  %v797_v17 = vshll.u32 %v7340_v3, 16  ;;  %v1197_v24 = vld [vmem:[#allocation2 + $0x24] sm:$0xf] }
  0x3b   : > { %v1306_v19 = vsel %vm7280_vm11, %v1301_v9, %v7300_v39  ;;  %v1315_v20 = vrot.slane %v1313_v10, 5  ;;  %v782_v21 = vor.u32 %v780_v6, %v779_v12  ;;  %v784_v22 = vrot.slane %v779_v12, 4  ;;  %v1198_v25 = vld [vmem:[#allocation2 + $0x28] sm:$0xf]  ;;  %v7368_v39 = vld [vmem:[%s8852_s3 + $0xa0] sm:$0xff]   ;;  %v7394_v1 = vld [vmem:[%s8852_s3 + $0x98] sm:$0xff]  }
  0x3c   : > { %6449 = vmatpush3.bf16.msra.mxu0 %v6877_v37  ;;  %v788_v27 = vrot.slane %v786_v50, 7  ;;  %v7361_v29 = vrot.slane %v794_v16, 7  ;;  %v1318_v31 = vshrl.u32 %v1197_v24, 16  ;;  %v1321_v34 = vshll.u32 %v1197_v24, 16  ;;  %v594_v35 = vld [vmem:[#allocation2 + $0x48] sm:$0x1]  ;;  %6501 = vmatpush3.bf16.msra.mxu1 %v6886_v62 }
  0x3d   : > { %v1316_v30 = vsel %vm7280_vm11, %v1311_v0, %v1315_v20  ;;  %v1327_v33 = vshll.u32 %v1198_v25, 16  ;;  %6450 = vmatprep.subr.bf16.mxu0 %v6881_v52  ;;  %v1199_v41 = vld [vmem:[#allocation2 + $0x2c] sm:$0x1]  ;;  %v1331_v42 = vshrl.u32 %v1198_v25, 16  ;;  %v7372_v44 = vcombine.low %v1197_v24, %v1198_v25  ;;  %v1059_v38 = vld [vmem:[#allocation2 + $0x30] sm:$0xf]  ;;  %6502 = vmatprep.subr.bf16.mxu1 %v6890_v23 }
  0x3e   : > { %v7370_v40 = vcombine.low %v1306_v19, %v1316_v30  ;;  %v783_v37 = vsel %vm7192_vm7, %v775_v11, %v782_v21  ;;  %v7377_v46 = vld [vmem:[%s7164_s21 + $0x28] sm:$0xf]  ;;  %v650_v59 = vld [vmem:[#allocation2 + $0x50] sm:$0x1]  ;;  %v1320_v48 = vrot.slane %v1318_v31, 4  ;;  %v1323_v51 = vrot.slane %v1321_v34, 5 }
  0x3f   : > { %v1329_v53 = vrot.slane %v1327_v33, 5  ;;  %v1337_v55 = vshll.u32 %v1199_v41, 16  ;;  %1062 = vst [vmem:[#allocation2 + $0x34] sm:$0xf] %v783_v37  ;;  %v1063_v56 = vld [vmem:[#allocation2 + $0x38] sm:$0x1]  ;;  %6419 = vmatmul.mubr.bf16.gmra.mxu1 %v7372_v44  ;;  %v1060_v36 = vsel %vm7205_vm8, %v774_v26, %v1059_v38  ;;  %v791_v61 = vor.u32 %v789_v15, %v788_v27 }
  0x40   : > { %8931 = vst [vmem:[#allocation6_spill] sm:$0xff] %v7370_v40  ;;  %v7383_v60 = vld [vmem:[%s7164_s21 + $0x2c] sm:$0xf]  ;;  %6370 = vmatprep.mubr.bf16.mxu0 %v7370_v40  ;;  %v1333_v28 = vrot.slane %v1331_v42, 4  ;;  %v1064_v49 = vsel %vm7168_vm2, %v784_v22, %v1063_v56  ;;  %v1066_v62 = vld [vmem:[#allocation2 + $0x3c] sm:$0xf]  ;;  %v1324_v2 = vor.u32 %v1323_v51, %v1320_v48  ;;  %v799_v5 = vor.u32 %v797_v17, %v7361_v29 }
  0x41   : > { %v1070_v63 = vld [vmem:[#allocation2 + $0x44] sm:$0x1]  ;;  %v597_v0 = vld [vmem:[#allocation2 + $0x54] sm:$0x1]  ;;  %v1339_v3 = vrot.slane %v1337_v55, 5  ;;  %v792_v4 = vrot.slane %v788_v27, 4  ;;  %6451 = vmatpush3.bf16.msra.mxu0 %v6881_v52  ;;  %v1067_v10 = vsel %vm7205_vm8, %v791_v61, %v1066_v62  ;;  %6503 = vmatpush3.bf16.msra.mxu1 %v6890_v23 }
  0x42   : > { %1061 = vst [vmem:[#allocation2 + $0x30] sm:$0xf] %v1060_v36  ;;  %1065 = vst [vmem:[#allocation2 + $0x38] sm:$0x1] %v1064_v49  ;;  %v7398_v6 = vld [vmem:[%s7164_s21 + $0x30] sm:$0xf]  ;;  %v1334_v8 = vor.u32 %v1333_v28, %v1329_v53  ;;  %6452 = vmatprep.subr.bf16.mxu0 %v7368_v39  ;;  %6504 = vmatprep.subr.bf16.mxu1 %v6894_v47 }
  0x43   : > { %v653_v7 = vld [vmem:[#allocation2 + $0x5c] sm:$0x1]  ;;  %v801_v9 = vrot.slane %v7361_v29, 4  ;;  %v595_v11 = vsel %vm7168_vm2, 0, %v594_v35  ;;  %v1325_v12 = vrot.slane %v1324_v2, 4  ;;  %v800_v50 = vsel %vm7192_vm7, %v792_v4, %v799_v5  ;;  %v6898_v16 = vld [vmem:[%s8852_s3 + $0xc8] sm:$0xff]  }
  0x44   : > { %1068 = vst [vmem:[#allocation2 + $0x3c] sm:$0xf] %v1067_v10  ;;  %596 = vst [vmem:[#allocation2 + $0x48] sm:$0x1] %v595_v11  ;;  %v651_v52 = vsel %vm7176_vm4, 0, %v650_v59  ;;  %v803_v15 = vshrl.u32 %v7377_v46, 16 }
  0x45   : > { %v1335_v17 = vrot.slane %v1334_v8, 4  ;;  %1069 = vst [vmem:[#allocation2 + $0x40] sm:$0xf] %v800_v50  ;;  %v1071_v19 = vsel %vm7168_vm2, %v801_v9, %v1070_v63  ;;  %652 = vst [vmem:[#allocation2 + $0x50] sm:$0x1] %v651_v52  ;;  %v806_v20 = vshll.u32 %v7377_v46, 16  ;;  %v1330_v22 = vsel %vm7280_vm11, %v1325_v12, %v1329_v53  ;;  %6453 = vmatpush3.bf16.msra.mxu0 %v7368_v39 }
  0x46   : > { %v811_v21 = vshrl.u32 %v7383_v60, 16  ;;  %1072 = vst [vmem:[#allocation2 + $0x44] sm:$0x1] %v1071_v19  ;;  %v805_v23 = vrot.slane %v803_v15, 7  ;;  %v814_v24 = vshll.u32 %v7383_v60, 16  ;;  %v598_v25 = vsel %vm7168_vm2, 0, %v597_v0  ;;  %6454 = vmatprep.subr.bf16.mxu0 %v7394_v1  ;;  %6505 = vmatpush3.bf16.msra.mxu1 %v6894_v47 }
  0x47   : > { %v1340_v26 = vsel %vm7280_vm11, %v1335_v17, %v1339_v3  ;;  %v1201_v27 = vld [vmem:[#allocation2 + $0x34] sm:$0xf]  ;;  %599 = vst [vmem:[#allocation2 + $0x54] sm:$0x1] %v598_v25  ;;  %v654_v30 = vsel %vm7176_vm4, 0, %v653_v7  ;;  %v820_v31 = vshrl.u32 %v7398_v6, 16  ;;  %6506 = vmatprep.subr.bf16.mxu1 %v6898_v16 }
  0x48   : > { %v7426_v29 = vrot.slane %v811_v21, 7  ;;  %v7432_v34 = vcombine.low %v1330_v22, %v1340_v26  ;;  %v1351_v33 = vshll.u32 %v1201_v27, 16  ;;  %v1355_v35 = vshrl.u32 %v1201_v27, 16  ;;  %655 = vst [vmem:[#allocation2 + $0x5c] sm:$0x1] %v654_v30  ;;  %v6893_v39 = vld [vmem:[%s8852_s3 + $0x90] sm:$0xff]  }
  0x49   : > { %v6902_v41 = vld [vmem:[%s8852_s3 + $0xc0] sm:$0xff]   ;;  %v1200_v42 = vld [vmem:[#allocation2 + $0x30] sm:$0xf]  ;;  %v1202_v37 = vld [vmem:[#allocation2 + $0x38] sm:$0x1]  ;;  %v808_v38 = vor.u32 %v806_v20, %v805_v23  ;;  %v809_v46 = vrot.slane %v805_v23, 4  ;;  %6455 = vmatpush3.bf16.msra.mxu0 %v7394_v1 }
  0x4a   : > { %8932 = vst [vmem:[#allocation7_spill] sm:$0xff] %v7432_v34  ;;  %v816_v59 = vor.u32 %v814_v24, %v7426_v29  ;;  %v818_v47 = vrot.slane %v7426_v29, 4  ;;  %6371 = vmatmul.mubr.bf16.gmra.mxu0 %v7432_v34  ;;  %v1342_v48 = vshrl.u32 %v1200_v42, 16  ;;  %v1345_v51 = vshll.u32 %v1200_v42, 16  ;;  %v7448_v56 = vld [vmem:[%s8852_s3 + $0x88] sm:$0xff]   ;;  %6507 = vmatpush3.bf16.msra.mxu1 %v6898_v16  ;;  %v6904_v5 = vld [vmem:[%s8852_s3 + $0x178] sm:$0xff]  }
  0x4b   : > { %v7443_v53 = vrot.slane %v1351_v33, 5  ;;  %v1357_v55 = vrot.slane %v1355_v35, 4  ;;  %v1361_v60 = vshll.u32 %v1202_v37, 16  ;;  %v7450_v28 = vcombine.low %v1200_v42, %v1201_v27  ;;  %v1203_v36 = vld [vmem:[#allocation2 + $0x3c] sm:$0xf]  ;;  %6456 = vmatprep.subr.bf16.mxu0 %v6893_v39  ;;  %6508 = vmatprep.subr.bf16.mxu1 %v6902_v41  ;;  %v6901_v27 = vld [vmem:[%s8852_s3 + $0x80] sm:$0xff]  }
  0x4c   : > { %v817_v49 = vsel %vm7192_vm7, %v809_v46, %v816_v59  ;;  %v1073_v61 = vld [vmem:[#allocation2 + $0x48] sm:$0xf]  ;;  %v7454_v62 = vrot.slane %v820_v31, 7  ;;  %v1344_v63 = vrot.slane %v1342_v48, 4  ;;  %v1347_v0 = vrot.slane %v1345_v51, 5 }
  0x4d   : > { %v1358_v2 = vor.u32 %v1357_v55, %v7443_v53  ;;  %v1204_v3 = vld [vmem:[#allocation2 + $0x40] sm:$0xf]  ;;  %v1366_v4 = vshrl.u32 %v1203_v36, 16  ;;  %1076 = vst [vmem:[#allocation2 + $0x4c] sm:$0xf] %v817_v49  ;;  %v1363_v7 = vrot.slane %v1361_v60, 5  ;;  %6422 = vmatprep.mubr.bf16.mxu1 %v7450_v28  ;;  %6457 = vmatpush3.bf16.msra.mxu0 %v6893_v39  ;;  %v1074_v25 = vsel %vm7205_vm8, %v808_v38, %v1073_v61 }
  0x4e   : > { %v1205_v8 = vld [vmem:[#allocation2 + $0x44] sm:$0x1]  ;;  %v1369_v1 = vshll.u32 %v1203_v36, 16  ;;  %v1375_v9 = vshll.u32 %v1204_v3, 16  ;;  %v1379_v10 = vshrl.u32 %v1204_v3, 16  ;;  %v1348_v11 = vor.u32 %v1347_v0, %v1344_v63  ;;  %6509 = vmatpush3.bf16.msra.mxu1 %v6902_v41  ;;  %6458 = vmatprep.subr.bf16.mxu0 %v7448_v56 }
  0x4f   : > { %v1359_v12 = vrot.slane %v1358_v2, 4  ;;  %v1368_v50 = vrot.slane %v1366_v4, 4  ;;  %v1385_v52 = vshll.u32 %v1205_v8, 16  ;;  %v1077_v15 = vld [vmem:[#allocation2 + $0x50] sm:$0x1]  ;;  %v7462_v20 = vcombine.low %v1203_v36, %v1204_v3  ;;  %6590 = vmatprep.subr.bf16.mxu1 %v6904_v5 }
  0x50   : > { %v1371_v16 = vrot.slane %v1369_v1, 5  ;;  %v1377_v17 = vrot.slane %v1375_v9, 5  ;;  %v1381_v19 = vrot.slane %v1379_v10, 4  ;;  %v550_v21 = vld [vmem:[%s7164_s21 + $0x34] sm:$0xf]  ;;  %v1349_v22 = vrot.slane %v1348_v11, 4 }
  0x51   : > { %v1364_v23 = vsel %vm7280_vm11, %v1359_v12, %v1363_v7  ;;  %v1387_v24 = vrot.slane %v1385_v52, 5  ;;  %v600_v26 = vld [vmem:[#allocation2 + $0x60] sm:$0x1]  ;;  %6423 = vmatmul.mubr.bf16.gmra.mxu1 %v7462_v20  ;;  %1075 = vst [vmem:[#allocation2 + $0x48] sm:$0xf] %v1074_v25  ;;  %v1078_v31 = vsel %vm7168_vm2, %v818_v47, %v1077_v15  ;;  %v823_v33 = vshll.u32 %v7398_v6, 16  ;;  %6459 = vmatpush3.bf16.msra.mxu0 %v7448_v56 }
  0x52   : > { %v1372_v29 = vor.u32 %v1371_v16, %v1368_v50  ;;  %v1382_v30 = vor.u32 %v1381_v19, %v1377_v17  ;;  %v1080_v35 = vld [vmem:[#allocation2 + $0x54] sm:$0xf]  ;;  %v656_v39 = vld [vmem:[#allocation2 + $0x68] sm:$0x1]  ;;  %v1354_v41 = vsel %vm7280_vm11, %v1349_v22, %v7443_v53  ;;  %1079 = vst [vmem:[#allocation2 + $0x50] sm:$0x1] %v1078_v31  ;;  %6460 = vmatprep.subr.bf16.mxu0 %v6901_v27 }
  0x53   : > { %v826_v42 = vrot.slane %v7454_v62, 4  ;;  %v828_v37 = vshrl.u32 %v550_v21, 16  ;;  %v831_v38 = vshll.u32 %v550_v21, 16  ;;  %v551_v46 = vld [vmem:[%s7164_s21 + $0x38] sm:$0xf]  ;;  %v7488_v48 = vcombine.low %v1354_v41, %v1364_v23 }
  0x54   : > { %v7483_v59 = vld [vmem:[%s7164_s21 + $0x3c] sm:$0xf]  ;;  %v1373_v6 = vrot.slane %v1372_v29, 4  ;;  %v1383_v51 = vrot.slane %v1382_v30, 4  ;;  %v1207_v55 = vld [vmem:[#allocation2 + $0x4c] sm:$0xf]  ;;  %v825_v60 = vor.u32 %v823_v33, %v7454_v62 }
  0x55   : > { %v6903_v47 = vld [vmem:[%s8852_s3 + $0x138] sm:$0xff]   ;;  %8933 = vst [vmem:[#allocation8_spill] sm:$0xff] %v7488_v48  ;;  %v1399_v53 = vshll.u32 %v1207_v55, 16  ;;  %v1403_v36 = vshrl.u32 %v1207_v55, 16  ;;  %v830_v49 = vrot.slane %v828_v37, 7  ;;  %v601_v61 = vsel %vm7168_vm2, 0, %v600_v26  ;;  %6374 = vmatprep.mubr.bf16.mxu0 %v7488_v48  ;;  %6461 = vmatpush3.bf16.msra.mxu0 %v6901_v27 }
  0x56   : > { %v1378_v63 = vsel %vm7280_vm11, %v1373_v6, %v1377_v17  ;;  %v1388_v0 = vsel %vm7280_vm11, %v1383_v51, %v1387_v24  ;;  %v1081_v62 = vsel %vm7205_vm8, %v825_v60, %v1080_v35  ;;  %602 = vst [vmem:[#allocation2 + $0x60] sm:$0x1] %v601_v61  ;;  %v657_v56 = vsel %vm7176_vm4, 0, %v656_v39  ;;  %v603_v2 = vld [vmem:[#allocation2 + $0x6c] sm:$0x1]  ;;  %6542 = vmatprep.subr.bf16.mxu0 %v6903_v47 }
  0x57   : > { %v7503_v3 = vcombine.low %v1378_v63, %v1388_v0  ;;  %v7505_v4 = vrot.slane %v1399_v53, 5  ;;  %v1405_v5 = vrot.slane %v1403_v36, 4  ;;  %v833_v7 = vor.u32 %v831_v38, %v830_v49  ;;  %1082 = vst [vmem:[#allocation2 + $0x54] sm:$0xf] %v1081_v62  ;;  %v1084_v8 = vld [vmem:[#allocation2 + $0x5c] sm:$0x1] }
  0x58   : > { %658 = vst [vmem:[#allocation2 + $0x68] sm:$0x1] %v657_v56  ;;  %v835_v1 = vrot.slane %v830_v49, 4  ;;  %v837_v9 = vshrl.u32 %v551_v46, 16  ;;  %v840_v10 = vshll.u32 %v551_v46, 16  ;;  %v845_v11 = vshrl.u32 %v7483_v59, 16 }
  0x59   : > { %8934 = vst [vmem:[#allocation9_spill] sm:$0xff] %v7503_v3  ;;  %v7509_v12 = vld [vmem:[%s7164_s21 + $0x40] sm:$0xf]  ;;  %6375 = vmatmul.mubr.bf16.gmra.mxu0 %v7503_v3  ;;  %v1206_v50 = vld [vmem:[#allocation2 + $0x48] sm:$0xf]  ;;  %v1406_v52 = vor.u32 %v1405_v5, %v7505_v4  ;;  %v834_v15 = vsel %vm7192_vm7, %v826_v42, %v833_v7  ;;  %v848_v16 = vshll.u32 %v7483_v59, 16 }
  0x5a   : > { %v604_v17 = vsel %vm7168_vm2, 0, %v603_v2  ;;  %v659_v19 = vld [vmem:[#allocation2 + $0x74] sm:$0x1]  ;;  %v1208_v21 = vld [vmem:[#allocation2 + $0x50] sm:$0x1]  ;;  %v1390_v22 = vshrl.u32 %v1206_v50, 16  ;;  %v7518_v24 = vcombine.low %v1206_v50, %v1207_v55  ;;  %v1085_v25 = vsel %vm7168_vm2, %v835_v1, %v1084_v8 }
  0x5b   : > { %v1393_v23 = vshll.u32 %v1206_v50, 16  ;;  %1083 = vst [vmem:[#allocation2 + $0x58] sm:$0xf] %v834_v15  ;;  %605 = vst [vmem:[#allocation2 + $0x6c] sm:$0x1] %v604_v17  ;;  %v1407_v26 = vrot.slane %v1406_v52, 4 }
  0x5c   : > { %v1409_v27 = vshll.u32 %v1208_v21, 16  ;;  %1086 = vst [vmem:[#allocation2 + $0x5c] sm:$0x1] %v1085_v25  ;;  %v839_v29 = vrot.slane %v837_v9, 7  ;;  %v847_v30 = vrot.slane %v845_v11, 7  ;;  %v1392_v31 = vrot.slane %v1390_v22, 4  ;;  %6426 = vmatprep.mubr.bf16.mxu1 %v7518_v24 }
  0x5d   : > { %v1395_v33 = vrot.slane %v1393_v23, 5  ;;  %v554_v35 = vld [vmem:[%s7164_s21 + $0x44] sm:$0xf]  ;;  %v660_v39 = vsel %vm7176_vm4, 0, %v659_v19  ;;  %v854_v41 = vshrl.u32 %v7509_v12, 16  ;;  %v857_v56 = vshll.u32 %v7509_v12, 16 }
  0x5e   : > { %v1411_v42 = vrot.slane %v1409_v27, 5  ;;  %v842_v37 = vor.u32 %v840_v10, %v839_v29  ;;  %v843_v38 = vrot.slane %v839_v29, 4  ;;  %v850_v46 = vor.u32 %v848_v16, %v847_v30  ;;  %v1087_v59 = vld [vmem:[#allocation2 + $0x60] sm:$0xf]  ;;  %661 = vst [vmem:[#allocation2 + $0x74] sm:$0x1] %v660_v39 }
  0x5f   : > { %v1396_v47 = vor.u32 %v1395_v33, %v1392_v31  ;;  %v7527_v6 = vld [vmem:[#allocation2 + $0x54] sm:$0xf]  ;;  %v852_v51 = vrot.slane %v847_v30, 4  ;;  %v1091_v55 = vld [vmem:[#allocation2 + $0x68] sm:$0x1]  ;;  %v856_v60 = vrot.slane %v854_v41, 7 }
  0x60   : > { %v1412_v53 = vsel %vm7280_vm11, %v1407_v26, %v1411_v42  ;;  %v1414_v36 = vshrl.u32 %v7527_v6, 16  ;;  %v1417_v49 = vshll.u32 %v7527_v6, 16  ;;  %v851_v61 = vsel %vm7192_vm7, %v843_v38, %v850_v46  ;;  %v606_v2 = vld [vmem:[#allocation2 + $0x78] sm:$0x1]  ;;  %v555_v22 = vld [vmem:[%s7164_s21 + $0x48] sm:$0xf] }
  0x61   : > { %v1397_v63 = vrot.slane %v1396_v47, 4  ;;  %v1088_v0 = vsel %vm7205_vm8, %v842_v37, %v1087_v59  ;;  %1090 = vst [vmem:[#allocation2 + $0x64] sm:$0xf] %v851_v61  ;;  %v1092_v62 = vsel %vm7168_vm2, %v852_v51, %v1091_v55  ;;  %v860_v1 = vrot.slane %v856_v60, 4  ;;  %v7559_v29 = vld [vmem:[%s7164_s21 + $0x4c] sm:$0xf] }
  0x62   : > { %v7540_v5 = vld [vmem:[#allocation2 + $0x58] sm:$0xf]  ;;  %v1416_v7 = vrot.slane %v1414_v36, 4  ;;  %v1419_v8 = vrot.slane %v1417_v49, 5  ;;  %1089 = vst [vmem:[#allocation2 + $0x60] sm:$0xf] %v1088_v0  ;;  %v859_v21 = vor.u32 %v857_v56, %v856_v60 }
  0x63   : > { %1093 = vst [vmem:[#allocation2 + $0x68] sm:$0x1] %v1092_v62  ;;  %v862_v9 = vshrl.u32 %v554_v35, 16  ;;  %v1402_v10 = vsel %vm7280_vm11, %v1397_v63, %v7505_v4  ;;  %v7545_v11 = vld [vmem:[#allocation2 + $0x5c] sm:$0x1]  ;;  %v1423_v50 = vshll.u32 %v7540_v5, 16  ;;  %v7551_v52 = vcombine.low %v7527_v6, %v7540_v5 }
  0x64   : > { %v1427_v12 = vshrl.u32 %v7540_v5, 16  ;;  %v1094_v15 = vld [vmem:[#allocation2 + $0x6c] sm:$0xf]  ;;  %v7553_v16 = vcombine.low %v1402_v10, %v1412_v53  ;;  %v1420_v17 = vor.u32 %v1419_v8, %v1416_v7  ;;  %v1433_v19 = vshll.u32 %v7545_v11, 16  ;;  %v662_v4 = vld [vmem:[#allocation2 + $0x80] sm:$0x1] }
  0x65   : > { %v1425_v23 = vrot.slane %v1423_v50, 5  ;;  %6427 = vmatmul.mubr.bf16.gmra.mxu1 %v7551_v52  ;;  %v864_v26 = vrot.slane %v862_v9, 7  ;;  %v865_v27 = vshll.u32 %v554_v35, 16  ;;  %v1095_v33 = vsel %vm7205_vm8, %v859_v21, %v1094_v15  ;;  %v1098_v39 = vld [vmem:[#allocation2 + $0x74] sm:$0x1] }
  0x66   : > { %8935 = vst [vmem:[#allocation10_spill] sm:$0xff] %v7553_v16  ;;  %v1429_v25 = vrot.slane %v1427_v12, 4  ;;  %6378 = vmatprep.mubr.bf16.mxu0 %v7553_v16  ;;  %v1421_v30 = vrot.slane %v1420_v17, 4  ;;  %v1435_v31 = vrot.slane %v1433_v19, 5  ;;  %v607_v41 = vsel %vm7168_vm2, 0, %v606_v2 }
  0x67   : > { %v867_v37 = vor.u32 %v865_v27, %v864_v26  ;;  %v869_v38 = vrot.slane %v864_v26, 4  ;;  %1096 = vst [vmem:[#allocation2 + $0x6c] sm:$0xf] %v1095_v33  ;;  %608 = vst [vmem:[#allocation2 + $0x78] sm:$0x1] %v607_v41  ;;  %v663_v35 = vsel %vm7176_vm4, 0, %v662_v4 }
  0x68   : > { %v1430_v42 = vor.u32 %v1429_v25, %v1425_v23  ;;  %v1426_v46 = vsel %vm7280_vm11, %v1421_v30, %v1425_v23  ;;  %v7570_v59 = vld [vmem:[#allocation2 + $0x64] sm:$0xf]  ;;  %664 = vst [vmem:[#allocation2 + $0x80] sm:$0x1] %v663_v35  ;;  %v871_v47 = vshrl.u32 %v555_v22, 16  ;;  %v874_v51 = vshll.u32 %v555_v22, 16 }
  0x69   : > { %v879_v55 = vshrl.u32 %v7559_v29, 16  ;;  %v7573_v53 = vld [vmem:[#allocation2 + $0x60] sm:$0xf]  ;;  %v1447_v49 = vshll.u32 %v7570_v59, 16  ;;  %v868_v61 = vsel %vm7192_vm7, %v860_v1, %v867_v37  ;;  %v1099_v63 = vsel %vm7168_vm2, %v869_v38, %v1098_v39  ;;  %v609_v7 = vld [vmem:[#allocation2 + $0x84] sm:$0x1] }
  0x6a   : > { %v1431_v60 = vrot.slane %v1430_v42, 4  ;;  %v7575_v36 = vld [vmem:[#allocation2 + $0x68] sm:$0x1]  ;;  %v1438_v0 = vshrl.u32 %v7573_v53, 16  ;;  %v1441_v62 = vshll.u32 %v7573_v53, 16  ;;  %v1451_v56 = vshrl.u32 %v7570_v59, 16 }
  0x6b   : > { %v1457_v2 = vshll.u32 %v7575_v36, 16  ;;  %1097 = vst [vmem:[#allocation2 + $0x70] sm:$0xf] %v868_v61  ;;  %1100 = vst [vmem:[#allocation2 + $0x74] sm:$0x1] %v1099_v63  ;;  %v1449_v9 = vrot.slane %v1447_v49, 5  ;;  %v7590_v1 = vcombine.low %v7573_v53, %v7570_v59 }
  0x6c   : > { %v1436_v8 = vsel %vm7280_vm11, %v1431_v60, %v1435_v31  ;;  %v873_v10 = vrot.slane %v871_v47, 7  ;;  %v665_v50 = vld [vmem:[#allocation2 + $0x8c] sm:$0x1]  ;;  %v1440_v15 = vrot.slane %v1438_v0, 4  ;;  %v1443_v17 = vrot.slane %v1441_v62, 5 }
  0x6d   : > { %8936 = vst [vmem:[#allocation11_spill] sm:$0xff] %v7590_v1  ;;  %v7592_v12 = vcombine.low %v1426_v46, %v1436_v8  ;;  %v1453_v19 = vrot.slane %v1451_v56, 4  ;;  %v1459_v21 = vrot.slane %v1457_v2, 5  ;;  %6430 = vmatprep.mubr.bf16.mxu1 %v7590_v1  ;;  %v881_v23 = vrot.slane %v879_v55, 7  ;;  %v557_v35 = vld [vmem:[%s7164_s21 + $0x50] sm:$0xf] }
  0x6e   : > { %v876_v22 = vor.u32 %v874_v51, %v873_v10  ;;  %v877_v4 = vrot.slane %v873_v10, 4  ;;  %v1444_v25 = vor.u32 %v1443_v17, %v1440_v15  ;;  %v1215_v27 = vld [vmem:[#allocation2 + $0x6c] sm:$0xf]  ;;  %v882_v30 = vshll.u32 %v7559_v29, 16  ;;  %v1101_v31 = vld [vmem:[#allocation2 + $0x78] sm:$0xf] }
  0x6f   : > { %8937 = vst [vmem:[#allocation12_spill] sm:$0xff] %v7592_v12  ;;  %6379 = vmatmul.mubr.bf16.gmra.mxu0 %v7592_v12  ;;  %v1454_v26 = vor.u32 %v1453_v19, %v1449_v9  ;;  %v610_v33 = vsel %vm7168_vm2, 0, %v609_v7  ;;  %v1462_v39 = vshrl.u32 %v1215_v27, 16  ;;  %v1465_v41 = vshll.u32 %v1215_v27, 16  ;;  %v1105_v38 = vld [vmem:[#allocation2 + $0x80] sm:$0x1] }
  0x70   : > { %v886_v42 = vrot.slane %v881_v23, 4  ;;  %v1102_v37 = vsel %vm7205_vm8, %v876_v22, %v1101_v31  ;;  %611 = vst [vmem:[#allocation2 + $0x84] sm:$0x1] %v610_v33  ;;  %v1445_v46 = vrot.slane %v1444_v25, 4  ;;  %v884_v51 = vor.u32 %v882_v30, %v881_v23  ;;  %v558_v7 = vld [vmem:[%s7164_s21 + $0x54] sm:$0xf] }
  0x71   : > { %v1455_v47 = vrot.slane %v1454_v26, 4  ;;  %1103 = vst [vmem:[#allocation2 + $0x78] sm:$0xf] %v1102_v37  ;;  %v666_v29 = vsel %vm7176_vm4, 0, %v665_v50  ;;  %v1464_v49 = vrot.slane %v1462_v39, 4  ;;  %v1467_v61 = vrot.slane %v1465_v41, 5 }
  0x72   : > { %v1216_v55 = vld [vmem:[#allocation2 + $0x70] sm:$0xf]  ;;  %v1217_v60 = vld [vmem:[#allocation2 + $0x74] sm:$0x1]  ;;  %v1106_v63 = vsel %vm7168_vm2, %v886_v42, %v1105_v38  ;;  %667 = vst [vmem:[#allocation2 + $0x8c] sm:$0x1] %v666_v29  ;;  %v1450_v0 = vsel %vm7280_vm11, %v1445_v46, %v1449_v9  ;;  %v885_v9 = vsel %vm7192_vm7, %v877_v4, %v884_v51 }
  0x73   : > { %v1460_v62 = vsel %vm7280_vm11, %v1455_v47, %v1459_v21  ;;  %v1471_v56 = vshll.u32 %v1216_v55, 16  ;;  %v1475_v2 = vshrl.u32 %v1216_v55, 16  ;;  %1107 = vst [vmem:[#allocation2 + $0x80] sm:$0x1] %v1106_v63  ;;  %v1468_v10 = vor.u32 %v1467_v61, %v1464_v49  ;;  %v7616_v17 = vld [vmem:[%s7164_s21 + $0x58] sm:$0xf] }
  0x74   : > { %v7611_v8 = vcombine.low %v1450_v0, %v1460_v62  ;;  %v1481_v50 = vshll.u32 %v1217_v60, 16  ;;  %v7613_v15 = vcombine.low %v1215_v27, %v1216_v55  ;;  %v612_v19 = vld [vmem:[#allocation2 + $0x90] sm:$0x1]  ;;  %v888_v25 = vshrl.u32 %v557_v35, 16  ;;  %v668_v21 = vld [vmem:[#allocation2 + $0x98] sm:$0x1] }
  0x75   : > { %v1473_v22 = vrot.slane %v1471_v56, 5  ;;  %v1477_v23 = vrot.slane %v1475_v2, 4  ;;  %v1469_v26 = vrot.slane %v1468_v10, 4  ;;  %1104 = vst [vmem:[#allocation2 + $0x7c] sm:$0xf] %v885_v9  ;;  %v891_v31 = vshll.u32 %v557_v35, 16 }
  0x76   : > { %8938 = vst [vmem:[#allocation13_spill] sm:$0xff] %v7611_v8  ;;  %8939 = vst [vmem:[#allocation14_spill] sm:$0xff] %v7613_v15  ;;  %6382 = vmatprep.mubr.bf16.mxu0 %v7611_v8  ;;  %v1483_v30 = vrot.slane %v1481_v50, 5  ;;  %6431 = vmatmul.mubr.bf16.gmra.mxu1 %v7613_v15  ;;  %v896_v27 = vshrl.u32 %v558_v7, 16  ;;  %v890_v39 = vrot.slane %v888_v25, 7  ;;  %v899_v41 = vshll.u32 %v558_v7, 16 }
  0x77   : > { %v1478_v33 = vor.u32 %v1477_v23, %v1473_v22  ;;  %v1108_v42 = vld [vmem:[#allocation2 + $0x84] sm:$0xf]  ;;  %v613_v37 = vsel %vm7168_vm2, 0, %v612_v19  ;;  %v1474_v4 = vsel %vm7280_vm11, %v1469_v26, %v1473_v22  ;;  %v669_v47 = vsel %vm7176_vm4, 0, %v668_v21  ;;  %v560_v61 = vld [vmem:[%s7164_s21 + $0x5c] sm:$0xf] }
  0x78   : > { %v7626_v38 = vld [vmem:[#allocation2 + $0x78] sm:$0xf]  ;;  %v898_v46 = vrot.slane %v896_v27, 7  ;;  %614 = vst [vmem:[#allocation2 + $0x90] sm:$0x1] %v613_v37  ;;  %v905_v35 = vshrl.u32 %v7616_v17, 16  ;;  %v893_v60 = vor.u32 %v891_v31, %v890_v39 }
  0x79   : > { %v1479_v51 = vrot.slane %v1478_v33, 4  ;;  %v1486_v29 = vshrl.u32 %v7626_v38, 16  ;;  %v1489_v55 = vshll.u32 %v7626_v38, 16  ;;  %v1112_v49 = vld [vmem:[#allocation2 + $0x8c] sm:$0x1]  ;;  %v894_v0 = vrot.slane %v890_v39, 4 }
  0x7a   : > { %670 = vst [vmem:[#allocation2 + $0x98] sm:$0x1] %v669_v47  ;;  %v7634_v63 = vld [vmem:[#allocation2 + $0x80] sm:$0x1]  ;;  %v901_v62 = vor.u32 %v899_v41, %v898_v46  ;;  %v903_v56 = vrot.slane %v898_v46, 4  ;;  %v907_v2 = vrot.slane %v905_v35, 7  ;;  %v1109_v25 = vsel %vm7205_vm8, %v893_v60, %v1108_v42 }
  0x7b   : > { %v1484_v7 = vsel %vm7280_vm11, %v1479_v51, %v1483_v30  ;;  %v1488_v10 = vrot.slane %v1486_v29, 4  ;;  %v1491_v50 = vrot.slane %v1489_v55, 5  ;;  %v1505_v19 = vshll.u32 %v7634_v63, 16  ;;  %v615_v22 = vld [vmem:[#allocation2 + $0x9c] sm:$0x1] }
  0x7c   : > { %v7639_v23 = vcombine.low %v1474_v4, %v1484_v7  ;;  %v902_v9 = vsel %vm7192_vm7, %v894_v0, %v901_v62  ;;  %v1113_v21 = vsel %vm7168_vm2, %v903_v56, %v1112_v49  ;;  %v7648_v26 = vld [vmem:[%s7164_s21 + $0x60] sm:$0xf]  ;;  %v7651_v31 = vld [vmem:[%s7164_s21 + $0x64] sm:$0xf]  ;;  %v7653_v27 = vld [vmem:[#allocation2 + $0x7c] sm:$0xf] }
  0x7d   : > { %v671_v30 = vld [vmem:[#allocation2 + $0xa4] sm:$0x1]  ;;  %v1492_v33 = vor.u32 %v1491_v50, %v1488_v10  ;;  %v1507_v39 = vrot.slane %v1505_v19, 5  ;;  %1110 = vst [vmem:[#allocation2 + $0x84] sm:$0xf] %v1109_v25  ;;  %v908_v41 = vshll.u32 %v7616_v17, 16  ;;  %v7661_v46 = vcombine.low %v7626_v38, %v7653_v27 }
  0x7e   : > { %8940 = vst [vmem:[#allocation15_spill] sm:$0xff] %v7639_v23  ;;  %1111 = vst [vmem:[#allocation2 + $0x88] sm:$0xf] %v902_v9  ;;  %v911_v37 = vrot.slane %v907_v2, 4  ;;  %6383 = vmatmul.mubr.bf16.gmra.mxu0 %v7639_v23  ;;  %v1495_v42 = vshll.u32 %v7653_v27, 16  ;;  %v1499_v4 = vshrl.u32 %v7653_v27, 16 }
  0x7f   : > { %1114 = vst [vmem:[#allocation2 + $0x8c] sm:$0x1] %v1113_v21  ;;  %8941 = vst [vmem:[#allocation16_spill] sm:$0xff] %v7661_v46  ;;  %v913_v47 = vshrl.u32 %v560_v61, 16  ;;  %v618_v35 = vld [vmem:[#allocation2 + $0xa8] sm:$0x1]  ;;  %v910_v29 = vor.u32 %v908_v41, %v907_v2  ;;  %6434 = vmatprep.mubr.bf16.mxu1 %v7661_v46 }
  0x80   : > { %v1493_v51 = vrot.slane %v1492_v33, 4  ;;  %v916_v55 = vshll.u32 %v560_v61, 16  ;;  %v1115_v60 = vld [vmem:[#allocation2 + $0x90] sm:$0xf]  ;;  %v616_v17 = vsel %vm7168_vm2, 0, %v615_v22  ;;  %v1497_v0 = vrot.slane %v1495_v42, 5 }
  0x81   : > { %v674_v49 = vld [vmem:[#allocation2 + $0xb0] sm:$0x1]  ;;  %v1501_v62 = vrot.slane %v1499_v4, 4  ;;  %v915_v56 = vrot.slane %v913_v47, 7  ;;  %v1119_v7 = vld [vmem:[#allocation2 + $0x98] sm:$0x1]  ;;  %v1116_v50 = vsel %vm7205_vm8, %v910_v29, %v1115_v60 }
  0x82   : > { %617 = vst [vmem:[#allocation2 + $0x9c] sm:$0x1] %v616_v17  ;;  %v672_v10 = vsel %vm7176_vm4, 0, %v671_v30  ;;  %v922_v61 = vshrl.u32 %v7648_v26, 16  ;;  %v925_v2 = vshll.u32 %v7648_v26, 16  ;;  %v930_v19 = vshrl.u32 %v7651_v31, 16 }
  0x83   : > { %673 = vst [vmem:[#allocation2 + $0xa4] sm:$0x1] %v672_v10  ;;  %v1498_v22 = vsel %vm7280_vm11, %v1493_v51, %v1497_v0  ;;  %v1502_v9 = vor.u32 %v1501_v62, %v1497_v0  ;;  %v918_v25 = vor.u32 %v916_v55, %v915_v56  ;;  %v920_v21 = vrot.slane %v915_v56, 4  ;;  %1117 = vst [vmem:[#allocation2 + $0x90] sm:$0xf] %v1116_v50 }
  0x84   : > { %v924_v33 = vrot.slane %v922_v61, 7  ;;  %v932_v30 = vrot.slane %v930_v19, 7  ;;  %v933_v41 = vshll.u32 %v7651_v31, 16  ;;  %v619_v42 = vsel %vm7168_vm2, 0, %v618_v35  ;;  %v7678_v47 = vld [vmem:[#allocation2 + $0x84] sm:$0xf] }
  0x85   : > { %v1503_v4 = vrot.slane %v1502_v9, 4  ;;  %v7680_v26 = vld [vmem:[#allocation2 + $0x88] sm:$0xf]  ;;  %v919_v29 = vsel %vm7192_vm7, %v911_v37, %v918_v25  ;;  %v1120_v51 = vsel %vm7168_vm2, %v920_v21, %v1119_v7  ;;  %620 = vst [vmem:[#allocation2 + $0xa8] sm:$0x1] %v619_v42  ;;  %v675_v60 = vsel %vm7176_vm4, 0, %v674_v49 }
  0x86   : > { %v563_v55 = vld [vmem:[%s7164_s21 + $0x68] sm:$0xf]  ;;  %v7689_v31 = vld [vmem:[#allocation2 + $0x8c] sm:$0x1]  ;;  %v1510_v35 = vshrl.u32 %v7678_v47, 16  ;;  %v1513_v17 = vshll.u32 %v7678_v47, 16  ;;  %v7700_v49 = vcombine.low %v7678_v47, %v7680_v26  ;;  %v927_v7 = vor.u32 %v925_v2, %v924_v33 }
  0x87   : > { %v1519_v0 = vshll.u32 %v7680_v26, 16  ;;  %v1523_v62 = vshrl.u32 %v7680_v26, 16  ;;  %1118 = vst [vmem:[#allocation2 + $0x94] sm:$0xf] %v919_v29  ;;  %1121 = vst [vmem:[#allocation2 + $0x98] sm:$0x1] %v1120_v51  ;;  %v1508_v37 = vsel %vm7280_vm11, %v1503_v4, %v1507_v39  ;;  %v935_v29 = vor.u32 %v933_v41, %v932_v30 }
  0x88   : > { %676 = vst [vmem:[#allocation2 + $0xb0] sm:$0x1] %v675_v60  ;;  %v1529_v56 = vshll.u32 %v7689_v31, 16  ;;  %8942 = vst [vmem:[#allocation17_spill] sm:$0xff] %v7700_v49  ;;  %v7702_v10 = vcombine.low %v1498_v22, %v1508_v37  ;;  %v1512_v50 = vrot.slane %v1510_v35, 4  ;;  %v1515_v61 = vrot.slane %v1513_v17, 5  ;;  %6435 = vmatmul.mubr.bf16.gmra.mxu1 %v7700_v49 }
  0x89   : > { %v1521_v19 = vrot.slane %v1519_v0, 5  ;;  %v1122_v9 = vld [vmem:[#allocation2 + $0x9c] sm:$0xf]  ;;  %v1525_v25 = vrot.slane %v1523_v62, 4  ;;  %v928_v42 = vrot.slane %v924_v33, 4  ;;  %v937_v2 = vrot.slane %v932_v30, 4 }
  0x8a   : > { %8943 = vst [vmem:[#allocation18_spill] sm:$0xff] %v7702_v10  ;;  %v1531_v21 = vrot.slane %v1529_v56, 5  ;;  %v1126_v39 = vld [vmem:[#allocation2 + $0xa4] sm:$0x1]  ;;  %6386 = vmatprep.mubr.bf16.mxu0 %v7702_v10  ;;  %v1516_v4 = vor.u32 %v1515_v61, %v1512_v50  ;;  %v7706_v51 = vld [vmem:[#allocation2 + $0x90] sm:$0xf]  ;;  %v1123_v22 = vsel %vm7205_vm8, %v927_v7, %v1122_v9 }
  0x8b   : > { %v939_v60 = vshrl.u32 %v563_v55, 16  ;;  %v1526_v35 = vor.u32 %v1525_v25, %v1521_v19  ;;  %v1534_v17 = vshrl.u32 %v7706_v51, 16  ;;  %v1537_v0 = vshll.u32 %v7706_v51, 16  ;;  %1124 = vst [vmem:[#allocation2 + $0x9c] sm:$0xf] %v1123_v22 }
  0x8c   : > { %v936_v33 = vsel %vm7192_vm7, %v928_v42, %v935_v29  ;;  %v1517_v41 = vrot.slane %v1516_v4, 4  ;;  %v1127_v62 = vsel %vm7168_vm2, %v937_v2, %v1126_v39  ;;  %v564_v37 = vld [vmem:[%s7164_s21 + $0x6c] sm:$0xf]  ;;  %v942_v56 = vshll.u32 %v563_v55, 16  ;;  %v621_v25 = vld [vmem:[#allocation2 + $0xb4] sm:$0x1] }
  0x8d   : > { %1125 = vst [vmem:[#allocation2 + $0xa0] sm:$0xf] %v936_v33  ;;  %v7717_v30 = vrot.slane %v939_v60, 7  ;;  %v1527_v7 = vrot.slane %v1526_v35, 4  ;;  %v1536_v9 = vrot.slane %v1534_v17, 4  ;;  %v1539_v29 = vrot.slane %v1537_v0, 5 }
  0x8e   : > { %v7719_v50 = vld [vmem:[#allocation2 + $0x94] sm:$0xf]  ;;  %v7721_v61 = vld [vmem:[#allocation2 + $0x98] sm:$0x1]  ;;  %1128 = vst [vmem:[#allocation2 + $0xa4] sm:$0x1] %v1127_v62  ;;  %v1522_v42 = vsel %vm7280_vm11, %v1517_v41, %v1521_v19 }
  0x8f   : > { %v1543_v4 = vshll.u32 %v7719_v50, 16  ;;  %v1547_v39 = vshrl.u32 %v7719_v50, 16  ;;  %v1129_v2 = vld [vmem:[#allocation2 + $0xa8] sm:$0xf]  ;;  %v677_v22 = vld [vmem:[#allocation2 + $0xbc] sm:$0x1]  ;;  %v1532_v55 = vsel %vm7280_vm11, %v1527_v7, %v1531_v21  ;;  %v7732_v35 = vcombine.low %v7706_v51, %v7719_v50 }
  0x90   : > { %v1553_v60 = vshll.u32 %v7721_v61, 16  ;;  %v944_v17 = vor.u32 %v942_v56, %v7717_v30  ;;  %v7735_v33 = vcombine.low %v1522_v42, %v1532_v55  ;;  %v1540_v19 = vor.u32 %v1539_v29, %v1536_v9  ;;  %v6976_v49 = vld [vmem:[#allocation2 + $0xc] sm:$0xf]  ;;  %v6982_v32 = vld [vmem:[#allocation2 + $0x40] sm:$0xf] }
  0x91   : > { %8944 = vst [vmem:[#allocation19_spill] sm:$0xff] %v7732_v35  ;;  %v1545_v0 = vrot.slane %v1543_v4, 5  ;;  %v1549_v41 = vrot.slane %v1547_v39, 4  ;;  %6438 = vmatprep.mubr.bf16.mxu1 %v7732_v35  ;;  %v945_v57 = vrot.slane %v7717_v30, 4  ;;  %v947_v21 = vshrl.u32 %v564_v37, 16 }
  0x92   : > { %8945 = vst [vmem:[#allocation20_spill] sm:$0xff] %v7735_v33  ;;  %v1555_v62 = vrot.slane %v1553_v60, 5  ;;  %v950_v7 = vshll.u32 %v564_v37, 16  ;;  %6387 = vmatmul.mubr.bf16.gmra.mxu0 %v7735_v33  ;;  %v1541_v10 = vrot.slane %v1540_v19, 4  ;;  %v7740_v8 = vld [vmem:[#allocation2 + $0x9c] sm:$0xf]  ;;  %v1130_v56 = vsel %vm7205_vm8, %v944_v17, %v1129_v2 }
  0x93   : > { %v1550_v23 = vor.u32 %v1549_v41, %v1545_v0  ;;  %v622_v9 = vsel %vm7168_vm2, 0, %v621_v25  ;;  %v1558_v29 = vshrl.u32 %v7740_v8, 16  ;;  %v1561_v30 = vshll.u32 %v7740_v8, 16  ;;  %1131 = vst [vmem:[#allocation2 + $0xa8] sm:$0xf] %v1130_v56 }
  0x94   : > { %v7746_v42 = vld [vmem:[#allocation2 + $0xa0] sm:$0xf]  ;;  %v949_v37 = vrot.slane %v947_v21, 7  ;;  %v565_v4 = vld [vmem:[%s7164_s21 + $0x70] sm:$0xf]  ;;  %v678_v39 = vsel %vm7176_vm4, 0, %v677_v22  ;;  %v1546_v2 = vsel %vm7280_vm11, %v1541_v10, %v1545_v0 }
  0x95   : > { %623 = vst [vmem:[#allocation2 + $0xb4] sm:$0x1] %v622_v9  ;;  %v1551_v55 = vrot.slane %v1550_v23, 4  ;;  %v7755_v60 = vld [vmem:[#allocation2 + $0xa4] sm:$0x1]  ;;  %v1567_v25 = vshll.u32 %v7746_v42, 16  ;;  %v7763_v22 = vcombine.low %v7740_v8, %v7746_v42 }
  0x96   : > { %v1571_v17 = vshrl.u32 %v7746_v42, 16  ;;  %v1133_v19 = vld [vmem:[#allocation2 + $0xb0] sm:$0x1]  ;;  %v566_v41 = vld [vmem:[%s7164_s21 + $0x74] sm:$0xf]  ;;  %v1560_v21 = vrot.slane %v1558_v29, 4  ;;  %v952_v33 = vor.u32 %v950_v7, %v949_v37 }
  0x97   : > { %679 = vst [vmem:[#allocation2 + $0xbc] sm:$0x1] %v678_v39  ;;  %v1563_v56 = vrot.slane %v1561_v30, 5  ;;  %v1577_v9 = vshll.u32 %v7755_v60, 16  ;;  %8946 = vst [vmem:[#allocation21_spill] sm:$0xff] %v7763_v22  ;;  %v1556_v23 = vsel %vm7280_vm11, %v1551_v55, %v1555_v62  ;;  %v1569_v10 = vrot.slane %v1567_v25, 5  ;;  %6439 = vmatmul.mubr.bf16.gmra.mxu1 %v7763_v22 }
  0x98   : > { %v1573_v0 = vrot.slane %v1571_v17, 4  ;;  %v7767_v12 = vcombine.low %v1546_v2, %v1556_v23  ;;  %v954_v29 = vrot.slane %v949_v37, 4  ;;  %v953_v39 = vsel %vm7192_vm7, %v945_v57, %v952_v33 }
  0x99   : > { %v1564_v16 = vor.u32 %v1563_v56, %v1560_v21  ;;  %v1579_v3 = vrot.slane %v1577_v9, 5  ;;  %v956_v48 = vshrl.u32 %v565_v4, 16  ;;  %v959_v34 = vshll.u32 %v565_v4, 16  ;;  %1132 = vst [vmem:[#allocation2 + $0xac] sm:$0xf] %v953_v39 }
  0x9a   : > { %8947 = vst [vmem:[#allocation22_spill] sm:$0xff] %v7767_v12  ;;  %v1574_v30 = vor.u32 %v1573_v0, %v1569_v10  ;;  %6390 = vmatprep.mubr.bf16.mxu0 %v7767_v12  ;;  %v1134_v62 = vsel %vm7168_vm2, %v954_v29, %v1133_v19  ;;  %v964_v7 = vshrl.u32 %v566_v41, 16  ;;  %v967_v2 = vshll.u32 %v566_v41, 16  ;;  %v7775_v25 = vld [vmem:[#allocation2 + $0xa8] sm:$0xf] }
  0x9b   : > { %v1565_v40 = vrot.slane %v1564_v16, 4  ;;  %1135 = vst [vmem:[#allocation2 + $0xb0] sm:$0x1] %v1134_v62  ;;  %v958_v37 = vrot.slane %v956_v48, 7  ;;  %v1582_v33 = vshrl.u32 %v7775_v25, 16  ;;  %v1585_v4 = vshll.u32 %v7775_v25, 16 }
  0x9c   : > { %v1575_v55 = vrot.slane %v1574_v30, 4  ;;  %v1136_v17 = vld [vmem:[#allocation2 + $0xb4] sm:$0xf]  ;;  %v966_v16 = vrot.slane %v964_v7, 7  ;;  %v5488_v46 = vrot.slane %v6976_v49, 9  ;;  %vm5082_vm15 = vcmask 1041408  }
  0x9d   : > { %v1570_v57 = vsel %vm7280_vm11, %v1565_v40, %v1569_v10  ;;  %v961_v56 = vor.u32 %v959_v34, %v958_v37  ;;  %v962_v41 = vrot.slane %v958_v37, 4  ;;  %v1584_v23 = vrot.slane %v1582_v33, 4  ;;  %v6970_v33 = vld [vmem:[#allocation2 + $0x4] sm:$0xf] }
  0x9e   : > { %v1140_v21 = vld [vmem:[#allocation2 + $0xbc] sm:$0x1]  ;;  %v1580_v19 = vsel %vm7280_vm11, %v1575_v55, %v1579_v3  ;;  %v1587_v0 = vrot.slane %v1585_v4, 5  ;;  %v969_v48 = vor.u32 %v967_v2, %v966_v16  ;;  %v971_v29 = vrot.slane %v966_v16, 4  ;;  %v6969_v55 = vld [vmem:[#allocation2 + $0x8] sm:$0x1] }
  0x9f   : > { %v7783_v9 = vcombine.low %v1570_v57, %v1580_v19  ;;  %v1137_v40 = vsel %vm7205_vm8, %v961_v56, %v1136_v17  ;;  %v1739_v37 = vrot.slane %v6969_v55, 5  ;;  %v1736_v4 = vrot.slane %v6970_v33, 5  ;;  %v7803_v16 = vld [vmem:[#allocation2 + $0x14] sm:$0x1]  ;;  %v6974_v55 = vld [vmem:[#allocation2 + $0x1c] sm:$0xf] }
  0xa0   : > { %v1588_v10 = vor.u32 %v1587_v0, %v1584_v23  ;;  %v970_v30 = vsel %vm7192_vm7, %v962_v41, %v969_v48  ;;  %1138 = vst [vmem:[#allocation2 + $0xb4] sm:$0xf] %v1137_v40  ;;  %v7790_v39 = vld [vmem:[#allocation2 + $0xac] sm:$0xf]  ;;  %v1141_v34 = vsel %vm7168_vm2, %v971_v29, %v1140_v21  ;;  %v6972_v23 = vld [vmem:[#allocation2] sm:$0xf] }
  0xa1   : > { %8948 = vst [vmem:[#allocation23_spill] sm:$0xff] %v7783_v9  ;;  %6391 = vmatmul.mubr.bf16.gmra.mxu0 %v7783_v9  ;;  %1139 = vst [vmem:[#allocation2 + $0xb8] sm:$0xf] %v970_v30  ;;  %v1591_v62 = vshll.u32 %v7790_v39, 16  ;;  %v1595_v7 = vshrl.u32 %v7790_v39, 16  ;;  %v7800_v2 = vcombine.low %v7775_v25, %v7790_v39  ;;  %v5487_v0 = vrot.slane %v6972_v23, 9 }
  0xa2   : > { %v7794_v3 = vld [vmem:[#allocation2 + $0xb0] sm:$0x1]  ;;  %1142 = vst [vmem:[#allocation2 + $0xbc] sm:$0x1] %v1141_v34  ;;  %v1589_v17 = vrot.slane %v1588_v10, 4  ;;  %v1738_v34 = vrot.slane %v1736_v4, 4 }
  0xa3   : > { %8949 = vst [vmem:[#allocation24_spill] sm:$0xff] %v7800_v2  ;;  %v1601_v57 = vshll.u32 %v7794_v3, 16  ;;  %v1593_v19 = vrot.slane %v1591_v62, 5  ;;  %v1597_v56 = vrot.slane %v1595_v7, 4  ;;  %6442 = vmatprep.mubr.bf16.mxu1 %v7800_v2  ;;  %v6973_v48 = vld [vmem:[#allocation2 + $0x10] sm:$0xf]  ;;  %v1737_v43 = vsel %vm7825_vm14, %v5487_v0, %v1736_v4 }
  0xa4   : > { %v1743_v29 = vrot.slane %v6973_v48, 5  ;;  %v1750_v33 = vrot.slane %v6974_v55, 5  ;;  %v6975_v9 = vld [vmem:[#allocation2 + $0x28] sm:$0xf]  ;;  %v8951_v48 = vmov 0 }
  0xa5   : > { %v1603_v41 = vrot.slane %v1601_v57, 5  ;;  %v1598_v40 = vor.u32 %v1597_v56, %v1593_v19  ;;  %v1594_v10 = vsel %vm7280_vm11, %v1589_v17, %v1593_v19  ;;  %v1757_v23 = vrot.slane %v6975_v9, 5  ;;  %v6980_v0 = vld [vmem:[#allocation2 + $0x2c] sm:$0x1] }
  0xa6   : > { %v8952_v48 = vsel %vm7825_vm14, 4294967295, %v8951_v48  ;;  %v1745_v1 = vrot.slane %v1743_v29, 4 }
  0xa7   : > { %v7809_v30 = vld [vmem:[#allocation2 + $0xb4] sm:$0xf]  ;;  %v1599_v62 = vrot.slane %v1598_v40, 4  ;;  %8953 = vst [vmem:[#allocation26_spill] sm:$0xff] %v8952_v48 }
  0xa8   : > { %v7811_v7 = vld [vmem:[#allocation2 + $0xb8] sm:$0xf]  ;;  %v1606_v21 = vshrl.u32 %v7809_v30, 16  ;;  %v1609_v57 = vshll.u32 %v7809_v30, 16 }
  0xa9   : > { %v7815_v12 = vld [vmem:[#allocation2 + $0xbc] sm:$0x1]  ;;  %v1615_v56 = vshll.u32 %v7811_v7, 16  ;;  %v1619_v17 = vshrl.u32 %v7811_v7, 16  ;;  %v7821_v19 = vcombine.low %v7809_v30, %v7811_v7  ;;  %v1604_v40 = vsel %vm7280_vm11, %v1599_v62, %v1603_v41  ;;  %v6977_v41 = vld [vmem:[#allocation2 + $0x18] sm:$0xf] }
  0xaa   : > { %v1608_v9 = vrot.slane %v1606_v21, 4  ;;  %v1611_v55 = vrot.slane %v1609_v57, 5  ;;  %v1625_v54 = vshll.u32 %v7815_v12, 16  ;;  %v7832_v2 = vcombine.low %v1594_v10, %v1604_v40  ;;  %v6978_v40 = vld [vmem:[#allocation2 + $0x20] sm:$0x1] }
  0xab   : > { %8950 = vst [vmem:[#allocation25_spill] sm:$0xff] %v7821_v19  ;;  %v1617_v22 = vrot.slane %v1615_v56, 5  ;;  %v1621_v35 = vrot.slane %v1619_v17, 4  ;;  %6443 = vmatmul.mubr.bf16.gmra.mxu1 %v7821_v19  ;;  %v5489_v21 = vrot.slane %v6977_v41, 9  ;;  %v1740_v57 = vsel %vm7825_vm14, %v1738_v34, %v1739_v37 }
  0xac   : > { %8954 = vst [vmem:[#allocation27_spill] sm:$0xff] %v7832_v2  ;;  %v1612_v15 = vor.u32 %v1611_v55, %v1608_v9  ;;  %6510 = vmatprep.mubr.bf16.mxu1 %v7287_v13  ;;  %6394 = vmatprep.mubr.bf16.mxu0 %v7832_v2  ;;  %v1627_v10 = vrot.slane %v1625_v54, 5  ;;  %v1752_v56 = vrot.slane %v1750_v33, 4  ;;  %v1753_v49 = vrot.slane %v6978_v40, 5  ;;  %v6979_v9 = vld [vmem:[#allocation2 + $0x24] sm:$0xf] }
  0xad   : > { %v1622_v62 = vor.u32 %v1621_v35, %v1617_v22  ;;  %v5490_v55 = vrot.slane %v6979_v9, 9  ;;  %v1759_v19 = vrot.slane %v1757_v23, 4  ;;  %v1760_v13 = vrot.slane %v6980_v0, 5  ;;  %v6981_v54 = vld [vmem:[#allocation2 + $0x34] sm:$0xf] }
  0xae   : > { %v1613_v17 = vrot.slane %v1612_v15, 4  ;;  %v1744_v35 = vsel %vm7825_vm14, %v5488_v46, %v1743_v29  ;;  %v1764_v2 = vrot.slane %v6981_v54, 5  ;;  %v1771_v37 = vrot.slane %v6982_v32, 5  ;;  %v6906_v46 = vld [vmem:[%s8852_s3 + $0x170] sm:$0xff]  }
  0xaf   : > { %v1623_v4 = vrot.slane %v1622_v62, 4  ;;  %v5585_v34 = vcombine.low %v1737_v43, %v1740_v57  ;;  %v8955_v40 = vrot.slane %v7803_v16, 5  ;;  %v1751_v9 = vsel %vm7825_vm14, %v5489_v21, %v1750_v33  ;;  %v6983_v29 = vld [vmem:[#allocation2 + $0x30] sm:$0xf]  ;;  %v7860_v43 = vld [vmem:[#allocation2 + $0x4c] sm:$0xf] }
  0xb0   : > { %v1618_v41 = vsel %vm7280_vm11, %v1613_v17, %v1617_v22  ;;  %v1754_v32 = vsel %vm7825_vm14, %v1752_v56, %v1753_v49  ;;  %v1778_v16 = vrot.slane %v7860_v43, 5  ;;  %v1761_v33 = vsel %vm7825_vm14, %v1759_v19, %v1760_v13  ;;  %v6985_v21 = vld [vmem:[#allocation2 + $0x38] sm:$0x1]  ;;  %v6986_v17 = vld [vmem:[#allocation2 + $0x3c] sm:$0xf]  ;;  %v6908_v56 = vld [vmem:[%s8852_s3 + $0x168] sm:$0xff]  }
  0xb1   : > { %v1628_v15 = vsel %vm7280_vm11, %v1623_v4, %v1627_v10  ;;  %v1747_v62 = vsel %vm7825_vm14, %v1745_v1, %v8955_v40  ;;  %v5491_v10 = vrot.slane %v6983_v29, 9  ;;  %v1758_v1 = vsel %vm7825_vm14, %v5490_v55, %v1757_v23  ;;  %v6987_v49 = vld [vmem:[%s8852_s3 + $0x178] sm:$0xff]   ;;  %v7877_v55 = vld [vmem:[#allocation2 + $0x44] sm:$0x1]  ;;  %v7880_v13 = vld [vmem:[#allocation2 + $0x48] sm:$0xf] }
  0xb2   : > { %v7856_v22 = vcombine.low %v1618_v41, %v1628_v15  ;;  %v1767_v57 = vrot.slane %v6985_v21, 5  ;;  %v5492_v4 = vrot.slane %v6986_v17, 9  ;;  %v1766_v0 = vrot.slane %v1764_v2, 4  ;;  %v7886_v15 = vld [vmem:[#allocation2 + $0x50] sm:$0x1] }
  0xb3   : > { %6511 = vmatmul.mubr.bf16.vlgmr.msra.gmra.mxu1 %v7303_v45  ;;  %v7875_v23 = vrot.slane %v1771_v37, 4  ;;  %v1774_v19 = vrot.slane %v7877_v55, 5  ;;  %v7883_v54 = vcombine.low %v1744_v35, %v1747_v62  ;;  %v5494_v29 = vrot.slane %v7527_v6, 9 }
  0xb4   : > { %6395 = vmatmul.mubr.bf16.gmra.mxu0 %v7856_v22  ;;  %6591 = vmatpush3.bf16.msra.mxu1 %v6987_v49  ;;  %v7890_v21 = vcombine.low %v1751_v9, %v1754_v32  ;;  %v7892_v17 = vcombine.low %v1758_v1, %v1761_v33  ;;  %v7896_v49 = vrot.slane %v1778_v16, 4  ;;  %v1785_v35 = vrot.slane %v7540_v5, 5 }
  0xb5   : > { %6462 = vmatprep.mubr.bf16.mxu0 %v5585_v34  ;;  %6514 = vmatprep.mubr.bf16.mxu1 %v7372_v44  ;;  %v5497_v41 = vrot.slane %v7626_v38, 9  ;;  %v1806_v40 = vrot.slane %v7653_v27, 5  ;;  %v1765_v9 = vsel %vm7825_vm14, %v5491_v10, %v1764_v2  ;;  %v1768_v32 = vsel %vm7825_vm14, %v1766_v0, %v1767_v57  ;;  %v6905_v2 = vld [vmem:[%s8852_s3 + $0x130] sm:$0xff]  }
  0xb6   : > { %6592 = vmatprep.subr.bf16.mxu1 %v6906_v46  ;;  %v1792_v1 = vrot.slane %v7570_v59, 5  ;;  %v7911_v34 = vsel %vm7825_vm14, %v5492_v4, %v1771_v37  ;;  %v7921_v10 = vrot.slane %v1785_v35, 4  ;;  %v6910_v37 = vld [vmem:[%s8852_s3 + $0x160] sm:$0xff]   ;;  %v5498_v57 = vrot.slane %v7678_v47, 9  ;;  %v8082_v59 = vld [vmem:[%s8852_s3 + $0x1f8] sm:$0xff]  }
  0xb7   : > { %v1807_v38 = vsel %vm7825_vm14, %v5497_v41, %v1806_v40  ;;  %v1808_v27 = vrot.slane %v1806_v40, 4  ;;  %v1813_v4 = vrot.slane %v7680_v26, 5  ;;  %v1816_v0 = vrot.slane %v7689_v31, 5 }
  0xb8   : > { %6593 = vmatpush3.bf16.msra.mxu1 %v6906_v46  ;;  %v1809_v46 = vrot.slane %v7634_v63, 5  ;;  %v7930_v63 = vcombine.low %v1765_v9, %v1768_v32  ;;  %v5499_v40 = vrot.slane %v7706_v51, 9  ;;  %v1820_v33 = vrot.slane %v7719_v50, 5  ;;  %v6991_v32 = vld [vmem:[%s8852_s3 + $0x138] sm:$0xff]  }
  0xb9   : > { %6594 = vmatprep.subr.bf16.mxu1 %v6908_v56  ;;  %v1814_v26 = vsel %vm7825_vm14, %v5498_v57, %v1813_v4  ;;  %v1815_v31 = vrot.slane %v1813_v4, 4  ;;  %v1823_v9 = vrot.slane %v7721_v61, 5  ;;  %v624_v57 = vld [vmem:[#allocation2 + $0xc0] sm:$0x1]  ;;  %v6907_v61 = vld [vmem:[%s8852_s3 + $0x128] sm:$0xff]   ;;  %v8961_v55 = vrot.slane %v7886_v15, 5 }
  0xba   : > { %v1810_v41 = vsel %vm7825_vm14, %v1808_v27, %v1809_v46  ;;  %v1821_v51 = vsel %vm7825_vm14, %v5499_v40, %v1820_v33  ;;  %v1822_v50 = vrot.slane %v1820_v33, 4  ;;  %v1827_v27 = vrot.slane %v7746_v42, 5  ;;  %v7952_v46 = vld [vmem:[%s7164_s21 + $0x78] sm:$0xf]  ;;  %v6913_v15 = vld [vmem:[%s8852_s3 + $0x110] sm:$0xff]  }
  0xbb   : > { %6515 = vmatmul.mubr.bf16.gmra.mxu1 %v7450_v28  ;;  %v7938_v47 = vcombine.low %v1807_v38, %v1810_v41  ;;  %v5500_v38 = vrot.slane %v7740_v8, 9  ;;  %v1817_v4 = vsel %vm7825_vm14, %v1815_v31, %v1816_v0  ;;  %v1830_v41 = vrot.slane %v7755_v60, 5  ;;  %v6912_v42 = vld [vmem:[%s8852_s3 + $0x158] sm:$0xff]   ;;  %v680_v60 = vld [vmem:[#allocation2 + $0xc8] sm:$0x1] }
  0xbc   : > { %6463 = vmatmul.mubr.bf16.vlgmr.msra.gmra.mxu0 %v7883_v54  ;;  %6518 = vmatprep.mubr.bf16.mxu1 %v7462_v20  ;;  %v5501_v33 = vrot.slane %v7775_v25, 9  ;;  %v1834_v8 = vrot.slane %v7790_v39, 5  ;;  %v7965_v40 = vcombine.low %v1814_v26, %v1817_v4  ;;  %v1829_v0 = vrot.slane %v1827_v27, 4  ;;  %v568_v31 = vld [vmem:[%s7164_s21 + $0x7c] sm:$0xf]  ;;  %v6909_v25 = vld [vmem:[%s8852_s3 + $0x120] sm:$0xff]  }
  0xbd   : > { %8956 = vst [vmem:[#allocation28_spill] sm:$0xff] %v7938_v47  ;;  %6543 = vmatpush3.bf16.msra.mxu0 %v6991_v32  ;;  %6466 = vmatprep.mubr.bf16.mxu0 %v7890_v21  ;;  %v1824_v32 = vsel %vm7825_vm14, %v1822_v50, %v1823_v9  ;;  %v1837_v4 = vrot.slane %v7794_v3, 5  ;;  %v6914_v9 = vld [vmem:[%s8852_s3 + $0x150] sm:$0xff]   ;;  %v8969_v5 = vrot.slane %v7575_v36, 5 }
  0xbe   : > { %6544 = vmatprep.subr.bf16.mxu0 %v6905_v2  ;;  %6595 = vmatpush3.bf16.msra.mxu1 %v6908_v56  ;;  %8957 = vst [vmem:[#allocation29_spill] sm:$0xff] %v7965_v40  ;;  %v1828_v56 = vsel %vm7825_vm14, %v5500_v38, %v1827_v27  ;;  %v7975_v39 = vcombine.low %v1821_v51, %v1824_v32  ;;  %v1836_v26 = vrot.slane %v1834_v8, 4  ;;  %v5502_v38 = vrot.slane %v7809_v30, 9 }
  0xbf   : > { %6596 = vmatprep.subr.bf16.mxu1 %v6910_v37  ;;  %v1835_v62 = vsel %vm7825_vm14, %v5501_v33, %v1834_v8  ;;  %v1831_v50 = vsel %vm7825_vm14, %v1829_v0, %v1830_v41  ;;  %v1841_v27 = vrot.slane %v7811_v7, 5  ;;  %v1844_v51 = vrot.slane %v7815_v12, 5 }
  0xc0   : > { %8958 = vst [vmem:[#allocation30_spill] sm:$0xff] %v7975_v39  ;;  %v7988_v33 = vcombine.low %v1828_v56, %v1831_v50  ;;  %v1838_v3 = vsel %vm7825_vm14, %v1836_v26, %v1837_v4  ;;  %v973_v8 = vshrl.u32 %v7952_v46, 16  ;;  %v981_v32 = vshrl.u32 %v568_v31, 16 }
  0xc1   : > { %6545 = vmatpush3.bf16.msra.mxu0 %v6905_v2  ;;  %v625_v2 = vsel %vm7168_vm2, 0, %v624_v57  ;;  %v7996_v30 = vcombine.low %v1835_v62, %v1838_v3  ;;  %v1842_v12 = vsel %vm7825_vm14, %v5502_v38, %v1841_v27  ;;  %v1843_v7 = vrot.slane %v1841_v27, 4  ;;  %v6911_v57 = vld [vmem:[%s8852_s3 + $0x118] sm:$0xff]  }
  0xc2   : > { %6546 = vmatprep.subr.bf16.mxu0 %v6907_v61  ;;  %6597 = vmatpush3.bf16.msra.mxu1 %v6910_v37  ;;  %626 = vst [vmem:[#allocation2 + $0xc0] sm:$0x1] %v625_v2  ;;  %v976_v37 = vshll.u32 %v7952_v46, 16  ;;  %v975_v41 = vrot.slane %v973_v8, 7  ;;  %v984_v56 = vshll.u32 %v568_v31, 16  ;;  %v681_v62 = vsel %vm7176_vm4, 0, %v680_v60 }
  0xc3   : > { %6519 = vmatmul.mubr.bf16.gmra.mxu1 %v7518_v24  ;;  %6598 = vmatprep.subr.bf16.mxu1 %v6912_v42  ;;  %8959 = vst [vmem:[#allocation31_spill] sm:$0xff] %v7996_v30  ;;  %v1775_v46 = vsel %vm7825_vm14, %v7875_v23, %v1774_v19  ;;  %v8960_v0 = vrot.slane %v7880_v13, 9  ;;  %v6916_v31 = vld [vmem:[%s8852_s3 + $0x148] sm:$0xff]   ;;  %v1845_v60 = vsel %vm7825_vm14, %v1843_v7, %v1844_v51  ;;  %682 = vst [vmem:[#allocation2 + $0xc8] sm:$0x1] %v681_v62  ;;  %v8964_v3 = vld [vmem:[#allocation11_spill] sm:$0xff] }
  0xc4   : > { %6467 = vmatmul.mubr.bf16.gmra.mxu0 %v7892_v17  ;;  %6522 = vmatprep.mubr.bf16.mxu1 %v7551_v52  ;;  %v1782_v23 = vsel %vm7825_vm14, %v7896_v49, %v8961_v55  ;;  %v8030_v43 = vcombine.low %v1842_v12, %v1845_v60  ;;  %v979_v19 = vrot.slane %v975_v41, 4  ;;  %v978_v13 = vor.u32 %v976_v37, %v975_v41  ;;  %v6992_v12 = vld [vmem:[#allocation2 + $0x70] sm:$0xf] }
  0xc5   : > { %6470 = vmatprep.mubr.bf16.mxu0 %v7930_v63  ;;  %6547 = vmatpush3.bf16.msra.mxu0 %v6907_v61  ;;  %v1779_v26 = vsel %vm7825_vm14, %v8960_v0, %v1778_v16  ;;  %v983_v16 = vrot.slane %v981_v32, 7  ;;  %v8033_v61 = vcombine.low %v7911_v34, %v1775_v46  ;;  %v1794_v4 = vrot.slane %v1792_v1, 4  ;;  %v8979_v34 = vld [vmem:[#allocation25_spill] sm:$0xff] }
  0xc6   : > { %6548 = vmatprep.subr.bf16.mxu0 %v6909_v25  ;;  %6599 = vmatpush3.bf16.msra.mxu1 %v6912_v42  ;;  %8962 = vst [vmem:[#allocation32_spill] sm:$0xff] %v8030_v43  ;;  %v8040_v38 = vcombine.low %v1779_v26, %v1782_v23  ;;  %v6919_v42 = vld [vmem:[%s8852_s3 + $0x140] sm:$0xff]   ;;  %v1799_v7 = vrot.slane %v6992_v12, 5  ;;  %v8967_v41 = vrot.slane %v7545_v11, 5  ;;  %v8968_v62 = vrot.slane %v7573_v53, 9 }
  0xc7   : > { %6600 = vmatprep.subr.bf16.mxu1 %v6914_v9  ;;  %v986_v50 = vor.u32 %v984_v56, %v983_v16  ;;  %v988_v49 = vrot.slane %v983_v16, 4  ;;  %v1796_v11 = vsel %vm7825_vm14, %v1794_v4, %v8969_v5  ;;  %v6918_v26 = vld [vmem:[%s8852_s3 + $0x100] sm:$0xff]  }
  0xc8   : > { %v1789_v32 = vsel %vm7825_vm14, %v7921_v10, %v8967_v41  ;;  %v1793_v6 = vsel %vm7825_vm14, %v8968_v62, %v1792_v1  ;;  %v1801_v1 = vrot.slane %v1799_v7, 4  ;;  %v6994_v10 = vld [vmem:[#allocation2 + $0x74] sm:$0x1]  ;;  %v571_v41 = vld [vmem:[%s495_s26] sm:$0xf] }
  0xc9   : > { %6549 = vmatpush3.bf16.msra.mxu0 %v6909_v25  ;;  %v987_v27 = vsel %vm7192_vm7, %v979_v19, %v986_v50  ;;  %v1143_v51 = vld [vmem:[#allocation2 + $0xc0] sm:$0xf]  ;;  %v8966_v25 = vld [vmem:[#allocation14_spill] sm:$0xff]  ;;  %v8086_v46 = vcombine.low %v1793_v6, %v1796_v11  ;;  %v1151_v5 = vshrl.u32 %v571_v41, 16 }
  0xca   : > { %6550 = vmatprep.subr.bf16.mxu0 %v6911_v57  ;;  %6601 = vmatpush3.bf16.msra.mxu1 %v6914_v9  ;;  %v1144_v8 = vsel %vm7205_vm8, %v978_v13, %v1143_v51  ;;  %1146 = vst [vmem:[#allocation2 + $0xc4] sm:$0xf] %v987_v27  ;;  %v1147_v37 = vld [vmem:[#allocation2 + $0xc8] sm:$0x1]  ;;  %v1786_v9 = vsel %vm7825_vm14, %v5494_v29, %v1785_v35  ;;  %v6993_v35 = vld [vmem:[#allocation2 + $0x6c] sm:$0xf] }
  0xcb   : > { %6523 = vmatmul.mubr.bf16.gmra.mxu1 %v8964_v3  ;;  %6602 = vmatprep.subr.bf16.mxu1 %v6916_v31  ;;  %1145 = vst [vmem:[#allocation2 + $0xc0] sm:$0xf] %v1144_v8  ;;  %v1148_v56 = vsel %vm7168_vm2, %v988_v49, %v1147_v37  ;;  %v6915_v29 = vld [vmem:[%s8852_s3 + $0x108] sm:$0xff]   ;;  %v8084_v53 = vcombine.low %v1786_v9, %v1789_v32  ;;  %v5496_v36 = vrot.slane %v6993_v35, 9  ;;  %8971 = vst [vmem:[#allocation11_spill] sm:$0xff] %v8086_v46  ;;  %v8114_v27 = vld [vmem:[%s8852_s3 + $0x1b8] sm:$0xff]  }
  0xcc   : > { %6471 = vmatmul.mubr.bf16.gmra.mxu0 %v8033_v61  ;;  %6526 = vmatprep.mubr.bf16.mxu1 %v8966_v25  ;;  %1149 = vst [vmem:[#allocation2 + $0xc8] sm:$0x1] %v1148_v56  ;;  %v8973_v13 = vld [vmem:[#allocation17_spill] sm:$0xff]  ;;  %v572_v32 = vld [vmem:[%s495_s26 + $0x4] sm:$0xf] }
  0xcd   : > { %6474 = vmatprep.mubr.bf16.mxu0 %v8040_v38  ;;  %6551 = vmatpush3.bf16.msra.mxu0 %v6911_v57  ;;  %8970 = vst [vmem:[#allocation3_spill] sm:$0xff] %v8084_v53  ;;  %v1802_v57 = vrot.slane %v6994_v10, 5  ;;  %v1800_v19 = vsel %vm7825_vm14, %v5496_v36, %v1799_v7  ;;  %v627_v7 = vld [vmem:[#allocation2 + $0xcc] sm:$0x1]  ;;  %v1159_v11 = vshrl.u32 %v572_v32, 16  ;;  %v1153_v10 = vrot.slane %v1151_v5, 7 }
  0xce   : > { %6552 = vmatprep.subr.bf16.mxu0 %v6913_v15  ;;  %6603 = vmatpush3.bf16.msra.mxu1 %v6916_v31  ;;  %v8972_v31 = vld [vmem:[#allocation16_spill] sm:$0xff]  ;;  %v628_v56 = vsel %vm7168_vm2, 0, %v627_v7  ;;  %v6922_v5 = vld [vmem:[%s8852_s3 + $0x1b0] sm:$0xff]  }
  0xcf   : > { %6604 = vmatprep.subr.bf16.mxu1 %v6919_v42  ;;  %v1803_v16 = vsel %vm7825_vm14, %v1801_v1, %v1802_v57  ;;  %629 = vst [vmem:[#allocation2 + $0xcc] sm:$0x1] %v628_v56  ;;  %v1154_v57 = vshll.u32 %v571_v41, 16  ;;  %v8977_v41 = vmov 0   ;;  %v8978_v56 = vld [vmem:[#allocation24_spill] sm:$0xff] }
  0xd0   : > { %v8120_v37 = vcombine.low %v1800_v19, %v1803_v16  ;;  %v1161_v19 = vrot.slane %v1159_v11, 7  ;;  %v1162_v16 = vshll.u32 %v572_v32, 16 }
  0xd1   : > { %6553 = vmatpush3.bf16.msra.mxu0 %v6913_v15  ;;  %v8088_v0 = vld [vmem:[#allocation2 + $0xc4] sm:$0xf] }
  0xd2   : > { %6554 = vmatprep.subr.bf16.mxu0 %v6915_v29  ;;  %6605 = vmatpush3.bf16.msra.mxu1 %v6919_v42  ;;  %v8094_v60 = vld [vmem:[#allocation2 + $0xc0] sm:$0xf]  ;;  %v1643_v55 = vshrl.u32 %v8088_v0, 16  ;;  %v1639_v23 = vshll.u32 %v8088_v0, 16  ;;  %8974 = vst [vmem:[#allocation4_spill] sm:$0xff] %v8120_v37  ;;  %v1166_v7 = vrot.slane %v1161_v19, 4 }
  0xd3   : > { %6527 = vmatmul.mubr.bf16.gmra.mxu1 %v8972_v31  ;;  %6686 = vmatprep.subr.bf16.mxu1 %v8082_v59  ;;  %v1630_v4 = vshrl.u32 %v8094_v60, 16  ;;  %v1633_v15 = vshll.u32 %v8094_v60, 16  ;;  %v8108_v50 = vld [vmem:[#allocation2 + $0xc8] sm:$0x1]  ;;  %v8152_v2 = vcombine.low %v8094_v60, %v8088_v0 }
  0xd4   : > { %6475 = vmatmul.mubr.bf16.gmra.mxu0 %v8084_v53  ;;  %6530 = vmatprep.mubr.bf16.mxu1 %v8973_v13  ;;  %v1641_v49 = vrot.slane %v1639_v23, 5  ;;  %v1645_v42 = vrot.slane %v1643_v55, 4  ;;  %v1649_v12 = vshll.u32 %v8108_v50, 16  ;;  %v8975_v55 = vld [vmem:[#allocation19_spill] sm:$0xff] }
  0xd5   : > { %6478 = vmatprep.mubr.bf16.mxu0 %v8086_v46  ;;  %6555 = vmatpush3.bf16.msra.mxu0 %v6915_v29  ;;  %v1632_v51 = vrot.slane %v1630_v4, 4  ;;  %v1635_v8 = vrot.slane %v1633_v15, 5  ;;  %v683_v29 = vld [vmem:[#allocation2 + $0xd4] sm:$0x1]  ;;  %v1156_v4 = vor.u32 %v1154_v57, %v1153_v10  ;;  %v1157_v15 = vrot.slane %v1153_v10, 4  ;;  %v6929_v57 = vld [vmem:[%s8852_s3 + $0x1d8] sm:$0xff]  }
  0xd6   : > { %6556 = vmatprep.subr.bf16.mxu0 %v6918_v26  ;;  %v1646_v9 = vor.u32 %v1645_v42, %v1641_v49  ;;  %v1651_v6 = vrot.slane %v1649_v12, 5  ;;  %v684_v36 = vsel %vm7176_vm4, 0, %v683_v29  ;;  %v1171_v12 = vld [vmem:[#allocation2 + $0xcc] sm:$0xf]  ;;  %v8981_v29 = vld [vmem:[#allocation6_spill] sm:$0xff] }
  0xd7   : > { %v1636_v62 = vor.u32 %v1635_v8, %v1632_v51  ;;  %685 = vst [vmem:[#allocation2 + $0xd4] sm:$0x1] %v684_v36  ;;  %v1164_v51 = vor.u32 %v1162_v16, %v1161_v19 }
  0xd8   : > { %v1647_v35 = vrot.slane %v1646_v9, 4  ;;  %v1172_v9 = vsel %vm7205_vm8, %v1156_v4, %v1171_v12  ;;  %v8984_v12 = vld [vmem:[#allocation9_spill] sm:$0xff] }
  0xd9   : > { %6557 = vmatpush3.bf16.msra.mxu0 %v6918_v26  ;;  %v1637_v1 = vrot.slane %v1636_v62, 4  ;;  %v8976_v26 = vld [vmem:[#allocation21_spill] sm:$0xff]  ;;  %v1165_v8 = vsel %vm7192_vm7, %v1157_v15, %v1164_v51  ;;  %1173 = vst [vmem:[#allocation2 + $0xcc] sm:$0xf] %v1172_v9  ;;  %v6931_v15 = vld [vmem:[%s8852_s3 + $0x1d0] sm:$0xff]  }
  0xda   : > { %6638 = vmatprep.subr.bf16.mxu0 %v8114_v27  ;;  %v1652_v23 = vsel %vm7280_vm11, %v1647_v35, %v1651_v6  ;;  %1174 = vst [vmem:[#allocation2 + $0xd0] sm:$0xf] %v1165_v8  ;;  %1185 = vst [vmem:[#allocation2 + $0xcc] sm:$0xf] %v8977_v41  ;;  %v8980_v62 = vld [vmem:[#allocation5_spill] sm:$0xff]  ;;  %v8982_v35 = vld [vmem:[#allocation7_spill] sm:$0xff] }
  0xdb   : > { %6531 = vmatmul.mubr.bf16.gmra.mxu1 %v8975_v55  ;;  %v1642_v18 = vsel %vm7280_vm11, %v1637_v1, %v1641_v49  ;;  %1186 = vst [vmem:[#allocation2 + $0xd0] sm:$0xf] %v8977_v41  ;;  %v6924_v1 = vld [vmem:[%s8852_s3 + $0x1a8] sm:$0xff]   ;;  %v8983_v8 = vld [vmem:[#allocation8_spill] sm:$0xff] }
  0xdc   : > { %6479 = vmatmul.mubr.bf16.gmra.mxu0 %v8120_v37  ;;  %6534 = vmatprep.mubr.bf16.mxu1 %v8976_v26  ;;  %v8135_v42 = vcombine.low %v1642_v18, %v1652_v23  ;;  %v6926_v18 = vld [vmem:[%s8852_s3 + $0x1a0] sm:$0xff]   ;;  %v6933_v9 = vld [vmem:[%s8852_s3 + $0x1c8] sm:$0xff]  }
  0xdd   : > { %6482 = vmatprep.mubr.bf16.mxu0 %v7938_v47 }
  0xde   : > { %v1175_v49 = vld [vmem:[#allocation2 + $0xd4] sm:$0x1] }
  0xdf   : > { %v1176_v32 = vsel %vm7168_vm2, %v1166_v7, %v1175_v49  ;;  %v6928_v7 = vld [vmem:[%s8852_s3 + $0x198] sm:$0xff]   ;;  %v6930_v49 = vld [vmem:[%s8852_s3 + $0x190] sm:$0xff]  }
  0xe0   : > { %1177 = vst [vmem:[#allocation2 + $0xd4] sm:$0x1] %v1176_v32  ;;  %v6935_v32 = vld [vmem:[%s8852_s3 + $0x1c0] sm:$0xff]  }
  0xe1   : > { %1187 = vst [vmem:[#allocation2 + $0xd4] sm:$0x1] %v8977_v41 }
  0xe3   : > { %6535 = vmatmul.mubr.bf16.gmra.mxu1 %v8978_v56 }
  0xe4   : > { %6483 = vmatmul.mubr.bf16.gmra.mxu0 %v7965_v40  ;;  %6538 = vmatprep.mubr.bf16.mxu1 %v8979_v34 }
  0xe5   : > { %6486 = vmatprep.mubr.bf16.mxu0 %v7975_v39 }
  0xeb   : > { %6539 = vmatmul.mubr.bf16.gmra.mxu1 %v8152_v2 }
  0xec   : > { %6487 = vmatmul.mubr.bf16.gmra.mxu0 %v7988_v33  ;;  %6606 = vmatprep.mubr.bf16.mxu1 %v7883_v54  ;;  %v6925_v54 = vld [vmem:[%s8852_s3 + $0x1e8] sm:$0xff]  }
  0xed   : > { %6490 = vmatprep.mubr.bf16.mxu0 %v7996_v30 }
  0xef   : > { %v6416_v6 = vpop.f32.mrf.mxu1 }
  0xf1   : > { %v2312_v11 = vpop.f32.mrf.mxu1 }
  0xf3   : > { %6607 = vmatmul.mubr.bf16.vlgmr.msra.gmra.mxu1 %v7890_v21  ;;  %v6417_v19 = vpop.f32.mrf.mxu1 }
  0xf4   : > { %6491 = vmatmul.mubr.bf16.gmra.mxu0 %v8030_v43  ;;  %6687 = vmatpush3.bf16.msra.mxu1 %v8082_v59  ;;  %v6927_v59 = vld [vmem:[%s8852_s3 + $0x1e0] sm:$0xff]  }
  0xf5   : > { %6558 = vmatprep.mubr.bf16.mxu0 %v8980_v62  ;;  %6610 = vmatprep.mubr.bf16.mxu1 %v7892_v17  ;;  %v8199_v51 = vpop.f32.mrf.mxu1 }
  0xf6   : > { %6688 = vmatprep.subr.bf16.mxu1 %v6923_v14 }
  0xf7   : > { %v6368_v36 = vpop.f32.mrf.mxu0 }
  0xf8   : > { %6689 = vmatpush3.bf16.msra.mxu1 %v6923_v14  ;;  %v8183_v10 = vadd.f32 %v6416_v6, %v6368_v36  ;;  %v8986_v6 = vld [vmem:[#allocation12_spill] sm:$0xff] }
  0xf9   : > { %6690 = vmatprep.subr.bf16.mxu1 %v6925_v54  ;;  %v2039_v23 = vpop.f32.mrf.mxu0 }
  0xfa   : > { %v8188_v16 = vadd.f32 %v2312_v11, %v2039_v23  ;;  %v6934_v23 = vld [vmem:[%s8852_s3 + $0x180] sm:$0xff]  }
  0xfb   : > { %6611 = vmatmul.mubr.bf16.gmra.mxu1 %v7930_v63 }
  0xfc   : > { %6559 = vmatmul.mubr.bf16.vlgmr.msra.gmra.mxu0 %v8981_v29  ;;  %6614 = vmatprep.mubr.bf16.mxu1 %v8033_v61 }
  0xfd   : > { %6639 = vmatpush3.bf16.msra.mxu0 %v8114_v27  ;;  %6562 = vmatprep.mubr.bf16.mxu0 %v8982_v35  ;;  %v6369_v27 = vpop.f32.mrf.mxu0 }
  0xfe   : > { %6640 = vmatprep.subr.bf16.mxu0 %v6922_v5  ;;  %6691 = vmatpush3.bf16.msra.mxu1 %v6925_v54  ;;  %v8193_v4 = vadd.f32 %v6417_v19, %v6369_v27  ;;  %v8985_v54 = vld [vmem:[#allocation10_spill] sm:$0xff] }
  0xff   : > { %6692 = vmatprep.subr.bf16.mxu1 %v6927_v59  ;;  %v6420_v41 = vpop.f32.mrf.mxu1  ;;  %v8217_v14 = vpop.f32.mrf.mxu0 }
 0x101   : > { %6641 = vmatpush3.bf16.msra.mxu0 %v6922_v5  ;;  %v2328_v62 = vpop.f32.mrf.mxu1  ;;  %v6932_v5 = vld [vmem:[%s8852_s3 + $0x188] sm:$0xff]  }
 0x102   : > { %6642 = vmatprep.subr.bf16.mxu0 %v6924_v1  ;;  %6693 = vmatpush3.bf16.msra.mxu1 %v6927_v59  ;;  %v6937_v59 = vld [vmem:[%s8853_s4 + $0x38] sm:$0xff]  }
 0x103   : > { %6615 = vmatmul.mubr.bf16.gmra.mxu1 %v8040_v38  ;;  %6694 = vmatprep.subr.bf16.mxu1 %v6929_v57  ;;  %v6421_v36 = vpop.f32.mrf.mxu1 }
 0x104   : > { %6563 = vmatmul.mubr.bf16.gmra.mxu0 %v8983_v8  ;;  %6618 = vmatprep.mubr.bf16.mxu1 %v8084_v53 }
 0x105   : > { %6566 = vmatprep.mubr.bf16.mxu0 %v8984_v12  ;;  %6643 = vmatpush3.bf16.msra.mxu0 %v6924_v1 }
 0x106   : > { %6644 = vmatprep.subr.bf16.mxu0 %v6926_v18  ;;  %6695 = vmatpush3.bf16.msra.mxu1 %v6929_v57 }
 0x107   : > { %6696 = vmatprep.subr.bf16.mxu1 %v6931_v15 }
 0x109   : > { %6645 = vmatpush3.bf16.msra.mxu0 %v6926_v18  ;;  %v8236_v18 = vpop.f32.mrf.mxu1 }
 0x10a   : > { %6646 = vmatprep.subr.bf16.mxu0 %v6928_v7  ;;  %6697 = vmatpush3.bf16.msra.mxu1 %v6931_v15  ;;  %v6372_v11 = vpop.f32.mrf.mxu0  ;;  %v8987_v15 = vld [vmem:[#allocation13_spill] sm:$0xff] }
 0x10b   : > { %6619 = vmatmul.mubr.bf16.gmra.mxu1 %v8086_v46  ;;  %6698 = vmatprep.subr.bf16.mxu1 %v6933_v9  ;;  %v8228_v1 = vadd.f32 %v6420_v41, %v6372_v11  ;;  %v6936_v41 = vld [vmem:[%s8852_s3 + $0x238] sm:$0xff]   ;;  %v8990_v11 = vld [vmem:[#allocation18_spill] sm:$0xff]  ;;  %v1851_v46 = vrot.slane %v8108_v50, 5 }
 0x10c   : > { %6567 = vmatmul.mubr.bf16.gmra.mxu0 %v8985_v54  ;;  %6622 = vmatprep.mubr.bf16.mxu1 %v8120_v37  ;;  %v2055_v57 = vpop.f32.mrf.mxu0  ;;  %v8993_v50 = vld [vmem:[#allocation23_spill] sm:$0xff] }
 0x10d   : > { %6570 = vmatprep.mubr.bf16.mxu0 %v8986_v6  ;;  %6647 = vmatpush3.bf16.msra.mxu0 %v6928_v7  ;;  %v8233_v19 = vadd.f32 %v2328_v62, %v2055_v57 }
 0x10e   : > { %6648 = vmatprep.subr.bf16.mxu0 %v6930_v49  ;;  %6699 = vmatpush3.bf16.msra.mxu1 %v6933_v9  ;;  %v6373_v27 = vpop.f32.mrf.mxu0  ;;  %v8989_v9 = vld [vmem:[#allocation15_spill] sm:$0xff] }
 0x10f   : > { %6700 = vmatprep.subr.bf16.mxu1 %v6935_v32  ;;  %v8240_v7 = vadd.f32 %v6421_v36, %v6373_v27  ;;  %v1848_v36 = vrot.slane %v8088_v0, 5  ;;  %v8992_v0 = vld [vmem:[#allocation22_spill] sm:$0xff] }
 0x111   : > { %6649 = vmatpush3.bf16.msra.mxu0 %v6930_v49  ;;  %8988 = vst [vmem:[#allocation14_spill] sm:$0xff] %v8240_v7  ;;  %v6424_v49 = vpop.f32.mrf.mxu1  ;;  %v1850_v37 = vrot.slane %v1848_v36, 4 }
 0x112   : > { %6650 = vmatprep.subr.bf16.mxu0 %v6932_v5  ;;  %6701 = vmatpush3.bf16.msra.mxu1 %v6935_v32  ;;  %v8246_v32 = vpop.f32.mrf.mxu0 }
 0x113   : > { %6623 = vmatmul.mubr.bf16.gmra.mxu1 %v7938_v47  ;;  %6782 = vmatprep.subr.bf16.mxu1 %v6937_v59  ;;  %v2344_v62 = vpop.f32.mrf.mxu1 }
 0x114   : > { %6571 = vmatmul.mubr.bf16.gmra.mxu0 %v8987_v15  ;;  %6626 = vmatprep.mubr.bf16.mxu1 %v7965_v40 }
 0x115   : > { %6574 = vmatprep.mubr.bf16.mxu0 %v8989_v9  ;;  %6651 = vmatpush3.bf16.msra.mxu0 %v6932_v5  ;;  %v8991_v5 = vld [vmem:[#allocation20_spill] sm:$0xff]  ;;  %v6425_v47 = vpop.f32.mrf.mxu1 }
 0x116   : > { %6652 = vmatprep.subr.bf16.mxu0 %v6934_v23 }
 0x119   : > { %6653 = vmatpush3.bf16.msra.mxu0 %v6934_v23  ;;  %v6376_v57 = vpop.f32.mrf.mxu0  ;;  %v5503_v23 = vrot.slane %v8094_v60, 9  ;;  %v1852_v60 = vsel %vm7825_vm14, %v1850_v37, %v1851_v46  ;;  %v6939_v37 = vld [vmem:[%s8853_s4 + $0x30] sm:$0xff]  }
 0x11a   : > { %6734 = vmatprep.subr.bf16.mxu0 %v6936_v41  ;;  %v8253_v27 = vadd.f32 %v6424_v49, %v6376_v57  ;;  %v8268_v57 = vpop.f32.mrf.mxu1 }
 0x11b   : > { %6627 = vmatmul.mubr.bf16.gmra.mxu1 %v7975_v39  ;;  %v2071_v40 = vpop.f32.mrf.mxu0  ;;  %v1849_v49 = vsel %vm7825_vm14, %v5503_v23, %v1848_v36 }
 0x11c   : > { %6575 = vmatmul.mubr.bf16.gmra.mxu0 %v8990_v11  ;;  %6630 = vmatprep.mubr.bf16.mxu1 %v7988_v33  ;;  %v8257_v39 = vadd.f32 %v2344_v62, %v2071_v40  ;;  %v8271_v40 = vcombine.low %v1849_v49, %v1852_v60 }
 0x11d   : > { %6578 = vmatprep.mubr.bf16.mxu0 %v8991_v5  ;;  %v6377_v53 = vpop.f32.mrf.mxu0 }
 0x11e   : > { %v8259_v7 = vadd.f32 %v6425_v47, %v6377_v53  ;;  %8994 = vst [vmem:[#allocation16_spill] sm:$0xff] %v8271_v40  ;;  %v8995_v53 = vld [vmem:[#allocation27_spill] sm:$0xff] }
 0x11f   : > { %v8277_v36 = vpop.f32.mrf.mxu0 }
 0x123   : > { %6631 = vmatmul.mubr.bf16.gmra.mxu1 %v7996_v30 }
 0x124   : > { %6579 = vmatmul.mubr.bf16.gmra.mxu0 %v8992_v0  ;;  %6634 = vmatprep.mubr.bf16.mxu1 %v8030_v43 }
 0x125   : > { %6582 = vmatprep.mubr.bf16.mxu0 %v8993_v50  ;;  %v6428_v47 = vpop.f32.mrf.mxu1 }
 0x127   : > { %v2360_v62 = vpop.f32.mrf.mxu1 }
 0x129   : > { %v6429_v23 = vpop.f32.mrf.mxu1 }
 0x12b   : > { %6635 = vmatmul.mubr.bf16.gmra.mxu1 %v8271_v40  ;;  %v2363_v48 = vpop.f32.mrf.mxu1  ;;  %v6941_v40 = vld [vmem:[%s8853_s4 + $0x28] sm:$0xff]  }
 0x12c   : > { %6583 = vmatmul.mubr.bf16.gmra.mxu0 %v8995_v53  ;;  %6702 = vmatprep.mubr.bf16.mxu1 %v8981_v29 }
 0x12d   : > { %6586 = vmatprep.mubr.bf16.mxu0 %v7856_v22 }
 0x12f   : > { %v6380_v46 = vpop.f32.mrf.mxu0 }
 0x130   : > { %v8282_v49 = vadd.f32 %v6428_v47, %v6380_v46 }
 0x131   : > { %v2087_v60 = vpop.f32.mrf.mxu0 }
 0x132   : > { %v8286_v29 = vadd.f32 %v2360_v62, %v2087_v60 }
 0x133   : > { %6703 = vmatmul.mubr.bf16.vlgmr.msra.gmra.mxu1 %v8982_v35  ;;  %v6381_v43 = vpop.f32.mrf.mxu0 }
 0x134   : > { %6587 = vmatmul.mubr.bf16.gmra.mxu0 %v8135_v42  ;;  %6783 = vmatpush3.bf16.msra.mxu1 %v6937_v59  ;;  %v8293_v47 = vadd.f32 %v6429_v23, %v6381_v43 }
 0x135   : > { %6654 = vmatprep.mubr.bf16.mxu0 %v7303_v45  ;;  %6706 = vmatprep.mubr.bf16.mxu1 %v8983_v8  ;;  %v2090_v35 = vpop.f32.mrf.mxu0  ;;  %v6938_v45 = vld [vmem:[%s8852_s3 + $0x230] sm:$0xff]   ;;  %v6943_v8 = vld [vmem:[%s8853_s4 + $0x20] sm:$0xff]  }
 0x136   : > { %6784 = vmatprep.subr.bf16.mxu1 %v6939_v37  ;;  %v8295_v46 = vadd.f32 %v2363_v48, %v2090_v35  ;;  %v6432_v59 = vpop.f32.mrf.mxu1  ;;  %v6940_v48 = vld [vmem:[%s8852_s3 + $0x228] sm:$0xff]  }
 0x138   : > { %6785 = vmatpush3.bf16.msra.mxu1 %v6939_v37  ;;  %v2376_v43 = vpop.f32.mrf.mxu1 }
 0x139   : > { %6786 = vmatprep.subr.bf16.mxu1 %v6941_v40 }
 0x13a   : > { %v6433_v23 = vpop.f32.mrf.mxu1 }
 0x13b   : > { %6707 = vmatmul.mubr.bf16.gmra.mxu1 %v8984_v12  ;;  %v6945_v12 = vld [vmem:[%s8853_s4 + $0x18] sm:$0xff]  }
 0x13c   : > { %6655 = vmatmul.mubr.bf16.vlgmr.msra.gmra.mxu0 %v7372_v44  ;;  %6710 = vmatprep.mubr.bf16.mxu1 %v8985_v54  ;;  %v2379_v60 = vpop.f32.mrf.mxu1 }
 0x13d   : > { %6735 = vmatpush3.bf16.msra.mxu0 %v6936_v41  ;;  %6658 = vmatprep.mubr.bf16.mxu0 %v7450_v28  ;;  %v6942_v28 = vld [vmem:[%s8852_s3 + $0x220] sm:$0xff]  }
 0x13e   : > { %6736 = vmatprep.subr.bf16.mxu0 %v6938_v45  ;;  %6787 = vmatpush3.bf16.msra.mxu1 %v6941_v40  ;;  %v6384_v62 = vpop.f32.mrf.mxu0  ;;  %v6947_v40 = vld [vmem:[%s8853_s4 + $0x10] sm:$0xff]  }
 0x13f   : > { %6788 = vmatprep.subr.bf16.mxu1 %v6943_v8  ;;  %v8313_v44 = vadd.f32 %v6432_v59, %v6384_v62  ;;  %v8352_v62 = vld [vmem:[#allocation2 + $0xcc] sm:$0xf] }
 0x140   : > { %v2103_v54 = vpop.f32.mrf.mxu0 }
 0x141   : > { %6737 = vmatpush3.bf16.msra.mxu0 %v6938_v45  ;;  %v8319_v41 = vadd.f32 %v2376_v43, %v2103_v54  ;;  %v1654_v54 = vshrl.u32 %v8352_v62, 16 }
 0x142   : > { %6738 = vmatprep.subr.bf16.mxu0 %v6940_v48  ;;  %6789 = vmatpush3.bf16.msra.mxu1 %v6943_v8  ;;  %v6385_v37 = vpop.f32.mrf.mxu0  ;;  %v6952_v8 = vld [vmem:[%s8853_s4] sm:$0xff]  }
 0x143   : > { %6711 = vmatmul.mubr.bf16.gmra.mxu1 %v8986_v6  ;;  %6790 = vmatprep.subr.bf16.mxu1 %v6945_v12  ;;  %v8327_v35 = vadd.f32 %v6433_v23, %v6385_v37  ;;  %v6944_v6 = vld [vmem:[%s8852_s3 + $0x218] sm:$0xff]  }
 0x144   : > { %6659 = vmatmul.mubr.bf16.gmra.mxu0 %v7462_v20  ;;  %6714 = vmatprep.mubr.bf16.mxu1 %v8987_v15  ;;  %v2106_v59 = vpop.f32.mrf.mxu0  ;;  %v6949_v20 = vld [vmem:[%s8853_s4 + $0x8] sm:$0xff]   ;;  %v6946_v15 = vld [vmem:[%s8852_s3 + $0x210] sm:$0xff]  }
 0x145   : > { %6662 = vmatprep.mubr.bf16.mxu0 %v7518_v24  ;;  %6739 = vmatpush3.bf16.msra.mxu0 %v6940_v48  ;;  %v8332_v45 = vadd.f32 %v2379_v60, %v2106_v59  ;;  %v6948_v48 = vld [vmem:[%s8852_s3 + $0x208] sm:$0xff]  }
 0x146   : > { %6740 = vmatprep.subr.bf16.mxu0 %v6942_v28  ;;  %6791 = vmatpush3.bf16.msra.mxu1 %v6945_v12  ;;  %v8350_v12 = vld [vmem:[#allocation2 + $0xd0] sm:$0xf] }
 0x147   : > { %6792 = vmatprep.subr.bf16.mxu1 %v6947_v40  ;;  %v1667_v37 = vshrl.u32 %v8350_v12, 16 }
 0x148   : > { %v6436_v24 = vpop.f32.mrf.mxu1 }
 0x149   : > { %6741 = vmatpush3.bf16.msra.mxu0 %v6942_v28 }
 0x14a   : > { %6742 = vmatprep.subr.bf16.mxu0 %v6944_v6  ;;  %6793 = vmatpush3.bf16.msra.mxu1 %v6947_v40  ;;  %v2392_v43 = vpop.f32.mrf.mxu1  ;;  %v1657_v40 = vshll.u32 %v8352_v62, 16 }
 0x14b   : > { %6715 = vmatmul.mubr.bf16.gmra.mxu1 %v8989_v9  ;;  %6794 = vmatprep.subr.bf16.mxu1 %v6949_v20 }
 0x14c   : > { %6663 = vmatmul.mubr.bf16.gmra.mxu0 %v7551_v52  ;;  %6718 = vmatprep.mubr.bf16.mxu1 %v8990_v11  ;;  %v6437_v9 = vpop.f32.mrf.mxu1  ;;  %v6951_v52 = vld [vmem:[%s8852_s3 + $0x200] sm:$0xff]   ;;  %v1663_v11 = vshll.u32 %v8350_v12, 16 }
 0x14d   : > { %6666 = vmatprep.mubr.bf16.mxu0 %v8964_v3  ;;  %6743 = vmatpush3.bf16.msra.mxu0 %v6944_v6 }
 0x14e   : > { %6744 = vmatprep.subr.bf16.mxu0 %v6946_v15  ;;  %6795 = vmatpush3.bf16.msra.mxu1 %v6949_v20  ;;  %v2395_v28 = vpop.f32.mrf.mxu1  ;;  %v1656_v20 = vrot.slane %v1654_v54, 4 }
 0x14f   : > { %6796 = vmatprep.subr.bf16.mxu1 %v6952_v8 }
 0x151   : > { %6745 = vmatpush3.bf16.msra.mxu0 %v6946_v15  ;;  %v1669_v15 = vrot.slane %v1667_v37, 4 }
 0x152   : > { %6746 = vmatprep.subr.bf16.mxu0 %v6948_v48  ;;  %6797 = vmatpush3.bf16.msra.mxu1 %v6952_v8  ;;  %v6388_v3 = vpop.f32.mrf.mxu0 }
 0x153   : > { %6719 = vmatmul.mubr.bf16.gmra.mxu1 %v8991_v5  ;;  %v8361_v23 = vadd.f32 %v6436_v24, %v6388_v3  ;;  %v1659_v24 = vrot.slane %v1657_v40, 5  ;;  %v8371_v3 = vld [vmem:[#allocation2 + $0xd4] sm:$0x1] }
 0x154   : > { %6667 = vmatmul.mubr.bf16.gmra.mxu0 %v8966_v25  ;;  %6722 = vmatprep.mubr.bf16.mxu1 %v8992_v0  ;;  %v2119_v60 = vpop.f32.mrf.mxu0  ;;  %v1665_v25 = vrot.slane %v1663_v11, 5 }
 0x155   : > { %6670 = vmatprep.mubr.bf16.mxu0 %v8972_v31  ;;  %6747 = vmatpush3.bf16.msra.mxu0 %v6948_v48  ;;  %v8367_v5 = vadd.f32 %v2392_v43, %v2119_v60  ;;  %v1660_v43 = vor.u32 %v1659_v24, %v1656_v20  ;;  %v6995_v24 = vld [vmem:[%s7164_s21] sm:$0xf] }
 0x156   : > { %6748 = vmatprep.subr.bf16.mxu0 %v6951_v52  ;;  %v6389_v6 = vpop.f32.mrf.mxu0  ;;  %v1670_v48 = vor.u32 %v1669_v15, %v1665_v25 }
 0x157   : > { %v8369_v59 = vadd.f32 %v6437_v9, %v6389_v6  ;;  %v6440_v0 = vpop.f32.mrf.mxu1  ;;  %v1673_v9 = vshll.u32 %v8371_v3, 16  ;;  %v1661_v40 = vrot.slane %v1660_v43, 4 }
 0x158   : > { %v2122_v8 = vpop.f32.mrf.mxu0  ;;  %v1671_v37 = vrot.slane %v1670_v48, 4  ;;  %v5700_v48 = vcombine.low %v8352_v62, %v8350_v12 }
 0x159   : > { %6749 = vmatpush3.bf16.msra.mxu0 %v6951_v52  ;;  %v8373_v30 = vadd.f32 %v2395_v28, %v2122_v8  ;;  %v2408_v31 = vpop.f32.mrf.mxu1  ;;  %v1675_v52 = vrot.slane %v1673_v9, 5  ;;  %v6999_v9 = vld [vmem:[%s7164_s21 + $0x10] sm:$0xf] }
 0x15b   : > { %6723 = vmatmul.mubr.bf16.gmra.mxu1 %v8993_v50  ;;  %v6441_v54 = vpop.f32.mrf.mxu1  ;;  %v1676_v6 = vsel %vm7280_vm11, %v1671_v37, %v1675_v52 }
 0x15c   : > { %6671 = vmatmul.mubr.bf16.gmra.mxu0 %v8973_v13  ;;  %6726 = vmatprep.mubr.bf16.mxu1 %v8995_v53 }
 0x15d   : > { %6674 = vmatprep.mubr.bf16.mxu0 %v8975_v55  ;;  %v2411_v60 = vpop.f32.mrf.mxu1  ;;  %v1666_v55 = vsel %vm7280_vm11, %v1661_v40, %v1665_v25  ;;  %v6997_v25 = vld [vmem:[%s7164_s21 + $0x8] sm:$0xf] }
 0x161   : > { %v6392_v11 = vpop.f32.mrf.mxu0 }
 0x162   : > { %v8380_v28 = vadd.f32 %v6440_v0, %v6392_v11  ;;  %v7000_v11 = vld [vmem:[%s7164_s21 + $0x14] sm:$0xf] }
 0x163   : > { %v2135_v50 = vpop.f32.mrf.mxu0  ;;  %6727 = vmatmul.mubr.bf16.gmra.mxu1 %v7856_v22 }
 0x164   : > { %v8383_v13 = vadd.f32 %v2408_v31, %v2135_v50  ;;  %6675 = vmatmul.mubr.bf16.gmra.mxu0 %v8976_v26  ;;  %6730 = vmatprep.mubr.bf16.mxu1 %v8135_v42  ;;  %v5725_v26 = vcombine.low %v1666_v55, %v1676_v6  ;;  %v6996_v42 = vld [vmem:[%s7164_s21 + $0x4] sm:$0xf]  ;;  %v6998_v31 = vld [vmem:[%s7164_s21 + $0xc] sm:$0xf]  ;;  %v7001_v55 = vld [vmem:[%s7164_s21 + $0x18] sm:$0xf] }
 0x165   : > { %v6393_v53 = vpop.f32.mrf.mxu0  ;;  %6678 = vmatprep.mubr.bf16.mxu0 %v8978_v56  ;;  %v5759_v15 = vcombine.low %v6995_v24, %v6996_v42  ;;  %v5760_v43 = vcombine.low %v6997_v25, %v6998_v31  ;;  %v7002_v6 = vld [vmem:[%s7164_s21 + $0x1c] sm:$0xf]  ;;  %v7003_v24 = vld [vmem:[%s7164_s21 + $0x20] sm:$0xf]  ;;  %v7004_v42 = vld [vmem:[%s7164_s21 + $0x24] sm:$0xf] }
 0x166   : > { %v8392_v0 = vadd.f32 %v6441_v54, %v6393_v53  ;;  %v5761_v54 = vcombine.low %v6999_v9, %v7000_v11 }
 0x167   : > { %v2138_v22 = vpop.f32.mrf.mxu0 }
 0x168   : > { %v8394_v20 = vadd.f32 %v2411_v60, %v2138_v22  ;;  %v5762_v22 = vcombine.low %v7001_v55, %v7002_v6 }
 0x16b   : > { %v6444_v8 = vpop.f32.mrf.mxu1  ;;  %6731 = vmatmul.mubr.bf16.gmra.mxu1 %v5725_v26 }
 0x16c   : > { %6679 = vmatmul.mubr.bf16.gmra.mxu0 %v8979_v34  ;;  %6798 = vmatprep.mubr.bf16.mxu1 %v5759_v15  ;;  %v5763_v15 = vcombine.low %v7003_v24, %v7004_v42 }
 0x16d   : > { %6682 = vmatprep.mubr.bf16.mxu0 %v8152_v2  ;;  %v2424_v58 = vpop.f32.mrf.mxu1 }
 0x16f   : > { %v6445_v56 = vpop.f32.mrf.mxu1 }
 0x171   : > { %v2427_v40 = vpop.f32.mrf.mxu1 }
 0x173   : > { %v6512_v37 = vpop.f32.mrf.mxu1  ;;  %6799 = vmatmul.mubr.bf16.vlgmr.msra.gmra.mxu1 %v5760_v43 }
 0x174   : > { %v6396_v34 = vpop.f32.mrf.mxu0  ;;  %6683 = vmatmul.mubr.bf16.gmra.mxu0 %v5700_v48  ;;  %6802 = vmatprep.mubr.bf16.mxu1 %v5761_v54 }
 0x175   : > { %v8406_v2 = vadd.f32 %v6444_v8, %v6396_v34  ;;  %6750 = vmatprep.mubr.bf16.mxu0 %v7890_v21  ;;  %v2864_v52 = vpop.f32.mrf.mxu1  ;;  %v7005_v34 = vld [vmem:[%s7164_s21 + $0x28] sm:$0xf] }
 0x176   : > { %v2151_v50 = vpop.f32.mrf.mxu0 }
 0x177   : > { %v8409_v53 = vadd.f32 %v2424_v58, %v2151_v50  ;;  %v6513_v60 = vpop.f32.mrf.mxu1  ;;  %v7006_v50 = vld [vmem:[%s7164_s21 + $0x2c] sm:$0xf] }
 0x178   : > { %v6397_v26 = vpop.f32.mrf.mxu0  ;;  %v5764_v55 = vcombine.low %v7005_v34, %v7006_v50  ;;  %v7010_v34 = vld [vmem:[%s7164_s21 + $0x3c] sm:$0xf] }
 0x179   : > { %v8415_v25 = vadd.f32 %v6445_v56, %v6397_v26  ;;  %v2867_v31 = vpop.f32.mrf.mxu1  ;;  %v7008_v26 = vld [vmem:[%s7164_s21 + $0x34] sm:$0xf] }
 0x17a   : > { %v2154_v8 = vpop.f32.mrf.mxu0 }
 0x17b   : > { %v8417_v43 = vadd.f32 %v2427_v40, %v2154_v8  ;;  %v6516_v21 = vpop.f32.mrf.mxu1  ;;  %6803 = vmatmul.mubr.bf16.gmra.mxu1 %v5762_v22  ;;  %v7007_v22 = vld [vmem:[%s7164_s21 + $0x30] sm:$0xf] }
 0x17c   : > { %v6464_v58 = vpop.f32.mrf.mxu0  ;;  %6751 = vmatmul.mubr.bf16.vlgmr.msra.gmra.mxu0 %v7892_v17  ;;  %6806 = vmatprep.mubr.bf16.mxu1 %v5763_v15  ;;  %v5765_v24 = vcombine.low %v7007_v22, %v7008_v26  ;;  %v2316_v17 = vadd.f32 %v8199_v51, %v8217_v14 }
 0x17d   : > { %v2731_v48 = vadd.f32 %v6464_v58, %v8183_v10  ;;  %6754 = vmatprep.mubr.bf16.mxu0 %v7930_v63  ;;  %v2880_v56 = vpop.f32.mrf.mxu1 }
 0x17e   : > { %v2602_v9 = vpop.f32.mrf.mxu0 }
 0x17f   : > { %v8422_v11 = vadd.f32 %v6512_v37, %v2731_v48  ;;  %v2729_v54 = vadd.f32 %v2602_v9, %v8188_v16  ;;  %v6517_v40 = vpop.f32.mrf.mxu1 }
 0x180   : > { %v6465_v6 = vpop.f32.mrf.mxu0 }
 0x181   : > { %v8431_v10 = vadd.f32 %v2864_v52, %v2729_v54  ;;  %v2732_v63 = vadd.f32 %v6465_v6, %v8193_v4  ;;  %v2883_v42 = vpop.f32.mrf.mxu1  ;;  %v7009_v54 = vld [vmem:[%s7164_s21 + $0x38] sm:$0xf]  ;;  %v7011_v6 = vld [vmem:[%s7164_s21 + $0x40] sm:$0xf] }
 0x182   : > { %v2605_v37 = vpop.f32.mrf.mxu0  ;;  %v5766_v50 = vcombine.low %v7009_v54, %v7010_v34  ;;  %v7013_v54 = vld [vmem:[%s7164_s21 + $0x48] sm:$0xf]  ;;  %v7014_v34 = vld [vmem:[%s7164_s21 + $0x4c] sm:$0xf] }
 0x183   : > { %v8434_v15 = vadd.f32 %v6513_v60, %v2732_v63  ;;  %v2730_v16 = vadd.f32 %v2605_v37, %v2316_v17  ;;  %v6520_v8 = vpop.f32.mrf.mxu1  ;;  %6807 = vmatmul.mubr.bf16.gmra.mxu1 %v5764_v55 }
 0x184   : > { %v6468_v58 = vpop.f32.mrf.mxu0  ;;  %6755 = vmatmul.mubr.bf16.gmra.mxu0 %v8033_v61  ;;  %6810 = vmatprep.mubr.bf16.mxu1 %v5765_v24  ;;  %v7012_v61 = vld [vmem:[%s7164_s21 + $0x44] sm:$0xf] }
 0x185   : > { %v8437_v51 = vadd.f32 %v2867_v31, %v2730_v16  ;;  %v2735_v14 = vadd.f32 %v6468_v58, %v8228_v1  ;;  %6758 = vmatprep.mubr.bf16.mxu0 %v8040_v38  ;;  %v2896_v4 = vpop.f32.mrf.mxu1  ;;  %v5767_v22 = vcombine.low %v7011_v6, %v7012_v61  ;;  %v2332_v31 = vadd.f32 %v8236_v18, %v8246_v32  ;;  %v8996_v38 = vld [vmem:[#allocation14_spill] sm:$0xff]  ;;  %v8997_v16 = vld [vmem:[#allocation3_spill] sm:$0xff] }
 0x186   : > { %v2618_v52 = vpop.f32.mrf.mxu0  ;;  %v7015_v6 = vld [vmem:[%s7164_s21 + $0x50] sm:$0xf]  ;;  %v7016_v61 = vld [vmem:[%s7164_s21 + $0x54] sm:$0xf] }
 0x187   : > { %v8441_v60 = vadd.f32 %v6516_v21, %v2735_v14  ;;  %v2733_v48 = vadd.f32 %v2618_v52, %v8233_v19  ;;  %v6521_v9 = vpop.f32.mrf.mxu1 }
 0x188   : > { %v6469_v55 = vpop.f32.mrf.mxu0 }
 0x189   : > { %v8450_v1 = vadd.f32 %v2880_v56, %v2733_v48  ;;  %v2736_v26 = vadd.f32 %v6469_v55, %v8996_v38  ;;  %v2899_v24 = vpop.f32.mrf.mxu1  ;;  %v8998_v56 = vld [vmem:[#allocation11_spill] sm:$0xff] }
 0x18a   : > { %v2621_v21 = vpop.f32.mrf.mxu0 }
 0x18b   : > { %v8453_v17 = vadd.f32 %v6517_v40, %v2736_v26  ;;  %v2734_v19 = vadd.f32 %v2621_v21, %v2332_v31  ;;  %v6524_v63 = vpop.f32.mrf.mxu1  ;;  %6811 = vmatmul.mubr.bf16.gmra.mxu1 %v5766_v50  ;;  %v5768_v50 = vcombine.low %v7013_v54, %v7014_v34 }
 0x18c   : > { %v6472_v37 = vpop.f32.mrf.mxu0  ;;  %6759 = vmatmul.mubr.bf16.gmra.mxu0 %v8997_v16  ;;  %6814 = vmatprep.mubr.bf16.mxu1 %v5767_v22  ;;  %v5769_v22 = vcombine.low %v7015_v6, %v7016_v61 }
 0x18d   : > { %v8456_v18 = vadd.f32 %v2883_v42, %v2734_v19  ;;  %v2739_v32 = vadd.f32 %v6472_v37, %v8253_v27  ;;  %6762 = vmatprep.mubr.bf16.mxu0 %v8998_v56  ;;  %v2912_v58 = vpop.f32.mrf.mxu1  ;;  %v2348_v42 = vadd.f32 %v8268_v57, %v8277_v36  ;;  %v8999_v37 = vld [vmem:[#allocation4_spill] sm:$0xff] }
 0x18e   : > { %v2634_v14 = vpop.f32.mrf.mxu0 }
 0x18f   : > { %v8460_v40 = vadd.f32 %v6520_v8, %v2739_v32  ;;  %v2737_v52 = vadd.f32 %v2634_v14, %v8257_v39  ;;  %v6525_v48 = vpop.f32.mrf.mxu1  ;;  %v7017_v14 = vld [vmem:[%s7164_s21 + $0x58] sm:$0xf] }
 0x190   : > { %v6473_v55 = vpop.f32.mrf.mxu0 }
 0x191   : > { %v8469_v27 = vadd.f32 %v2896_v4, %v2737_v52  ;;  %v2740_v31 = vadd.f32 %v6473_v55, %v8259_v7  ;;  %v2915_v38 = vpop.f32.mrf.mxu1  ;;  %v9000_v7 = vld [vmem:[#allocation28_spill] sm:$0xff]  ;;  %v7018_v52 = vld [vmem:[%s7164_s21 + $0x5c] sm:$0xf] }
 0x192   : > { %v2637_v8 = vpop.f32.mrf.mxu0  ;;  %v5770_v54 = vcombine.low %v7017_v14, %v7018_v52  ;;  %v7020_v55 = vld [vmem:[%s7164_s21 + $0x64] sm:$0xf]  ;;  %v7023_v52 = vld [vmem:[%s7164_s21 + $0x70] sm:$0xf] }
 0x193   : > { %v8472_v26 = vadd.f32 %v6521_v9, %v2740_v31  ;;  %v2738_v39 = vadd.f32 %v2637_v8, %v2348_v42  ;;  %v6528_v21 = vpop.f32.mrf.mxu1  ;;  %6815 = vmatmul.mubr.bf16.gmra.mxu1 %v5768_v50  ;;  %v7019_v50 = vld [vmem:[%s7164_s21 + $0x60] sm:$0xf]  ;;  %v9001_v8 = vld [vmem:[#allocation29_spill] sm:$0xff] }
 0x194   : > { %v6476_v19 = vpop.f32.mrf.mxu0  ;;  %6763 = vmatmul.mubr.bf16.gmra.mxu0 %v8999_v37  ;;  %6818 = vmatprep.mubr.bf16.mxu1 %v5769_v22  ;;  %v5771_v6 = vcombine.low %v7019_v50, %v7020_v55 }
 0x195   : > { %v8475_v57 = vadd.f32 %v2899_v24, %v2738_v39  ;;  %v2743_v36 = vadd.f32 %v6476_v19, %v8282_v49  ;;  %6766 = vmatprep.mubr.bf16.mxu0 %v9000_v7  ;;  %v2928_v4 = vpop.f32.mrf.mxu1  ;;  %v9002_v39 = vld [vmem:[#allocation30_spill] sm:$0xff]  ;;  %v7021_v7 = vld [vmem:[%s7164_s21 + $0x68] sm:$0xf] }
 0x196   : > { %v2650_v16 = vpop.f32.mrf.mxu0 }
 0x197   : > { %v8479_v9 = vadd.f32 %v6524_v63, %v2743_v36  ;;  %v2741_v32 = vadd.f32 %v2650_v16, %v8286_v29  ;;  %v6529_v56 = vpop.f32.mrf.mxu1  ;;  %v7022_v16 = vld [vmem:[%s7164_s21 + $0x6c] sm:$0xf] }
 0x198   : > { %v6477_v34 = vpop.f32.mrf.mxu0 }
 0x199   : > { %v8486_v24 = vadd.f32 %v2912_v58, %v2741_v32  ;;  %v2744_v49 = vadd.f32 %v6477_v34, %v8293_v47  ;;  %v2931_v61 = vpop.f32.mrf.mxu1  ;;  %v5772_v32 = vcombine.low %v7021_v7, %v7022_v16 }
 0x19a   : > { %v2653_v22 = vpop.f32.mrf.mxu0 }
 0x19b   : > { %v8489_v42 = vadd.f32 %v6525_v48, %v2744_v49  ;;  %v2742_v29 = vadd.f32 %v2653_v22, %v8295_v46  ;;  %v6532_v63 = vpop.f32.mrf.mxu1  ;;  %6819 = vmatmul.mubr.bf16.gmra.mxu1 %v5770_v54  ;;  %v7024_v54 = vld [vmem:[%s7164_s21 + $0x74] sm:$0xf] }
 0x19c   : > { %v6480_v31 = vpop.f32.mrf.mxu0  ;;  %6767 = vmatmul.mubr.bf16.gmra.mxu0 %v9001_v8  ;;  %6822 = vmatprep.mubr.bf16.mxu1 %v5771_v6  ;;  %v5773_v34 = vcombine.low %v7023_v52, %v7024_v54 }
 0x19d   : > { %v8493_v58 = vadd.f32 %v2915_v38, %v2742_v29  ;;  %v2747_v47 = vadd.f32 %v6480_v31, %v8313_v44  ;;  %6770 = vmatprep.mubr.bf16.mxu0 %v9002_v39  ;;  %v2944_v19 = vpop.f32.mrf.mxu1  ;;  %v9003_v29 = vld [vmem:[#allocation31_spill] sm:$0xff] }
 0x19e   : > { %v2666_v48 = vpop.f32.mrf.mxu0  ;;  %v7025_v39 = vld [vmem:[%s7164_s21 + $0x78] sm:$0xf] }
 0x19f   : > { %v8497_v37 = vadd.f32 %v6528_v21, %v2747_v47  ;;  %v2745_v46 = vadd.f32 %v2666_v48, %v8319_v41  ;;  %v6533_v36 = vpop.f32.mrf.mxu1  ;;  %v7026_v48 = vld [vmem:[%s7164_s21 + $0x7c] sm:$0xf] }
 0x1a0   : > { %v6481_v14 = vpop.f32.mrf.mxu0 }
 0x1a1   : > { %v8504_v38 = vadd.f32 %v2928_v4, %v2745_v46  ;;  %v2748_v44 = vadd.f32 %v6481_v14, %v8327_v35  ;;  %v2947_v50 = vpop.f32.mrf.mxu1  ;;  %v5774_v46 = vcombine.low %v7025_v39, %v7026_v48 }
 0x1a2   : > { %v2669_v55 = vpop.f32.mrf.mxu0 }
 0x1a3   : > { %v8507_v6 = vadd.f32 %v6529_v56, %v2748_v44  ;;  %v2746_v21 = vadd.f32 %v2669_v55, %v8332_v45  ;;  %v6536_v41 = vpop.f32.mrf.mxu1  ;;  %6823 = vmatmul.mubr.bf16.gmra.mxu1 %v5772_v32  ;;  %v1855_v56 = vrot.slane %v8350_v12, 5  ;;  %v1858_v12 = vrot.slane %v8371_v3, 5 }
 0x1a4   : > { %v6484_v49 = vpop.f32.mrf.mxu0  ;;  %6771 = vmatmul.mubr.bf16.gmra.mxu0 %v7988_v33  ;;  %6826 = vmatprep.mubr.bf16.mxu1 %v5773_v34  ;;  %v9004_v34 = vld [vmem:[#allocation32_spill] sm:$0xff] }
 0x1a5   : > { %v8511_v22 = vadd.f32 %v2931_v61, %v2746_v21  ;;  %v2751_v4 = vadd.f32 %v6484_v49, %v8361_v23  ;;  %6774 = vmatprep.mubr.bf16.mxu0 %v9003_v29  ;;  %v2960_v35 = vpop.f32.mrf.mxu1  ;;  %v5504_v61 = vrot.slane %v8352_v62, 9  ;;  %v1857_v32 = vrot.slane %v1855_v56, 4 }
 0x1a6   : > { %v2682_v31 = vpop.f32.mrf.mxu0 }
 0x1a7   : > { %v8516_v8 = vadd.f32 %v6532_v63, %v2751_v4  ;;  %v2749_v45 = vadd.f32 %v2682_v31, %v8367_v5  ;;  %v6537_v47 = vpop.f32.mrf.mxu1  ;;  %v1856_v55 = vsel %vm7825_vm14, %v5504_v61, %v1855_v56  ;;  %v1859_v3 = vsel %vm7825_vm14, %v1857_v32, %v1858_v12 }
 0x1a8   : > { %v6485_v33 = vpop.f32.mrf.mxu0 }
 0x1a9   : > { %v8522_v7 = vadd.f32 %v2944_v19, %v2749_v45  ;;  %v2752_v23 = vadd.f32 %v6485_v33, %v8369_v59  ;;  %v2963_v16 = vpop.f32.mrf.mxu1  ;;  %v9005_v19 = vld [vmem:[#allocation16_spill] sm:$0xff] }
 0x1aa   : > { %v2685_v14 = vpop.f32.mrf.mxu0 }
 0x1ab   : > { %v8526_v63 = vadd.f32 %v6533_v36, %v2752_v23  ;;  %v2750_v5 = vadd.f32 %v2685_v14, %v8373_v30  ;;  %v6540_v52 = vpop.f32.mrf.mxu1  ;;  %6827 = vmatmul.mubr.bf16.gmra.mxu1 %v5774_v46 }
 0x1ac   : > { %v6488_v54 = vpop.f32.mrf.mxu0  ;;  %6775 = vmatmul.mubr.bf16.gmra.mxu0 %v9004_v34 }
 0x1ad   : > { %v8530_v44 = vadd.f32 %v2947_v50, %v2750_v5  ;;  %v2755_v62 = vadd.f32 %v6488_v54, %v8380_v28  ;;  %6778 = vmatprep.mubr.bf16.mxu0 %v9005_v19  ;;  %v2976_v36 = vpop.f32.mrf.mxu1  ;;  %v5750_v50 = vcombine.low %v1856_v55, %v1859_v3 }
 0x1ae   : > { %v2698_v21 = vpop.f32.mrf.mxu0 }
 0x1af   : > { %v8538_v30 = vadd.f32 %v6536_v41, %v2755_v62  ;;  %v2753_v49 = vadd.f32 %v2698_v21, %v8383_v13  ;;  %v6541_v4 = vpop.f32.mrf.mxu1 }
 0x1b0   : > { %v6489_v29 = vpop.f32.mrf.mxu0 }
 0x1b1   : > { %v8541_v31 = vadd.f32 %v2960_v35, %v2753_v49  ;;  %v2756_v28 = vadd.f32 %v6489_v29, %v8392_v0  ;;  %v2979_v45 = vpop.f32.mrf.mxu1 }
 0x1b2   : > { %v2701_v39 = vpop.f32.mrf.mxu0 }
 0x1b3   : > { %v8544_v48 = vadd.f32 %v6537_v47, %v2756_v28  ;;  %v2754_v56 = vadd.f32 %v2701_v39, %v8394_v20  ;;  %v6608_v46 = vpop.f32.mrf.mxu1 }
 0x1b4   : > { %v6492_v33 = vpop.f32.mrf.mxu0  ;;  %6779 = vmatmul.mubr.bf16.gmra.mxu0 %v5750_v50 }
 0x1b5   : > { %v8547_v41 = vadd.f32 %v2963_v16, %v2754_v56  ;;  %v2759_v13 = vadd.f32 %v6492_v33, %v8406_v2  ;;  %v3388_v61 = vpop.f32.mrf.mxu1 }
 0x1b6   : > { %v2714_v23 = vpop.f32.mrf.mxu0 }
 0x1b7   : > { %v8550_v32 = vadd.f32 %v6540_v52, %v2759_v13  ;;  %v2757_v35 = vadd.f32 %v2714_v23, %v8409_v53  ;;  %v6609_v0 = vpop.f32.mrf.mxu1 }
 0x1b8   : > { %v6493_v12 = vpop.f32.mrf.mxu0 }
 0x1b9   : > { %v8553_v14 = vadd.f32 %v2976_v36, %v2757_v35  ;;  %v2760_v47 = vadd.f32 %v6493_v12, %v8415_v25  ;;  %v3391_v20 = vpop.f32.mrf.mxu1 }
 0x1ba   : > { %v2717_v5 = vpop.f32.mrf.mxu0 }
 0x1bb   : > { %v8556_v54 = vadd.f32 %v6541_v4, %v2760_v47  ;;  %v2758_v16 = vadd.f32 %v2717_v5, %v8417_v43  ;;  %v6612_v34 = vpop.f32.mrf.mxu1 }
 0x1bc   : > { %v6560_v2 = vpop.f32.mrf.mxu0 }
 0x1bd   : > { %v8559_v62 = vadd.f32 %v2979_v45, %v2758_v16  ;;  %v3255_v52 = vadd.f32 %v6560_v2, %v8422_v11  ;;  %v3404_v19 = vpop.f32.mrf.mxu1 }
 0x1be   : > { %v3126_v53 = vpop.f32.mrf.mxu0 }
 0x1bf   : > { %v8562_v59 = vadd.f32 %v6608_v46, %v3255_v52  ;;  %v3253_v55 = vadd.f32 %v3126_v53, %v8431_v10  ;;  %v6613_v3 = vpop.f32.mrf.mxu1 }
 0x1c0   : > { %v6561_v25 = vpop.f32.mrf.mxu0 }
 0x1c1   : > { %v8565_v36 = vadd.f32 %v3388_v61, %v3253_v55  ;;  %v3256_v21 = vadd.f32 %v6561_v25, %v8434_v15  ;;  %v3407_v49 = vpop.f32.mrf.mxu1 }
 0x1c2   : > { %v3129_v43 = vpop.f32.mrf.mxu0 }
 0x1c3   : > { %v8568_v4 = vadd.f32 %v6609_v0, %v3256_v21  ;;  %v3254_v29 = vadd.f32 %v3129_v43, %v8437_v51  ;;  %v6616_v50 = vpop.f32.mrf.mxu1 }
 0x1c4   : > { %v6564_v11 = vpop.f32.mrf.mxu0 }
 0x1c5   : > { %v8571_v28 = vadd.f32 %v3391_v20, %v3254_v29  ;;  %v3259_v45 = vadd.f32 %v6564_v11, %v8441_v60  ;;  %v3420_v39 = vpop.f32.mrf.mxu1 }
 0x1c6   : > { %v3142_v10 = vpop.f32.mrf.mxu0 }
 0x1c7   : > { %v8574_v56 = vadd.f32 %v6612_v34, %v3259_v45  ;;  %v3257_v46 = vadd.f32 %v3142_v10, %v8450_v1  ;;  %v6617_v33 = vpop.f32.mrf.mxu1 }
 0x1c8   : > { %v6565_v15 = vpop.f32.mrf.mxu0 }
 0x1c9   : > { %v8577_v13 = vadd.f32 %v3404_v19, %v3257_v46  ;;  %v3260_v61 = vadd.f32 %v6565_v15, %v8453_v17  ;;  %v3423_v23 = vpop.f32.mrf.mxu1 }
 0x1ca   : > { %v3145_v51 = vpop.f32.mrf.mxu0 }
 0x1cb   : > { %v8580_v35 = vadd.f32 %v6613_v3, %v3260_v61  ;;  %v3258_v0 = vadd.f32 %v3145_v51, %v8456_v18  ;;  %v6620_v12 = vpop.f32.mrf.mxu1 }
 0x1cc   : > { %v6568_v60 = vpop.f32.mrf.mxu0 }
 0x1cd   : > { %v8583_v47 = vadd.f32 %v3407_v49, %v3258_v0  ;;  %v3263_v20 = vadd.f32 %v6568_v60, %v8460_v40  ;;  %v3436_v5 = vpop.f32.mrf.mxu1 }
 0x1ce   : > { %v3158_v1 = vpop.f32.mrf.mxu0 }
 0x1cf   : > { %v8586_v16 = vadd.f32 %v6616_v50, %v3263_v20  ;;  %v3261_v34 = vadd.f32 %v3158_v1, %v8469_v27  ;;  %v6621_v2 = vpop.f32.mrf.mxu1 }
 0x1d0   : > { %v6569_v17 = vpop.f32.mrf.mxu0 }
 0x1d1   : > { %v8589_v52 = vadd.f32 %v3420_v39, %v3261_v34  ;;  %v3264_v19 = vadd.f32 %v6569_v17, %v8472_v26  ;;  %v3439_v53 = vpop.f32.mrf.mxu1 }
 0x1d2   : > { %v3161_v18 = vpop.f32.mrf.mxu0 }
 0x1d3   : > { %v8592_v55 = vadd.f32 %v6617_v33, %v3264_v19  ;;  %v3262_v3 = vadd.f32 %v3161_v18, %v8475_v57  ;;  %v6624_v25 = vpop.f32.mrf.mxu1 }
 0x1d4   : > { %v6572_v40 = vpop.f32.mrf.mxu0 }
 0x1d5   : > { %v8595_v21 = vadd.f32 %v3423_v23, %v3262_v3  ;;  %v3267_v49 = vadd.f32 %v6572_v40, %v8479_v9  ;;  %v3452_v43 = vpop.f32.mrf.mxu1 }
 0x1d6   : > { %v3174_v27 = vpop.f32.mrf.mxu0 }
 0x1d7   : > { %v8598_v29 = vadd.f32 %v6620_v12, %v3267_v49  ;;  %v3265_v50 = vadd.f32 %v3174_v27, %v8486_v24  ;;  %v6625_v11 = vpop.f32.mrf.mxu1 }
 0x1d8   : > { %v6573_v26 = vpop.f32.mrf.mxu0 }
 0x1d9   : > { %v8601_v45 = vadd.f32 %v3436_v5, %v3265_v50  ;;  %v3268_v39 = vadd.f32 %v6573_v26, %v8489_v42  ;;  %v3455_v10 = vpop.f32.mrf.mxu1 }
 0x1da   : > { %v3177_v57 = vpop.f32.mrf.mxu0 }
 0x1db   : > { %v8604_v46 = vadd.f32 %v6621_v2, %v3268_v39  ;;  %v3266_v33 = vadd.f32 %v3177_v57, %v8493_v58  ;;  %v6628_v15 = vpop.f32.mrf.mxu1 }
 0x1dc   : > { %v6576_v9 = vpop.f32.mrf.mxu0 }
 0x1dd   : > { %v8607_v61 = vadd.f32 %v3439_v53, %v3266_v33  ;;  %v3271_v23 = vadd.f32 %v6576_v9, %v8497_v37  ;;  %v3468_v51 = vpop.f32.mrf.mxu1 }
 0x1de   : > { %v3190_v24 = vpop.f32.mrf.mxu0 }
 0x1df   : > { %v8610_v0 = vadd.f32 %v6624_v25, %v3271_v23  ;;  %v3269_v12 = vadd.f32 %v3190_v24, %v8504_v38  ;;  %v6629_v60 = vpop.f32.mrf.mxu1 }
 0x1e0   : > { %v6577_v42 = vpop.f32.mrf.mxu0 }
 0x1e1   : > { %v8613_v20 = vadd.f32 %v3452_v43, %v3269_v12  ;;  %v3272_v5 = vadd.f32 %v6577_v42, %v8507_v6  ;;  %v3471_v1 = vpop.f32.mrf.mxu1 }
 0x1e2   : > { %v3193_v58 = vpop.f32.mrf.mxu0 }
 0x1e3   : > { %v8616_v34 = vadd.f32 %v6625_v11, %v3272_v5  ;;  %v3270_v2 = vadd.f32 %v3193_v58, %v8511_v22  ;;  %v6632_v17 = vpop.f32.mrf.mxu1 }
 0x1e4   : > { %v6580_v37 = vpop.f32.mrf.mxu0 }
 0x1e5   : > { %v8619_v19 = vadd.f32 %v3455_v10, %v3270_v2  ;;  %v3275_v53 = vadd.f32 %v6580_v37, %v8516_v8  ;;  %v3484_v18 = vpop.f32.mrf.mxu1 }
 0x1e6   : > { %v3206_v38 = vpop.f32.mrf.mxu0 }
 0x1e7   : > { %v8622_v3 = vadd.f32 %v6628_v15, %v3275_v53  ;;  %v3273_v25 = vadd.f32 %v3206_v38, %v8522_v7  ;;  %v6633_v40 = vpop.f32.mrf.mxu1 }
 0x1e8   : > { %v6581_v6 = vpop.f32.mrf.mxu0 }
 0x1e9   : > { %v8625_v49 = vadd.f32 %v3468_v51, %v3273_v25  ;;  %v3276_v43 = vadd.f32 %v6581_v6, %v8526_v63  ;;  %v3487_v27 = vpop.f32.mrf.mxu1 }
 0x1ea   : > { %v3209_v22 = vpop.f32.mrf.mxu0 }
 0x1eb   : > { %v8628_v50 = vadd.f32 %v6629_v60, %v3276_v43  ;;  %v3274_v11 = vadd.f32 %v3209_v22, %v8530_v44  ;;  %v6636_v26 = vpop.f32.mrf.mxu1 }
 0x1ec   : > { %v6584_v8 = vpop.f32.mrf.mxu0 }
 0x1ed   : > { %v8631_v39 = vadd.f32 %v3471_v1, %v3274_v11  ;;  %v3279_v10 = vadd.f32 %v6584_v8, %v8538_v30  ;;  %v3500_v57 = vpop.f32.mrf.mxu1 }
 0x1ee   : > { %v3222_v7 = vpop.f32.mrf.mxu0 }
 0x1ef   : > { %v8634_v33 = vadd.f32 %v6632_v17, %v3279_v10  ;;  %v3277_v15 = vadd.f32 %v3222_v7, %v8541_v31  ;;  %v6637_v9 = vpop.f32.mrf.mxu1 }
 0x1f0   : > { %v6585_v63 = vpop.f32.mrf.mxu0 }
 0x1f1   : > { %v8637_v23 = vadd.f32 %v3484_v18, %v3277_v15  ;;  %v3280_v51 = vadd.f32 %v6585_v63, %v8544_v48  ;;  %v3503_v24 = vpop.f32.mrf.mxu1 }
 0x1f2   : > { %v3225_v44 = vpop.f32.mrf.mxu0 }
 0x1f3   : > { %v8640_v12 = vadd.f32 %v6633_v40, %v3280_v51  ;;  %v3278_v60 = vadd.f32 %v3225_v44, %v8547_v41  ;;  %v6704_v42 = vpop.f32.mrf.mxu1 }
 0x1f4   : > { %v6588_v30 = vpop.f32.mrf.mxu0 }
 0x1f5   : > { %v8643_v5 = vadd.f32 %v3487_v27, %v3278_v60  ;;  %v3283_v1 = vadd.f32 %v6588_v30, %v8550_v32  ;;  %v3912_v58 = vpop.f32.mrf.mxu1 }
 0x1f6   : > { %v3238_v31 = vpop.f32.mrf.mxu0 }
 0x1f7   : > { %v8646_v2 = vadd.f32 %v6636_v26, %v3283_v1  ;;  %v3281_v17 = vadd.f32 %v3238_v31, %v8553_v14  ;;  %v6705_v37 = vpop.f32.mrf.mxu1 }
 0x1f8   : > { %v6589_v48 = vpop.f32.mrf.mxu0 }
 0x1f9   : > { %v8649_v53 = vadd.f32 %v3500_v57, %v3281_v17  ;;  %v3284_v18 = vadd.f32 %v6589_v48, %v8556_v54  ;;  %v3915_v38 = vpop.f32.mrf.mxu1 }
 0x1fa   : > { %v3241_v41 = vpop.f32.mrf.mxu0 }
 0x1fb   : > { %v8652_v25 = vadd.f32 %v6637_v9, %v3284_v18  ;;  %v3282_v40 = vadd.f32 %v3241_v41, %v8559_v62  ;;  %v6708_v6 = vpop.f32.mrf.mxu1 }
 0x1fc   : > { %v6656_v32 = vpop.f32.mrf.mxu0 }
 0x1fd   : > { %v8655_v43 = vadd.f32 %v3503_v24, %v3282_v40  ;;  %v3779_v27 = vadd.f32 %v6656_v32, %v8562_v59  ;;  %v3928_v22 = vpop.f32.mrf.mxu1 }
 0x1fe   : > { %v3650_v14 = vpop.f32.mrf.mxu0 }
 0x1ff   : > { %v8658_v11 = vadd.f32 %v6704_v42, %v3779_v27  ;;  %v3777_v26 = vadd.f32 %v3650_v14, %v8565_v36  ;;  %v6709_v8 = vpop.f32.mrf.mxu1 }
 0x200   : > { %v6657_v54 = vpop.f32.mrf.mxu0 }
 0x201   : > { %v8661_v10 = vadd.f32 %v3912_v58, %v3777_v26  ;;  %v3780_v57 = vadd.f32 %v6657_v54, %v8568_v4  ;;  %v3931_v7 = vpop.f32.mrf.mxu1 }
 0x202   : > { %v3653_v62 = vpop.f32.mrf.mxu0 }
 0x203   : > { %v8664_v15 = vadd.f32 %v6705_v37, %v3780_v57  ;;  %v3778_v9 = vadd.f32 %v3653_v62, %v8571_v28  ;;  %v6712_v63 = vpop.f32.mrf.mxu1 }
 0x204   : > { %v6660_v59 = vpop.f32.mrf.mxu0 }
 0x205   : > { %v8667_v51 = vadd.f32 %v3915_v38, %v3778_v9  ;;  %v3783_v24 = vadd.f32 %v6660_v59, %v8574_v56  ;;  %v3944_v44 = vpop.f32.mrf.mxu1 }
 0x206   : > { %v3666_v36 = vpop.f32.mrf.mxu0 }
 0x207   : > { %v8670_v60 = vadd.f32 %v6708_v6, %v3783_v24  ;;  %v3781_v42 = vadd.f32 %v3666_v36, %v8577_v13  ;;  %v6713_v30 = vpop.f32.mrf.mxu1 }
 0x208   : > { %v6661_v4 = vpop.f32.mrf.mxu0 }
 0x209   : > { %v8673_v1 = vadd.f32 %v3928_v22, %v3781_v42  ;;  %v3784_v58 = vadd.f32 %v6661_v4, %v8580_v35  ;;  %v3947_v31 = vpop.f32.mrf.mxu1 }
 0x20a   : > { %v3669_v28 = vpop.f32.mrf.mxu0 }
 0x20b   : > { %v8676_v17 = vadd.f32 %v6709_v8, %v3784_v58  ;;  %v3782_v37 = vadd.f32 %v3669_v28, %v8583_v47  ;;  %v6716_v48 = vpop.f32.mrf.mxu1 }
 0x20c   : > { %v6664_v56 = vpop.f32.mrf.mxu0 }
 0x20d   : > { %v8679_v18 = vadd.f32 %v3931_v7, %v3782_v37  ;;  %v3787_v38 = vadd.f32 %v6664_v56, %v8586_v16  ;;  %v3960_v41 = vpop.f32.mrf.mxu1 }
 0x20e   : > { %v3682_v13 = vpop.f32.mrf.mxu0 }
 0x20f   : > { %v8682_v40 = vadd.f32 %v6712_v63, %v3787_v38  ;;  %v3785_v6 = vadd.f32 %v3682_v13, %v8589_v52  ;;  %v6717_v32 = vpop.f32.mrf.mxu1 }
 0x210   : > { %v6665_v35 = vpop.f32.mrf.mxu0 }
 0x211   : > { %v8685_v27 = vadd.f32 %v3944_v44, %v3785_v6  ;;  %v3788_v22 = vadd.f32 %v6665_v35, %v8592_v55  ;;  %v3963_v14 = vpop.f32.mrf.mxu1 }
 0x212   : > { %v3685_v47 = vpop.f32.mrf.mxu0 }
 0x213   : > { %v8688_v26 = vadd.f32 %v6713_v30, %v3788_v22  ;;  %v3786_v8 = vadd.f32 %v3685_v47, %v8595_v21  ;;  %v6720_v54 = vpop.f32.mrf.mxu1 }
 0x214   : > { %v6668_v16 = vpop.f32.mrf.mxu0 }
 0x215   : > { %v8691_v57 = vadd.f32 %v3947_v31, %v3786_v8  ;;  %v3791_v7 = vadd.f32 %v6668_v16, %v8598_v29  ;;  %v3976_v62 = vpop.f32.mrf.mxu1 }
 0x216   : > { %v3698_v52 = vpop.f32.mrf.mxu0 }
 0x217   : > { %v8694_v9 = vadd.f32 %v6716_v48, %v3791_v7  ;;  %v3789_v63 = vadd.f32 %v3698_v52, %v8601_v45  ;;  %v6721_v59 = vpop.f32.mrf.mxu1 }
 0x218   : > { %v6669_v55 = vpop.f32.mrf.mxu0 }
 0x219   : > { %v8697_v24 = vadd.f32 %v3960_v41, %v3789_v63  ;;  %v3792_v44 = vadd.f32 %v6669_v55, %v8604_v46  ;;  %v3979_v36 = vpop.f32.mrf.mxu1 }
 0x21a   : > { %v3701_v21 = vpop.f32.mrf.mxu0 }
 0x21b   : > { %v8700_v42 = vadd.f32 %v6717_v32, %v3792_v44  ;;  %v3790_v30 = vadd.f32 %v3701_v21, %v8607_v61  ;;  %v6724_v4 = vpop.f32.mrf.mxu1 }
 0x21c   : > { %v6672_v29 = vpop.f32.mrf.mxu0 }
 0x21d   : > { %v8703_v58 = vadd.f32 %v3963_v14, %v3790_v30  ;;  %v3795_v31 = vadd.f32 %v6672_v29, %v8610_v0  ;;  %v3992_v28 = vpop.f32.mrf.mxu1 }
 0x21e   : > { %v3714_v45 = vpop.f32.mrf.mxu0 }
 0x21f   : > { %v8706_v37 = vadd.f32 %v6720_v54, %v3795_v31  ;;  %v3793_v48 = vadd.f32 %v3714_v45, %v8613_v20  ;;  %v6725_v56 = vpop.f32.mrf.mxu1 }
 0x220   : > { %v6673_v46 = vpop.f32.mrf.mxu0 }
 0x221   : > { %v8709_v38 = vadd.f32 %v3976_v62, %v3793_v48  ;;  %v3796_v41 = vadd.f32 %v6673_v46, %v8616_v34  ;;  %v3995_v13 = vpop.f32.mrf.mxu1 }
 0x222   : > { %v3717_v61 = vpop.f32.mrf.mxu0 }
 0x223   : > { %v8712_v6 = vadd.f32 %v6721_v59, %v3796_v41  ;;  %v3794_v32 = vadd.f32 %v3717_v61, %v8619_v19  ;;  %v6728_v35 = vpop.f32.mrf.mxu1 }
 0x224   : > { %v6676_v0 = vpop.f32.mrf.mxu0 }
 0x225   : > { %v8715_v22 = vadd.f32 %v3979_v36, %v3794_v32  ;;  %v3799_v14 = vadd.f32 %v6676_v0, %v8622_v3  ;;  %v4008_v47 = vpop.f32.mrf.mxu1 }
 0x226   : > { %v3730_v20 = vpop.f32.mrf.mxu0 }
 0x227   : > { %v8718_v8 = vadd.f32 %v6724_v4, %v3799_v14  ;;  %v3797_v54 = vadd.f32 %v3730_v20, %v8625_v49  ;;  %v6729_v16 = vpop.f32.mrf.mxu1 }
 0x228   : > { %v6677_v34 = vpop.f32.mrf.mxu0 }
 0x229   : > { %v8721_v7 = vadd.f32 %v3992_v28, %v3797_v54  ;;  %v3800_v62 = vadd.f32 %v6677_v34, %v8628_v50  ;;  %v4011_v52 = vpop.f32.mrf.mxu1 }
 0x22a   : > { %v3733_v19 = vpop.f32.mrf.mxu0 }
 0x22b   : > { %v8724_v63 = vadd.f32 %v6725_v56, %v3800_v62  ;;  %v3798_v59 = vadd.f32 %v3733_v19, %v8631_v39  ;;  %v6732_v55 = vpop.f32.mrf.mxu1 }
 0x22c   : > { %v6680_v3 = vpop.f32.mrf.mxu0 }
 0x22d   : > { %v8727_v44 = vadd.f32 %v3995_v13, %v3798_v59  ;;  %v3803_v36 = vadd.f32 %v6680_v3, %v8634_v33  ;;  %v4024_v21 = vpop.f32.mrf.mxu1 }
 0x22e   : > { %v3746_v49 = vpop.f32.mrf.mxu0 }
 0x22f   : > { %v8730_v30 = vadd.f32 %v6728_v35, %v3803_v36  ;;  %v3801_v4 = vadd.f32 %v3746_v49, %v8637_v23  ;;  %v6733_v50 = vpop.f32.mrf.mxu1 }
 0x230   : > { %v6681_v29 = vpop.f32.mrf.mxu0 }
 0x231   : > { %v8733_v31 = vadd.f32 %v4008_v47, %v3801_v4  ;;  %v3804_v28 = vadd.f32 %v6681_v29, %v8640_v12  ;;  %v4027_v39 = vpop.f32.mrf.mxu1 }
 0x232   : > { %v3749_v45 = vpop.f32.mrf.mxu0 }
 0x233   : > { %v8736_v48 = vadd.f32 %v6729_v16, %v3804_v28  ;;  %v3802_v56 = vadd.f32 %v3749_v45, %v8643_v5  ;;  %v6800_v33 = vpop.f32.mrf.mxu1 }
 0x234   : > { %v6684_v46 = vpop.f32.mrf.mxu0 }
 0x235   : > { %v8739_v41 = vadd.f32 %v4011_v52, %v3802_v56  ;;  %v3807_v13 = vadd.f32 %v6684_v46, %v8646_v2  ;;  %v4527_v61 = vpop.f32.mrf.mxu1 }
 0x236   : > { %v3762_v23 = vpop.f32.mrf.mxu0  ;;  %v5122_v54 = vmul.f32 %v4527_v61, %v4527_v61 }
 0x237   : > { %v8748_v12 = vadd.f32 %v6732_v55, %v3807_v13  ;;  %v3805_v32 = vadd.f32 %v3762_v23, %v8649_v53  ;;  %v6801_v35 = vpop.f32.mrf.mxu1  ;;  %v5124_v55 = vmul.f32 %v6800_v33, %v6800_v33 }
 0x238   : > { %v6685_v5 = vpop.f32.mrf.mxu0  ;;  %v6007_v0 = vpack.c.bf16 %v6801_v35, %v6800_v33  ;;  %v5125_v4 = vmul.f32 %v6801_v35, %v6801_v35 }
 0x239   : > { %v8751_v14 = vadd.f32 %v4024_v21, %v3805_v32  ;;  %v3808_v2 = vadd.f32 %v6685_v5, %v8652_v25  ;;  %v4530_v47 = vpop.f32.mrf.mxu1 }
 0x23a   : > { %v3765_v20 = vpop.f32.mrf.mxu0  ;;  %6095 = vst [vmem:[%s8746_s23 + $0x8] sm:$0xff] %v6007_v0   ;;  %v6002_v16 = vpack.c.bf16 %v4530_v47, %v4527_v61  ;;  %v5085_v34 = vadd.f32 %v4530_v47, %v4527_v61  ;;  %v5123_v62 = vmul.f32 %v4530_v47, %v4530_v47 }
 0x23b   : > { %v8755_v52 = vadd.f32 %v6733_v50, %v3808_v2  ;;  %v3806_v19 = vadd.f32 %v3765_v20, %v8655_v43  ;;  %v6804_v53 = vpop.f32.mrf.mxu1 }
 0x23c   : > { %v6752_v59 = vpop.f32.mrf.mxu0  ;;  %6003 = vst [vmem:[%s8746_s23] sm:$0xff] %v6002_v16   ;;  %v5086_v3 = vadd.f32 %v6800_v33, %v5085_v34  ;;  %v5154_v36 = vadd.f32 %v5123_v62, %v5122_v54  ;;  %v5128_v54 = vmul.f32 %v6804_v53, %v6804_v53 }
 0x23d   : > { %v8759_v21 = vadd.f32 %v4027_v39, %v3806_v19  ;;  %v4543_v25 = vpop.f32.mrf.mxu1  ;;  %v4303_v61 = vadd.f32 %v6752_v59, %v8658_v11 }
 0x23e   : > { %v4174_v49 = vpop.f32.mrf.mxu0  ;;  %v5155_v29 = vadd.f32 %v5154_v36, %v5124_v55  ;;  %v5087_v28 = vadd.f32 %v6801_v35, %v5086_v3  ;;  %v5126_v45 = vmul.f32 %v4543_v25, %v4543_v25 }
 0x23f   : > { %v6805_v50 = vpop.f32.mrf.mxu1  ;;  %v4301_v33 = vadd.f32 %v4174_v49, %v8661_v10 }
 0x240   : > { %v6753_v56 = vpop.f32.mrf.mxu0  ;;  %v5088_v46 = vadd.f32 %v5087_v28, %v4543_v25  ;;  %v5156_v43 = vadd.f32 %v5155_v29, %v5125_v4  ;;  %v6017_v13 = vpack.c.bf16 %v6805_v50, %v6804_v53  ;;  %v5129_v36 = vmul.f32 %v6805_v50, %v6805_v50 }
 0x241   : > { %v4304_v39 = vadd.f32 %v6753_v56, %v8664_v15  ;;  %v4546_v23 = vpop.f32.mrf.mxu1  ;;  %v5011_v34 = vmul.f32 %v4301_v33, %v4301_v33  ;;  %v5013_v29 = vmul.f32 %v4303_v61, %v4303_v61 }
 0x242   : > { %v4177_v32 = vpop.f32.mrf.mxu0  ;;  %v5157_v35 = vadd.f32 %v5156_v43, %v5126_v45  ;;  %6097 = vst [vmem:[%s8746_s23 + $0x18] sm:$0xff] %v6017_v13   ;;  %v6012_v5 = vpack.c.bf16 %v4546_v23, %v4543_v25  ;;  %v5089_v0 = vadd.f32 %v5088_v46, %v4546_v23  ;;  %v5127_v2 = vmul.f32 %v4546_v23, %v4546_v23 }
 0x243   : > { %v5927_v47 = vpack.c.bf16 %v4304_v39, %v4303_v61  ;;  %v4302_v11 = vadd.f32 %v4177_v32, %v8667_v51  ;;  %v6808_v20 = vpop.f32.mrf.mxu1  ;;  %v5014_v56 = vmul.f32 %v4304_v39, %v4304_v39 }
 0x244   : > { %v6756_v10 = vpop.f32.mrf.mxu0  ;;  %6096 = vst [vmem:[%s8746_s23 + $0x10] sm:$0xff] %v6012_v5   ;;  %v5090_v15 = vadd.f32 %v6804_v53, %v5089_v0  ;;  %v5158_v16 = vadd.f32 %v5157_v35, %v5127_v2 }
 0x245   : > { %6080 = vst [vmem:[%s8768_s9 + $0x8] sm:$0xff] %v5927_v47   ;;  %v5922_v62 = vpack.c.bf16 %v4302_v11, %v4301_v33  ;;  %v4974_v19 = vadd.f32 %v4302_v11, %v4301_v33  ;;  %v5012_v59 = vmul.f32 %v4302_v11, %v4302_v11  ;;  %v4559_v55 = vpop.f32.mrf.mxu1  ;;  %v4307_v32 = vadd.f32 %v6756_v10, %v8670_v60 }
 0x246   : > { %v4190_v3 = vpop.f32.mrf.mxu0  ;;  %v5159_v25 = vadd.f32 %v5158_v16, %v5128_v54  ;;  %v5091_v49 = vadd.f32 %v6805_v50, %v5090_v15  ;;  %v5130_v4 = vmul.f32 %v4559_v55, %v4559_v55 }
 0x247   : > { %5923 = vst [vmem:[%s8768_s9] sm:$0xff] %v5922_v62   ;;  %v4975_v51 = vadd.f32 %v4974_v19, %v4303_v61  ;;  %v5043_v28 = vadd.f32 %v5012_v59, %v5011_v34  ;;  %v4305_v45 = vadd.f32 %v4190_v3, %v8673_v1  ;;  %v6809_v53 = vpop.f32.mrf.mxu1 }
 0x248   : > { %v6757_v46 = vpop.f32.mrf.mxu0  ;;  %v5092_v43 = vadd.f32 %v5091_v49, %v4559_v55  ;;  %v5160_v13 = vadd.f32 %v5159_v25, %v5129_v36  ;;  %v6027_v33 = vpack.c.bf16 %v6809_v53, %v6808_v20  ;;  %v5133_v59 = vmul.f32 %v6809_v53, %v6809_v53 }
 0x249   : > { %v5044_v23 = vadd.f32 %v5043_v28, %v5013_v29  ;;  %v4976_v35 = vadd.f32 %v4975_v51, %v4304_v39  ;;  %v4308_v50 = vadd.f32 %v6757_v46, %v8676_v17  ;;  %v4562_v5 = vpop.f32.mrf.mxu1  ;;  %v5015_v54 = vmul.f32 %v4305_v45, %v4305_v45 }
 0x24a   : > { %v4193_v0 = vpop.f32.mrf.mxu0  ;;  %v5161_v61 = vadd.f32 %v5160_v13, %v5130_v4  ;;  %6099 = vst [vmem:[%s8746_s23 + $0x28] sm:$0xff] %v6027_v33   ;;  %v6022_v2 = vpack.c.bf16 %v4562_v5, %v4559_v55  ;;  %v5093_v1 = vadd.f32 %v5092_v43, %v4562_v5  ;;  %v5131_v47 = vmul.f32 %v4562_v5, %v4562_v5 }
 0x24b   : > { %v4977_v11 = vadd.f32 %v4976_v35, %v4305_v45  ;;  %v5045_v15 = vadd.f32 %v5044_v23, %v5014_v56  ;;  %v5937_v16 = vpack.c.bf16 %v4308_v50, %v4307_v32  ;;  %v6812_v34 = vpop.f32.mrf.mxu1  ;;  %v4306_v62 = vadd.f32 %v4193_v0, %v8679_v18 }
 0x24c   : > { %v6760_v60 = vpop.f32.mrf.mxu0  ;;  %v5132_v39 = vmul.f32 %v6808_v20, %v6808_v20  ;;  %6098 = vst [vmem:[%s8746_s23 + $0x20] sm:$0xff] %v6022_v2   ;;  %v5094_v17 = vadd.f32 %v6808_v20, %v5093_v1  ;;  %v5162_v10 = vadd.f32 %v5161_v61, %v5131_v47  ;;  %v5017_v29 = vmul.f32 %v4307_v32, %v4307_v32 }
 0x24d   : > { %v5046_v19 = vadd.f32 %v5045_v15, %v5015_v54  ;;  %6082 = vst [vmem:[%s8768_s9 + $0x18] sm:$0xff] %v5937_v16   ;;  %v4575_v3 = vpop.f32.mrf.mxu1  ;;  %v5932_v55 = vpack.c.bf16 %v4306_v62, %v4305_v45  ;;  %v4978_v36 = vadd.f32 %v4977_v11, %v4306_v62  ;;  %v5016_v25 = vmul.f32 %v4306_v62, %v4306_v62 }
 0x24e   : > { %v4206_v49 = vpop.f32.mrf.mxu0  ;;  %v5163_v4 = vadd.f32 %v5162_v10, %v5132_v39  ;;  %v5095_v28 = vadd.f32 %v6809_v53, %v5094_v17  ;;  %v5134_v18 = vmul.f32 %v4575_v3, %v4575_v3  ;;  %v5018_v23 = vmul.f32 %v4308_v50, %v4308_v50 }
 0x24f   : > { %v4309_v51 = vadd.f32 %v4206_v49, %v8685_v27  ;;  %v6813_v56 = vpop.f32.mrf.mxu1  ;;  %6081 = vst [vmem:[%s8768_s9 + $0x10] sm:$0xff] %v5932_v55   ;;  %v4979_v20 = vadd.f32 %v4978_v36, %v4307_v32  ;;  %v5047_v46 = vadd.f32 %v5046_v19, %v5016_v25  ;;  %v4311_v45 = vadd.f32 %v6760_v60, %v8682_v40 }
 0x250   : > { %v6761_v43 = vpop.f32.mrf.mxu0  ;;  %v5164_v13 = vadd.f32 %v5163_v4, %v5133_v59  ;;  %v6037_v33 = vpack.c.bf16 %v6813_v56, %v6812_v34  ;;  %v5096_v5 = vadd.f32 %v5095_v28, %v4575_v3  ;;  %v5137_v25 = vmul.f32 %v6813_v56, %v6813_v56 }
 0x251   : > { %v4312_v35 = vadd.f32 %v6761_v43, %v8688_v26  ;;  %v4578_v0 = vpop.f32.mrf.mxu1  ;;  %v5048_v61 = vadd.f32 %v5047_v46, %v5017_v29  ;;  %v4980_v27 = vadd.f32 %v4979_v20, %v4308_v50  ;;  %v5019_v16 = vmul.f32 %v4309_v51, %v4309_v51 }
 0x252   : > { %v4209_v53 = vpop.f32.mrf.mxu0  ;;  %v5165_v2 = vadd.f32 %v5164_v13, %v5134_v18  ;;  %6101 = vst [vmem:[%s8746_s23 + $0x38] sm:$0xff] %v6037_v33   ;;  %v6032_v1 = vpack.c.bf16 %v4578_v0, %v4575_v3  ;;  %v5097_v11 = vadd.f32 %v5096_v5, %v4578_v0  ;;  %v5135_v62 = vmul.f32 %v4578_v0, %v4578_v0 }
 0x253   : > { %v5947_v32 = vpack.c.bf16 %v4312_v35, %v4311_v45  ;;  %v4310_v47 = vadd.f32 %v4209_v53, %v8691_v57  ;;  %v6816_v54 = vpop.f32.mrf.mxu1  ;;  %v4981_v15 = vadd.f32 %v4980_v27, %v4309_v51  ;;  %v5049_v40 = vadd.f32 %v5048_v61, %v5018_v23 }
 0x254   : > { %v6764_v26 = vpop.f32.mrf.mxu0  ;;  %6100 = vst [vmem:[%s8746_s23 + $0x30] sm:$0xff] %v6032_v1   ;;  %v5136_v50 = vmul.f32 %v6812_v34, %v6812_v34  ;;  %v5098_v17 = vadd.f32 %v6812_v34, %v5097_v11  ;;  %v5021_v19 = vmul.f32 %v4311_v45, %v4311_v45  ;;  %v5166_v57 = vadd.f32 %v5165_v2, %v5135_v62 }
 0x255   : > { %6084 = vst [vmem:[%s8768_s9 + $0x28] sm:$0xff] %v5947_v32   ;;  %v5942_v60 = vpack.c.bf16 %v4310_v47, %v4309_v51  ;;  %v5020_v39 = vmul.f32 %v4310_v47, %v4310_v47  ;;  %v4591_v10 = vpop.f32.mrf.mxu1  ;;  %v5050_v59 = vadd.f32 %v5049_v40, %v5019_v16  ;;  %v4982_v3 = vadd.f32 %v4981_v15, %v4310_v47 }
 0x256   : > { %v4222_v55 = vpop.f32.mrf.mxu0  ;;  %v5099_v49 = vadd.f32 %v6813_v56, %v5098_v17  ;;  %v5138_v4 = vmul.f32 %v4591_v10, %v4591_v10  ;;  %v5167_v20 = vadd.f32 %v5166_v57, %v5136_v50  ;;  %v5022_v34 = vmul.f32 %v4312_v35, %v4312_v35 }
 0x257   : > { %6083 = vst [vmem:[%s8768_s9 + $0x20] sm:$0xff] %v5942_v60   ;;  %v4313_v36 = vadd.f32 %v4222_v55, %v8697_v24  ;;  %v6817_v29 = vpop.f32.mrf.mxu1  ;;  %v4983_v28 = vadd.f32 %v4982_v3, %v4311_v45  ;;  %v5051_v18 = vadd.f32 %v5050_v59, %v5020_v39  ;;  %v4315_v43 = vadd.f32 %v6764_v26, %v8694_v9 }
 0x258   : > { %v6765_v51 = vpop.f32.mrf.mxu0  ;;  %v6047_v46 = vpack.c.bf16 %v6817_v29, %v6816_v54  ;;  %v5100_v33 = vadd.f32 %v5099_v49, %v4591_v10  ;;  %v5168_v0 = vadd.f32 %v5167_v20, %v5137_v25  ;;  %v5140_v16 = vmul.f32 %v6816_v54, %v6816_v54 }
 0x259   : > { %v4316_v13 = vadd.f32 %v6765_v51, %v8700_v42  ;;  %v4594_v23 = vpop.f32.mrf.mxu1  ;;  %v5052_v5 = vadd.f32 %v5051_v18, %v5021_v19  ;;  %v4984_v24 = vadd.f32 %v4983_v28, %v4312_v35  ;;  %v5023_v45 = vmul.f32 %v4313_v36, %v4313_v36 }
 0x25a   : > { %v4225_v56 = vpop.f32.mrf.mxu0  ;;  %6103 = vst [vmem:[%s8746_s23 + $0x48] sm:$0xff] %v6047_v46   ;;  %v6042_v61 = vpack.c.bf16 %v4594_v23, %v4591_v10  ;;  %v5101_v2 = vadd.f32 %v5100_v33, %v4594_v23  ;;  %v5169_v47 = vadd.f32 %v5168_v0, %v5138_v4  ;;  %v5139_v11 = vmul.f32 %v4594_v23, %v4594_v23 }
 0x25b   : > { %v5957_v27 = vpack.c.bf16 %v4316_v13, %v4315_v43  ;;  %v4314_v53 = vadd.f32 %v4225_v56, %v8703_v58  ;;  %v6820_v1 = vpop.f32.mrf.mxu1  ;;  %v4985_v32 = vadd.f32 %v4984_v24, %v4313_v36  ;;  %v5053_v9 = vadd.f32 %v5052_v5, %v5022_v34 }
 0x25c   : > { %v6768_v42 = vpop.f32.mrf.mxu0  ;;  %6102 = vst [vmem:[%s8746_s23 + $0x40] sm:$0xff] %v6042_v61   ;;  %v5102_v40 = vadd.f32 %v6816_v54, %v5101_v2  ;;  %v5025_v62 = vmul.f32 %v4315_v43, %v4315_v43  ;;  %v5170_v58 = vadd.f32 %v5169_v47, %v5139_v11  ;;  %v5141_v10 = vmul.f32 %v6817_v29, %v6817_v29 }
 0x25d   : > { %6086 = vst [vmem:[%s8768_s9 + $0x38] sm:$0xff] %v5957_v27   ;;  %v5952_v35 = vpack.c.bf16 %v4314_v53, %v4313_v36  ;;  %v5024_v15 = vmul.f32 %v4314_v53, %v4314_v53  ;;  %v4607_v26 = vpop.f32.mrf.mxu1  ;;  %v5054_v60 = vadd.f32 %v5053_v9, %v5023_v45  ;;  %v4986_v39 = vadd.f32 %v4985_v32, %v4314_v53 }
 0x25e   : > { %v4238_v50 = vpop.f32.mrf.mxu0  ;;  %v5103_v19 = vadd.f32 %v6817_v29, %v5102_v40  ;;  %v5142_v59 = vmul.f32 %v4607_v26, %v4607_v26  ;;  %v5171_v25 = vadd.f32 %v5170_v58, %v5140_v16  ;;  %v5026_v54 = vmul.f32 %v4316_v13, %v4316_v13 }
 0x25f   : > { %6085 = vst [vmem:[%s8768_s9 + $0x30] sm:$0xff] %v5952_v35   ;;  %v4317_v17 = vadd.f32 %v4238_v50, %v8709_v38  ;;  %v6821_v3 = vpop.f32.mrf.mxu1  ;;  %v4987_v55 = vadd.f32 %v4986_v39, %v4315_v43  ;;  %v5055_v57 = vadd.f32 %v5054_v60, %v5024_v15  ;;  %v4319_v4 = vadd.f32 %v6768_v42, %v8706_v37 }
 0x260   : > { %v6769_v36 = vpop.f32.mrf.mxu0  ;;  %v6057_v49 = vpack.c.bf16 %v6821_v3, %v6820_v1  ;;  %v5104_v18 = vadd.f32 %v5103_v19, %v4607_v26  ;;  %v5172_v46 = vadd.f32 %v5171_v25, %v5141_v10  ;;  %v5144_v27 = vmul.f32 %v6820_v1, %v6820_v1 }
 0x261   : > { %v4320_v28 = vadd.f32 %v6769_v36, %v8712_v6  ;;  %v4610_v51 = vpop.f32.mrf.mxu1  ;;  %v5056_v20 = vadd.f32 %v5055_v57, %v5025_v62  ;;  %v4988_v38 = vadd.f32 %v4987_v55, %v4316_v13  ;;  %v5027_v43 = vmul.f32 %v4317_v17, %v4317_v17 }
 0x262   : > { %v4241_v29 = vpop.f32.mrf.mxu0  ;;  %6105 = vst [vmem:[%s8746_s23 + $0x58] sm:$0xff] %v6057_v49   ;;  %v6052_v34 = vpack.c.bf16 %v4610_v51, %v4607_v26  ;;  %v5105_v5 = vadd.f32 %v5104_v18, %v4610_v51  ;;  %v5173_v0 = vadd.f32 %v5172_v46, %v5142_v59  ;;  %v5143_v61 = vmul.f32 %v4610_v51, %v4610_v51 }
 0x263   : > { %v5967_v33 = vpack.c.bf16 %v4320_v28, %v4319_v4  ;;  %v4318_v23 = vadd.f32 %v4241_v29, %v8715_v22  ;;  %v6824_v24 = vpop.f32.mrf.mxu1  ;;  %v4989_v56 = vadd.f32 %v4988_v38, %v4317_v17  ;;  %v5057_v37 = vadd.f32 %v5056_v20, %v5026_v54 }
 0x264   : > { %v6772_v6 = vpop.f32.mrf.mxu0  ;;  %6104 = vst [vmem:[%s8746_s23 + $0x50] sm:$0xff] %v6052_v34   ;;  %v5106_v53 = vadd.f32 %v6820_v1, %v5105_v5  ;;  %v5029_v32 = vmul.f32 %v4319_v4, %v4319_v4  ;;  %v5174_v22 = vadd.f32 %v5173_v0, %v5143_v61  ;;  %v5145_v35 = vmul.f32 %v6821_v3, %v6821_v3 }
 0x265   : > { %6088 = vst [vmem:[%s8768_s9 + $0x48] sm:$0xff] %v5967_v33   ;;  %v5962_v13 = vpack.c.bf16 %v4318_v23, %v4317_v17  ;;  %v5028_v45 = vmul.f32 %v4318_v23, %v4318_v23  ;;  %v4623_v2 = vpop.f32.mrf.mxu1  ;;  %v5058_v9 = vadd.f32 %v5057_v37, %v5027_v43  ;;  %v4990_v42 = vadd.f32 %v4989_v56, %v4318_v23 }
 0x266   : > { %v4254_v47 = vpop.f32.mrf.mxu0  ;;  %v5107_v15 = vadd.f32 %v6821_v3, %v5106_v53  ;;  %v5146_v16 = vmul.f32 %v4623_v2, %v4623_v2  ;;  %v5175_v39 = vadd.f32 %v5174_v22, %v5144_v27  ;;  %v5030_v1 = vmul.f32 %v4320_v28, %v4320_v28 }
 0x267   : > { %6087 = vst [vmem:[%s8768_s9 + $0x40] sm:$0xff] %v5962_v13   ;;  %v4321_v11 = vadd.f32 %v4254_v47, %v8721_v7  ;;  %v6825_v40 = vpop.f32.mrf.mxu1  ;;  %v4991_v26 = vadd.f32 %v4990_v42, %v4319_v4  ;;  %v5059_v62 = vadd.f32 %v5058_v9, %v5028_v45  ;;  %v4323_v58 = vadd.f32 %v6772_v6, %v8718_v8 }
 0x268   : > { %v6773_v60 = vpop.f32.mrf.mxu0  ;;  %v6067_v50 = vpack.c.bf16 %v6825_v40, %v6824_v24  ;;  %v5108_v10 = vadd.f32 %v5107_v15, %v4623_v2  ;;  %v5176_v55 = vadd.f32 %v5175_v39, %v5145_v35  ;;  %v5148_v29 = vmul.f32 %v6824_v24, %v6824_v24 }
 0x269   : > { %v4324_v17 = vadd.f32 %v6773_v60, %v8724_v63  ;;  %v4626_v19 = vpop.f32.mrf.mxu1  ;;  %v5060_v59 = vadd.f32 %v5059_v62, %v5029_v32  ;;  %v4992_v7 = vadd.f32 %v4991_v26, %v4320_v28  ;;  %v5031_v36 = vmul.f32 %v4321_v11, %v4321_v11 }
 0x26a   : > { %v4257_v3 = vpop.f32.mrf.mxu0  ;;  %6107 = vst [vmem:[%s8746_s23 + $0x68] sm:$0xff] %v6067_v50   ;;  %v6062_v57 = vpack.c.bf16 %v4626_v19, %v4623_v2  ;;  %v5109_v54 = vadd.f32 %v5108_v10, %v4626_v19  ;;  %v5177_v51 = vadd.f32 %v5176_v55, %v5146_v16  ;;  %v5147_v20 = vmul.f32 %v4626_v19, %v4626_v19 }
 0x26b   : > { %v5977_v25 = vpack.c.bf16 %v4324_v17, %v4323_v58  ;;  %v4322_v49 = vadd.f32 %v4257_v3, %v8727_v44  ;;  %v6828_v4 = vpop.f32.mrf.mxu1  ;;  %v4993_v18 = vadd.f32 %v4992_v7, %v4321_v11  ;;  %v5061_v8 = vadd.f32 %v5060_v59, %v5030_v1 }
 0x26c   : > { %v6776_v63 = vpop.f32.mrf.mxu0  ;;  %6106 = vst [vmem:[%s8746_s23 + $0x60] sm:$0xff] %v6062_v57   ;;  %v5110_v46 = vadd.f32 %v6824_v24, %v5109_v54  ;;  %v5033_v43 = vmul.f32 %v4323_v58, %v4323_v58  ;;  %v5178_v44 = vadd.f32 %v5177_v51, %v5147_v20  ;;  %v5149_v37 = vmul.f32 %v6825_v40, %v6825_v40 }
 0x26d   : > { %6090 = vst [vmem:[%s8768_s9 + $0x58] sm:$0xff] %v5977_v25   ;;  %v5972_v28 = vpack.c.bf16 %v4322_v49, %v4321_v11  ;;  %v5032_v38 = vmul.f32 %v4322_v49, %v4322_v49  ;;  %v4639_v34 = vpop.f32.mrf.mxu1  ;;  %v5062_v33 = vadd.f32 %v5061_v8, %v5031_v36  ;;  %v4994_v23 = vadd.f32 %v4993_v18, %v4322_v49 }
 0x26e   : > { %v4270_v5 = vpop.f32.mrf.mxu0  ;;  %v5111_v6 = vadd.f32 %v6825_v40, %v5110_v46  ;;  %v5150_v0 = vmul.f32 %v4639_v34, %v4639_v34  ;;  %v5179_v53 = vadd.f32 %v5178_v44, %v5148_v29  ;;  %v5034_v24 = vmul.f32 %v4324_v17, %v4324_v17 }
 0x26f   : > { %6089 = vst [vmem:[%s8768_s9 + $0x50] sm:$0xff] %v5972_v28   ;;  %v4325_v56 = vadd.f32 %v4270_v5, %v8733_v31  ;;  %v6829_v61 = vpop.f32.mrf.mxu1  ;;  %v4995_v13 = vadd.f32 %v4994_v23, %v4323_v58  ;;  %v5063_v45 = vadd.f32 %v5062_v33, %v5032_v38  ;;  %v4327_v32 = vadd.f32 %v6776_v63, %v8730_v30 }
 0x270   : > { %v6777_v27 = vpop.f32.mrf.mxu0  ;;  %v6077_v2 = vpack.c.bf16 %v6829_v61, %v6828_v4  ;;  %v5112_v42 = vadd.f32 %v5111_v6, %v4639_v34  ;;  %v5180_v35 = vadd.f32 %v5179_v53, %v5149_v37  ;;  %v5152_v59 = vmul.f32 %v6828_v4, %v6828_v4 }
 0x271   : > { %v4328_v9 = vadd.f32 %v6777_v27, %v8736_v48  ;;  %v4642_v47 = vpop.f32.mrf.mxu1  ;;  %v5064_v22 = vadd.f32 %v5063_v45, %v5033_v43  ;;  %v4996_v31 = vadd.f32 %v4995_v13, %v4324_v17  ;;  %v5035_v16 = vmul.f32 %v4325_v56, %v4325_v56 }
 0x272   : > { %v4273_v11 = vpop.f32.mrf.mxu0  ;;  %6109 = vst [vmem:[%s8746_s23 + $0x78] sm:$0xff] %v6077_v2   ;;  %v6072_v15 = vpack.c.bf16 %v4642_v47, %v4639_v34  ;;  %v5113_v62 = vadd.f32 %v5112_v42, %v4642_v47  ;;  %v5181_v48 = vadd.f32 %v5180_v35, %v5150_v0  ;;  %v5151_v50 = vmul.f32 %v4642_v47, %v4642_v47 }
 0x273   : > { %v5987_v40 = vpack.c.bf16 %v4328_v9, %v4327_v32  ;;  %v4326_v26 = vadd.f32 %v4273_v11, %v8739_v41  ;;  %v4997_v60 = vadd.f32 %v4996_v31, %v4325_v56  ;;  %v5065_v30 = vadd.f32 %v5064_v22, %v5034_v24 }
 0x274   : > { %v6780_v39 = vpop.f32.mrf.mxu0  ;;  %6108 = vst [vmem:[%s8746_s23 + $0x70] sm:$0xff] %v6072_v15   ;;  %v5114_v17 = vadd.f32 %v6828_v4, %v5113_v62  ;;  %v5182_v3 = vadd.f32 %v5181_v48, %v5151_v50  ;;  %v5037_v55 = vmul.f32 %v4327_v32, %v4327_v32  ;;  %v5153_v41 = vmul.f32 %v6829_v61, %v6829_v61 }
 0x275   : > { %6092 = vst [vmem:[%s8768_s9 + $0x68] sm:$0xff] %v5987_v40   ;;  %v5982_v1 = vpack.c.bf16 %v4326_v26, %v4325_v56  ;;  %v5036_v58 = vmul.f32 %v4326_v26, %v4326_v26  ;;  %v5066_v10 = vadd.f32 %v5065_v30, %v5035_v16  ;;  %v4998_v19 = vadd.f32 %v4997_v60, %v4326_v26 }
 0x276   : > { %v4286_v7 = vpop.f32.mrf.mxu0  ;;  %v5115_v57 = vadd.f32 %v6829_v61, %v5114_v17  ;;  %v5183_v18 = vadd.f32 %v5182_v3, %v5152_v59  ;;  %v4331_v8 = vadd.f32 %v6780_v39, %v8748_v12  ;;  %v5038_v20 = vmul.f32 %v4328_v9, %v4328_v9 }
 0x277   : > { %6091 = vst [vmem:[%s8768_s9 + $0x60] sm:$0xff] %v5982_v1   ;;  %v4999_v36 = vadd.f32 %v4998_v19, %v4327_v32  ;;  %v5067_v25 = vadd.f32 %v5066_v10, %v5036_v58  ;;  %v4329_v49 = vadd.f32 %v4286_v7, %v8751_v14 }
 0x278   : > { %v6781_v54 = vpop.f32.mrf.mxu0  ;;  %v5116_v51 = vrot.slane %v5115_v57, 4  ;;  %v5184_v29 = vadd.f32 %v5183_v18, %v5153_v41  ;;  %v5041_v61 = vmul.f32 %v4331_v8, %v4331_v8 }
 0x279   : > { %v4332_v63 = vadd.f32 %v6781_v54, %v8755_v52  ;;  %v5068_v4 = vadd.f32 %v5067_v25, %v5037_v55  ;;  %v5000_v28 = vadd.f32 %v4999_v36, %v4328_v9  ;;  %v5039_v14 = vmul.f32 %v4329_v49, %v4329_v49 }
 0x27a   : > { %v4289_v38 = vpop.f32.mrf.mxu0  ;;  %v5117_v43 = vadd.f32 %v5116_v51, %v5115_v57  ;;  %v5185_v5 = vrot.slane %v5184_v29, 4 }
 0x27b   : > { %v5997_v46 = vpack.c.bf16 %v4332_v63, %v4331_v8  ;;  %v4330_v34 = vadd.f32 %v4289_v38, %v8759_v21  ;;  %v5001_v33 = vadd.f32 %v5000_v28, %v4329_v49  ;;  %v5069_v23 = vadd.f32 %v5068_v4, %v5038_v20 }
 0x27c   : > { %v5118_v56 = vrot.slane %v5117_v43, 2  ;;  %v5186_v6 = vadd.f32 %v5185_v5, %v5184_v29  ;;  %v5042_v21 = vmul.f32 %v4332_v63, %v4332_v63 }
 0x27d   : > { %6094 = vst [vmem:[%s8768_s9 + $0x78] sm:$0xff] %v5997_v46   ;;  %v5992_v44 = vpack.c.bf16 %v4330_v34, %v4329_v49  ;;  %v5040_v12 = vmul.f32 %v4330_v34, %v4330_v34  ;;  %v5070_v52 = vadd.f32 %v5069_v23, %v5039_v14  ;;  %v5002_v37 = vadd.f32 %v5001_v33, %v4330_v34 }
 0x27e   : > { %v5119_v0 = vadd.f32 %v5118_v56, %v5117_v43  ;;  %v5187_v27 = vrot.slane %v5186_v6, 2 }
 0x27f   : > { %6093 = vst [vmem:[%s8768_s9 + $0x70] sm:$0xff] %v5992_v44   ;;  %v5003_v13 = vadd.f32 %v5002_v37, %v4331_v8  ;;  %v5071_v45 = vadd.f32 %v5070_v52, %v5040_v12 }
 0x280   : > { %v5120_v24 = vrot.slane %v5119_v0, 1  ;;  %v5188_v32 = vadd.f32 %v5187_v27, %v5186_v6 }
 0x281   : > { %v5004_v53 = vadd.f32 %v5003_v13, %v4332_v63  ;;  %v5072_v2 = vadd.f32 %v5071_v45, %v5041_v61 }
 0x282   : > { %v5189_v47 = vrot.slane %v5188_v32, 1  ;;  %v5121_v11 = vadd.f32 %v5120_v24, %v5119_v0 }
 0x283   : > { %v5005_v9 = vrot.slane %v5004_v53, 4  ;;  %v5073_v42 = vadd.f32 %v5072_v2, %v5042_v21 }
 0x284   : > { %v5190_v35 = vadd.f32 %v5189_v47, %v5188_v32 }
 0x285   : > { %v5006_v22 = vadd.f32 %v5005_v9, %v5004_v53  ;;  %v5074_v31 = vrot.slane %v5073_v42, 4 }
 0x286   : > { %v5191_v40 = vsel %vm573_vm0, %v5121_v11, %v5190_v35 }
 0x287   : > { %v5007_v15 = vrot.slane %v5006_v22, 2  ;;  %v5075_v16 = vadd.f32 %v5074_v31, %v5073_v42  ;;  %v5192_v26 = vsel %vm5082_vm15, %v5191_v40, 0.0 }
 0x288   : > { %5193 = vst [vmem:[%s535_s12] sm:$0xff] %v5192_v26 }
 0x289   : > { %v5008_v62 = vadd.f32 %v5007_v15, %v5006_v22  ;;  %v5076_v60 = vrot.slane %v5075_v16, 2 }
 0x28b   : > { %v5009_v30 = vrot.slane %v5008_v62, 1  ;;  %v5077_v39 = vadd.f32 %v5076_v60, %v5075_v16 }
 0x28d   : > { %v5078_v48 = vrot.slane %v5077_v39, 1  ;;  %v5010_v50 = vadd.f32 %v5009_v30, %v5008_v62 }
 0x28f   : > { %v5079_v1 = vadd.f32 %v5078_v48, %v5077_v39 }
 0x291   : > { %v5081_v58 = vsel %vm573_vm0, %v5010_v50, %v5079_v1 }
 0x292   : > { %v5083_v17 = vsel %vm5082_vm15, %v5081_v58, 0.0 }
 0x293   : > { %5084 = vst [vmem:[%s528_s14] sm:$0xff] %v5083_v17 }
 0x294 PF: > { %s19_s29 = sadd.s32 1, %s7049_s29   ;;  %s9007_s27 = smov %s7045_s28 }
 0x295   : > { %p16_p5 = scmp.ge.s32.totalorder %s19_s29, 4   ;;  %s9008_s28 = smov %s9010_s30 }
 0x297   :  { %18 = sbr.rel (!%p16_p5) target bundleno = 2 (0x2), region = 126 }

</bundles_post_ra>
